<compile_context>
chip_gen: v7x
topology: tpu7x:2x2x1
jax: 0.10.0
libtpu: 0.0.40
codegen_flags: <defaults>
</compile_context>

<pallas_src>
from functools import partial

import jax
import jax.numpy as jnp
from jax.experimental import pallas as pl
from jax.experimental.pallas import tpu as pltpu

# RReLU eval-mode slope: (lower + upper) / 2 with PyTorch defaults 1/8, 1/3.
# TODO(synk): RReLU training-mode per-element random slopes are not modeled.
LEAKY_SLOPE = (1.0 / 8.0 + 1.0 / 3.0) / 2.0
BN_EPS = 1e-5
LANE = 128
MATMUL_DTYPE = jnp.bfloat16   # set to jnp.float32 for bit-closer-to-torch math


def _pair(v):
    return (v, v) if isinstance(v, int) else (int(v[0]), int(v[1]))


def _cdiv(a, b):
    return -(-a // b)


# ----------------------------------------------------------------------------
# Static per-layer plan (pure Python, derived once from the config)
# ----------------------------------------------------------------------------
def _axis_geometry(n_in, k, s, p):
    """Polyphase geometry along one spatial axis of a ConvTranspose."""
    n_out = (n_in - 1) * s - 2 * p + k
    taps, deltas, nphase = [], [], []
    for r in range(s):
        kap = (r + p) % s
        taps.append(len(range(kap, k, s)))       # contributing taps this phase
        deltas.append((r + p) // s)
        nphase.append(len(range(r, n_out, s)))   # output positions this phase
    if len(set(taps)) != 1 or len(set(nphase)) != 1:
        raise NotImplementedError(
            "non-uniform polyphase (kernel/output size not divisible by "
            "stride) is not supported")
    m, n_pix = taps[0], nphase[0]
    pad_lo = max(m - 1 - d for d in deltas)
    start = [pad_lo + d - (m - 1) for d in deltas]   # first padded row read
    return n_out, m, n_pix, pad_lo, start


def make_layer_plan(hin, win, ci, co, ksize, stride, padding, target_lanes=1024):
    kh, kw = _pair(ksize)
    sh, sw = _pair(stride)
    ph, pw = _pair(padding)

    ho, mh, hop, pad_t, a0 = _axis_geometry(hin, kh, sh, ph)
    wo, mw, wop, pad_l, b0 = _axis_geometry(win, kw, sw, pw)

    # Pad row width to a lane multiple: im2col taps become pure lane shifts of
    # the flattened (row * wr + col) axis, and stores are lane-dense.
    need_w = max(pad_l + win, max(b0) + (mw - 1) + wop)
    wr = LANE * _cdiv(need_w, LANE)
    pad_r = wr - pad_l - win

    th = max(1, min(hop, target_lanes // wr))   # phase-output rows per step
    ns = _cdiv(hop, th)                         # row strips (grid axis 1)
    span = th + max(a0) + mh                    # input rows one strip touches
    hp = ns * th + max(a0) + mh                 # padded input height
    pad_b = hp - pad_t - hin
    assert pad_b >= 0

    tap_offsets = []
    for rh in range(sh):
        for rw in range(sw):
            tap_offsets.append(tuple(
                (a0[rh] + m) * wr + (b0[rw] + n)
                for m in range(mh) for n in range(mw)))

    return dict(
        ci=ci, co=co, co_pad=max(8, _cdiv(co, 8) * 8),
        ho=ho, wo=wo, hop=hop, wop=wop,
        stride=(sh, sw), pad_hw=(ph, pw), mh=mh, mw=mw, r=mh * mw * ci,
        n_ph=sh * sw, wr=wr, hp=hp, th=th, ns=ns, span=span,
        pad_t=pad_t, pad_b=pad_b, pad_l=pad_l, pad_r=pad_r,
        tap_offsets=tuple(tap_offsets),
    )


def make_plans(cfg):
    c0, h0, w0 = cfg["deconv_input_shape"]
    plans = []
    ci, hin, win = c0, h0, w0
    for i, co in enumerate(cfg["num_filters_list"]):
        plan = make_layer_plan(hin, win, ci, co, cfg["filter_size_list"][i],
                               cfg["stride_list"][i], cfg["padding_list"][i])
        plans.append(plan)
        ci, hin, win = co, plan["ho"], plan["wo"]
    return plans


# ----------------------------------------------------------------------------
# Pallas kernel: one ConvTranspose2d layer (+ fused bias/BN/RReLU epilogue)
# ----------------------------------------------------------------------------
def _make_deconv_kernel(plan, apply_act, out_dtype):
    th, wr, span = plan["th"], plan["wr"], plan["span"]
    tile = th * wr
    tap_offsets = plan["tap_offsets"]

    def kernel(x_ref, w_ref, scale_ref, shift_ref, o_ref):
        # x_ref:       (1, Ci, Hp*Wr)     padded input, rows flattened on lanes
        # w_ref:       (n_ph, Co_pad, R)  per-phase weight matrices (bf16)
        # scale/shift: (Co_pad, 1)        folded bias + BatchNorm (f32)
        # o_ref:       (1, n_ph, Co_pad, th*Wr)
        strip = pl.program_id(1)
        start = pl.multiple_of(strip * tile, LANE)
        base = x_ref[0, :, pl.ds(start, span * wr)]        # [Ci, span*wr]
        scale = scale_ref[...]
        shift = shift_ref[...]
        for phase in range(plan["n_ph"]):
            # Build the [R, tile] patch matrix in VMEM: each tap is a static
            # lane-shifted window of `base`, concatenated along sublanes.
            patches = jnp.concatenate(
                [base[:, off:off + tile] for off in tap_offsets[phase]],
                axis=0)
            y = jnp.dot(w_ref[phase], patches,
                        preferred_element_type=jnp.float32)  # [Co_pad, tile]
            y = y * scale + shift            # bias + BatchNorm2d (eval), fused
            if apply_act:
                y = jnp.where(y >= 0.0, y, LEAKY_SLOPE * y)  # RReLU (eval)
            o_ref[0, phase] = y.astype(out_dtype)

    return kernel


def deconv_layer(x_nchw, w_ph, scale, shift, plan, apply_act, out_dtype):
    b = x_nchw.shape[0]
    ci, co, co_pad = plan["ci"], plan["co"], plan["co_pad"]
    hpw = plan["hp"] * plan["wr"]
    tile = plan["th"] * plan["wr"]

    xp = jnp.pad(x_nchw.astype(MATMUL_DTYPE),
                 ((0, 0), (0, 0),
                  (plan["pad_t"], plan["pad_b"]),
                  (plan["pad_l"], plan["pad_r"])))
    xflat = xp.reshape(b, ci, hpw)

    out = pl.pallas_call(
        _make_deconv_kernel(plan, apply_act, out_dtype),
        out_shape=jax.ShapeDtypeStruct(
            (b, plan["n_ph"], co_pad, plan["ns"] * tile), out_dtype),
        grid=(b, plan["ns"]),
        in_specs=[
            pl.BlockSpec((1, ci, hpw), lambda i, j: (i, 0, 0)),
            pl.BlockSpec((plan["n_ph"], co_pad, plan["r"]),
                         lambda i, j: (0, 0, 0)),
            pl.BlockSpec((co_pad, 1), lambda i, j: (0, 0)),
            pl.BlockSpec((co_pad, 1), lambda i, j: (0, 0)),
        ],
        out_specs=pl.BlockSpec((1, plan["n_ph"], co_pad, tile),
                               lambda i, j: (i, 0, 0, j)),
        compiler_params=pltpu.CompilerParams(
            dimension_semantics=("parallel", "parallel"),
            vmem_limit_bytes=32 * 1024 * 1024,
        ),
    )(xflat, w_ph, scale, shift)

    # Drop lane/row padding and interleave the s*s phases (depth-to-space).
    # Arrays are tiny (<~1 MB); result is NCHW exactly like PyTorch.
    sh, sw = plan["stride"]
    out = out.reshape(b, sh, sw, co_pad, plan["ns"] * plan["th"], plan["wr"])
    out = out[:, :, :, :co, :plan["hop"], :plan["wop"]]
    out = jnp.transpose(out, (0, 3, 4, 1, 5, 2))
    return out.reshape(b, co, plan["ho"], plan["wo"])


# ----------------------------------------------------------------------------
# One-time parameter preprocessing (hoisted out of the forward path)
# ----------------------------------------------------------------------------
def _phase_weights(w_torch, plan):
    # PyTorch ConvTranspose2d weight layout: [Ci, Co, Kh, Kw].
    ci, co, kh, kw = w_torch.shape
    sh, sw = plan["stride"]
    ph, pw = plan["pad_hw"]
    mats = []
    for rh in range(sh):
        kh0 = (rh + ph) % sh
        for rw in range(sw):
            kw0 = (rw + pw) % sw
            sub = w_torch[:, :, kh0::sh, kw0::sw]     # phase taps [Ci,Co,MH,MW]
            sub = sub[:, :, ::-1, ::-1]               # correlation form (flip)
            sub = jnp.transpose(sub, (2, 3, 0, 1))    # [MH, MW, Ci, Co]
            mats.append(sub.reshape(-1, co).T)        # [Co, R]
    w = jnp.stack(mats, axis=0)                       # [n_ph, Co, R]
    return jnp.pad(w, ((0, 0), (0, plan["co_pad"] - co), (0, 0))
                   ).astype(MATMUL_DTYPE)


def preprocess_params(params, cfg, plans):
    n_layers = len(cfg["num_filters_list"])
    layers = []
    for i, plan in enumerate(plans):
        w = params[f"conv{i}_w"]
        bias = params[f"conv{i}_b"]
        if i != n_layers - 1:
            # Fold eval-mode BatchNorm2d into per-channel scale/shift.
            inv = params[f"bn{i}_gamma"] / jnp.sqrt(params[f"bn{i}_var"] + BN_EPS)
            scale = inv
            shift = (bias - params[f"bn{i}_mean"]) * inv + params[f"bn{i}_beta"]
        else:
            scale = jnp.ones_like(bias)
            shift = bias
        pad = plan["co_pad"] - plan["co"]
        layers.append(dict(
            w=_phase_weights(w, plan),
            scale=jnp.pad(scale, (0, pad)).reshape(-1, 1).astype(jnp.float32),
            shift=jnp.pad(shift, (0, pad)).reshape(-1, 1).astype(jnp.float32),
        ))
    return dict(lin_w=params["lin_w"], lin_b=params["lin_b"], layers=layers)


# ----------------------------------------------------------------------------
# Full ConvDecoder forward
# ----------------------------------------------------------------------------
def conv_decoder_forward(x, proc, *, plans, deconv_input_shape):
    c0, h0, w0 = deconv_input_shape
    # Tiny Linear ([2,32] @ [32,240]): a dedicated Pallas call is pure launch
    # overhead (perf review) -> plain XLA dot.
    h = jnp.dot(x, proc["lin_w"]) + proc["lin_b"]
    h = h.reshape(-1, c0, h0, w0)                 # NCHW, like torch.reshape
    n_layers = len(plans)
    for i, plan in enumerate(plans):
        last = i == n_layers - 1
        layer = proc["layers"][i]
        h = deconv_layer(h, layer["w"], layer["scale"], layer["shift"], plan,
                         apply_act=not last,
                         out_dtype=jnp.float32 if last else MATMUL_DTYPE)
    return h


# ----------------------------------------------------------------------------
# Deterministic synthetic parameters
# ----------------------------------------------------------------------------
def init_params(key, cfg):
    c0, h0, w0 = cfg["deconv_input_shape"]
    d = c0 * h0 * w0
    length = cfg["input_length"]
    params = {}
    key, k1, k2 = jax.random.split(key, 3)
    params["lin_w"] = 0.1 * jax.random.normal(k1, (length, d), jnp.float32)
    params["lin_b"] = 0.1 * jax.random.normal(k2, (d,), jnp.float32)

    in_ch = c0
    for i, (co, (kh, kw)) in enumerate(
            zip(cfg["num_filters_list"], cfg["filter_size_list"])):
        key, kw_, kb_, kg_, kbeta_ = jax.random.split(key, 5)
        params[f"conv{i}_w"] = 0.05 * jax.random.normal(
            kw_, (in_ch, co, kh, kw), jnp.float32)
        params[f"conv{i}_b"] = 0.05 * jax.random.normal(kb_, (co,), jnp.float32)
        if i != len(cfg["num_filters_list"]) - 1:
            params[f"bn{i}_gamma"] = 1.0 + 0.1 * jax.random.normal(
                kg_, (co,), jnp.float32)
            params[f"bn{i}_beta"] = 0.1 * jax.random.normal(
                kbeta_, (co,), jnp.float32)
            params[f"bn{i}_mean"] = jnp.zeros((co,), jnp.float32)
            params[f"bn{i}_var"] = jnp.ones((co,), jnp.float32)
        in_ch = co
    return params


if __name__ == "__main__":
    # Small configuration consistent with the module's constructor signature.
    cfg = {
        "input_length": 32,
        "deconv_input_shape": [8, 6, 5],
        "num_filters_list": [8, 8, 16, 3],
        "filter_size_list": [(4, 4), (6, 6), (6, 6), (8, 8)],
        "stride_list": [2, 2, 2, 2],
        "padding_list": [(0, 0), (1, 1), (1, 1), (0, 1)],
    }
    batch = 2

    key = jax.random.PRNGKey(0)
    key, kx = jax.random.split(key)
    x = jax.random.normal(kx, (batch, cfg["input_length"]), jnp.float32)
    params = init_params(key, cfg)

    plans = make_plans(cfg)                       # static geometry, once
    proc = preprocess_params(params, cfg, plans)  # weight flip/BN fold, once

    fwd = jax.jit(partial(conv_decoder_forward, plans=plans,
                          deconv_input_shape=tuple(cfg["deconv_input_shape"])))
    out = jax.block_until_ready(fwd(x, proc))

    # expected output shape: [B, 3, 130, 112] for this config
    assert out.shape == (batch, 3, 130, 112), out.shape
    assert bool(jnp.all(jnp.isfinite(out)))
    print("KERNEL_OK")
</pallas_src>

<mosaic_0001>
module attributes {stable_mosaic.version = 11 : i64} {
  func.func @kernel(%arg0: i32, %arg1: i32, %arg2: memref<1x8x1152xbf16, #tpu.memory_space<vmem>>, %arg3: memref<4x8x32xbf16, #tpu.memory_space<vmem>>, %arg4: memref<8x1xf32, #tpu.memory_space<vmem>>, %arg5: memref<8x1xf32, #tpu.memory_space<vmem>>, %arg6: memref<1x4x8x896xbf16, #tpu.memory_space<vmem>>) attributes {dimension_semantics = [#tpu.dimension_semantics<parallel>, #tpu.dimension_semantics<parallel>], iteration_bounds = array<i64: 2, 1>, scalar_prefetch = 0 : i64, scratch_operands = 0 : i64, tpu.core_type = #tpu.core_type<tc>, window_params = [{transform_indices = @transform_0, window_bounds = array<i64: 1, 8, 1152>}, {pipeline_mode = #tpu.pipeline_mode<synchronous>, transform_indices = @transform_1, window_bounds = array<i64: 4, 8, 32>}, {pipeline_mode = #tpu.pipeline_mode<synchronous>, transform_indices = @transform_2, window_bounds = array<i64: 8, 1>}, {pipeline_mode = #tpu.pipeline_mode<synchronous>, transform_indices = @transform_3, window_bounds = array<i64: 8, 1>}, {transform_indices = @transform_4, window_bounds = array<i64: 1, 4, 8, 896>}]} {
    %c896_i32 = arith.constant 896 : i32
    %0 = arith.muli %arg1, %c896_i32 : i32
    %1 = tpu.assume_multiple %0, 128 : i32
    %c0 = arith.constant 0 : index
    %c0_0 = arith.constant 0 : index
    %2 = arith.index_cast %1 : i32 to index
    %3 = vector.load %arg2[%c0, %c0_0, %2] : memref<1x8x1152xbf16, #tpu.memory_space<vmem>>, vector<1x8x1152xbf16>
    %4 = vector.shape_cast %3 : vector<1x8x1152xbf16> to vector<8x1152xbf16>
    %c0_1 = arith.constant 0 : index
    %c0_2 = arith.constant 0 : index
    %5 = vector.load %arg4[%c0_1, %c0_2] : memref<8x1xf32, #tpu.memory_space<vmem>>, vector<8x1xf32>
    %c0_3 = arith.constant 0 : index
    %c0_4 = arith.constant 0 : index
    %6 = vector.load %arg5[%c0_3, %c0_4] : memref<8x1xf32, #tpu.memory_space<vmem>>, vector<8x1xf32>
    %7 = vector.extract_strided_slice %4 {offsets = [0, 0], sizes = [8, 896], strides = [1, 1]} : vector<8x1152xbf16> to vector<8x896xbf16>
    %8 = vector.extract_strided_slice %4 {offsets = [0, 1], sizes = [8, 896], strides = [1, 1]} : vector<8x1152xbf16> to vector<8x896xbf16>
    %9 = vector.extract_strided_slice %4 {offsets = [0, 128], sizes = [8, 896], strides = [1, 1]} : vector<8x1152xbf16> to vector<8x896xbf16>
    %10 = vector.extract_strided_slice %4 {offsets = [0, 129], sizes = [8, 896], strides = [1, 1]} : vector<8x1152xbf16> to vector<8x896xbf16>
    %11 = tpu.concatenate %7, %8, %9, %10 in 0 : vector<8x896xbf16>, vector<8x896xbf16>, vector<8x896xbf16>, vector<8x896xbf16> -> vector<32x896xbf16>
    %c0_5 = arith.constant 0 : index
    %c0_6 = arith.constant 0 : index
    %c0_7 = arith.constant 0 : index
    %12 = vector.load %arg3[%c0_5, %c0_6, %c0_7] : memref<4x8x32xbf16, #tpu.memory_space<vmem>>, vector<1x8x32xbf16>
    %13 = vector.shape_cast %12 : vector<1x8x32xbf16> to vector<8x32xbf16>
    %cst = arith.constant dense<0.000000e+00> : vector<8x896xf32>
    %14 = tpu.matmul %13, %11, %cst {dimension_numbers = #tpu.dot_dimension_numbers<[1], [0], [0], [1], [0, 0, 1, 1], [], []>} : vector<8x32xbf16>, vector<32x896xbf16>, vector<8x896xf32> -> vector<8x896xf32>
    %15 = vector.broadcast %5 : vector<8x1xf32> to vector<8x896xf32>
    %16 = arith.mulf %14, %15 : vector<8x896xf32>
    %17 = vector.broadcast %6 : vector<8x1xf32> to vector<8x896xf32>
    %18 = arith.addf %16, %17 : vector<8x896xf32>
    %cst_8 = arith.constant 0.000000e+00 : f32
    %19 = vector.broadcast %cst_8 : f32 to vector<8x896xf32>
    %20 = arith.cmpf oge, %18, %19 : vector<8x896xf32>
    %cst_9 = arith.constant 0.229166672 : f32
    %21 = vector.broadcast %cst_9 : f32 to vector<8x896xf32>
    %22 = arith.mulf %21, %18 : vector<8x896xf32>
    %23 = arith.select %20, %18, %22 : vector<8x896xi1>, vector<8x896xf32>
    %24 = arith.truncf %23 : vector<8x896xf32> to vector<8x896xbf16>
    %c0_10 = arith.constant 0 : index
    %c0_11 = arith.constant 0 : index
    %c0_12 = arith.constant 0 : index
    %c0_13 = arith.constant 0 : index
    %25 = vector.load %arg6[%c0_10, %c0_11, %c0_12, %c0_13] : memref<1x4x8x896xbf16, #tpu.memory_space<vmem>>, vector<1x1x8x896xbf16>
    %26 = vector.shape_cast %25 : vector<1x1x8x896xbf16> to vector<8x896xbf16>
    %27 = vector.shape_cast %24 : vector<8x896xbf16> to vector<1x1x8x896xbf16>
    tpu.vector_store %arg6[%c0_10, %c0_11, %c0_12, %c0_13], %27 {strides = array<i32>} : memref<1x4x8x896xbf16, #tpu.memory_space<vmem>>, vector<1x1x8x896xbf16>,
    %28 = vector.extract_strided_slice %4 {offsets = [0, 0], sizes = [8, 896], strides = [1, 1]} : vector<8x1152xbf16> to vector<8x896xbf16>
    %29 = vector.extract_strided_slice %4 {offsets = [0, 1], sizes = [8, 896], strides = [1, 1]} : vector<8x1152xbf16> to vector<8x896xbf16>
    %30 = vector.extract_strided_slice %4 {offsets = [0, 128], sizes = [8, 896], strides = [1, 1]} : vector<8x1152xbf16> to vector<8x896xbf16>
    %31 = vector.extract_strided_slice %4 {offsets = [0, 129], sizes = [8, 896], strides = [1, 1]} : vector<8x1152xbf16> to vector<8x896xbf16>
    %32 = tpu.concatenate %28, %29, %30, %31 in 0 : vector<8x896xbf16>, vector<8x896xbf16>, vector<8x896xbf16>, vector<8x896xbf16> -> vector<32x896xbf16>
    %c1 = arith.constant 1 : index
    %c0_14 = arith.constant 0 : index
    %c0_15 = arith.constant 0 : index
    %33 = vector.load %arg3[%c1, %c0_14, %c0_15] : memref<4x8x32xbf16, #tpu.memory_space<vmem>>, vector<1x8x32xbf16>
    %34 = vector.shape_cast %33 : vector<1x8x32xbf16> to vector<8x32xbf16>
    %cst_16 = arith.constant dense<0.000000e+00> : vector<8x896xf32>
    %35 = tpu.matmul %34, %32, %cst_16 {dimension_numbers = #tpu.dot_dimension_numbers<[1], [0], [0], [1], [0, 0, 1, 1], [], []>} : vector<8x32xbf16>, vector<32x896xbf16>, vector<8x896xf32> -> vector<8x896xf32>
    %36 = vector.broadcast %5 : vector<8x1xf32> to vector<8x896xf32>
    %37 = arith.mulf %35, %36 : vector<8x896xf32>
    %38 = vector.broadcast %6 : vector<8x1xf32> to vector<8x896xf32>
    %39 = arith.addf %37, %38 : vector<8x896xf32>
    %cst_17 = arith.constant 0.000000e+00 : f32
    %40 = vector.broadcast %cst_17 : f32 to vector<8x896xf32>
    %41 = arith.cmpf oge, %39, %40 : vector<8x896xf32>
    %cst_18 = arith.constant 0.229166672 : f32
    %42 = vector.broadcast %cst_18 : f32 to vector<8x896xf32>
    %43 = arith.mulf %42, %39 : vector<8x896xf32>
    %44 = arith.select %41, %39, %43 : vector<8x896xi1>, vector<8x896xf32>
    %45 = arith.truncf %44 : vector<8x896xf32> to vector<8x896xbf16>
    %c0_19 = arith.constant 0 : index
    %c1_20 = arith.constant 1 : index
    %c0_21 = arith.constant 0 : index
    %c0_22 = arith.constant 0 : index
    %46 = vector.load %arg6[%c0_19, %c1_20, %c0_21, %c0_22] : memref<1x4x8x896xbf16, #tpu.memory_space<vmem>>, vector<1x1x8x896xbf16>
    %47 = vector.shape_cast %46 : vector<1x1x8x896xbf16> to vector<8x896xbf16>
    %48 = vector.shape_cast %45 : vector<8x896xbf16> to vector<1x1x8x896xbf16>
    tpu.vector_store %arg6[%c0_19, %c1_20, %c0_21, %c0_22], %48 {strides = array<i32>} : memref<1x4x8x896xbf16, #tpu.memory_space<vmem>>, vector<1x1x8x896xbf16>,
    %49 = vector.extract_strided_slice %4 {offsets = [0, 0], sizes = [8, 896], strides = [1, 1]} : vector<8x1152xbf16> to vector<8x896xbf16>
    %50 = vector.extract_strided_slice %4 {offsets = [0, 1], sizes = [8, 896], strides = [1, 1]} : vector<8x1152xbf16> to vector<8x896xbf16>
    %51 = vector.extract_strided_slice %4 {offsets = [0, 128], sizes = [8, 896], strides = [1, 1]} : vector<8x1152xbf16> to vector<8x896xbf16>
    %52 = vector.extract_strided_slice %4 {offsets = [0, 129], sizes = [8, 896], strides = [1, 1]} : vector<8x1152xbf16> to vector<8x896xbf16>
    %53 = tpu.concatenate %49, %50, %51, %52 in 0 : vector<8x896xbf16>, vector<8x896xbf16>, vector<8x896xbf16>, vector<8x896xbf16> -> vector<32x896xbf16>
    %c2 = arith.constant 2 : index
    %c0_23 = arith.constant 0 : index
    %c0_24 = arith.constant 0 : index
    %54 = vector.load %arg3[%c2, %c0_23, %c0_24] : memref<4x8x32xbf16, #tpu.memory_space<vmem>>, vector<1x8x32xbf16>
    %55 = vector.shape_cast %54 : vector<1x8x32xbf16> to vector<8x32xbf16>
    %cst_25 = arith.constant dense<0.000000e+00> : vector<8x896xf32>
    %56 = tpu.matmul %55, %53, %cst_25 {dimension_numbers = #tpu.dot_dimension_numbers<[1], [0], [0], [1], [0, 0, 1, 1], [], []>} : vector<8x32xbf16>, vector<32x896xbf16>, vector<8x896xf32> -> vector<8x896xf32>
    %57 = vector.broadcast %5 : vector<8x1xf32> to vector<8x896xf32>
    %58 = arith.mulf %56, %57 : vector<8x896xf32>
    %59 = vector.broadcast %6 : vector<8x1xf32> to vector<8x896xf32>
    %60 = arith.addf %58, %59 : vector<8x896xf32>
    %cst_26 = arith.constant 0.000000e+00 : f32
    %61 = vector.broadcast %cst_26 : f32 to vector<8x896xf32>
    %62 = arith.cmpf oge, %60, %61 : vector<8x896xf32>
    %cst_27 = arith.constant 0.229166672 : f32
    %63 = vector.broadcast %cst_27 : f32 to vector<8x896xf32>
    %64 = arith.mulf %63, %60 : vector<8x896xf32>
    %65 = arith.select %62, %60, %64 : vector<8x896xi1>, vector<8x896xf32>
    %66 = arith.truncf %65 : vector<8x896xf32> to vector<8x896xbf16>
    %c0_28 = arith.constant 0 : index
    %c2_29 = arith.constant 2 : index
    %c0_30 = arith.constant 0 : index
    %c0_31 = arith.constant 0 : index
    %67 = vector.load %arg6[%c0_28, %c2_29, %c0_30, %c0_31] : memref<1x4x8x896xbf16, #tpu.memory_space<vmem>>, vector<1x1x8x896xbf16>
    %68 = vector.shape_cast %67 : vector<1x1x8x896xbf16> to vector<8x896xbf16>
    %69 = vector.shape_cast %66 : vector<8x896xbf16> to vector<1x1x8x896xbf16>
    tpu.vector_store %arg6[%c0_28, %c2_29, %c0_30, %c0_31], %69 {strides = array<i32>} : memref<1x4x8x896xbf16, #tpu.memory_space<vmem>>, vector<1x1x8x896xbf16>,
    %70 = vector.extract_strided_slice %4 {offsets = [0, 0], sizes = [8, 896], strides = [1, 1]} : vector<8x1152xbf16> to vector<8x896xbf16>
    %71 = vector.extract_strided_slice %4 {offsets = [0, 1], sizes = [8, 896], strides = [1, 1]} : vector<8x1152xbf16> to vector<8x896xbf16>
    %72 = vector.extract_strided_slice %4 {offsets = [0, 128], sizes = [8, 896], strides = [1, 1]} : vector<8x1152xbf16> to vector<8x896xbf16>
    %73 = vector.extract_strided_slice %4 {offsets = [0, 129], sizes = [8, 896], strides = [1, 1]} : vector<8x1152xbf16> to vector<8x896xbf16>
    %74 = tpu.concatenate %70, %71, %72, %73 in 0 : vector<8x896xbf16>, vector<8x896xbf16>, vector<8x896xbf16>, vector<8x896xbf16> -> vector<32x896xbf16>
    %c3 = arith.constant 3 : index
    %c0_32 = arith.constant 0 : index
    %c0_33 = arith.constant 0 : index
    %75 = vector.load %arg3[%c3, %c0_32, %c0_33] : memref<4x8x32xbf16, #tpu.memory_space<vmem>>, vector<1x8x32xbf16>
    %76 = vector.shape_cast %75 : vector<1x8x32xbf16> to vector<8x32xbf16>
    %cst_34 = arith.constant dense<0.000000e+00> : vector<8x896xf32>
    %77 = tpu.matmul %76, %74, %cst_34 {dimension_numbers = #tpu.dot_dimension_numbers<[1], [0], [0], [1], [0, 0, 1, 1], [], []>} : vector<8x32xbf16>, vector<32x896xbf16>, vector<8x896xf32> -> vector<8x896xf32>
    %78 = vector.broadcast %5 : vector<8x1xf32> to vector<8x896xf32>
    %79 = arith.mulf %77, %78 : vector<8x896xf32>
    %80 = vector.broadcast %6 : vector<8x1xf32> to vector<8x896xf32>
    %81 = arith.addf %79, %80 : vector<8x896xf32>
    %cst_35 = arith.constant 0.000000e+00 : f32
    %82 = vector.broadcast %cst_35 : f32 to vector<8x896xf32>
    %83 = arith.cmpf oge, %81, %82 : vector<8x896xf32>
    %cst_36 = arith.constant 0.229166672 : f32
    %84 = vector.broadcast %cst_36 : f32 to vector<8x896xf32>
    %85 = arith.mulf %84, %81 : vector<8x896xf32>
    %86 = arith.select %83, %81, %85 : vector<8x896xi1>, vector<8x896xf32>
    %87 = arith.truncf %86 : vector<8x896xf32> to vector<8x896xbf16>
    %c0_37 = arith.constant 0 : index
    %c3_38 = arith.constant 3 : index
    %c0_39 = arith.constant 0 : index
    %c0_40 = arith.constant 0 : index
    %88 = vector.load %arg6[%c0_37, %c3_38, %c0_39, %c0_40] : memref<1x4x8x896xbf16, #tpu.memory_space<vmem>>, vector<1x1x8x896xbf16>
    %89 = vector.shape_cast %88 : vector<1x1x8x896xbf16> to vector<8x896xbf16>
    %90 = vector.shape_cast %87 : vector<8x896xbf16> to vector<1x1x8x896xbf16>
    tpu.vector_store %arg6[%c0_37, %c3_38, %c0_39, %c0_40], %90 {strides = array<i32>} : memref<1x4x8x896xbf16, #tpu.memory_space<vmem>>, vector<1x1x8x896xbf16>,
    return
  }
  func.func @transform_0(%arg0: i32, %arg1: i32) -> (i32, i32, i32) {
    %c0_i32 = arith.constant 0 : i32
    %c0_i32_0 = arith.constant 0 : i32
    %c0_i32_1 = arith.constant 0 : i32
    return %arg0, %c0_i32, %c0_i32_0 : i32, i32, i32
  }
  func.func @transform_1(%arg0: i32, %arg1: i32) -> (i32, i32, i32) {
    %c0_i32 = arith.constant 0 : i32
    %c0_i32_0 = arith.constant 0 : i32
    %c0_i32_1 = arith.constant 0 : i32
    %c0_i32_2 = arith.constant 0 : i32
    return %c0_i32, %c0_i32_0, %c0_i32_1 : i32, i32, i32
  }
  func.func @transform_2(%arg0: i32, %arg1: i32) -> (i32, i32) {
    %c0_i32 = arith.constant 0 : i32
    %c0_i32_0 = arith.constant 0 : i32
    %c0_i32_1 = arith.constant 0 : i32
    return %c0_i32, %c0_i32_0 : i32, i32
  }
  func.func @transform_3(%arg0: i32, %arg1: i32) -> (i32, i32) {
    %c0_i32 = arith.constant 0 : i32
    %c0_i32_0 = arith.constant 0 : i32
    %c0_i32_1 = arith.constant 0 : i32
    return %c0_i32, %c0_i32_0 : i32, i32
  }
  func.func @transform_4(%arg0: i32, %arg1: i32) -> (i32, i32, i32, i32) {
    %c0_i32 = arith.constant 0 : i32
    %c0_i32_0 = arith.constant 0 : i32
    %c0_i32_1 = arith.constant 0 : i32
    return %arg0, %c0_i32, %c0_i32_0, %arg1 : i32, i32, i32, i32
  }
}

module attributes {stable_mosaic.version = 11 : i64} {
  func.func @kernel(%arg0: i32, %arg1: i32, %arg2: memref<1x8x2560xbf16, #tpu.memory_space<vmem>>, %arg3: memref<4x8x72xbf16, #tpu.memory_space<vmem>>, %arg4: memref<8x1xf32, #tpu.memory_space<vmem>>, %arg5: memref<8x1xf32, #tpu.memory_space<vmem>>, %arg6: memref<1x4x8x1024xbf16, #tpu.memory_space<vmem>>) attributes {dimension_semantics = [#tpu.dimension_semantics<parallel>, #tpu.dimension_semantics<parallel>], iteration_bounds = array<i64: 2, 2>, scalar_prefetch = 0 : i64, scratch_operands = 0 : i64, tpu.core_type = #tpu.core_type<tc>, window_params = [{transform_indices = @transform_0, window_bounds = array<i64: 1, 8, 2560>}, {pipeline_mode = #tpu.pipeline_mode<synchronous>, transform_indices = @transform_1, window_bounds = array<i64: 4, 8, 72>}, {pipeline_mode = #tpu.pipeline_mode<synchronous>, transform_indices = @transform_2, window_bounds = array<i64: 8, 1>}, {pipeline_mode = #tpu.pipeline_mode<synchronous>, transform_indices = @transform_3, window_bounds = array<i64: 8, 1>}, {transform_indices = @transform_4, window_bounds = array<i64: 1, 4, 8, 1024>}]} {
    %c1024_i32 = arith.constant 1024 : i32
    %0 = arith.muli %arg1, %c1024_i32 : i32
    %1 = tpu.assume_multiple %0, 128 : i32
    %c0 = arith.constant 0 : index
    %c0_0 = arith.constant 0 : index
    %2 = arith.index_cast %1 : i32 to index
    %3 = vector.load %arg2[%c0, %c0_0, %2] : memref<1x8x2560xbf16, #tpu.memory_space<vmem>>, vector<1x8x1536xbf16>
    %4 = vector.shape_cast %3 : vector<1x8x1536xbf16> to vector<8x1536xbf16>
    %c0_1 = arith.constant 0 : index
    %c0_2 = arith.constant 0 : index
    %5 = vector.load %arg4[%c0_1, %c0_2] : memref<8x1xf32, #tpu.memory_space<vmem>>, vector<8x1xf32>
    %c0_3 = arith.constant 0 : index
    %c0_4 = arith.constant 0 : index
    %6 = vector.load %arg5[%c0_3, %c0_4] : memref<8x1xf32, #tpu.memory_space<vmem>>, vector<8x1xf32>
    %7 = vector.extract_strided_slice %4 {offsets = [0, 0], sizes = [8, 1024], strides = [1, 1]} : vector<8x1536xbf16> to vector<8x1024xbf16>
    %8 = vector.extract_strided_slice %4 {offsets = [0, 1], sizes = [8, 1024], strides = [1, 1]} : vector<8x1536xbf16> to vector<8x1024xbf16>
    %9 = vector.extract_strided_slice %4 {offsets = [0, 2], sizes = [8, 1024], strides = [1, 1]} : vector<8x1536xbf16> to vector<8x1024xbf16>
    %10 = vector.extract_strided_slice %4 {offsets = [0, 128], sizes = [8, 1024], strides = [1, 1]} : vector<8x1536xbf16> to vector<8x1024xbf16>
    %11 = vector.extract_strided_slice %4 {offsets = [0, 129], sizes = [8, 1024], strides = [1, 1]} : vector<8x1536xbf16> to vector<8x1024xbf16>
    %12 = vector.extract_strided_slice %4 {offsets = [0, 130], sizes = [8, 1024], strides = [1, 1]} : vector<8x1536xbf16> to vector<8x1024xbf16>
    %13 = vector.extract_strided_slice %4 {offsets = [0, 256], sizes = [8, 1024], strides = [1, 1]} : vector<8x1536xbf16> to vector<8x1024xbf16>
    %14 = vector.extract_strided_slice %4 {offsets = [0, 257], sizes = [8, 1024], strides = [1, 1]} : vector<8x1536xbf16> to vector<8x1024xbf16>
    %15 = vector.extract_strided_slice %4 {offsets = [0, 258], sizes = [8, 1024], strides = [1, 1]} : vector<8x1536xbf16> to vector<8x1024xbf16>
    %16 = tpu.concatenate %7, %8, %9, %10, %11, %12, %13, %14, %15 in 0 : vector<8x1024xbf16>, vector<8x1024xbf16>, vector<8x1024xbf16>, vector<8x1024xbf16>, vector<8x1024xbf16>, vector<8x1024xbf16>, vector<8x1024xbf16>, vector<8x1024xbf16>, vector<8x1024xbf16> -> vector<72x1024xbf16>
    %c0_5 = arith.constant 0 : index
    %c0_6 = arith.constant 0 : index
    %c0_7 = arith.constant 0 : index
    %17 = vector.load %arg3[%c0_5, %c0_6, %c0_7] : memref<4x8x72xbf16, #tpu.memory_space<vmem>>, vector<1x8x72xbf16>
    %18 = vector.shape_cast %17 : vector<1x8x72xbf16> to vector<8x72xbf16>
    %cst = arith.constant dense<0.000000e+00> : vector<8x1024xf32>
    %19 = tpu.matmul %18, %16, %cst {dimension_numbers = #tpu.dot_dimension_numbers<[1], [0], [0], [1], [0, 0, 1, 1], [], []>} : vector<8x72xbf16>, vector<72x1024xbf16>, vector<8x1024xf32> -> vector<8x1024xf32>
    %20 = vector.broadcast %5 : vector<8x1xf32> to vector<8x1024xf32>
    %21 = arith.mulf %19, %20 : vector<8x1024xf32>
    %22 = vector.broadcast %6 : vector<8x1xf32> to vector<8x1024xf32>
    %23 = arith.addf %21, %22 : vector<8x1024xf32>
    %cst_8 = arith.constant 0.000000e+00 : f32
    %24 = vector.broadcast %cst_8 : f32 to vector<8x1024xf32>
    %25 = arith.cmpf oge, %23, %24 : vector<8x1024xf32>
    %cst_9 = arith.constant 0.229166672 : f32
    %26 = vector.broadcast %cst_9 : f32 to vector<8x1024xf32>
    %27 = arith.mulf %26, %23 : vector<8x1024xf32>
    %28 = arith.select %25, %23, %27 : vector<8x1024xi1>, vector<8x1024xf32>
    %29 = arith.truncf %28 : vector<8x1024xf32> to vector<8x1024xbf16>
    %c0_10 = arith.constant 0 : index
    %c0_11 = arith.constant 0 : index
    %c0_12 = arith.constant 0 : index
    %c0_13 = arith.constant 0 : index
    %30 = vector.load %arg6[%c0_10, %c0_11, %c0_12, %c0_13] : memref<1x4x8x1024xbf16, #tpu.memory_space<vmem>>, vector<1x1x8x1024xbf16>
    %31 = vector.shape_cast %30 : vector<1x1x8x1024xbf16> to vector<8x1024xbf16>
    %32 = vector.shape_cast %29 : vector<8x1024xbf16> to vector<1x1x8x1024xbf16>
    tpu.vector_store %arg6[%c0_10, %c0_11, %c0_12, %c0_13], %32 {strides = array<i32>} : memref<1x4x8x1024xbf16, #tpu.memory_space<vmem>>, vector<1x1x8x1024xbf16>,
    %33 = vector.extract_strided_slice %4 {offsets = [0, 1], sizes = [8, 1024], strides = [1, 1]} : vector<8x1536xbf16> to vector<8x1024xbf16>
    %34 = vector.extract_strided_slice %4 {offsets = [0, 2], sizes = [8, 1024], strides = [1, 1]} : vector<8x1536xbf16> to vector<8x1024xbf16>
    %35 = vector.extract_strided_slice %4 {offsets = [0, 3], sizes = [8, 1024], strides = [1, 1]} : vector<8x1536xbf16> to vector<8x1024xbf16>
    %36 = vector.extract_strided_slice %4 {offsets = [0, 129], sizes = [8, 1024], strides = [1, 1]} : vector<8x1536xbf16> to vector<8x1024xbf16>
    %37 = vector.extract_strided_slice %4 {offsets = [0, 130], sizes = [8, 1024], strides = [1, 1]} : vector<8x1536xbf16> to vector<8x1024xbf16>
    %38 = vector.extract_strided_slice %4 {offsets = [0, 131], sizes = [8, 1024], strides = [1, 1]} : vector<8x1536xbf16> to vector<8x1024xbf16>
    %39 = vector.extract_strided_slice %4 {offsets = [0, 257], sizes = [8, 1024], strides = [1, 1]} : vector<8x1536xbf16> to vector<8x1024xbf16>
    %40 = vector.extract_strided_slice %4 {offsets = [0, 258], sizes = [8, 1024], strides = [1, 1]} : vector<8x1536xbf16> to vector<8x1024xbf16>
    %41 = vector.extract_strided_slice %4 {offsets = [0, 259], sizes = [8, 1024], strides = [1, 1]} : vector<8x1536xbf16> to vector<8x1024xbf16>
    %42 = tpu.concatenate %33, %34, %35, %36, %37, %38, %39, %40, %41 in 0 : vector<8x1024xbf16>, vector<8x1024xbf16>, vector<8x1024xbf16>, vector<8x1024xbf16>, vector<8x1024xbf16>, vector<8x1024xbf16>, vector<8x1024xbf16>, vector<8x1024xbf16>, vector<8x1024xbf16> -> vector<72x1024xbf16>
    %c1 = arith.constant 1 : index
    %c0_14 = arith.constant 0 : index
    %c0_15 = arith.constant 0 : index
    %43 = vector.load %arg3[%c1, %c0_14, %c0_15] : memref<4x8x72xbf16, #tpu.memory_space<vmem>>, vector<1x8x72xbf16>
    %44 = vector.shape_cast %43 : vector<1x8x72xbf16> to vector<8x72xbf16>
    %cst_16 = arith.constant dense<0.000000e+00> : vector<8x1024xf32>
    %45 = tpu.matmul %44, %42, %cst_16 {dimension_numbers = #tpu.dot_dimension_numbers<[1], [0], [0], [1], [0, 0, 1, 1], [], []>} : vector<8x72xbf16>, vector<72x1024xbf16>, vector<8x1024xf32> -> vector<8x1024xf32>
    %46 = vector.broadcast %5 : vector<8x1xf32> to vector<8x1024xf32>
    %47 = arith.mulf %45, %46 : vector<8x1024xf32>
    %48 = vector.broadcast %6 : vector<8x1xf32> to vector<8x1024xf32>
    %49 = arith.addf %47, %48 : vector<8x1024xf32>
    %cst_17 = arith.constant 0.000000e+00 : f32
    %50 = vector.broadcast %cst_17 : f32 to vector<8x1024xf32>
    %51 = arith.cmpf oge, %49, %50 : vector<8x1024xf32>
    %cst_18 = arith.constant 0.229166672 : f32
    %52 = vector.broadcast %cst_18 : f32 to vector<8x1024xf32>
    %53 = arith.mulf %52, %49 : vector<8x1024xf32>
    %54 = arith.select %51, %49, %53 : vector<8x1024xi1>, vector<8x1024xf32>
    %55 = arith.truncf %54 : vector<8x1024xf32> to vector<8x1024xbf16>
    %c0_19 = arith.constant 0 : index
    %c1_20 = arith.constant 1 : index
    %c0_21 = arith.constant 0 : index
    %c0_22 = arith.constant 0 : index
    %56 = vector.load %arg6[%c0_19, %c1_20, %c0_21, %c0_22] : memref<1x4x8x1024xbf16, #tpu.memory_space<vmem>>, vector<1x1x8x1024xbf16>
    %57 = vector.shape_cast %56 : vector<1x1x8x1024xbf16> to vector<8x1024xbf16>
    %58 = vector.shape_cast %55 : vector<8x1024xbf16> to vector<1x1x8x1024xbf16>
    tpu.vector_store %arg6[%c0_19, %c1_20, %c0_21, %c0_22], %58 {strides = array<i32>} : memref<1x4x8x1024xbf16, #tpu.memory_space<vmem>>, vector<1x1x8x1024xbf16>,
    %59 = vector.extract_strided_slice %4 {offsets = [0, 128], sizes = [8, 1024], strides = [1, 1]} : vector<8x1536xbf16> to vector<8x1024xbf16>
    %60 = vector.extract_strided_slice %4 {offsets = [0, 129], sizes = [8, 1024], strides = [1, 1]} : vector<8x1536xbf16> to vector<8x1024xbf16>
    %61 = vector.extract_strided_slice %4 {offsets = [0, 130], sizes = [8, 1024], strides = [1, 1]} : vector<8x1536xbf16> to vector<8x1024xbf16>
    %62 = vector.extract_strided_slice %4 {offsets = [0, 256], sizes = [8, 1024], strides = [1, 1]} : vector<8x1536xbf16> to vector<8x1024xbf16>
    %63 = vector.extract_strided_slice %4 {offsets = [0, 257], sizes = [8, 1024], strides = [1, 1]} : vector<8x1536xbf16> to vector<8x1024xbf16>
    %64 = vector.extract_strided_slice %4 {offsets = [0, 258], sizes = [8, 1024], strides = [1, 1]} : vector<8x1536xbf16> to vector<8x1024xbf16>
    %65 = vector.extract_strided_slice %4 {offsets = [0, 384], sizes = [8, 1024], strides = [1, 1]} : vector<8x1536xbf16> to vector<8x1024xbf16>
    %66 = vector.extract_strided_slice %4 {offsets = [0, 385], sizes = [8, 1024], strides = [1, 1]} : vector<8x1536xbf16> to vector<8x1024xbf16>
    %67 = vector.extract_strided_slice %4 {offsets = [0, 386], sizes = [8, 1024], strides = [1, 1]} : vector<8x1536xbf16> to vector<8x1024xbf16>
    %68 = tpu.concatenate %59, %60, %61, %62, %63, %64, %65, %66, %67 in 0 : vector<8x1024xbf16>, vector<8x1024xbf16>, vector<8x1024xbf16>, vector<8x1024xbf16>, vector<8x1024xbf16>, vector<8x1024xbf16>, vector<8x1024xbf16>, vector<8x1024xbf16>, vector<8x1024xbf16> -> vector<72x1024xbf16>
    %c2 = arith.constant 2 : index
    %c0_23 = arith.constant 0 : index
    %c0_24 = arith.constant 0 : index
    %69 = vector.load %arg3[%c2, %c0_23, %c0_24] : memref<4x8x72xbf16, #tpu.memory_space<vmem>>, vector<1x8x72xbf16>
    %70 = vector.shape_cast %69 : vector<1x8x72xbf16> to vector<8x72xbf16>
    %cst_25 = arith.constant dense<0.000000e+00> : vector<8x1024xf32>
    %71 = tpu.matmul %70, %68, %cst_25 {dimension_numbers = #tpu.dot_dimension_numbers<[1], [0], [0], [1], [0, 0, 1, 1], [], []>} : vector<8x72xbf16>, vector<72x1024xbf16>, vector<8x1024xf32> -> vector<8x1024xf32>
    %72 = vector.broadcast %5 : vector<8x1xf32> to vector<8x1024xf32>
    %73 = arith.mulf %71, %72 : vector<8x1024xf32>
    %74 = vector.broadcast %6 : vector<8x1xf32> to vector<8x1024xf32>
    %75 = arith.addf %73, %74 : vector<8x1024xf32>
    %cst_26 = arith.constant 0.000000e+00 : f32
    %76 = vector.broadcast %cst_26 : f32 to vector<8x1024xf32>
    %77 = arith.cmpf oge, %75, %76 : vector<8x1024xf32>
    %cst_27 = arith.constant 0.229166672 : f32
    %78 = vector.broadcast %cst_27 : f32 to vector<8x1024xf32>
    %79 = arith.mulf %78, %75 : vector<8x1024xf32>
    %80 = arith.select %77, %75, %79 : vector<8x1024xi1>, vector<8x1024xf32>
    %81 = arith.truncf %80 : vector<8x1024xf32> to vector<8x1024xbf16>
    %c0_28 = arith.constant 0 : index
    %c2_29 = arith.constant 2 : index
    %c0_30 = arith.constant 0 : index
    %c0_31 = arith.constant 0 : index
    %82 = vector.load %arg6[%c0_28, %c2_29, %c0_30, %c0_31] : memref<1x4x8x1024xbf16, #tpu.memory_space<vmem>>, vector<1x1x8x1024xbf16>
    %83 = vector.shape_cast %82 : vector<1x1x8x1024xbf16> to vector<8x1024xbf16>
    %84 = vector.shape_cast %81 : vector<8x1024xbf16> to vector<1x1x8x1024xbf16>
    tpu.vector_store %arg6[%c0_28, %c2_29, %c0_30, %c0_31], %84 {strides = array<i32>} : memref<1x4x8x1024xbf16, #tpu.memory_space<vmem>>, vector<1x1x8x1024xbf16>,
    %85 = vector.extract_strided_slice %4 {offsets = [0, 129], sizes = [8, 1024], strides = [1, 1]} : vector<8x1536xbf16> to vector<8x1024xbf16>
    %86 = vector.extract_strided_slice %4 {offsets = [0, 130], sizes = [8, 1024], strides = [1, 1]} : vector<8x1536xbf16> to vector<8x1024xbf16>
    %87 = vector.extract_strided_slice %4 {offsets = [0, 131], sizes = [8, 1024], strides = [1, 1]} : vector<8x1536xbf16> to vector<8x1024xbf16>
    %88 = vector.extract_strided_slice %4 {offsets = [0, 257], sizes = [8, 1024], strides = [1, 1]} : vector<8x1536xbf16> to vector<8x1024xbf16>
    %89 = vector.extract_strided_slice %4 {offsets = [0, 258], sizes = [8, 1024], strides = [1, 1]} : vector<8x1536xbf16> to vector<8x1024xbf16>
    %90 = vector.extract_strided_slice %4 {offsets = [0, 259], sizes = [8, 1024], strides = [1, 1]} : vector<8x1536xbf16> to vector<8x1024xbf16>
    %91 = vector.extract_strided_slice %4 {offsets = [0, 385], sizes = [8, 1024], strides = [1, 1]} : vector<8x1536xbf16> to vector<8x1024xbf16>
    %92 = vector.extract_strided_slice %4 {offsets = [0, 386], sizes = [8, 1024], strides = [1, 1]} : vector<8x1536xbf16> to vector<8x1024xbf16>
    %93 = vector.extract_strided_slice %4 {offsets = [0, 387], sizes = [8, 1024], strides = [1, 1]} : vector<8x1536xbf16> to vector<8x1024xbf16>
    %94 = tpu.concatenate %85, %86, %87, %88, %89, %90, %91, %92, %93 in 0 : vector<8x1024xbf16>, vector<8x1024xbf16>, vector<8x1024xbf16>, vector<8x1024xbf16>, vector<8x1024xbf16>, vector<8x1024xbf16>, vector<8x1024xbf16>, vector<8x1024xbf16>, vector<8x1024xbf16> -> vector<72x1024xbf16>
    %c3 = arith.constant 3 : index
    %c0_32 = arith.constant 0 : index
    %c0_33 = arith.constant 0 : index
    %95 = vector.load %arg3[%c3, %c0_32, %c0_33] : memref<4x8x72xbf16, #tpu.memory_space<vmem>>, vector<1x8x72xbf16>
    %96 = vector.shape_cast %95 : vector<1x8x72xbf16> to vector<8x72xbf16>
    %cst_34 = arith.constant dense<0.000000e+00> : vector<8x1024xf32>
    %97 = tpu.matmul %96, %94, %cst_34 {dimension_numbers = #tpu.dot_dimension_numbers<[1], [0], [0], [1], [0, 0, 1, 1], [], []>} : vector<8x72xbf16>, vector<72x1024xbf16>, vector<8x1024xf32> -> vector<8x1024xf32>
    %98 = vector.broadcast %5 : vector<8x1xf32> to vector<8x1024xf32>
    %99 = arith.mulf %97, %98 : vector<8x1024xf32>
    %100 = vector.broadcast %6 : vector<8x1xf32> to vector<8x1024xf32>
    %101 = arith.addf %99, %100 : vector<8x1024xf32>
    %cst_35 = arith.constant 0.000000e+00 : f32
    %102 = vector.broadcast %cst_35 : f32 to vector<8x1024xf32>
    %103 = arith.cmpf oge, %101, %102 : vector<8x1024xf32>
    %cst_36 = arith.constant 0.229166672 : f32
    %104 = vector.broadcast %cst_36 : f32 to vector<8x1024xf32>
    %105 = arith.mulf %104, %101 : vector<8x1024xf32>
    %106 = arith.select %103, %101, %105 : vector<8x1024xi1>, vector<8x1024xf32>
    %107 = arith.truncf %106 : vector<8x1024xf32> to vector<8x1024xbf16>
    %c0_37 = arith.constant 0 : index
    %c3_38 = arith.constant 3 : index
    %c0_39 = arith.constant 0 : index
    %c0_40 = arith.constant 0 : index
    %108 = vector.load %arg6[%c0_37, %c3_38, %c0_39, %c0_40] : memref<1x4x8x1024xbf16, #tpu.memory_space<vmem>>, vector<1x1x8x1024xbf16>
    %109 = vector.shape_cast %108 : vector<1x1x8x1024xbf16> to vector<8x1024xbf16>
    %110 = vector.shape_cast %107 : vector<8x1024xbf16> to vector<1x1x8x1024xbf16>
    tpu.vector_store %arg6[%c0_37, %c3_38, %c0_39, %c0_40], %110 {strides = array<i32>} : memref<1x4x8x1024xbf16, #tpu.memory_space<vmem>>, vector<1x1x8x1024xbf16>,
    return
  }
  func.func @transform_0(%arg0: i32, %arg1: i32) -> (i32, i32, i32) {
    %c0_i32 = arith.constant 0 : i32
    %c0_i32_0 = arith.constant 0 : i32
    %c0_i32_1 = arith.constant 0 : i32
    return %arg0, %c0_i32, %c0_i32_0 : i32, i32, i32
  }
  func.func @transform_1(%arg0: i32, %arg1: i32) -> (i32, i32, i32) {
    %c0_i32 = arith.constant 0 : i32
    %c0_i32_0 = arith.constant 0 : i32
    %c0_i32_1 = arith.constant 0 : i32
    %c0_i32_2 = arith.constant 0 : i32
    return %c0_i32, %c0_i32_0, %c0_i32_1 : i32, i32, i32
  }
  func.func @transform_2(%arg0: i32, %arg1: i32) -> (i32, i32) {
    %c0_i32 = arith.constant 0 : i32
    %c0_i32_0 = arith.constant 0 : i32
    %c0_i32_1 = arith.constant 0 : i32
    return %c0_i32, %c0_i32_0 : i32, i32
  }
  func.func @transform_3(%arg0: i32, %arg1: i32) -> (i32, i32) {
    %c0_i32 = arith.constant 0 : i32
    %c0_i32_0 = arith.constant 0 : i32
    %c0_i32_1 = arith.constant 0 : i32
    return %c0_i32, %c0_i32_0 : i32, i32
  }
  func.func @transform_4(%arg0: i32, %arg1: i32) -> (i32, i32, i32, i32) {
    %c0_i32 = arith.constant 0 : i32
    %c0_i32_0 = arith.constant 0 : i32
    %c0_i32_1 = arith.constant 0 : i32
    return %arg0, %c0_i32, %c0_i32_0, %arg1 : i32, i32, i32, i32
  }
}

module attributes {stable_mosaic.version = 11 : i64} {
  func.func @kernel(%arg0: i32, %arg1: i32, %arg2: memref<1x8x4608xbf16, #tpu.memory_space<vmem>>, %arg3: memref<4x16x72xbf16, #tpu.memory_space<vmem>>, %arg4: memref<16x1xf32, #tpu.memory_space<vmem>>, %arg5: memref<16x1xf32, #tpu.memory_space<vmem>>, %arg6: memref<1x4x16x1024xbf16, #tpu.memory_space<vmem>>) attributes {dimension_semantics = [#tpu.dimension_semantics<parallel>, #tpu.dimension_semantics<parallel>], iteration_bounds = array<i64: 2, 4>, scalar_prefetch = 0 : i64, scratch_operands = 0 : i64, tpu.core_type = #tpu.core_type<tc>, window_params = [{transform_indices = @transform_0, window_bounds = array<i64: 1, 8, 4608>}, {pipeline_mode = #tpu.pipeline_mode<synchronous>, transform_indices = @transform_1, window_bounds = array<i64: 4, 16, 72>}, {pipeline_mode = #tpu.pipeline_mode<synchronous>, transform_indices = @transform_2, window_bounds = array<i64: 16, 1>}, {pipeline_mode = #tpu.pipeline_mode<synchronous>, transform_indices = @transform_3, window_bounds = array<i64: 16, 1>}, {transform_indices = @transform_4, window_bounds = array<i64: 1, 4, 16, 1024>}]} {
    %c1024_i32 = arith.constant 1024 : i32
    %0 = arith.muli %arg1, %c1024_i32 : i32
    %1 = tpu.assume_multiple %0, 128 : i32
    %c0 = arith.constant 0 : index
    %c0_0 = arith.constant 0 : index
    %2 = arith.index_cast %1 : i32 to index
    %3 = vector.load %arg2[%c0, %c0_0, %2] : memref<1x8x4608xbf16, #tpu.memory_space<vmem>>, vector<1x8x1536xbf16>
    %4 = vector.shape_cast %3 : vector<1x8x1536xbf16> to vector<8x1536xbf16>
    %c0_1 = arith.constant 0 : index
    %c0_2 = arith.constant 0 : index
    %5 = vector.load %arg4[%c0_1, %c0_2] : memref<16x1xf32, #tpu.memory_space<vmem>>, vector<16x1xf32>
    %c0_3 = arith.constant 0 : index
    %c0_4 = arith.constant 0 : index
    %6 = vector.load %arg5[%c0_3, %c0_4] : memref<16x1xf32, #tpu.memory_space<vmem>>, vector<16x1xf32>
    %7 = vector.extract_strided_slice %4 {offsets = [0, 0], sizes = [8, 1024], strides = [1, 1]} : vector<8x1536xbf16> to vector<8x1024xbf16>
    %8 = vector.extract_strided_slice %4 {offsets = [0, 1], sizes = [8, 1024], strides = [1, 1]} : vector<8x1536xbf16> to vector<8x1024xbf16>
    %9 = vector.extract_strided_slice %4 {offsets = [0, 2], sizes = [8, 1024], strides = [1, 1]} : vector<8x1536xbf16> to vector<8x1024xbf16>
    %10 = vector.extract_strided_slice %4 {offsets = [0, 128], sizes = [8, 1024], strides = [1, 1]} : vector<8x1536xbf16> to vector<8x1024xbf16>
    %11 = vector.extract_strided_slice %4 {offsets = [0, 129], sizes = [8, 1024], strides = [1, 1]} : vector<8x1536xbf16> to vector<8x1024xbf16>
    %12 = vector.extract_strided_slice %4 {offsets = [0, 130], sizes = [8, 1024], strides = [1, 1]} : vector<8x1536xbf16> to vector<8x1024xbf16>
    %13 = vector.extract_strided_slice %4 {offsets = [0, 256], sizes = [8, 1024], strides = [1, 1]} : vector<8x1536xbf16> to vector<8x1024xbf16>
    %14 = vector.extract_strided_slice %4 {offsets = [0, 257], sizes = [8, 1024], strides = [1, 1]} : vector<8x1536xbf16> to vector<8x1024xbf16>
    %15 = vector.extract_strided_slice %4 {offsets = [0, 258], sizes = [8, 1024], strides = [1, 1]} : vector<8x1536xbf16> to vector<8x1024xbf16>
    %16 = tpu.concatenate %7, %8, %9, %10, %11, %12, %13, %14, %15 in 0 : vector<8x1024xbf16>, vector<8x1024xbf16>, vector<8x1024xbf16>, vector<8x1024xbf16>, vector<8x1024xbf16>, vector<8x1024xbf16>, vector<8x1024xbf16>, vector<8x1024xbf16>, vector<8x1024xbf16> -> vector<72x1024xbf16>
    %c0_5 = arith.constant 0 : index
    %c0_6 = arith.constant 0 : index
    %c0_7 = arith.constant 0 : index
    %17 = vector.load %arg3[%c0_5, %c0_6, %c0_7] : memref<4x16x72xbf16, #tpu.memory_space<vmem>>, vector<1x16x72xbf16>
    %18 = vector.shape_cast %17 : vector<1x16x72xbf16> to vector<16x72xbf16>
    %cst = arith.constant dense<0.000000e+00> : vector<16x1024xf32>
    %19 = tpu.matmul %18, %16, %cst {dimension_numbers = #tpu.dot_dimension_numbers<[1], [0], [0], [1], [0, 0, 1, 1], [], []>} : vector<16x72xbf16>, vector<72x1024xbf16>, vector<16x1024xf32> -> vector<16x1024xf32>
    %20 = vector.broadcast %5 : vector<16x1xf32> to vector<16x1024xf32>
    %21 = arith.mulf %19, %20 : vector<16x1024xf32>
    %22 = vector.broadcast %6 : vector<16x1xf32> to vector<16x1024xf32>
    %23 = arith.addf %21, %22 : vector<16x1024xf32>
    %cst_8 = arith.constant 0.000000e+00 : f32
    %24 = vector.broadcast %cst_8 : f32 to vector<16x1024xf32>
    %25 = arith.cmpf oge, %23, %24 : vector<16x1024xf32>
    %cst_9 = arith.constant 0.229166672 : f32
    %26 = vector.broadcast %cst_9 : f32 to vector<16x1024xf32>
    %27 = arith.mulf %26, %23 : vector<16x1024xf32>
    %28 = arith.select %25, %23, %27 : vector<16x1024xi1>, vector<16x1024xf32>
    %29 = arith.truncf %28 : vector<16x1024xf32> to vector<16x1024xbf16>
    %c0_10 = arith.constant 0 : index
    %c0_11 = arith.constant 0 : index
    %c0_12 = arith.constant 0 : index
    %c0_13 = arith.constant 0 : index
    %30 = vector.load %arg6[%c0_10, %c0_11, %c0_12, %c0_13] : memref<1x4x16x1024xbf16, #tpu.memory_space<vmem>>, vector<1x1x16x1024xbf16>
    %31 = vector.shape_cast %30 : vector<1x1x16x1024xbf16> to vector<16x1024xbf16>
    %32 = vector.shape_cast %29 : vector<16x1024xbf16> to vector<1x1x16x1024xbf16>
    tpu.vector_store %arg6[%c0_10, %c0_11, %c0_12, %c0_13], %32 {strides = array<i32>} : memref<1x4x16x1024xbf16, #tpu.memory_space<vmem>>, vector<1x1x16x1024xbf16>,
    %33 = vector.extract_strided_slice %4 {offsets = [0, 1], sizes = [8, 1024], strides = [1, 1]} : vector<8x1536xbf16> to vector<8x1024xbf16>
    %34 = vector.extract_strided_slice %4 {offsets = [0, 2], sizes = [8, 1024], strides = [1, 1]} : vector<8x1536xbf16> to vector<8x1024xbf16>
    %35 = vector.extract_strided_slice %4 {offsets = [0, 3], sizes = [8, 1024], strides = [1, 1]} : vector<8x1536xbf16> to vector<8x1024xbf16>
    %36 = vector.extract_strided_slice %4 {offsets = [0, 129], sizes = [8, 1024], strides = [1, 1]} : vector<8x1536xbf16> to vector<8x1024xbf16>
    %37 = vector.extract_strided_slice %4 {offsets = [0, 130], sizes = [8, 1024], strides = [1, 1]} : vector<8x1536xbf16> to vector<8x1024xbf16>
    %38 = vector.extract_strided_slice %4 {offsets = [0, 131], sizes = [8, 1024], strides = [1, 1]} : vector<8x1536xbf16> to vector<8x1024xbf16>
    %39 = vector.extract_strided_slice %4 {offsets = [0, 257], sizes = [8, 1024], strides = [1, 1]} : vector<8x1536xbf16> to vector<8x1024xbf16>
    %40 = vector.extract_strided_slice %4 {offsets = [0, 258], sizes = [8, 1024], strides = [1, 1]} : vector<8x1536xbf16> to vector<8x1024xbf16>
    %41 = vector.extract_strided_slice %4 {offsets = [0, 259], sizes = [8, 1024], strides = [1, 1]} : vector<8x1536xbf16> to vector<8x1024xbf16>
    %42 = tpu.concatenate %33, %34, %35, %36, %37, %38, %39, %40, %41 in 0 : vector<8x1024xbf16>, vector<8x1024xbf16>, vector<8x1024xbf16>, vector<8x1024xbf16>, vector<8x1024xbf16>, vector<8x1024xbf16>, vector<8x1024xbf16>, vector<8x1024xbf16>, vector<8x1024xbf16> -> vector<72x1024xbf16>
    %c1 = arith.constant 1 : index
    %c0_14 = arith.constant 0 : index
    %c0_15 = arith.constant 0 : index
    %43 = vector.load %arg3[%c1, %c0_14, %c0_15] : memref<4x16x72xbf16, #tpu.memory_space<vmem>>, vector<1x16x72xbf16>
    %44 = vector.shape_cast %43 : vector<1x16x72xbf16> to vector<16x72xbf16>
    %cst_16 = arith.constant dense<0.000000e+00> : vector<16x1024xf32>
    %45 = tpu.matmul %44, %42, %cst_16 {dimension_numbers = #tpu.dot_dimension_numbers<[1], [0], [0], [1], [0, 0, 1, 1], [], []>} : vector<16x72xbf16>, vector<72x1024xbf16>, vector<16x1024xf32> -> vector<16x1024xf32>
    %46 = vector.broadcast %5 : vector<16x1xf32> to vector<16x1024xf32>
    %47 = arith.mulf %45, %46 : vector<16x1024xf32>
    %48 = vector.broadcast %6 : vector<16x1xf32> to vector<16x1024xf32>
    %49 = arith.addf %47, %48 : vector<16x1024xf32>
    %cst_17 = arith.constant 0.000000e+00 : f32
    %50 = vector.broadcast %cst_17 : f32 to vector<16x1024xf32>
    %51 = arith.cmpf oge, %49, %50 : vector<16x1024xf32>
    %cst_18 = arith.constant 0.229166672 : f32
    %52 = vector.broadcast %cst_18 : f32 to vector<16x1024xf32>
    %53 = arith.mulf %52, %49 : vector<16x1024xf32>
    %54 = arith.select %51, %49, %53 : vector<16x1024xi1>, vector<16x1024xf32>
    %55 = arith.truncf %54 : vector<16x1024xf32> to vector<16x1024xbf16>
    %c0_19 = arith.constant 0 : index
    %c1_20 = arith.constant 1 : index
    %c0_21 = arith.constant 0 : index
    %c0_22 = arith.constant 0 : index
    %56 = vector.load %arg6[%c0_19, %c1_20, %c0_21, %c0_22] : memref<1x4x16x1024xbf16, #tpu.memory_space<vmem>>, vector<1x1x16x1024xbf16>
    %57 = vector.shape_cast %56 : vector<1x1x16x1024xbf16> to vector<16x1024xbf16>
    %58 = vector.shape_cast %55 : vector<16x1024xbf16> to vector<1x1x16x1024xbf16>
    tpu.vector_store %arg6[%c0_19, %c1_20, %c0_21, %c0_22], %58 {strides = array<i32>} : memref<1x4x16x1024xbf16, #tpu.memory_space<vmem>>, vector<1x1x16x1024xbf16>,
    %59 = vector.extract_strided_slice %4 {offsets = [0, 128], sizes = [8, 1024], strides = [1, 1]} : vector<8x1536xbf16> to vector<8x1024xbf16>
    %60 = vector.extract_strided_slice %4 {offsets = [0, 129], sizes = [8, 1024], strides = [1, 1]} : vector<8x1536xbf16> to vector<8x1024xbf16>
    %61 = vector.extract_strided_slice %4 {offsets = [0, 130], sizes = [8, 1024], strides = [1, 1]} : vector<8x1536xbf16> to vector<8x1024xbf16>
    %62 = vector.extract_strided_slice %4 {offsets = [0, 256], sizes = [8, 1024], strides = [1, 1]} : vector<8x1536xbf16> to vector<8x1024xbf16>
    %63 = vector.extract_strided_slice %4 {offsets = [0, 257], sizes = [8, 1024], strides = [1, 1]} : vector<8x1536xbf16> to vector<8x1024xbf16>
    %64 = vector.extract_strided_slice %4 {offsets = [0, 258], sizes = [8, 1024], strides = [1, 1]} : vector<8x1536xbf16> to vector<8x1024xbf16>
    %65 = vector.extract_strided_slice %4 {offsets = [0, 384], sizes = [8, 1024], strides = [1, 1]} : vector<8x1536xbf16> to vector<8x1024xbf16>
    %66 = vector.extract_strided_slice %4 {offsets = [0, 385], sizes = [8, 1024], strides = [1, 1]} : vector<8x1536xbf16> to vector<8x1024xbf16>
    %67 = vector.extract_strided_slice %4 {offsets = [0, 386], sizes = [8, 1024], strides = [1, 1]} : vector<8x1536xbf16> to vector<8x1024xbf16>
    %68 = tpu.concatenate %59, %60, %61, %62, %63, %64, %65, %66, %67 in 0 : vector<8x1024xbf16>, vector<8x1024xbf16>, vector<8x1024xbf16>, vector<8x1024xbf16>, vector<8x1024xbf16>, vector<8x1024xbf16>, vector<8x1024xbf16>, vector<8x1024xbf16>, vector<8x1024xbf16> -> vector<72x1024xbf16>
    %c2 = arith.constant 2 : index
    %c0_23 = arith.constant 0 : index
    %c0_24 = arith.constant 0 : index
    %69 = vector.load %arg3[%c2, %c0_23, %c0_24] : memref<4x16x72xbf16, #tpu.memory_space<vmem>>, vector<1x16x72xbf16>
    %70 = vector.shape_cast %69 : vector<1x16x72xbf16> to vector<16x72xbf16>
    %cst_25 = arith.constant dense<0.000000e+00> : vector<16x1024xf32>
    %71 = tpu.matmul %70, %68, %cst_25 {dimension_numbers = #tpu.dot_dimension_numbers<[1], [0], [0], [1], [0, 0, 1, 1], [], []>} : vector<16x72xbf16>, vector<72x1024xbf16>, vector<16x1024xf32> -> vector<16x1024xf32>
    %72 = vector.broadcast %5 : vector<16x1xf32> to vector<16x1024xf32>
    %73 = arith.mulf %71, %72 : vector<16x1024xf32>
    %74 = vector.broadcast %6 : vector<16x1xf32> to vector<16x1024xf32>
    %75 = arith.addf %73, %74 : vector<16x1024xf32>
    %cst_26 = arith.constant 0.000000e+00 : f32
    %76 = vector.broadcast %cst_26 : f32 to vector<16x1024xf32>
    %77 = arith.cmpf oge, %75, %76 : vector<16x1024xf32>
    %cst_27 = arith.constant 0.229166672 : f32
    %78 = vector.broadcast %cst_27 : f32 to vector<16x1024xf32>
    %79 = arith.mulf %78, %75 : vector<16x1024xf32>
    %80 = arith.select %77, %75, %79 : vector<16x1024xi1>, vector<16x1024xf32>
    %81 = arith.truncf %80 : vector<16x1024xf32> to vector<16x1024xbf16>
    %c0_28 = arith.constant 0 : index
    %c2_29 = arith.constant 2 : index
    %c0_30 = arith.constant 0 : index
    %c0_31 = arith.constant 0 : index
    %82 = vector.load %arg6[%c0_28, %c2_29, %c0_30, %c0_31] : memref<1x4x16x1024xbf16, #tpu.memory_space<vmem>>, vector<1x1x16x1024xbf16>
    %83 = vector.shape_cast %82 : vector<1x1x16x1024xbf16> to vector<16x1024xbf16>
    %84 = vector.shape_cast %81 : vector<16x1024xbf16> to vector<1x1x16x1024xbf16>
    tpu.vector_store %arg6[%c0_28, %c2_29, %c0_30, %c0_31], %84 {strides = array<i32>} : memref<1x4x16x1024xbf16, #tpu.memory_space<vmem>>, vector<1x1x16x1024xbf16>,
    %85 = vector.extract_strided_slice %4 {offsets = [0, 129], sizes = [8, 1024], strides = [1, 1]} : vector<8x1536xbf16> to vector<8x1024xbf16>
    %86 = vector.extract_strided_slice %4 {offsets = [0, 130], sizes = [8, 1024], strides = [1, 1]} : vector<8x1536xbf16> to vector<8x1024xbf16>
    %87 = vector.extract_strided_slice %4 {offsets = [0, 131], sizes = [8, 1024], strides = [1, 1]} : vector<8x1536xbf16> to vector<8x1024xbf16>
    %88 = vector.extract_strided_slice %4 {offsets = [0, 257], sizes = [8, 1024], strides = [1, 1]} : vector<8x1536xbf16> to vector<8x1024xbf16>
    %89 = vector.extract_strided_slice %4 {offsets = [0, 258], sizes = [8, 1024], strides = [1, 1]} : vector<8x1536xbf16> to vector<8x1024xbf16>
    %90 = vector.extract_strided_slice %4 {offsets = [0, 259], sizes = [8, 1024], strides = [1, 1]} : vector<8x1536xbf16> to vector<8x1024xbf16>
    %91 = vector.extract_strided_slice %4 {offsets = [0, 385], sizes = [8, 1024], strides = [1, 1]} : vector<8x1536xbf16> to vector<8x1024xbf16>
    %92 = vector.extract_strided_slice %4 {offsets = [0, 386], sizes = [8, 1024], strides = [1, 1]} : vector<8x1536xbf16> to vector<8x1024xbf16>
    %93 = vector.extract_strided_slice %4 {offsets = [0, 387], sizes = [8, 1024], strides = [1, 1]} : vector<8x1536xbf16> to vector<8x1024xbf16>
    %94 = tpu.concatenate %85, %86, %87, %88, %89, %90, %91, %92, %93 in 0 : vector<8x1024xbf16>, vector<8x1024xbf16>, vector<8x1024xbf16>, vector<8x1024xbf16>, vector<8x1024xbf16>, vector<8x1024xbf16>, vector<8x1024xbf16>, vector<8x1024xbf16>, vector<8x1024xbf16> -> vector<72x1024xbf16>
    %c3 = arith.constant 3 : index
    %c0_32 = arith.constant 0 : index
    %c0_33 = arith.constant 0 : index
    %95 = vector.load %arg3[%c3, %c0_32, %c0_33] : memref<4x16x72xbf16, #tpu.memory_space<vmem>>, vector<1x16x72xbf16>
    %96 = vector.shape_cast %95 : vector<1x16x72xbf16> to vector<16x72xbf16>
    %cst_34 = arith.constant dense<0.000000e+00> : vector<16x1024xf32>
    %97 = tpu.matmul %96, %94, %cst_34 {dimension_numbers = #tpu.dot_dimension_numbers<[1], [0], [0], [1], [0, 0, 1, 1], [], []>} : vector<16x72xbf16>, vector<72x1024xbf16>, vector<16x1024xf32> -> vector<16x1024xf32>
    %98 = vector.broadcast %5 : vector<16x1xf32> to vector<16x1024xf32>
    %99 = arith.mulf %97, %98 : vector<16x1024xf32>
    %100 = vector.broadcast %6 : vector<16x1xf32> to vector<16x1024xf32>
    %101 = arith.addf %99, %100 : vector<16x1024xf32>
    %cst_35 = arith.constant 0.000000e+00 : f32
    %102 = vector.broadcast %cst_35 : f32 to vector<16x1024xf32>
    %103 = arith.cmpf oge, %101, %102 : vector<16x1024xf32>
    %cst_36 = arith.constant 0.229166672 : f32
    %104 = vector.broadcast %cst_36 : f32 to vector<16x1024xf32>
    %105 = arith.mulf %104, %101 : vector<16x1024xf32>
    %106 = arith.select %103, %101, %105 : vector<16x1024xi1>, vector<16x1024xf32>
    %107 = arith.truncf %106 : vector<16x1024xf32> to vector<16x1024xbf16>
    %c0_37 = arith.constant 0 : index
    %c3_38 = arith.constant 3 : index
    %c0_39 = arith.constant 0 : index
    %c0_40 = arith.constant 0 : index
    %108 = vector.load %arg6[%c0_37, %c3_38, %c0_39, %c0_40] : memref<1x4x16x1024xbf16, #tpu.memory_space<vmem>>, vector<1x1x16x1024xbf16>
    %109 = vector.shape_cast %108 : vector<1x1x16x1024xbf16> to vector<16x1024xbf16>
    %110 = vector.shape_cast %107 : vector<16x1024xbf16> to vector<1x1x16x1024xbf16>
    tpu.vector_store %arg6[%c0_37, %c3_38, %c0_39, %c0_40], %110 {strides = array<i32>} : memref<1x4x16x1024xbf16, #tpu.memory_space<vmem>>, vector<1x1x16x1024xbf16>,
    return
  }
  func.func @transform_0(%arg0: i32, %arg1: i32) -> (i32, i32, i32) {
    %c0_i32 = arith.constant 0 : i32
    %c0_i32_0 = arith.constant 0 : i32
    %c0_i32_1 = arith.constant 0 : i32
    return %arg0, %c0_i32, %c0_i32_0 : i32, i32, i32
  }
  func.func @transform_1(%arg0: i32, %arg1: i32) -> (i32, i32, i32) {
    %c0_i32 = arith.constant 0 : i32
    %c0_i32_0 = arith.constant 0 : i32
    %c0_i32_1 = arith.constant 0 : i32
    %c0_i32_2 = arith.constant 0 : i32
    return %c0_i32, %c0_i32_0, %c0_i32_1 : i32, i32, i32
  }
  func.func @transform_2(%arg0: i32, %arg1: i32) -> (i32, i32) {
    %c0_i32 = arith.constant 0 : i32
    %c0_i32_0 = arith.constant 0 : i32
    %c0_i32_1 = arith.constant 0 : i32
    return %c0_i32, %c0_i32_0 : i32, i32
  }
  func.func @transform_3(%arg0: i32, %arg1: i32) -> (i32, i32) {
    %c0_i32 = arith.constant 0 : i32
    %c0_i32_0 = arith.constant 0 : i32
    %c0_i32_1 = arith.constant 0 : i32
    return %c0_i32, %c0_i32_0 : i32, i32
  }
  func.func @transform_4(%arg0: i32, %arg1: i32) -> (i32, i32, i32, i32) {
    %c0_i32 = arith.constant 0 : i32
    %c0_i32_0 = arith.constant 0 : i32
    %c0_i32_1 = arith.constant 0 : i32
    return %arg0, %c0_i32, %c0_i32_0, %arg1 : i32, i32, i32, i32
  }
}

module attributes {stable_mosaic.version = 11 : i64} {
  func.func @kernel(%arg0: i32, %arg1: i32, %arg2: memref<1x16x9728xbf16, #tpu.memory_space<vmem>>, %arg3: memref<4x8x256xbf16, #tpu.memory_space<vmem>>, %arg4: memref<8x1xf32, #tpu.memory_space<vmem>>, %arg5: memref<8x1xf32, #tpu.memory_space<vmem>>, %arg6: memref<1x4x8x1024xf32, #tpu.memory_space<vmem>>) attributes {dimension_semantics = [#tpu.dimension_semantics<parallel>, #tpu.dimension_semantics<parallel>], iteration_bounds = array<i64: 2, 9>, scalar_prefetch = 0 : i64, scratch_operands = 0 : i64, tpu.core_type = #tpu.core_type<tc>, window_params = [{transform_indices = @transform_0, window_bounds = array<i64: 1, 16, 9728>}, {pipeline_mode = #tpu.pipeline_mode<synchronous>, transform_indices = @transform_1, window_bounds = array<i64: 4, 8, 256>}, {pipeline_mode = #tpu.pipeline_mode<synchronous>, transform_indices = @transform_2, window_bounds = array<i64: 8, 1>}, {pipeline_mode = #tpu.pipeline_mode<synchronous>, transform_indices = @transform_3, window_bounds = array<i64: 8, 1>}, {transform_indices = @transform_4, window_bounds = array<i64: 1, 4, 8, 1024>}]} {
    %c1024_i32 = arith.constant 1024 : i32
    %0 = arith.muli %arg1, %c1024_i32 : i32
    %1 = tpu.assume_multiple %0, 128 : i32
    %c0 = arith.constant 0 : index
    %c0_0 = arith.constant 0 : index
    %2 = arith.index_cast %1 : i32 to index
    %3 = vector.load %arg2[%c0, %c0_0, %2] : memref<1x16x9728xbf16, #tpu.memory_space<vmem>>, vector<1x16x1536xbf16>
    %4 = vector.shape_cast %3 : vector<1x16x1536xbf16> to vector<16x1536xbf16>
    %c0_1 = arith.constant 0 : index
    %c0_2 = arith.constant 0 : index
    %5 = vector.load %arg4[%c0_1, %c0_2] : memref<8x1xf32, #tpu.memory_space<vmem>>, vector<8x1xf32>
    %c0_3 = arith.constant 0 : index
    %c0_4 = arith.constant 0 : index
    %6 = vector.load %arg5[%c0_3, %c0_4] : memref<8x1xf32, #tpu.memory_space<vmem>>, vector<8x1xf32>
    %7 = vector.extract_strided_slice %4 {offsets = [0, 0], sizes = [16, 1024], strides = [1, 1]} : vector<16x1536xbf16> to vector<16x1024xbf16>
    %8 = vector.extract_strided_slice %4 {offsets = [0, 1], sizes = [16, 1024], strides = [1, 1]} : vector<16x1536xbf16> to vector<16x1024xbf16>
    %9 = vector.extract_strided_slice %4 {offsets = [0, 2], sizes = [16, 1024], strides = [1, 1]} : vector<16x1536xbf16> to vector<16x1024xbf16>
    %10 = vector.extract_strided_slice %4 {offsets = [0, 3], sizes = [16, 1024], strides = [1, 1]} : vector<16x1536xbf16> to vector<16x1024xbf16>
    %11 = vector.extract_strided_slice %4 {offsets = [0, 128], sizes = [16, 1024], strides = [1, 1]} : vector<16x1536xbf16> to vector<16x1024xbf16>
    %12 = vector.extract_strided_slice %4 {offsets = [0, 129], sizes = [16, 1024], strides = [1, 1]} : vector<16x1536xbf16> to vector<16x1024xbf16>
    %13 = vector.extract_strided_slice %4 {offsets = [0, 130], sizes = [16, 1024], strides = [1, 1]} : vector<16x1536xbf16> to vector<16x1024xbf16>
    %14 = vector.extract_strided_slice %4 {offsets = [0, 131], sizes = [16, 1024], strides = [1, 1]} : vector<16x1536xbf16> to vector<16x1024xbf16>
    %15 = vector.extract_strided_slice %4 {offsets = [0, 256], sizes = [16, 1024], strides = [1, 1]} : vector<16x1536xbf16> to vector<16x1024xbf16>
    %16 = vector.extract_strided_slice %4 {offsets = [0, 257], sizes = [16, 1024], strides = [1, 1]} : vector<16x1536xbf16> to vector<16x1024xbf16>
    %17 = vector.extract_strided_slice %4 {offsets = [0, 258], sizes = [16, 1024], strides = [1, 1]} : vector<16x1536xbf16> to vector<16x1024xbf16>
    %18 = vector.extract_strided_slice %4 {offsets = [0, 259], sizes = [16, 1024], strides = [1, 1]} : vector<16x1536xbf16> to vector<16x1024xbf16>
    %19 = vector.extract_strided_slice %4 {offsets = [0, 384], sizes = [16, 1024], strides = [1, 1]} : vector<16x1536xbf16> to vector<16x1024xbf16>
    %20 = vector.extract_strided_slice %4 {offsets = [0, 385], sizes = [16, 1024], strides = [1, 1]} : vector<16x1536xbf16> to vector<16x1024xbf16>
    %21 = vector.extract_strided_slice %4 {offsets = [0, 386], sizes = [16, 1024], strides = [1, 1]} : vector<16x1536xbf16> to vector<16x1024xbf16>
    %22 = vector.extract_strided_slice %4 {offsets = [0, 387], sizes = [16, 1024], strides = [1, 1]} : vector<16x1536xbf16> to vector<16x1024xbf16>
    %23 = tpu.concatenate %7, %8, %9, %10, %11, %12, %13, %14, %15, %16, %17, %18, %19, %20, %21, %22 in 0 : vector<16x1024xbf16>, vector<16x1024xbf16>, vector<16x1024xbf16>, vector<16x1024xbf16>, vector<16x1024xbf16>, vector<16x1024xbf16>, vector<16x1024xbf16>, vector<16x1024xbf16>, vector<16x1024xbf16>, vector<16x1024xbf16>, vector<16x1024xbf16>, vector<16x1024xbf16>, vector<16x1024xbf16>, vector<16x1024xbf16>, vector<16x1024xbf16>, vector<16x1024xbf16> -> vector<256x1024xbf16>
    %c0_5 = arith.constant 0 : index
    %c0_6 = arith.constant 0 : index
    %c0_7 = arith.constant 0 : index
    %24 = vector.load %arg3[%c0_5, %c0_6, %c0_7] : memref<4x8x256xbf16, #tpu.memory_space<vmem>>, vector<1x8x256xbf16>
    %25 = vector.shape_cast %24 : vector<1x8x256xbf16> to vector<8x256xbf16>
    %cst = arith.constant dense<0.000000e+00> : vector<8x1024xf32>
    %26 = tpu.matmul %25, %23, %cst {dimension_numbers = #tpu.dot_dimension_numbers<[1], [0], [0], [1], [0, 0, 1, 1], [], []>} : vector<8x256xbf16>, vector<256x1024xbf16>, vector<8x1024xf32> -> vector<8x1024xf32>
    %27 = vector.broadcast %5 : vector<8x1xf32> to vector<8x1024xf32>
    %28 = arith.mulf %26, %27 : vector<8x1024xf32>
    %29 = vector.broadcast %6 : vector<8x1xf32> to vector<8x1024xf32>
    %30 = arith.addf %28, %29 : vector<8x1024xf32>
    %c0_8 = arith.constant 0 : index
    %c0_9 = arith.constant 0 : index
    %c0_10 = arith.constant 0 : index
    %c0_11 = arith.constant 0 : index
    %31 = vector.load %arg6[%c0_8, %c0_9, %c0_10, %c0_11] : memref<1x4x8x1024xf32, #tpu.memory_space<vmem>>, vector<1x1x8x1024xf32>
    %32 = vector.shape_cast %31 : vector<1x1x8x1024xf32> to vector<8x1024xf32>
    %33 = vector.shape_cast %30 : vector<8x1024xf32> to vector<1x1x8x1024xf32>
    tpu.vector_store %arg6[%c0_8, %c0_9, %c0_10, %c0_11], %33 {strides = array<i32>} : memref<1x4x8x1024xf32, #tpu.memory_space<vmem>>, vector<1x1x8x1024xf32>,
    %34 = vector.extract_strided_slice %4 {offsets = [0, 1], sizes = [16, 1024], strides = [1, 1]} : vector<16x1536xbf16> to vector<16x1024xbf16>
    %35 = vector.extract_strided_slice %4 {offsets = [0, 2], sizes = [16, 1024], strides = [1, 1]} : vector<16x1536xbf16> to vector<16x1024xbf16>
    %36 = vector.extract_strided_slice %4 {offsets = [0, 3], sizes = [16, 1024], strides = [1, 1]} : vector<16x1536xbf16> to vector<16x1024xbf16>
    %37 = vector.extract_strided_slice %4 {offsets = [0, 4], sizes = [16, 1024], strides = [1, 1]} : vector<16x1536xbf16> to vector<16x1024xbf16>
    %38 = vector.extract_strided_slice %4 {offsets = [0, 129], sizes = [16, 1024], strides = [1, 1]} : vector<16x1536xbf16> to vector<16x1024xbf16>
    %39 = vector.extract_strided_slice %4 {offsets = [0, 130], sizes = [16, 1024], strides = [1, 1]} : vector<16x1536xbf16> to vector<16x1024xbf16>
    %40 = vector.extract_strided_slice %4 {offsets = [0, 131], sizes = [16, 1024], strides = [1, 1]} : vector<16x1536xbf16> to vector<16x1024xbf16>
    %41 = vector.extract_strided_slice %4 {offsets = [0, 132], sizes = [16, 1024], strides = [1, 1]} : vector<16x1536xbf16> to vector<16x1024xbf16>
    %42 = vector.extract_strided_slice %4 {offsets = [0, 257], sizes = [16, 1024], strides = [1, 1]} : vector<16x1536xbf16> to vector<16x1024xbf16>
    %43 = vector.extract_strided_slice %4 {offsets = [0, 258], sizes = [16, 1024], strides = [1, 1]} : vector<16x1536xbf16> to vector<16x1024xbf16>
    %44 = vector.extract_strided_slice %4 {offsets = [0, 259], sizes = [16, 1024], strides = [1, 1]} : vector<16x1536xbf16> to vector<16x1024xbf16>
    %45 = vector.extract_strided_slice %4 {offsets = [0, 260], sizes = [16, 1024], strides = [1, 1]} : vector<16x1536xbf16> to vector<16x1024xbf16>
    %46 = vector.extract_strided_slice %4 {offsets = [0, 385], sizes = [16, 1024], strides = [1, 1]} : vector<16x1536xbf16> to vector<16x1024xbf16>
    %47 = vector.extract_strided_slice %4 {offsets = [0, 386], sizes = [16, 1024], strides = [1, 1]} : vector<16x1536xbf16> to vector<16x1024xbf16>
    %48 = vector.extract_strided_slice %4 {offsets = [0, 387], sizes = [16, 1024], strides = [1, 1]} : vector<16x1536xbf16> to vector<16x1024xbf16>
    %49 = vector.extract_strided_slice %4 {offsets = [0, 388], sizes = [16, 1024], strides = [1, 1]} : vector<16x1536xbf16> to vector<16x1024xbf16>
    %50 = tpu.concatenate %34, %35, %36, %37, %38, %39, %40, %41, %42, %43, %44, %45, %46, %47, %48, %49 in 0 : vector<16x1024xbf16>, vector<16x1024xbf16>, vector<16x1024xbf16>, vector<16x1024xbf16>, vector<16x1024xbf16>, vector<16x1024xbf16>, vector<16x1024xbf16>, vector<16x1024xbf16>, vector<16x1024xbf16>, vector<16x1024xbf16>, vector<16x1024xbf16>, vector<16x1024xbf16>, vector<16x1024xbf16>, vector<16x1024xbf16>, vector<16x1024xbf16>, vector<16x1024xbf16> -> vector<256x1024xbf16>
    %c1 = arith.constant 1 : index
    %c0_12 = arith.constant 0 : index
    %c0_13 = arith.constant 0 : index
    %51 = vector.load %arg3[%c1, %c0_12, %c0_13] : memref<4x8x256xbf16, #tpu.memory_space<vmem>>, vector<1x8x256xbf16>
    %52 = vector.shape_cast %51 : vector<1x8x256xbf16> to vector<8x256xbf16>
    %cst_14 = arith.constant dense<0.000000e+00> : vector<8x1024xf32>
    %53 = tpu.matmul %52, %50, %cst_14 {dimension_numbers = #tpu.dot_dimension_numbers<[1], [0], [0], [1], [0, 0, 1, 1], [], []>} : vector<8x256xbf16>, vector<256x1024xbf16>, vector<8x1024xf32> -> vector<8x1024xf32>
    %54 = vector.broadcast %5 : vector<8x1xf32> to vector<8x1024xf32>
    %55 = arith.mulf %53, %54 : vector<8x1024xf32>
    %56 = vector.broadcast %6 : vector<8x1xf32> to vector<8x1024xf32>
    %57 = arith.addf %55, %56 : vector<8x1024xf32>
    %c0_15 = arith.constant 0 : index
    %c1_16 = arith.constant 1 : index
    %c0_17 = arith.constant 0 : index
    %c0_18 = arith.constant 0 : index
    %58 = vector.load %arg6[%c0_15, %c1_16, %c0_17, %c0_18] : memref<1x4x8x1024xf32, #tpu.memory_space<vmem>>, vector<1x1x8x1024xf32>
    %59 = vector.shape_cast %58 : vector<1x1x8x1024xf32> to vector<8x1024xf32>
    %60 = vector.shape_cast %57 : vector<8x1024xf32> to vector<1x1x8x1024xf32>
    tpu.vector_store %arg6[%c0_15, %c1_16, %c0_17, %c0_18], %60 {strides = array<i32>} : memref<1x4x8x1024xf32, #tpu.memory_space<vmem>>, vector<1x1x8x1024xf32>,
    %61 = vector.extract_strided_slice %4 {offsets = [0, 0], sizes = [16, 1024], strides = [1, 1]} : vector<16x1536xbf16> to vector<16x1024xbf16>
    %62 = vector.extract_strided_slice %4 {offsets = [0, 1], sizes = [16, 1024], strides = [1, 1]} : vector<16x1536xbf16> to vector<16x1024xbf16>
    %63 = vector.extract_strided_slice %4 {offsets = [0, 2], sizes = [16, 1024], strides = [1, 1]} : vector<16x1536xbf16> to vector<16x1024xbf16>
    %64 = vector.extract_strided_slice %4 {offsets = [0, 3], sizes = [16, 1024], strides = [1, 1]} : vector<16x1536xbf16> to vector<16x1024xbf16>
    %65 = vector.extract_strided_slice %4 {offsets = [0, 128], sizes = [16, 1024], strides = [1, 1]} : vector<16x1536xbf16> to vector<16x1024xbf16>
    %66 = vector.extract_strided_slice %4 {offsets = [0, 129], sizes = [16, 1024], strides = [1, 1]} : vector<16x1536xbf16> to vector<16x1024xbf16>
    %67 = vector.extract_strided_slice %4 {offsets = [0, 130], sizes = [16, 1024], strides = [1, 1]} : vector<16x1536xbf16> to vector<16x1024xbf16>
    %68 = vector.extract_strided_slice %4 {offsets = [0, 131], sizes = [16, 1024], strides = [1, 1]} : vector<16x1536xbf16> to vector<16x1024xbf16>
    %69 = vector.extract_strided_slice %4 {offsets = [0, 256], sizes = [16, 1024], strides = [1, 1]} : vector<16x1536xbf16> to vector<16x1024xbf16>
    %70 = vector.extract_strided_slice %4 {offsets = [0, 257], sizes = [16, 1024], strides = [1, 1]} : vector<16x1536xbf16> to vector<16x1024xbf16>
    %71 = vector.extract_strided_slice %4 {offsets = [0, 258], sizes = [16, 1024], strides = [1, 1]} : vector<16x1536xbf16> to vector<16x1024xbf16>
    %72 = vector.extract_strided_slice %4 {offsets = [0, 259], sizes = [16, 1024], strides = [1, 1]} : vector<16x1536xbf16> to vector<16x1024xbf16>
    %73 = vector.extract_strided_slice %4 {offsets = [0, 384], sizes = [16, 1024], strides = [1, 1]} : vector<16x1536xbf16> to vector<16x1024xbf16>
    %74 = vector.extract_strided_slice %4 {offsets = [0, 385], sizes = [16, 1024], strides = [1, 1]} : vector<16x1536xbf16> to vector<16x1024xbf16>
    %75 = vector.extract_strided_slice %4 {offsets = [0, 386], sizes = [16, 1024], strides = [1, 1]} : vector<16x1536xbf16> to vector<16x1024xbf16>
    %76 = vector.extract_strided_slice %4 {offsets = [0, 387], sizes = [16, 1024], strides = [1, 1]} : vector<16x1536xbf16> to vector<16x1024xbf16>
    %77 = tpu.concatenate %61, %62, %63, %64, %65, %66, %67, %68, %69, %70, %71, %72, %73, %74, %75, %76 in 0 : vector<16x1024xbf16>, vector<16x1024xbf16>, vector<16x1024xbf16>, vector<16x1024xbf16>, vector<16x1024xbf16>, vector<16x1024xbf16>, vector<16x1024xbf16>, vector<16x1024xbf16>, vector<16x1024xbf16>, vector<16x1024xbf16>, vector<16x1024xbf16>, vector<16x1024xbf16>, vector<16x1024xbf16>, vector<16x1024xbf16>, vector<16x1024xbf16>, vector<16x1024xbf16> -> vector<256x1024xbf16>
    %c2 = arith.constant 2 : index
    %c0_19 = arith.constant 0 : index
    %c0_20 = arith.constant 0 : index
    %78 = vector.load %arg3[%c2, %c0_19, %c0_20] : memref<4x8x256xbf16, #tpu.memory_space<vmem>>, vector<1x8x256xbf16>
    %79 = vector.shape_cast %78 : vector<1x8x256xbf16> to vector<8x256xbf16>
    %cst_21 = arith.constant dense<0.000000e+00> : vector<8x1024xf32>
    %80 = tpu.matmul %79, %77, %cst_21 {dimension_numbers = #tpu.dot_dimension_numbers<[1], [0], [0], [1], [0, 0, 1, 1], [], []>} : vector<8x256xbf16>, vector<256x1024xbf16>, vector<8x1024xf32> -> vector<8x1024xf32>
    %81 = vector.broadcast %5 : vector<8x1xf32> to vector<8x1024xf32>
    %82 = arith.mulf %80, %81 : vector<8x1024xf32>
    %83 = vector.broadcast %6 : vector<8x1xf32> to vector<8x1024xf32>
    %84 = arith.addf %82, %83 : vector<8x1024xf32>
    %c0_22 = arith.constant 0 : index
    %c2_23 = arith.constant 2 : index
    %c0_24 = arith.constant 0 : index
    %c0_25 = arith.constant 0 : index
    %85 = vector.load %arg6[%c0_22, %c2_23, %c0_24, %c0_25] : memref<1x4x8x1024xf32, #tpu.memory_space<vmem>>, vector<1x1x8x1024xf32>
    %86 = vector.shape_cast %85 : vector<1x1x8x1024xf32> to vector<8x1024xf32>
    %87 = vector.shape_cast %84 : vector<8x1024xf32> to vector<1x1x8x1024xf32>
    tpu.vector_store %arg6[%c0_22, %c2_23, %c0_24, %c0_25], %87 {strides = array<i32>} : memref<1x4x8x1024xf32, #tpu.memory_space<vmem>>, vector<1x1x8x1024xf32>,
    %88 = vector.extract_strided_slice %4 {offsets = [0, 1], sizes = [16, 1024], strides = [1, 1]} : vector<16x1536xbf16> to vector<16x1024xbf16>
    %89 = vector.extract_strided_slice %4 {offsets = [0, 2], sizes = [16, 1024], strides = [1, 1]} : vector<16x1536xbf16> to vector<16x1024xbf16>
    %90 = vector.extract_strided_slice %4 {offsets = [0, 3], sizes = [16, 1024], strides = [1, 1]} : vector<16x1536xbf16> to vector<16x1024xbf16>
    %91 = vector.extract_strided_slice %4 {offsets = [0, 4], sizes = [16, 1024], strides = [1, 1]} : vector<16x1536xbf16> to vector<16x1024xbf16>
    %92 = vector.extract_strided_slice %4 {offsets = [0, 129], sizes = [16, 1024], strides = [1, 1]} : vector<16x1536xbf16> to vector<16x1024xbf16>
    %93 = vector.extract_strided_slice %4 {offsets = [0, 130], sizes = [16, 1024], strides = [1, 1]} : vector<16x1536xbf16> to vector<16x1024xbf16>
    %94 = vector.extract_strided_slice %4 {offsets = [0, 131], sizes = [16, 1024], strides = [1, 1]} : vector<16x1536xbf16> to vector<16x1024xbf16>
    %95 = vector.extract_strided_slice %4 {offsets = [0, 132], sizes = [16, 1024], strides = [1, 1]} : vector<16x1536xbf16> to vector<16x1024xbf16>
    %96 = vector.extract_strided_slice %4 {offsets = [0, 257], sizes = [16, 1024], strides = [1, 1]} : vector<16x1536xbf16> to vector<16x1024xbf16>
    %97 = vector.extract_strided_slice %4 {offsets = [0, 258], sizes = [16, 1024], strides = [1, 1]} : vector<16x1536xbf16> to vector<16x1024xbf16>
    %98 = vector.extract_strided_slice %4 {offsets = [0, 259], sizes = [16, 1024], strides = [1, 1]} : vector<16x1536xbf16> to vector<16x1024xbf16>
    %99 = vector.extract_strided_slice %4 {offsets = [0, 260], sizes = [16, 1024], strides = [1, 1]} : vector<16x1536xbf16> to vector<16x1024xbf16>
    %100 = vector.extract_strided_slice %4 {offsets = [0, 385], sizes = [16, 1024], strides = [1, 1]} : vector<16x1536xbf16> to vector<16x1024xbf16>
    %101 = vector.extract_strided_slice %4 {offsets = [0, 386], sizes = [16, 1024], strides = [1, 1]} : vector<16x1536xbf16> to vector<16x1024xbf16>
    %102 = vector.extract_strided_slice %4 {offsets = [0, 387], sizes = [16, 1024], strides = [1, 1]} : vector<16x1536xbf16> to vector<16x1024xbf16>
    %103 = vector.extract_strided_slice %4 {offsets = [0, 388], sizes = [16, 1024], strides = [1, 1]} : vector<16x1536xbf16> to vector<16x1024xbf16>
    %104 = tpu.concatenate %88, %89, %90, %91, %92, %93, %94, %95, %96, %97, %98, %99, %100, %101, %102, %103 in 0 : vector<16x1024xbf16>, vector<16x1024xbf16>, vector<16x1024xbf16>, vector<16x1024xbf16>, vector<16x1024xbf16>, vector<16x1024xbf16>, vector<16x1024xbf16>, vector<16x1024xbf16>, vector<16x1024xbf16>, vector<16x1024xbf16>, vector<16x1024xbf16>, vector<16x1024xbf16>, vector<16x1024xbf16>, vector<16x1024xbf16>, vector<16x1024xbf16>, vector<16x1024xbf16> -> vector<256x1024xbf16>
    %c3 = arith.constant 3 : index
    %c0_26 = arith.constant 0 : index
    %c0_27 = arith.constant 0 : index
    %105 = vector.load %arg3[%c3, %c0_26, %c0_27] : memref<4x8x256xbf16, #tpu.memory_space<vmem>>, vector<1x8x256xbf16>
    %106 = vector.shape_cast %105 : vector<1x8x256xbf16> to vector<8x256xbf16>
    %cst_28 = arith.constant dense<0.000000e+00> : vector<8x1024xf32>
    %107 = tpu.matmul %106, %104, %cst_28 {dimension_numbers = #tpu.dot_dimension_numbers<[1], [0], [0], [1], [0, 0, 1, 1], [], []>} : vector<8x256xbf16>, vector<256x1024xbf16>, vector<8x1024xf32> -> vector<8x1024xf32>
    %108 = vector.broadcast %5 : vector<8x1xf32> to vector<8x1024xf32>
    %109 = arith.mulf %107, %108 : vector<8x1024xf32>
    %110 = vector.broadcast %6 : vector<8x1xf32> to vector<8x1024xf32>
    %111 = arith.addf %109, %110 : vector<8x1024xf32>
    %c0_29 = arith.constant 0 : index
    %c3_30 = arith.constant 3 : index
    %c0_31 = arith.constant 0 : index
    %c0_32 = arith.constant 0 : index
    %112 = vector.load %arg6[%c0_29, %c3_30, %c0_31, %c0_32] : memref<1x4x8x1024xf32, #tpu.memory_space<vmem>>, vector<1x1x8x1024xf32>
    %113 = vector.shape_cast %112 : vector<1x1x8x1024xf32> to vector<8x1024xf32>
    %114 = vector.shape_cast %111 : vector<8x1024xf32> to vector<1x1x8x1024xf32>
    tpu.vector_store %arg6[%c0_29, %c3_30, %c0_31, %c0_32], %114 {strides = array<i32>} : memref<1x4x8x1024xf32, #tpu.memory_space<vmem>>, vector<1x1x8x1024xf32>,
    return
  }
  func.func @transform_0(%arg0: i32, %arg1: i32) -> (i32, i32, i32) {
    %c0_i32 = arith.constant 0 : i32
    %c0_i32_0 = arith.constant 0 : i32
    %c0_i32_1 = arith.constant 0 : i32
    return %arg0, %c0_i32, %c0_i32_0 : i32, i32, i32
  }
  func.func @transform_1(%arg0: i32, %arg1: i32) -> (i32, i32, i32) {
    %c0_i32 = arith.constant 0 : i32
    %c0_i32_0 = arith.constant 0 : i32
    %c0_i32_1 = arith.constant 0 : i32
    %c0_i32_2 = arith.constant 0 : i32
    return %c0_i32, %c0_i32_0, %c0_i32_1 : i32, i32, i32
  }
  func.func @transform_2(%arg0: i32, %arg1: i32) -> (i32, i32) {
    %c0_i32 = arith.constant 0 : i32
    %c0_i32_0 = arith.constant 0 : i32
    %c0_i32_1 = arith.constant 0 : i32
    return %c0_i32, %c0_i32_0 : i32, i32
  }
  func.func @transform_3(%arg0: i32, %arg1: i32) -> (i32, i32) {
    %c0_i32 = arith.constant 0 : i32
    %c0_i32_0 = arith.constant 0 : i32
    %c0_i32_1 = arith.constant 0 : i32
    return %c0_i32, %c0_i32_0 : i32, i32
  }
  func.func @transform_4(%arg0: i32, %arg1: i32) -> (i32, i32, i32, i32) {
    %c0_i32 = arith.constant 0 : i32
    %c0_i32_0 = arith.constant 0 : i32
    %c0_i32_1 = arith.constant 0 : i32
    return %arg0, %c0_i32, %c0_i32_0, %arg1 : i32, i32, i32, i32
  }
}

</mosaic_0001>

<bundles_post_ra>
// kernel: conv_decoder_forward.4
= control target key start
LH: loop header
LB: loop body
LE: loop exit
PB: predicated region body
PF: predicated region fallthrough
CT: control target
= control target key end

     0   :  { %9 = vsyncpa [#allocation3], 0  ;;  %s1650_s15 = smov 0   ;;  %s1652_s16 = smov 0   ;;  %s1948_s0 = inlined_call_operand.vmem [shape: bf16[2,8,1152], index: 0, kind: input, shape index: {}]   ;;  %s1949_s1 = inlined_call_operand.hbm [shape: bf16[4,8,32], index: 1, kind: input, shape index: {}]   ;;  %s1950_s2 = inlined_call_operand.vmem [shape: f32[8,1], index: 2, kind: input, shape index: {}]   ;;  %s1951_s3 = inlined_call_operand.vmem [shape: f32[8,1], index: 3, kind: input, shape index: {}]   ;;  %s1952_s4 = inlined_call_operand.vmem [shape: bf16[2,4,8,896], index: 4, kind: output, shape index: {}]  }
   0x1   :  { %s1654_s17 = smov 0  }
   0x2 LB: > { %s1384_s18 = sadd.s32 4294967295, %s1616_s17   ;;  %s27_s19 = sadd.s32 1, %s1612_s16  ;;  %s1616_s17 = sphi %s1654_s17, %s15_s17   ;;  %s1612_s16 = sphi %s1652_s16, %s1962_s16   ;;  %s1608_s15 = sphi %s1650_s15, %s1961_s15  }
   0x3   : > { %p29_p0 = scmp.ge.s32.totalorder %s27_s19, 2  ;;  %p1386_p1 = scmp.ge.s32.totalorder %s1616_s17, 1 }
   0x4   : > { %p149_p2 = scmp.lt.s32.totalorder %s1616_s17, 3  ;;  %p1675_p4 = scmp.eq.s32.totalorder %s1384_s18, 0 }
   0x5   : > { %s1964_s19 = smov (%p29_p0, %s27_s19), 0  ;;  %s1618_s22 = smov [#allocation2]  }
   0x6   : > { %p1671_p3 = pnand %p1386_p1, %p149_p2  ;;  %s161_s23 = sshll.u32 %s1618_s22, 4  ;;  %s162_s23 = int_to_ptr.vmem [resolvable:$true] %s161_s23 }
   0x7   : > { %s1957_s21 = scalar_select %p1675_p4, 1, 0 }
   0x8   : > { %s1956_s20 = scalar_select %p1671_p3, 1, 0 }
   0x9   : > { %p1514_p5 = pneg %p1671_p3  ;;  %s1562_s27 = scalar_lea.hbm %s1949_s1, 256 }
   0xa   : > { %p1563_p7 = scmp.ne.s32.totalorder %s1949_s1, %s1562_s27  ;;  %p1569_p11 = scmp.lt.u32.totalorder %s1562_s27, %s1949_s1 }
   0xb   : > { %p1683_p6 = pnand %p1675_p4, %p1514_p5 }
   0xd   : > { %p1564_p8 = pneg %p1683_p6 }
   0xf   : > { %p1565_p9 = pnand %p1564_p8, %p1563_p7 }
  0x11   : > { %p1566_p10 = pneg %p1565_p9 }
  0x13   : > { %p1571_p12 = pnand %p1569_p11, %p1566_p10 }
  0x15   : > { %1574 = shalt.err (!%p1571_p12)
}
  0x16   : > { %s1575_s6 = scalar_lea.vmem %s162_s23, 256  ;;  %p1583_p2 = scmp.lt.s32.totalorder %s162_s23, %s162_s23 }
  0x17   : > { %p1576_p13 = scmp.ne.s32.totalorder %s162_s23, %s1575_s6  ;;  %p1584_p5 = scmp.lt.s32.totalorder %s1575_s6, %s1575_s6 }
  0x19   : > { %p1578_p0 = pnand %p1576_p13, %p1564_p8  ;;  %p1585_p4 = por %p1584_p5, %p1583_p2 }
  0x1b   : > { %p1579_p1 = pneg %p1578_p0 }
  0x1d   : > { %p1586_p3 = pnand %p1585_p4, %p1579_p1 }
  0x1f   : > { %1589 = shalt.err (!%p1586_p3)
}
  0x20   : > { %s1619_s7 = smov 64   ;;  %s1620_s8 = smov 4  }
  0x21   : > { %1517 = dma.hbm_to_vmem [thread:$0]  (!%p1683_p6), %s1949_s1, 256, %s162_s23, [#allocation3], %s1619_s7, %s1619_s7, %s1620_s8  }
  0x22   : > { %p1959_p7 = scmp.ne.s32.totalorder %s1956_s20, 0 }
  0x23   : > { %p1960_p9 = scmp.ne.s32.totalorder (!%p1959_p7), %s1957_s21, 0 }
  0x24   : > { %191 = sbr.rel (%p1959_p7) target bundleno = 464 (0x1d0), region = 36 }
  0x2b   : > { %1603 = dma.done.wait (%p1960_p9), [#allocation3], 256  }
  0x2c   : > { %1605 = vsyncadd (%p1960_p9), [#allocation3], 4294967040  ;;  %p221_p3 = scmp.lt.s32.totalorder %s1608_s15, 1  ;;  %s1621_s18 = smov 127   ;;  %v1622_v7 = vmov 0   ;;  %v247_v14 = vld [vmem:[%s1950_s2] sm:$0xff] }
  0x2d   : > { %369 = vmatprep.mubr.bf16.mxu0 %v1622_v7  ;;  %410 = vmatprep.mubr.bf16.mxu1 %v1622_v7  ;;  %v248_v15 = vld [vmem:[%s1951_s3] sm:$0xff]  ;;  %vm285_vm0 = vcmask 1039360   ;;  %vm299_vm1 = vcmask 1043456   ;;  %vm333_vm2 = vcmask 261120   ;;  %v1623_v40 = vmov 0.0  }
  0x2e   : > { %s1966_s15 = smov (!%p221_p3, %s1608_s15), 1  ;;  %1551 = vset.pattern.permute.xlu1 %v1622_v7  ;;  %1552 = vset.pattern.permute.xlu0 %v1622_v7  ;;  %v332_v34 = vld [vmem:[#allocation2] sm:$0xf]  ;;  %vm1624_vm3 = vmmov 0   ;;  %v579_v43 = vld [vmem:[#allocation2 + $0x4] sm:$0xf] }
  0x2f   : > { %s1508_s11 = smul.u32 36, %s1966_s15  ;;  %v816_v44 = vld [vmem:[#allocation2 + $0x8] sm:$0xf]  ;;  %v1053_v45 = vld [vmem:[#allocation2 + $0xc] sm:$0xf] }
  0x30   : > { %s1509_s24 = smul.u32 112, %s1966_s15 }
  0x31   : > { %s225_s14 = scalar_lea.vmem %s1948_s0, %s1508_s11 }
  0x32   : > { %v242_v0 = vld [vmem:[%s225_s14] sm:$0xff]  ;;  %v243_v1 = vld [vmem:[%s225_s14 + $0x8] sm:$0xff]  ;;  %v244_v6 = vld [vmem:[%s225_s14 + $0x10] sm:$0xff]  ;;  %s1872_s15 = scalar_lea.vmem %s1952_s4, %s1509_s24 }
  0x33   : > { %v1394_v2 = vcombine.high %v242_v0, %v242_v0  ;;  %v1393_v3 = vcombine.low %v242_v0, %v242_v0  ;;  %v1395_v4 = vcombine.low %v243_v1, %v243_v1  ;;  %v1396_v5 = vcombine.high %v243_v1, %v243_v1  ;;  %v245_v10 = vld [vmem:[%s225_s14 + $0x18] sm:$0xff]  ;;  %v1561_v13 = vld [vmem:[%s225_s14 + $0x20] ss:$0 sps:$4 sm:$0xff]  }
  0x34   : > { %v1397_v8 = vcombine.low %v244_v6, %v244_v6  ;;  %v1398_v9 = vcombine.high %v244_v6, %v244_v6  ;;  %v1399_v11 = vcombine.low %v245_v10, %v245_v10  ;;  %v1400_v12 = vcombine.high %v245_v10, %v245_v10 }
  0x35   : > { %271 = vrot.lane.b32.xlu0 %v1394_v2, %s1621_s18  ;;  %269 = vrot.lane.b32.xlu1 %v1393_v3, %s1621_s18 }
  0x39   : > { %273 = vrot.lane.b32.xlu0 %v1395_v4, %s1621_s18  ;;  %275 = vrot.lane.b32.xlu1 %v1396_v5, %s1621_s18 }
  0x3d   : > { %277 = vrot.lane.b32.xlu0 %v1397_v8, %s1621_s18  ;;  %279 = vrot.lane.b32.xlu1 %v1398_v9, %s1621_s18 }
  0x41   : > { %281 = vrot.lane.b32.xlu0 %v1399_v11, %s1621_s18  ;;  %283 = vrot.lane.b32.xlu1 %v1400_v12, %s1621_s18 }
  0x45   : > { %296 = vrot.lane.b32.xlu0 %v1561_v13, %s1621_s18  ;;  %502 = vperm.xlu1 %1551, %v247_v14  }
  0x49   : > { %514 = vperm.xlu0 %1552, %v248_v15  }
  0xa7   : > { %v272_v16 = vpop.permute.xlu0 %271  ;;  %v270_v17 = vpop.permute.xlu1 %269 }
  0xa8   : > { %v286_v18 = vsel %vm285_vm0, %v270_v17, %v272_v16 }
  0xa9   : > { %v1735_v24 = vsel %vm299_vm1, %v1393_v3, %v286_v18 }
  0xab   : > { %v274_v19 = vpop.permute.xlu0 %273  ;;  %v276_v20 = vpop.permute.xlu1 %275 }
  0xac   : > { %v287_v21 = vsel %vm285_vm0, %v272_v16, %v274_v19  ;;  %v288_v22 = vsel %vm285_vm0, %v274_v19, %v276_v20 }
  0xad   : > { %v1731_v23 = vsel %vm299_vm1, %v1394_v2, %v287_v21  ;;  %v1738_v25 = vsel %vm299_vm1, %v1395_v4, %v288_v22 }
  0xae   : > { %337 = vmatprep.subr.bf16.mxu0 %v1731_v23 }
  0xaf   : > { %v278_v26 = vpop.permute.xlu0 %277  ;;  %338 = vmatpush1.bf16.msra.mxu0 %v1735_v24  ;;  %v280_v27 = vpop.permute.xlu1 %279 }
  0xb0   : > { %v289_v28 = vsel %vm285_vm0, %v276_v20, %v278_v26  ;;  %v290_v29 = vsel %vm285_vm0, %v278_v26, %v280_v27  ;;  %339 = vmatprep.subr.bf16.mxu0 %v1738_v25 }
  0xb1   : > { %v1745_v30 = vsel %vm299_vm1, %v1396_v5, %v289_v28  ;;  %v1749_v31 = vsel %vm299_vm1, %v1397_v8, %v290_v29 }
  0xb2   : > { %378 = vmatprep.subr.bf16.mxu1 %v1745_v30 }
  0xb3   : > { %v282_v32 = vpop.permute.xlu0 %281  ;;  %340 = vmatpush1.bf16.msra.mxu0 %v1731_v23  ;;  %379 = vmatpush1.bf16.msra.mxu1 %v1738_v25  ;;  %v284_v33 = vpop.permute.xlu1 %283 }
  0xb4   : > { %v291_v35 = vsel %vm285_vm0, %v280_v27, %v282_v32  ;;  %380 = vmatprep.subr.bf16.mxu1 %v1749_v31  ;;  %v292_v36 = vsel %vm285_vm0, %v282_v32, %v284_v33 }
  0xb5   : > { %v1757_v37 = vsel %vm299_vm1, %v1398_v9, %v291_v35  ;;  %v1760_v38 = vsel %vm299_vm1, %v1399_v11, %v292_v36 }
  0xb6   : > { %419 = vmatprep.subr.bf16.mxu0 %v1757_v37  ;;  %1402 = vmatmul.mubr.msk.bf16.vlgmr.msra.gmra.mrb[0].mxu0 %vm333_vm2, %v332_v34 }
  0xb7   : > { %381 = vmatpush1.bf16.msra.mxu1 %v1745_v30  ;;  %420 = vmatpush1.bf16.msra.mxu0 %v1749_v31  ;;  %v297_v39 = vpop.permute.xlu0 %296 }
  0xb8   : > { %421 = vmatprep.subr.bf16.mxu0 %v1760_v38  ;;  %1476 = vmatprep.subr.bf16.mxu1 %v1623_v40  ;;  %v298_v41 = vsel %vm285_vm0, %v284_v33, %v297_v39 }
  0xb9   : > { %451 = vmatprep.mubr.bf16.mxu0 %v1622_v7  ;;  %v1779_v42 = vsel %vm299_vm1, %v1400_v12, %v298_v41 }
  0xba   : > { %1403 = vmatmul.mubr.msk.bf16.vlgmr.msra.gmra.mrb[0].mxu1 %vm333_vm2, %v332_v34 }
  0xbb   : > { %422 = vmatpush1.bf16.msra.mxu0 %v1757_v37  ;;  %1477 = vmatpush3.bf16.msra.mxu1 %v1760_v38 }
  0xbc   : > { %583 = vmatprep.subr.bf16.mxu0 %v1731_v23  ;;  %1478 = vmatprep.subr.bf16.mxu1 %v1623_v40 }
  0xbd   : > { %1480 = vmatprep.mubr.msk.bf16.mxu1 %vm1624_vm3, %v1623_v40 }
  0xbe   : > { %1404 = vmatmul.mubr.msk.bf16.vlgmr.msra.gmra.mrb[4].mxu0 %vm333_vm2, %v332_v34 }
  0xbf   : > { %1479 = vmatpush3.bf16.msra.mxu1 %v1779_v42  ;;  %584 = vmatpush1.bf16.msra.mxu0 %v1735_v24 }
  0xc0   : > { %585 = vmatprep.subr.bf16.mxu0 %v1738_v25  ;;  %624 = vmatprep.subr.bf16.mxu1 %v1745_v30 }
  0xc1   : > { %615 = vmatprep.mubr.bf16.mxu0 %v1622_v7 }
  0xc2   : > { %1481 = vmatmul.mubr.msk.bf16.vlgmr.msra.gmra.mrb[4].mxu1 %vm333_vm2, %v332_v34 }
  0xc3   : > { %586 = vmatpush1.bf16.msra.mxu0 %v1731_v23  ;;  %625 = vmatpush1.bf16.msra.mxu1 %v1738_v25 }
  0xc4   : > { %626 = vmatprep.subr.bf16.mxu1 %v1749_v31  ;;  %665 = vmatprep.subr.bf16.mxu0 %v1757_v37  ;;  %v1857_v46 = vpop.permute.xlu1 %502 }
  0xc5   : > { %656 = vmatprep.mubr.bf16.mxu1 %v1622_v7 }
  0xc6   : > { %1410 = vmatmul.mubr.msk.bf16.vlgmr.msra.gmra.mrb[8].mxu0 %vm333_vm2, %v579_v43 }
  0xc7   : > { %627 = vmatpush1.bf16.msra.mxu1 %v1745_v30  ;;  %666 = vmatpush1.bf16.msra.mxu0 %v1749_v31 }
  0xc8   : > { %667 = vmatprep.subr.bf16.mxu0 %v1760_v38  ;;  %1484 = vmatprep.subr.bf16.mxu1 %v1623_v40  ;;  %v1859_v48 = vpop.permute.xlu0 %514 }
  0xc9   : > { %697 = vmatprep.mubr.bf16.mxu0 %v1622_v7 }
  0xca   : > { %1411 = vmatmul.mubr.msk.bf16.vlgmr.msra.gmra.mrb[8].mxu1 %vm333_vm2, %v579_v43 }
  0xcb   : > { %668 = vmatpush1.bf16.msra.mxu0 %v1757_v37  ;;  %1485 = vmatpush3.bf16.msra.mxu1 %v1760_v38 }
  0xcc   : > { %820 = vmatprep.subr.bf16.mxu0 %v1731_v23  ;;  %1486 = vmatprep.subr.bf16.mxu1 %v1623_v40 }
  0xcd   : > { %1488 = vmatprep.mubr.msk.bf16.mxu1 %vm1624_vm3, %v1623_v40 }
  0xce   : > { %1412 = vmatmul.mubr.msk.bf16.vlgmr.msra.gmra.mrb[12].mxu0 %vm333_vm2, %v579_v43 }
  0xcf   : > { %1487 = vmatpush3.bf16.msra.mxu1 %v1779_v42  ;;  %821 = vmatpush1.bf16.msra.mxu0 %v1735_v24 }
  0xd0   : > { %822 = vmatprep.subr.bf16.mxu0 %v1738_v25  ;;  %861 = vmatprep.subr.bf16.mxu1 %v1745_v30 }
  0xd1   : > { %852 = vmatprep.mubr.bf16.mxu0 %v1622_v7 }
  0xd2   : > { %1489 = vmatmul.mubr.msk.bf16.vlgmr.msra.gmra.mrb[12].mxu1 %vm333_vm2, %v579_v43 }
  0xd3   : > { %823 = vmatpush1.bf16.msra.mxu0 %v1731_v23  ;;  %862 = vmatpush1.bf16.msra.mxu1 %v1738_v25 }
  0xd4   : > { %863 = vmatprep.subr.bf16.mxu1 %v1749_v31  ;;  %902 = vmatprep.subr.bf16.mxu0 %v1757_v37 }
  0xd5   : > { %893 = vmatprep.mubr.bf16.mxu1 %v1622_v7 }
  0xd6   : > { %1422 = vmatmul.mubr.msk.bf16.vlgmr.msra.gmra.mrb[16].mxu0 %vm333_vm2, %v816_v44 }
  0xd7   : > { %864 = vmatpush1.bf16.msra.mxu1 %v1745_v30  ;;  %903 = vmatpush1.bf16.msra.mxu0 %v1749_v31 }
  0xd8   : > { %904 = vmatprep.subr.bf16.mxu0 %v1760_v38  ;;  %1492 = vmatprep.subr.bf16.mxu1 %v1623_v40 }
  0xd9   : > { %934 = vmatprep.mubr.bf16.mxu0 %v1622_v7 }
  0xda   : > { %1423 = vmatmul.mubr.msk.bf16.vlgmr.msra.gmra.mrb[16].mxu1 %vm333_vm2, %v816_v44 }
  0xdb   : > { %905 = vmatpush1.bf16.msra.mxu0 %v1757_v37  ;;  %1493 = vmatpush3.bf16.msra.mxu1 %v1760_v38 }
  0xdc   : > { %1057 = vmatprep.subr.bf16.mxu0 %v1731_v23  ;;  %1494 = vmatprep.subr.bf16.mxu1 %v1623_v40 }
  0xdd   : > { %1496 = vmatprep.mubr.msk.bf16.mxu1 %vm1624_vm3, %v1623_v40 }
  0xde   : > { %1424 = vmatmul.mubr.msk.bf16.vlgmr.msra.gmra.mrb[20].mxu0 %vm333_vm2, %v816_v44 }
  0xdf   : > { %1495 = vmatpush3.bf16.msra.mxu1 %v1779_v42  ;;  %1058 = vmatpush1.bf16.msra.mxu0 %v1735_v24 }
  0xe0   : > { %1059 = vmatprep.subr.bf16.mxu0 %v1738_v25  ;;  %1098 = vmatprep.subr.bf16.mxu1 %v1745_v30 }
  0xe1   : > { %1089 = vmatprep.mubr.bf16.mxu0 %v1622_v7 }
  0xe2   : > { %1497 = vmatmul.mubr.msk.bf16.vlgmr.msra.gmra.mrb[20].mxu1 %vm333_vm2, %v816_v44 }
  0xe3   : > { %1060 = vmatpush1.bf16.msra.mxu0 %v1731_v23  ;;  %1099 = vmatpush1.bf16.msra.mxu1 %v1738_v25 }
  0xe4   : > { %1100 = vmatprep.subr.bf16.mxu1 %v1749_v31  ;;  %1139 = vmatprep.subr.bf16.mxu0 %v1757_v37 }
  0xe5   : > { %1130 = vmatprep.mubr.bf16.mxu1 %v1622_v7 }
  0xe6   : > { %1434 = vmatmul.mubr.msk.bf16.vlgmr.msra.gmra.mrb[24].mxu0 %vm333_vm2, %v1053_v45 }
  0xe7   : > { %1101 = vmatpush1.bf16.msra.mxu1 %v1745_v30  ;;  %1140 = vmatpush1.bf16.msra.mxu0 %v1749_v31 }
  0xe8   : > { %1141 = vmatprep.subr.bf16.mxu0 %v1760_v38  ;;  %1500 = vmatprep.subr.bf16.mxu1 %v1623_v40 }
  0xe9   : > { %1171 = vmatprep.mubr.bf16.mxu0 %v1622_v7 }
  0xea   : > { %1435 = vmatmul.mubr.msk.bf16.vlgmr.msra.gmra.mrb[24].mxu1 %vm333_vm2, %v1053_v45 }
  0xeb   : > { %1142 = vmatpush1.bf16.msra.mxu0 %v1757_v37  ;;  %1501 = vmatpush3.bf16.msra.mxu1 %v1760_v38 }
  0xec   : > { %1502 = vmatprep.subr.bf16.mxu1 %v1623_v40  ;;  %1504 = vmatprep.mubr.msk.bf16.mxu1 %vm1624_vm3, %v1623_v40 }
  0xee   : > { %1436 = vmatmul.mubr.msk.bf16.vlgmr.msra.gmra.mrb[28].mxu0 %vm333_vm2, %v1053_v45 }
  0xef   : > { %1503 = vmatpush3.bf16.msra.mxu1 %v1779_v42 }
  0xf2   : > { %1505 = vmatmul.mubr.msk.bf16.vlgmr.msra.gmra.mrb[28].mxu1 %vm333_vm2, %v1053_v45 }
 0x189   : > { %v371_v47 = vpop.f32.mrb[0].mxu0 }
 0x18a   : > { %v373_v49 = vpop.f32.mrb[1].mxu0  ;;  %v505_v50 = vmul.f32 %v1857_v46, %v371_v47 }
 0x18b   : > { %v506_v51 = vmul.f32 %v1857_v46, %v373_v49  ;;  %v375_v52 = vpop.f32.mrb[2].mxu0 }
 0x18c   : > { %v517_v53 = vadd.f32 %v1859_v48, %v505_v50  ;;  %v376_v54 = vpop.f32.mrb[3].mxu0 }
 0x18d   : > { %v518_v55 = vadd.f32 %v1859_v48, %v506_v51  ;;  %v412_v56 = vpop.f32.mrb[0].mxu1 }
 0x18e   : > { %vm524_vm4 = vcmp.ge.f32.partialorder %v517_v53, 0.0  ;;  %v531_v57 = vmul.f32 0.22916667, %v517_v53  ;;  %v507_v58 = vmul.f32 %v1857_v46, %v412_v56  ;;  %v414_v59 = vpop.f32.mrb[1].mxu1 }
 0x18f   : > { %vm525_vm5 = vcmp.ge.f32.partialorder %v518_v55, 0.0  ;;  %v532_v60 = vmul.f32 0.22916667, %v518_v55  ;;  %v508_v61 = vmul.f32 %v1857_v46, %v414_v59  ;;  %v416_v62 = vpop.f32.mrb[2].mxu1 }
 0x190   : > { %v538_v63 = vsel %vm524_vm4, %v517_v53, %v531_v57  ;;  %v519_v0 = vadd.f32 %v1859_v48, %v507_v58  ;;  %v417_v1 = vpop.f32.mrb[3].mxu1 }
 0x191   : > { %v539_v2 = vsel %vm525_vm5, %v518_v55, %v532_v60  ;;  %v520_v3 = vadd.f32 %v1859_v48, %v508_v61  ;;  %v453_v4 = vpop.f32.mrb[4].mxu0 }
 0x192   : > { %v1448_v5 = vpack.c.bf16 %v539_v2, %v538_v63  ;;  %vm526_vm6 = vcmp.ge.f32.partialorder %v519_v0, 0.0  ;;  %v533_v6 = vmul.f32 0.22916667, %v519_v0  ;;  %v509_v7 = vmul.f32 %v1857_v46, %v453_v4  ;;  %v455_v8 = vpop.f32.mrb[5].mxu0 }
 0x193   : > { %vm527_vm7 = vcmp.ge.f32.partialorder %v520_v3, 0.0  ;;  %v534_v9 = vmul.f32 0.22916667, %v520_v3  ;;  %v510_v10 = vmul.f32 %v1857_v46, %v455_v8  ;;  %v457_v11 = vpop.f32.mrb[6].mxu0 }
 0x194   : > { %574 = vst [vmem:[%s1872_s15] sm:$0xff] %v1448_v5  ;;  %v540_v12 = vsel %vm526_vm6, %v519_v0, %v533_v6  ;;  %v521_v13 = vadd.f32 %v1859_v48, %v509_v7  ;;  %v458_v14 = vpop.f32.mrb[7].mxu0 }
 0x195   : > { %v541_v15 = vsel %vm527_vm7, %v520_v3, %v534_v9  ;;  %v522_v16 = vadd.f32 %v1859_v48, %v510_v10  ;;  %v494_v17 = vpop.f32.mrb[4].mxu1 }
 0x196   : > { %v1449_v18 = vpack.c.bf16 %v541_v15, %v540_v12  ;;  %vm528_vm8 = vcmp.ge.f32.partialorder %v521_v13, 0.0  ;;  %v535_v19 = vmul.f32 0.22916667, %v521_v13  ;;  %v511_v20 = vmul.f32 %v1857_v46, %v494_v17  ;;  %v1482_v21 = vpop.f32.mrb[5].mxu1 }
 0x197   : > { %vm529_vm9 = vcmp.ge.f32.partialorder %v522_v16, 0.0  ;;  %v536_v22 = vmul.f32 0.22916667, %v522_v16  ;;  %v497_v23 = vpop.f32.mrb[6].mxu1 }
 0x198   : > { %575 = vst [vmem:[%s1872_s15 + $0x8] sm:$0xff] %v1449_v18  ;;  %v542_v24 = vsel %vm528_vm8, %v521_v13, %v535_v19  ;;  %v523_v25 = vadd.f32 %v1859_v48, %v511_v20  ;;  %v1483_v26 = vpop.f32.mrb[7].mxu1 }
 0x199   : > { %v543_v27 = vsel %vm529_vm9, %v522_v16, %v536_v22  ;;  %v617_v28 = vpop.f32.mrb[8].mxu0 }
 0x19a   : > { %v1450_v29 = vpack.c.bf16 %v543_v27, %v542_v24  ;;  %vm530_vm10 = vcmp.ge.f32.partialorder %v523_v25, 0.0  ;;  %v537_v30 = vmul.f32 0.22916667, %v523_v25  ;;  %v746_v31 = vmul.f32 %v617_v28, %v1857_v46  ;;  %v619_v32 = vpop.f32.mrb[9].mxu0 }
 0x19b   : > { %v747_v33 = vmul.f32 %v619_v32, %v1857_v46  ;;  %v621_v34 = vpop.f32.mrb[10].mxu0 }
 0x19c   : > { %576 = vst [vmem:[%s1872_s15 + $0x10] sm:$0xff] %v1450_v29  ;;  %v544_v35 = vsel %vm530_vm10, %v523_v25, %v537_v30  ;;  %v753_v36 = vadd.f32 %v746_v31, %v1859_v48  ;;  %v622_v37 = vpop.f32.mrb[11].mxu0 }
 0x19d   : > { %v1451_v38 = vpack.c.bf16 %v544_v35, %v544_v35  ;;  %v754_v39 = vadd.f32 %v747_v33, %v1859_v48  ;;  %v658_v40 = vpop.f32.mrb[8].mxu1 }
 0x19e   : > { %vm760_vm11 = vcmp.ge.f32.partialorder %v753_v36, 0.0  ;;  %v767_v41 = vmul.f32 0.22916667, %v753_v36  ;;  %v748_v42 = vmul.f32 %v658_v40, %v1857_v46  ;;  %v660_v43 = vpop.f32.mrb[9].mxu1 }
 0x19f   : > { %577 = vst [vmem:[%s1872_s15 + $0x18] sm:$0xf] %v1451_v38  ;;  %vm761_vm12 = vcmp.ge.f32.partialorder %v754_v39, 0.0  ;;  %v768_v44 = vmul.f32 0.22916667, %v754_v39  ;;  %v749_v45 = vmul.f32 %v660_v43, %v1857_v46  ;;  %v662_v47 = vpop.f32.mrb[10].mxu1 }
 0x1a0   : > { %v774_v49 = vsel %vm760_vm11, %v753_v36, %v767_v41  ;;  %v755_v50 = vadd.f32 %v748_v42, %v1859_v48  ;;  %v663_v51 = vpop.f32.mrb[11].mxu1 }
 0x1a1   : > { %v775_v52 = vsel %vm761_vm12, %v754_v39, %v768_v44  ;;  %v756_v53 = vadd.f32 %v749_v45, %v1859_v48  ;;  %v699_v54 = vpop.f32.mrb[12].mxu0 }
 0x1a2   : > { %v1452_v55 = vpack.c.bf16 %v775_v52, %v774_v49  ;;  %vm762_vm13 = vcmp.ge.f32.partialorder %v755_v50, 0.0  ;;  %v769_v56 = vmul.f32 0.22916667, %v755_v50  ;;  %v750_v57 = vmul.f32 %v699_v54, %v1857_v46  ;;  %v701_v58 = vpop.f32.mrb[13].mxu0 }
 0x1a3   : > { %vm763_vm14 = vcmp.ge.f32.partialorder %v756_v53, 0.0  ;;  %v770_v59 = vmul.f32 0.22916667, %v756_v53  ;;  %v751_v60 = vmul.f32 %v701_v58, %v1857_v46  ;;  %v703_v61 = vpop.f32.mrb[14].mxu0 }
 0x1a4   : > { %1418 = vst [vmem:[%s1872_s15 + $0x1c] sm:$0xff] %v1452_v55  ;;  %v776_v62 = vsel %vm762_vm13, %v755_v50, %v769_v56  ;;  %v757_v63 = vadd.f32 %v750_v57, %v1859_v48  ;;  %v704_v0 = vpop.f32.mrb[15].mxu0 }
 0x1a5   : > { %v777_v1 = vsel %vm763_vm14, %v756_v53, %v770_v59  ;;  %v758_v2 = vadd.f32 %v751_v60, %v1859_v48  ;;  %v740_v3 = vpop.f32.mrb[12].mxu1 }
 0x1a6   : > { %v1453_v4 = vpack.c.bf16 %v777_v1, %v776_v62  ;;  %vm764_vm15 = vcmp.ge.f32.partialorder %v757_v63, 0.0  ;;  %v771_v5 = vmul.f32 0.22916667, %v757_v63  ;;  %v752_v6 = vmul.f32 %v740_v3, %v1857_v46  ;;  %v1490_v7 = vpop.f32.mrb[13].mxu1 }
 0x1a7   : > { %vm765_vm0 = vcmp.ge.f32.partialorder %v758_v2, 0.0  ;;  %v772_v8 = vmul.f32 0.22916667, %v758_v2  ;;  %v743_v9 = vpop.f32.mrb[14].mxu1 }
 0x1a8   : > { %1419 = vst [vmem:[%s1872_s15 + $0x24] sm:$0xff] %v1453_v4  ;;  %v778_v10 = vsel %vm764_vm15, %v757_v63, %v771_v5  ;;  %v759_v11 = vadd.f32 %v752_v6, %v1859_v48  ;;  %v1491_v12 = vpop.f32.mrb[15].mxu1 }
 0x1a9   : > { %v779_v13 = vsel %vm765_vm0, %v758_v2, %v772_v8  ;;  %v854_v14 = vpop.f32.mrb[16].mxu0 }
 0x1aa   : > { %v1454_v15 = vpack.c.bf16 %v779_v13, %v778_v10  ;;  %vm766_vm1 = vcmp.ge.f32.partialorder %v759_v11, 0.0  ;;  %v773_v16 = vmul.f32 0.22916667, %v759_v11  ;;  %v983_v17 = vmul.f32 %v854_v14, %v1857_v46  ;;  %v856_v18 = vpop.f32.mrb[17].mxu0 }
 0x1ab   : > { %v984_v19 = vmul.f32 %v856_v18, %v1857_v46  ;;  %v858_v20 = vpop.f32.mrb[18].mxu0 }
 0x1ac   : > { %1420 = vst [vmem:[%s1872_s15 + $0x2c] sm:$0xff] %v1454_v15  ;;  %v780_v21 = vsel %vm766_vm1, %v759_v11, %v773_v16  ;;  %v990_v22 = vadd.f32 %v983_v17, %v1859_v48  ;;  %v859_v23 = vpop.f32.mrb[19].mxu0 }
 0x1ad   : > { %v1455_v24 = vpack.c.bf16 %v780_v21, %v780_v21  ;;  %v991_v25 = vadd.f32 %v984_v19, %v1859_v48  ;;  %v895_v26 = vpop.f32.mrb[16].mxu1 }
 0x1ae   : > { %vm997_vm2 = vcmp.ge.f32.partialorder %v990_v22, 0.0  ;;  %v1004_v27 = vmul.f32 0.22916667, %v990_v22  ;;  %v985_v28 = vmul.f32 %v895_v26, %v1857_v46  ;;  %v897_v29 = vpop.f32.mrb[17].mxu1 }
 0x1af   : > { %1421 = vst [vmem:[%s1872_s15 + $0x34] sm:$0xf] %v1455_v24  ;;  %vm998_vm3 = vcmp.ge.f32.partialorder %v991_v25, 0.0  ;;  %v1005_v30 = vmul.f32 0.22916667, %v991_v25  ;;  %v986_v31 = vmul.f32 %v897_v29, %v1857_v46  ;;  %v899_v32 = vpop.f32.mrb[18].mxu1 }
 0x1b0   : > { %v1011_v33 = vsel %vm997_vm2, %v990_v22, %v1004_v27  ;;  %v992_v34 = vadd.f32 %v985_v28, %v1859_v48  ;;  %v900_v35 = vpop.f32.mrb[19].mxu1 }
 0x1b1   : > { %v1012_v36 = vsel %vm998_vm3, %v991_v25, %v1005_v30  ;;  %v993_v37 = vadd.f32 %v986_v31, %v1859_v48  ;;  %v936_v38 = vpop.f32.mrb[20].mxu0 }
 0x1b2   : > { %v1456_v39 = vpack.c.bf16 %v1012_v36, %v1011_v33  ;;  %vm999_vm4 = vcmp.ge.f32.partialorder %v992_v34, 0.0  ;;  %v1006_v40 = vmul.f32 0.22916667, %v992_v34  ;;  %v987_v41 = vmul.f32 %v936_v38, %v1857_v46  ;;  %v938_v42 = vpop.f32.mrb[21].mxu0 }
 0x1b3   : > { %vm1000_vm5 = vcmp.ge.f32.partialorder %v993_v37, 0.0  ;;  %v1007_v43 = vmul.f32 0.22916667, %v993_v37  ;;  %v988_v44 = vmul.f32 %v938_v42, %v1857_v46  ;;  %v940_v45 = vpop.f32.mrb[22].mxu0 }
 0x1b4   : > { %1430 = vst [vmem:[%s1872_s15 + $0x38] sm:$0xff] %v1456_v39  ;;  %v1013_v47 = vsel %vm999_vm4, %v992_v34, %v1006_v40  ;;  %v994_v49 = vadd.f32 %v987_v41, %v1859_v48  ;;  %v941_v50 = vpop.f32.mrb[23].mxu0 }
 0x1b5   : > { %v1014_v51 = vsel %vm1000_vm5, %v993_v37, %v1007_v43  ;;  %v995_v52 = vadd.f32 %v988_v44, %v1859_v48  ;;  %v977_v53 = vpop.f32.mrb[20].mxu1 }
 0x1b6   : > { %v1457_v54 = vpack.c.bf16 %v1014_v51, %v1013_v47  ;;  %vm1001_vm6 = vcmp.ge.f32.partialorder %v994_v49, 0.0  ;;  %v1008_v55 = vmul.f32 0.22916667, %v994_v49  ;;  %v989_v56 = vmul.f32 %v977_v53, %v1857_v46  ;;  %v1498_v57 = vpop.f32.mrb[21].mxu1 }
 0x1b7   : > { %vm1002_vm7 = vcmp.ge.f32.partialorder %v995_v52, 0.0  ;;  %v1009_v58 = vmul.f32 0.22916667, %v995_v52  ;;  %v980_v59 = vpop.f32.mrb[22].mxu1 }
 0x1b8   : > { %1431 = vst [vmem:[%s1872_s15 + $0x40] sm:$0xff] %v1457_v54  ;;  %v1015_v60 = vsel %vm1001_vm6, %v994_v49, %v1008_v55  ;;  %v996_v61 = vadd.f32 %v989_v56, %v1859_v48  ;;  %v1499_v62 = vpop.f32.mrb[23].mxu1 }
 0x1b9   : > { %v1016_v63 = vsel %vm1002_vm7, %v995_v52, %v1009_v58  ;;  %v1091_v0 = vpop.f32.mrb[24].mxu0 }
 0x1ba   : > { %v1458_v1 = vpack.c.bf16 %v1016_v63, %v1015_v60  ;;  %vm1003_vm8 = vcmp.ge.f32.partialorder %v996_v61, 0.0  ;;  %v1010_v2 = vmul.f32 0.22916667, %v996_v61  ;;  %v1220_v3 = vmul.f32 %v1091_v0, %v1857_v46  ;;  %v1093_v4 = vpop.f32.mrb[25].mxu0 }
 0x1bb   : > { %v1221_v5 = vmul.f32 %v1093_v4, %v1857_v46  ;;  %v1095_v6 = vpop.f32.mrb[26].mxu0 }
 0x1bc   : > { %1432 = vst [vmem:[%s1872_s15 + $0x48] sm:$0xff] %v1458_v1  ;;  %v1017_v7 = vsel %vm1003_vm8, %v996_v61, %v1010_v2  ;;  %v1227_v8 = vadd.f32 %v1220_v3, %v1859_v48  ;;  %v1096_v9 = vpop.f32.mrb[27].mxu0 }
 0x1bd   : > { %v1459_v10 = vpack.c.bf16 %v1017_v7, %v1017_v7  ;;  %v1228_v11 = vadd.f32 %v1221_v5, %v1859_v48  ;;  %v1132_v12 = vpop.f32.mrb[24].mxu1 }
 0x1be   : > { %vm1234_vm9 = vcmp.ge.f32.partialorder %v1227_v8, 0.0  ;;  %v1241_v13 = vmul.f32 0.22916667, %v1227_v8  ;;  %v1222_v14 = vmul.f32 %v1132_v12, %v1857_v46  ;;  %v1134_v15 = vpop.f32.mrb[25].mxu1 }
 0x1bf   : > { %1433 = vst [vmem:[%s1872_s15 + $0x50] sm:$0xf] %v1459_v10  ;;  %vm1235_vm10 = vcmp.ge.f32.partialorder %v1228_v11, 0.0  ;;  %v1242_v16 = vmul.f32 0.22916667, %v1228_v11  ;;  %v1223_v17 = vmul.f32 %v1134_v15, %v1857_v46  ;;  %v1136_v18 = vpop.f32.mrb[26].mxu1 }
 0x1c0   : > { %v1248_v19 = vsel %vm1234_vm9, %v1227_v8, %v1241_v13  ;;  %v1229_v20 = vadd.f32 %v1222_v14, %v1859_v48  ;;  %v1137_v21 = vpop.f32.mrb[27].mxu1 }
 0x1c1   : > { %v1249_v22 = vsel %vm1235_vm10, %v1228_v11, %v1242_v16  ;;  %v1230_v23 = vadd.f32 %v1223_v17, %v1859_v48  ;;  %v1173_v24 = vpop.f32.mrb[28].mxu0 }
 0x1c2   : > { %v1460_v25 = vpack.c.bf16 %v1249_v22, %v1248_v19  ;;  %vm1236_vm11 = vcmp.ge.f32.partialorder %v1229_v20, 0.0  ;;  %v1243_v26 = vmul.f32 0.22916667, %v1229_v20  ;;  %v1224_v27 = vmul.f32 %v1173_v24, %v1857_v46  ;;  %v1175_v28 = vpop.f32.mrb[29].mxu0 }
 0x1c3   : > { %vm1237_vm12 = vcmp.ge.f32.partialorder %v1230_v23, 0.0  ;;  %v1244_v29 = vmul.f32 0.22916667, %v1230_v23  ;;  %v1225_v30 = vmul.f32 %v1175_v28, %v1857_v46  ;;  %v1177_v31 = vpop.f32.mrb[30].mxu0 }
 0x1c4   : > { %1442 = vst [vmem:[%s1872_s15 + $0x54] sm:$0xff] %v1460_v25  ;;  %v1250_v32 = vsel %vm1236_vm11, %v1229_v20, %v1243_v26  ;;  %v1231_v33 = vadd.f32 %v1224_v27, %v1859_v48  ;;  %v1178_v34 = vpop.f32.mrb[31].mxu0 }
 0x1c5   : > { %v1251_v35 = vsel %vm1237_vm12, %v1230_v23, %v1244_v29  ;;  %v1232_v36 = vadd.f32 %v1225_v30, %v1859_v48  ;;  %v1214_v37 = vpop.f32.mrb[28].mxu1 }
 0x1c6   : > { %v1461_v38 = vpack.c.bf16 %v1251_v35, %v1250_v32  ;;  %vm1238_vm13 = vcmp.ge.f32.partialorder %v1231_v33, 0.0  ;;  %v1245_v39 = vmul.f32 0.22916667, %v1231_v33  ;;  %v1226_v40 = vmul.f32 %v1214_v37, %v1857_v46  ;;  %v1506_v41 = vpop.f32.mrb[29].mxu1 }
 0x1c7   : > { %vm1239_vm14 = vcmp.ge.f32.partialorder %v1232_v36, 0.0  ;;  %v1246_v42 = vmul.f32 0.22916667, %v1232_v36  ;;  %v1217_v43 = vpop.f32.mrb[30].mxu1 }
 0x1c8   : > { %1443 = vst [vmem:[%s1872_s15 + $0x5c] sm:$0xff] %v1461_v38  ;;  %v1252_v44 = vsel %vm1238_vm13, %v1231_v33, %v1245_v39  ;;  %v1233_v45 = vadd.f32 %v1226_v40, %v1859_v48  ;;  %v1507_v47 = vpop.f32.mrb[31].mxu1 }
 0x1c9   : > { %v1253_v49 = vsel %vm1239_vm14, %v1232_v36, %v1246_v42 }
 0x1ca   : > { %v1462_v50 = vpack.c.bf16 %v1253_v49, %v1252_v44  ;;  %vm1240_vm15 = vcmp.ge.f32.partialorder %v1233_v45, 0.0  ;;  %v1247_v51 = vmul.f32 0.22916667, %v1233_v45 }
 0x1cc   : > { %1444 = vst [vmem:[%s1872_s15 + $0x64] sm:$0xff] %v1462_v50  ;;  %v1254_v52 = vsel %vm1240_vm15, %v1233_v45, %v1247_v51 }
 0x1cd   : > { %v1463_v53 = vpack.c.bf16 %v1254_v52, %v1254_v52 }
 0x1cf   : > { %1445 = vst [vmem:[%s1872_s15 + $0x6c] sm:$0xf] %v1463_v53 }
 0x1d0 PF: > { %s15_s17 = sadd.s32 1, %s1616_s17   ;;  %s1961_s15 = smov %s1612_s16 }
 0x1d1   : > { %p12_p4 = scmp.ge.s32.totalorder %s15_s17, 4   ;;  %s1962_s16 = smov %s1964_s19 }
 0x1d3   :  { %14 = sbr.rel (!%p12_p4) target bundleno = 2 (0x2), region = 78 }
 0x1da   :  { %1319 = vsyncpa [#allocation3], 1 }
 0x1db   :  { %1321 = vsyncpa [#allocation3 + $0x1], 1 }

// kernel: conv_decoder_forward.5
= control target key start
LH: loop header
LB: loop body
LE: loop exit
PB: predicated region body
PF: predicated region fallthrough
CT: control target
= control target key end

     0   :  { %9 = vsyncpa [#allocation3], 0  ;;  %s2188_s15 = smov 0   ;;  %s2190_s16 = smov 0   ;;  %s3151_s0 = inlined_call_operand.vmem [shape: bf16[2,8,2560], index: 0, kind: input, shape index: {}]   ;;  %s3152_s1 = inlined_call_operand.hbm [shape: bf16[4,8,72], index: 1, kind: input, shape index: {}]   ;;  %s3153_s2 = inlined_call_operand.vmem [shape: f32[8,1], index: 2, kind: input, shape index: {}]   ;;  %s3154_s3 = inlined_call_operand.vmem [shape: f32[8,1], index: 3, kind: input, shape index: {}]   ;;  %s3155_s4 = inlined_call_operand.vmem [shape: bf16[2,4,8,2048], index: 4, kind: output, shape index: {}]  }
   0x1   :  { %s2192_s17 = smov 0   ;;  %s2194_s18 = smov 0  }
   0x2   :  { %s2196_s19 = smov 0   ;;  %s2198_s20 = smov 0  }
   0x3   :  { %s2200_s21 = smov 0  }
   0x4 LB: > { %s1875_s22 = sadd.s32 4294967295, %s2154_s21   ;;  %s24_s23 = sadd.s32 1, %s2146_s19  ;;  %s2154_s21 = sphi %s2200_s21, %s15_s21   ;;  %s2150_s20 = sphi %s2198_s20, %s3189_s20   ;;  %s2146_s19 = sphi %s2196_s19, %s3188_s19   ;;  %s2142_s18 = sphi %s2194_s18, %s3187_s18   ;;  %s2138_s17 = sphi %s2192_s17, %s3186_s17   ;;  %s2134_s16 = sphi %s2190_s16, %s3185_s16   ;;  %s2130_s15 = sphi %s2188_s15, %s3184_s15  }
   0x5   : > { %p25_p0 = scmp.ge.s32.totalorder %s24_s23, 2  ;;  %s27_s24 = sadd.s32 1, %s2150_s20 }
   0x6   : > { %s125_s25 = sadd.s32 1, %s2134_s16  ;;  %p135_p1 = scmp.ne.s32.totalorder %s2134_s16, %s2130_s15 }
   0x7   : > { %s3191_s23 = smov (%p25_p0, %s24_s23), 0  ;;  %s3193_s24 = smov (!%p25_p0, %s27_s24), %s2150_s20 }
   0x8   : > { %s121_s26 = ssub.s32 %s2146_s19, %s3191_s23  ;;  %p136_p2 = scmp.eq.s32.totalorder %s1875_s22, 3 }
   0x9   : > { %p29_p3 = scmp.ge.s32.totalorder %s3193_s24, 2  ;;  %p1877_p4 = scmp.ge.s32.totalorder %s2154_s21, 1 }
   0xa   : > { %p2235_p5 = por %p136_p2, %p135_p1  ;;  %p149_p6 = scmp.lt.s32.totalorder %s2154_s21, 5 }
   0xb   : > { %s3195_s24 = smov (%p29_p3, %s3193_s24), 0  ;;  %p2248_p8 = scmp.eq.s32.totalorder %s1875_s22, 0 }
   0xc   : > { %s3166_s27 = scalar_select %p2235_p5, 1, 0 }
   0xd   : > { %p2242_p7 = pnand %p1877_p4, %p149_p6  ;;  %s120_s29 = ssub.s32 %s2150_s20, %s3195_s24 }
   0xe   : > { %s3168_s30 = scalar_select %p2248_p8, 1, 0 }
   0xf   : > { %s3167_s28 = scalar_select %p2242_p7, 1, 0 }
  0x10   : > { %s122_s5 = sor.u32 %s121_s26, %s120_s29  ;;  %p1985_p9 = pneg %p2242_p7 }
  0x11   : > { %p123_p10 = scmp.eq.s32.totalorder %s122_s5, 0  ;;  %s2156_s6 = smov [#allocation2]  }
  0x12   : > { %s161_s7 = sshll.u32 %s2156_s6, 4  ;;  %p2256_p11 = pnand %p2248_p8, %p1985_p9  ;;  %s162_s7 = int_to_ptr.vmem [resolvable:$true] %s161_s7 }
  0x13   : > { %s2261_s9 = scalar_select %p123_p10, %s2134_s16, %s125_s25  }
  0x14   : > { %s2068_s12 = scalar_lea.hbm %s3152_s1, 256  ;;  %p2070_p13 = pneg %p2256_p11 }
  0x15   : > { %p2069_p12 = scmp.ne.s32.totalorder %s3152_s1, %s2068_s12  ;;  %p2075_p2 = scmp.lt.u32.totalorder %s2068_s12, %s3152_s1 }
  0x17   : > { %p2071_p0 = pnand %p2070_p13, %p2069_p12 }
  0x19   : > { %p2072_p1 = pneg %p2071_p0 }
  0x1b   : > { %p2077_p3 = pnand %p2075_p2, %p2072_p1 }
  0x1d   : > { %2080 = shalt.err (!%p2077_p3)
}
  0x1e   : > { %s2081_s25 = scalar_lea.vmem %s162_s7, 256  ;;  %p2089_p10 = scmp.lt.s32.totalorder %s162_s7, %s162_s7 }
  0x1f   : > { %p2082_p4 = scmp.ne.s32.totalorder %s162_s7, %s2081_s25  ;;  %p2090_p5 = scmp.lt.s32.totalorder %s2081_s25, %s2081_s25 }
  0x21   : > { %p2084_p6 = pnand %p2082_p4, %p2070_p13  ;;  %p2091_p8 = por %p2090_p5, %p2089_p10 }
  0x23   : > { %p2085_p9 = pneg %p2084_p6 }
  0x25   : > { %p2092_p7 = pnand %p2091_p8, %p2085_p9 }
  0x27   : > { %2095 = shalt.err (!%p2092_p7)
}
  0x28   : > { %s2157_s29 = smov 64   ;;  %s2158_s5 = smov 4  }
  0x29   : > { %1988 = dma.hbm_to_vmem [thread:$0]  (!%p2256_p11), %s3152_s1, 256, %s162_s7, [#allocation3], %s2157_s29, %s2157_s29, %s2158_s5  }
  0x2a   : > { %p3170_p12 = scmp.ne.s32.totalorder %s3167_s28, 0 }
  0x2c   : > { %191 = sbr.rel (%p3170_p12) target bundleno = 708 (0x2c4), region = 36 }
  0x33   : > { %p3171_p0 = scmp.ne.s32.totalorder %s3168_s30, 0 }
  0x35   : > { %2125 = dma.done.wait (%p3171_p0), [#allocation3], 256  }
  0x36   : > { %2127 = vsyncadd (%p3171_p0), [#allocation3], 4294967040  ;;  %p216_p5 = scmp.lt.s32.totalorder %s2142_s18, 1  ;;  %s1884_s11 = sshll.u32 %s2138_s17, 10  ;;  %v3159_v11 = vmov 0   ;;  %vm277_vm0 = vcmask 1039360  }
  0x37   : > { %s224_s12 = sshra.s32 %s1884_s11, 7  ;;  %s2159_s30 = smov 127   ;;  %507 = vmatprep.mubr.bf16.mxu1 %v3159_v11  ;;  %466 = vmatprep.mubr.bf16.mxu0 %v3159_v11  ;;  %vm330_vm1 = vcmask 1043456   ;;  %vm304_vm2 = vcmask 1031168   ;;  %vm413_vm3 = vcmask 588800   ;;  %vm1416_vm4 = vcmask 1022976  }
  0x38   : > { %s217_s8 = scalar_select %p216_p5, %s2142_s18, 1  ;;  %2054 = vset.pattern.permute.xlu0 %v3159_v11  ;;  %2055 = vset.pattern.permute.xlu1 %v3159_v11 }
  0x39   : > { %s1885_s14 = sshll.u32 %s224_s12, 2  ;;  %s2160_s25 = smov 126  }
  0x3a   : > { %s1980_s13 = smul.u32 80, %s217_s8  ;;  %s2162_s29 = smov 125  }
  0x3b   : > { %s213_s12 = sand.u32 1, %s2130_s15   ;;  %p3183_p7 = scmp.ne.s32.totalorder %s3166_s27, 0 }
  0x3c   : > { %s220_s28 = scalar_lea.vmem %s3151_s0, %s1980_s13  ;;  %s2937_s15 = sshll.u32 %s213_s12, 7 }
  0x3d   : > { %s2291_s26 = scalar_lea.vmem %s220_s28, %s1885_s14  ;;  %s2965_s8 = scalar_lea.vmem [#allocation4], %s2937_s15 }
  0x3e   : > { %v229_v0 = vld [vmem:[%s2291_s26 + $0x8] sm:$0xff]  ;;  %v228_v1 = vld [vmem:[%s2291_s26] sm:$0xff]  ;;  %v230_v2 = vld [vmem:[%s2291_s26 + $0x10] sm:$0xff]  ;;  %s1959_s13 = sshll.u32 (%p3183_p7), %s2138_s17, 3  ;;  %s1960_s14 = sshll.u32 (%p3183_p7), %s2142_s18, 6 }
  0x3f   : > { %v2296_v3 = vcombine.high %v229_v0, %v229_v0  ;;  %v2298_v4 = vcombine.high %v228_v1, %v228_v1  ;;  %v2304_v5 = vcombine.low %v230_v2, %v230_v2  ;;  %v2306_v6 = vcombine.low %v229_v0, %v229_v0  ;;  %v231_v9 = vld [vmem:[%s2291_s26 + $0x18] sm:$0xff]  ;;  %v232_v13 = vld [vmem:[%s2291_s26 + $0x20] sm:$0xff]  ;;  %v2355_v16 = vld [vmem:[%s2291_s26 + $0x28] sm:$0xff]  ;;  %s1746_s27 = sadd.s32 (%p3183_p7), %s1960_s14, %s1959_s13 }
  0x40   : > { %v2312_v7 = vcombine.high %v230_v2, %v230_v2  ;;  %v1886_v8 = vcombine.low %v228_v1, %v228_v1  ;;  %v2329_v10 = vcombine.low %v231_v9, %v231_v9  ;;  %v2339_v12 = vcombine.high %v231_v9, %v231_v9  ;;  %s1961_s22 = sshll.u32 (%p3183_p7), %s1746_s27, 2 }
  0x41   : > { %265 = vrot.lane.b32.xlu1 %v2296_v3, %s2159_s30  ;;  %261 = vrot.lane.b32.xlu0 %v2298_v4, %s2159_s30  ;;  %v2346_v14 = vcombine.low %v232_v13, %v232_v13  ;;  %v2352_v15 = vcombine.high %v232_v13, %v232_v13  ;;  %v2363_v17 = vcombine.low %v2355_v16, %v2355_v16  ;;  %s1748_s26 = scalar_lea.vmem (%p3183_p7), %s3155_s4, %s1961_s22 }
  0x45   : > { %267 = vrot.lane.b32.xlu1 %v2304_v5, %s2159_s30  ;;  %263 = vrot.lane.b32.xlu0 %v2306_v6, %s2159_s30 }
  0x49   : > { %269 = vrot.lane.b32.xlu0 %v2312_v7, %s2159_s30  ;;  %259 = vrot.lane.b32.xlu1 %v1886_v8, %s2159_s30 }
  0x4d   : > { %288 = vrot.lane.b32.xlu0 %v2298_v4, %s2160_s25  ;;  %290 = vrot.lane.b32.xlu1 %v2306_v6, %s2160_s25 }
  0x51   : > { %292 = vrot.lane.b32.xlu0 %v2296_v3, %s2160_s25  ;;  %294 = vrot.lane.b32.xlu1 %v2304_v5, %s2160_s25 }
  0x55   : > { %296 = vrot.lane.b32.xlu0 %v2312_v7, %s2160_s25  ;;  %286 = vrot.lane.b32.xlu1 %v1886_v8, %s2160_s25 }
  0x59   : > { %271 = vrot.lane.b32.xlu0 %v2329_v10, %s2159_s30  ;;  %298 = vrot.lane.b32.xlu1 %v2329_v10, %s2160_s25 }
  0x5d   : > { %273 = vrot.lane.b32.xlu0 %v2339_v12, %s2159_s30  ;;  %300 = vrot.lane.b32.xlu1 %v2339_v12, %s2160_s25 }
  0x61   : > { %275 = vrot.lane.b32.xlu0 %v2346_v14, %s2159_s30  ;;  %302 = vrot.lane.b32.xlu1 %v2346_v14, %s2160_s25 }
  0x65   : > { %315 = vrot.lane.b32.xlu0 %v2352_v15, %s2159_s30  ;;  %318 = vrot.lane.b32.xlu1 %v2352_v15, %s2160_s25 }
  0x69   : > { %324 = vrot.lane.b32.xlu0 %v2363_v17, %s2159_s30  ;;  %327 = vrot.lane.b32.xlu1 %v2363_v17, %s2160_s25 }
  0xb3   : > { %v266_v18 = vpop.permute.xlu1 %265  ;;  %v262_v19 = vpop.permute.xlu0 %261 }
  0xb7   : > { %v268_v20 = vpop.permute.xlu1 %267  ;;  %v264_v21 = vpop.permute.xlu0 %263 }
  0xb8   : > { %v2370_v22 = vsel %vm277_vm0, %v266_v18, %v268_v20  ;;  %v279_v23 = vsel %vm277_vm0, %v262_v19, %v264_v21  ;;  %v2374_v24 = vsel %vm277_vm0, %v264_v21, %v266_v18 }
  0xb9   : > { %v2379_v25 = vsel %vm330_vm1, %v2296_v3, %v2370_v22  ;;  %v2383_v26 = vsel %vm330_vm1, %v2298_v4, %v279_v23  ;;  %v2388_v27 = vsel %vm330_vm1, %v2306_v6, %v2374_v24 }
  0xba   : > { %434 = vmatprep.subr.bf16.mxu0 %v2383_v26  ;;  %475 = vmatprep.subr.bf16.mxu1 %v2379_v25 }
  0xbb   : > { %476 = vmatpush1.bf16.msra.mxu1 %v2388_v27  ;;  %v270_v28 = vpop.permute.xlu0 %269  ;;  %v260_v29 = vpop.permute.xlu1 %259 }
  0xbc   : > { %v278_v30 = vsel %vm277_vm0, %v260_v29, %v262_v19  ;;  %v2427_v44 = vsel %vm277_vm0, %v268_v20, %v270_v28 }
  0xbd   : > { %v2395_v31 = vsel %vm330_vm1, %v1886_v8, %v278_v30  ;;  %3173 = vst [vmem:[#allocation7_spill] sm:$0xff] %v2427_v44  ;;  %v2477_v57 = vsel %vm330_vm1, %v2304_v5, %v2427_v44  ;;  %v2505_v8 = vld [vmem:[#allocation2] sm:$0xf] }
  0xbe   : > { %435 = vmatpush1.bf16.msra.mxu0 %v2395_v31 }
  0xbf   : > { %v289_v32 = vpop.permute.xlu0 %288  ;;  %v291_v33 = vpop.permute.xlu1 %290 }
  0xc0   : > { %v306_v34 = vsel %vm304_vm2, %v289_v32, %v291_v33 }
  0xc1   : > { %v2401_v35 = vsel %vm330_vm1, %v306_v34, %v2306_v6  ;;  %v2472_v56 = vsel %vm330_vm1, %v279_v23, %v306_v34 }
  0xc2   : > { %436 = vmatprep.subr.bf16.mxu0 %v2401_v35 }
  0xc3   : > { %v293_v36 = vpop.permute.xlu0 %292  ;;  %v295_v37 = vpop.permute.xlu1 %294 }
  0xc4   : > { %v2405_v38 = vsel %vm304_vm2, %v291_v33, %v293_v36  ;;  %v2408_v39 = vsel %vm304_vm2, %v293_v36, %v295_v37 }
  0xc5   : > { %3172 = vst [vmem:[#allocation6_spill] sm:$0xff] %v2405_v38  ;;  %786 = vrot.lane.b32.xlu1 %v2405_v38, %s2159_s30  ;;  %788 = vrot.lane.b32.xlu0 %v2408_v39, %s2159_s30  ;;  %v2417_v40 = vsel %vm330_vm1, %v2408_v39, %v2304_v5  ;;  %v2422_v41 = vsel %vm330_vm1, %v2405_v38, %v2296_v3  ;;  %v417_v13 = vsel %vm330_vm1, %v2405_v38, 0 }
  0xc6   : > { %477 = vmatprep.subr.bf16.mxu1 %v2417_v40  ;;  %v2449_v49 = vsel %vm330_vm1, %v2374_v24, %v2405_v38  ;;  %v2454_v50 = vsel %vm330_vm1, %v2370_v22, %v2408_v39 }
  0xc7   : > { %v297_v42 = vpop.permute.xlu0 %296  ;;  %478 = vmatpush1.bf16.msra.mxu1 %v2422_v41  ;;  %v287_v43 = vpop.permute.xlu1 %286 }
  0xc8   : > { %v2430_v45 = vsel %vm304_vm2, %v295_v37, %v297_v42  ;;  %v305_v46 = vsel %vm304_vm2, %v287_v43, %v289_v32 }
  0xc9   : > { %790 = vrot.lane.b32.xlu1 %v2430_v45, %s2159_s30  ;;  %v2437_v47 = vsel %vm330_vm1, %v305_v46, %v2298_v4  ;;  %v2442_v48 = vsel %vm330_vm1, %v2427_v44, %v2430_v45  ;;  %v421_v61 = vsel %vm330_vm1, %v2430_v45, 0  ;;  %v2590_v37 = vsel %vm330_vm1, %v2430_v45, %v2312_v7 }
  0xca   : > { %437 = vmatpush1.bf16.msra.mxu0 %v2437_v47  ;;  %479 = vmatprep.subr.bf16.mxu1 %v2442_v48 }
  0xcb   : > { %v272_v51 = vpop.permute.xlu0 %271  ;;  %438 = vmatprep.subr.bf16.mxu0 %v2449_v49  ;;  %480 = vmatpush1.bf16.msra.mxu1 %v2454_v50  ;;  %v299_v52 = vpop.permute.xlu1 %298 }
  0xcc   : > { %v2459_v53 = vsel %vm277_vm0, %v270_v28, %v272_v51  ;;  %v2462_v54 = vsel %vm304_vm2, %v297_v42, %v299_v52 }
  0xcd   : > { %v2467_v55 = vsel %vm330_vm1, %v2312_v7, %v2459_v53  ;;  %792 = vrot.lane.b32.xlu0 %v2462_v54, %s2159_s30  ;;  %v2560_v32 = vsel %vm330_vm1, %v2462_v54, %v2329_v10 }
  0xce   : > { %439 = vmatpush1.bf16.msra.mxu0 %v2472_v56  ;;  %481 = vmatprep.subr.bf16.mxu1 %v2467_v55 }
  0xcf   : > { %v274_v58 = vpop.permute.xlu0 %273  ;;  %440 = vmatprep.subr.bf16.mxu0 %v2379_v25  ;;  %482 = vmatpush1.bf16.msra.mxu1 %v2477_v57  ;;  %v301_v59 = vpop.permute.xlu1 %300 }
  0xd0   : > { %v2484_v60 = vsel %vm304_vm2, %v299_v52, %v301_v59  ;;  %1899 = vmatprep.subr.msk.bf16.mxu1 %vm330_vm1, %v2462_v54  ;;  %v2498_v0 = vsel %vm277_vm0, %v272_v51, %v274_v58  ;;  %v2620_v52 = vsel %vm330_vm1, %v2459_v53, %v2462_v54 }
  0xd1   : > { %728 = vrot.lane.b32.xlu0 %v2383_v26, %s2159_s30  ;;  %794 = vrot.lane.b32.xlu1 %v2484_v60, %s2159_s30  ;;  %3174 = vst [vmem:[#allocation8_spill] sm:$0xff] %v2498_v0  ;;  %v2524_v19 = vsel %vm330_vm1, %v2329_v10, %v2498_v0  ;;  %v2565_v33 = vsel %vm330_vm1, %v2484_v60, %v2339_v12 }
  0xd2   : > { %441 = vmatpush1.bf16.msra.mxu0 %v2388_v27  ;;  %v2601_v43 = vsel %vm330_vm1, %v2498_v0, %v2484_v60 }
  0xd3   : > { %v276_v62 = vpop.permute.xlu0 %275  ;;  %1897 = vmatprep.subr.msk.bf16.mxu0 %vm330_vm1, %v2408_v39  ;;  %484 = vmatpush1.bf16.msra.mxu1 %v421_v61  ;;  %v303_v63 = vpop.permute.xlu1 %302 }
  0xd4   : > { %v2501_v1 = vsel %vm277_vm0, %v274_v58, %v276_v62  ;;  %v685_v2 = vsel %vm330_vm1, %v2346_v14, %v276_v62  ;;  %v2508_v9 = vsel %vm304_vm2, %v301_v59, %v303_v63  ;;  %v687_v23 = vsel %vm330_vm1, %v303_v63, %v2352_v15 }
  0xd5   : > { %3175 = vst [vmem:[#allocation9_spill] sm:$0xff] %v2501_v1  ;;  %732 = vrot.lane.b32.xlu0 %v2379_v25, %s2159_s30  ;;  %742 = vrot.lane.b32.xlu1 %v685_v2, %s2159_s30  ;;  %v2518_v18 = vsel %vm330_vm1, %v2339_v12, %v2501_v1  ;;  %v2539_v28 = vsel %vm330_vm1, %v2508_v9, %v2346_v14 }
  0xd6   : > { %443 = vmatpush1.bf16.msra.mxu0 %v417_v13  ;;  %557 = vmatprep.subr.bf16.mxu1 %v2518_v18  ;;  %v2606_v46 = vsel %vm330_vm1, %v2501_v1, %v2508_v9  ;;  %v1925_v2 = vcombine.high %v2355_v16, %v2355_v16 }
  0xd7   : > { %v2526_v20 = vpop.permute.xlu0 %315  ;;  %1900 = vmatmul.mubr.msk.bf16.vlgmr.msra.gmra.mrb[0].mxu1 %vm413_vm3, %v2505_v8  ;;  %516 = vmatprep.subr.bf16.mxu0 %v2467_v55  ;;  %v2531_v21 = vpop.permute.xlu1 %318 }
  0xd8   : > { %558 = vmatpush1.bf16.msra.mxu1 %v2524_v19  ;;  %589 = vmatprep.mubr.bf16.mxu1 %v3159_v11  ;;  %v2544_v29 = vsel %vm277_vm0, %v276_v62, %v2526_v20  ;;  %v2548_v30 = vsel %vm304_vm2, %v303_v63, %v2531_v21  ;;  %v425_v62 = vsel %vm330_vm1, %v2484_v60, 0 }
  0xd9   : > { %3176 = vst [vmem:[#allocation10_spill] sm:$0xff] %v2544_v29  ;;  %559 = vmatprep.subr.bf16.mxu1 %v2539_v28  ;;  %726 = vrot.lane.b32.xlu0 %v2395_v31, %s2159_s30  ;;  %v2575_v31 = vsel %vm330_vm1, %v2544_v29, %v2548_v30  ;;  %v2631_v59 = vsel %vm330_vm1, %v2346_v14, %v2544_v29  ;;  %v429_v61 = vsel %vm330_vm1, %v2548_v30, 0 }
  0xda   : > { %760 = vrot.lane.b32.xlu1 %v687_v23, %s2159_s30  ;;  %1898 = vmatmul.mubr.msk.bf16.vlgmr.msra.gmra.mrb[0].mxu0 %vm413_vm3, %v2505_v8 }
  0xdb   : > { %517 = vmatpush1.bf16.msra.mxu0 %v2477_v57  ;;  %v2567_v34 = vpop.permute.xlu0 %324  ;;  %548 = vmatprep.mubr.bf16.mxu0 %v3159_v11  ;;  %v2608_v51 = vpop.permute.xlu1 %327 }
  0xdc   : > { %518 = vmatprep.subr.bf16.mxu0 %v2560_v32  ;;  %560 = vmatpush1.bf16.msra.mxu1 %v2565_v33  ;;  %v2580_v36 = vsel %vm277_vm0, %v2526_v20, %v2567_v34  ;;  %v2625_v58 = vsel %vm304_vm2, %v2531_v21, %v2608_v51  ;;  %v693_v63 = vsel %vm330_vm1, %v2363_v17, %v2567_v34 }
  0xdd   : > { %561 = vmatprep.subr.bf16.mxu1 %v2575_v31  ;;  %748 = vrot.lane.b32.xlu0 %v2422_v41, %s2159_s30  ;;  %v2595_v42 = vsel %vm330_vm1, %v2352_v15, %v2580_v36 }
  0xde   : > { %730 = vrot.lane.b32.xlu1 %v2388_v27, %s2159_s30 }
  0xdf   : > { %519 = vmatpush1.bf16.msra.mxu0 %v2590_v37 }
  0xe0   : > { %520 = vmatprep.subr.bf16.mxu0 %v2601_v43  ;;  %562 = vmatpush1.bf16.msra.mxu1 %v2606_v46 }
  0xe1   : > { %752 = vrot.lane.b32.xlu0 %v2590_v37, %s2159_s30  ;;  %563 = vmatprep.subr.bf16.mxu1 %v2595_v42 }
  0xe2   : > { %734 = vrot.lane.b32.xlu1 %v2477_v57, %s2159_s30 }
  0xe3   : > { %521 = vmatpush1.bf16.msra.mxu0 %v2620_v52 }
  0xe4   : > { %522 = vmatprep.subr.bf16.mxu0 %v2518_v18  ;;  %564 = vmatpush1.bf16.msra.mxu1 %v2631_v59 }
  0xe5   : > { %764 = vrot.lane.b32.xlu0 %v2449_v49, %s2159_s30  ;;  %1903 = vmatprep.subr.msk.bf16.mxu1 %vm330_vm1, %v2625_v58 }
  0xe6   : > { %746 = vrot.lane.b32.xlu1 %v2401_v35, %s2159_s30 }
  0xe7   : > { %523 = vmatpush1.bf16.msra.mxu0 %v2524_v19 }
  0xe8   : > { %1901 = vmatprep.subr.msk.bf16.mxu0 %vm330_vm1, %v2508_v9  ;;  %566 = vmatpush1.bf16.msra.mxu1 %v429_v61 }
  0xe9   : > { %768 = vrot.lane.b32.xlu0 %v2442_v48, %s2159_s30 }
  0xea   : > { %750 = vrot.lane.b32.xlu1 %v2417_v40, %s2159_s30 }
  0xeb   : > { %525 = vmatpush1.bf16.msra.mxu0 %v425_v62  ;;  %1904 = vmatmul.mubr.msk.bf16.vlgmr.msra.gmra.mrb[4].mxu1 %vm413_vm3, %v2505_v8 }
  0xec   : > { %966 = vmatprep.mubr.bf16.mxu1 %v3159_v11 }
  0xed   : > { %762 = vrot.lane.b32.xlu0 %v2472_v56, %s2159_s30 }
  0xee   : > { %744 = vrot.lane.b32.xlu1 %v2437_v47, %s2159_s30  ;;  %1902 = vmatmul.mubr.msk.bf16.vlgmr.msra.gmra.mrb[4].mxu0 %vm413_vm3, %v2505_v8  ;;  %v690_v47 = vsel %vm330_vm1, %v2526_v20, %v2531_v21 }
  0xef   : > { %925 = vmatprep.mubr.bf16.mxu0 %v3159_v11 }
  0xf1   : > { %784 = vrot.lane.b32.xlu0 %v693_v63, %s2159_s30 }
  0xf2   : > { %766 = vrot.lane.b32.xlu1 %v2454_v50, %s2159_s30 }
  0xf5   : > { %798 = vrot.lane.b32.xlu0 %v2548_v30, %s2159_s30 }
  0xf6   : > { %770 = vrot.lane.b32.xlu1 %v2620_v52, %s2159_s30 }
  0xf9   : > { %738 = vrot.lane.b32.xlu0 %v2524_v19, %s2159_s30 }
  0xfa   : > { %736 = vrot.lane.b32.xlu1 %v2467_v55, %s2159_s30 }
  0xfd   : > { %740 = vrot.lane.b32.xlu0 %v2518_v18, %s2159_s30 }
  0xfe   : > { %778 = vrot.lane.b32.xlu1 %v690_v47, %s2159_s30 }
 0x101   : > { %754 = vrot.lane.b32.xlu0 %v2560_v32, %s2159_s30 }
 0x102   : > { %796 = vrot.lane.b32.xlu1 %v2508_v9, %s2159_s30 }
 0x105   : > { %758 = vrot.lane.b32.xlu0 %v2539_v28, %s2159_s30 }
 0x106   : > { %756 = vrot.lane.b32.xlu1 %v2565_v33, %s2159_s30 }
 0x109   : > { %772 = vrot.lane.b32.xlu0 %v2601_v43, %s2159_s30 }
 0x10a   : > { %774 = vrot.lane.b32.xlu1 %v2606_v46, %s2159_s30 }
 0x10d   : > { %776 = vrot.lane.b32.xlu0 %v2575_v31, %s2159_s30 }
 0x10e   : > { %782 = vrot.lane.b32.xlu1 %v2595_v42, %s2159_s30 }
 0x111   : > { %780 = vrot.lane.b32.xlu0 %v2631_v59, %s2159_s30 }
 0x112   : > { %800 = vrot.lane.b32.xlu1 %v2625_v58, %s2159_s30 }
 0x115   : > { %802 = vrot.lane.b32.xlu0 %v2608_v51, %s2159_s30 }
 0x116   : > { %1136 = vrot.lane.b32.xlu1 %v1925_v2, %s2159_s30 }
 0x119   : > { %1139 = vrot.lane.b32.xlu0 %v1925_v2, %s2160_s25 }
 0x11a   : > { %1400 = vrot.lane.b32.xlu1 %v2306_v6, %s2162_s29 }
 0x11d   : > { %1402 = vrot.lane.b32.xlu0 %v2296_v3, %s2162_s29  ;;  %v234_v3 = vld [vmem:[%s3153_s2] sm:$0xff] }
 0x11e   : > { %1404 = vrot.lane.b32.xlu1 %v2304_v5, %s2162_s29  ;;  %v235_v5 = vld [vmem:[%s3154_s3] sm:$0xff] }
 0x121   : > { %1406 = vrot.lane.b32.xlu0 %v2312_v7, %s2162_s29 }
 0x122   : > { %1398 = vrot.lane.b32.xlu1 %v2298_v4, %s2162_s29 }
 0x125   : > { %1408 = vrot.lane.b32.xlu0 %v2329_v10, %s2162_s29 }
 0x126   : > { %1410 = vrot.lane.b32.xlu1 %v2339_v12, %s2162_s29 }
 0x129   : > { %1412 = vrot.lane.b32.xlu0 %v2346_v14, %s2162_s29 }
 0x12a   : > { %1414 = vrot.lane.b32.xlu1 %v2352_v15, %s2162_s29 }
 0x12d   : > { %1425 = vrot.lane.b32.xlu0 %v2363_v17, %s2162_s29 }
 0x12e   : > { %1428 = vrot.lane.b32.xlu1 %v1925_v2, %s2162_s29 }
 0x131   : > { %600 = vperm.xlu0 %2054, %v234_v3  }
 0x132   : > { %613 = vperm.xlu1 %2055, %v235_v5  }
 0x137   : > { %v787_v4 = vpop.permute.xlu1 %786  ;;  %v789_v6 = vpop.permute.xlu0 %788 }
 0x13b   : > { %v791_v7 = vpop.permute.xlu1 %790 }
 0x13f   : > { %v793_v10 = vpop.permute.xlu0 %792 }
 0x143   : > { %v729_v12 = vpop.permute.xlu0 %728  ;;  %v2724_v14 = vpop.permute.xlu1 %794 }
 0x147   : > { %v733_v16 = vpop.permute.xlu0 %732  ;;  %v2726_v8 = vpop.permute.xlu1 %742 }
 0x14b   : > { %v727_v13 = vpop.permute.xlu0 %726 }
 0x14c   : > { %v2728_v20 = vpop.permute.xlu1 %760  ;;  %v804_v62 = vsel %vm277_vm0, %v727_v13, %v729_v12 }
 0x14f   : > { %v749_v21 = vpop.permute.xlu0 %748 }
 0x150   : > { %v731_v23 = vpop.permute.xlu1 %730 }
 0x151   : > { %v805_v61 = vsel %vm277_vm0, %v729_v12, %v731_v23  ;;  %v806_v3 = vsel %vm277_vm0, %v731_v23, %v733_v16 }
 0x152   : > { %893 = vmatprep.subr.bf16.mxu0 %v805_v61 }
 0x153   : > { %894 = vmatpush1.bf16.msra.mxu0 %v804_v62  ;;  %v2732_v63 = vpop.permute.xlu0 %752 }
 0x154   : > { %v735_v47 = vpop.permute.xlu1 %734 }
 0x155   : > { %v807_v2 = vsel %vm277_vm0, %v733_v16, %v735_v47 }
 0x156   : > { %934 = vmatprep.subr.bf16.mxu1 %v807_v2 }
 0x157   : > { %935 = vmatpush1.bf16.msra.mxu1 %v806_v3  ;;  %v765_v5 = vpop.permute.xlu0 %764 }
 0x158   : > { %v747_v11 = vpop.permute.xlu1 %746 }
 0x159   : > { %v813_v29 = vsel %vm277_vm0, %v747_v11, %v749_v21 }
 0x15a   : > { %895 = vmatprep.subr.bf16.mxu0 %v813_v29 }
 0x15b   : > { %v769_v0 = vpop.permute.xlu0 %768 }
 0x15c   : > { %v751_v1 = vpop.permute.xlu1 %750 }
 0x15d   : > { %v814_v12 = vsel %vm277_vm0, %v749_v21, %v751_v1  ;;  %v815_v13 = vsel %vm277_vm0, %v751_v1, %v2732_v63 }
 0x15e   : > { %936 = vmatprep.subr.bf16.mxu1 %v815_v13 }
 0x15f   : > { %937 = vmatpush1.bf16.msra.mxu1 %v814_v12  ;;  %v763_v61 = vpop.permute.xlu0 %762 }
 0x160   : > { %v745_v62 = vpop.permute.xlu1 %744  ;;  %v820_v29 = vsel %vm277_vm0, %v763_v61, %v765_v5 }
 0x161   : > { %v812_v16 = vsel %vm277_vm0, %v745_v62, %v747_v11  ;;  %v831_v11 = vsel %vm277_vm0, %v787_v4, %v789_v6  ;;  %v832_v62 = vsel %vm277_vm0, %v789_v6, %v791_v7  ;;  %v2758_v6 = vld [vmem:[#allocation2 + $0x4] sm:$0xf] }
 0x162   : > { %896 = vmatpush1.bf16.msra.mxu0 %v812_v16  ;;  %v870_v61 = vsel %vm330_vm1, %v831_v11, 0 }
 0x163   : > { %v2741_v23 = vpop.permute.xlu0 %784 }
 0x164   : > { %v767_v38 = vpop.permute.xlu1 %766 }
 0x165   : > { %v821_v44 = vsel %vm277_vm0, %v765_v5, %v767_v38  ;;  %v822_v13 = vsel %vm277_vm0, %v767_v38, %v769_v0  ;;  %v833_v38 = vsel %vm277_vm0, %v791_v7, %v793_v10 }
 0x166   : > { %897 = vmatprep.subr.bf16.mxu0 %v821_v44 }
 0x167   : > { %898 = vmatpush1.bf16.msra.mxu0 %v820_v29  ;;  %v2745_v21 = vpop.permute.xlu0 %798 }
 0x168   : > { %899 = vmatprep.subr.bf16.mxu0 %v807_v2  ;;  %v771_v1 = vpop.permute.xlu1 %770 }
 0x169   : > { %v823_v12 = vsel %vm277_vm0, %v769_v0, %v771_v1  ;;  %v834_v0 = vsel %vm277_vm0, %v793_v10, %v2724_v14 }
 0x16a   : > { %938 = vmatprep.subr.bf16.mxu1 %v823_v12  ;;  %v3177_v12 = vmov 0  }
 0x16b   : > { %900 = vmatpush1.bf16.msra.mxu0 %v806_v3  ;;  %939 = vmatpush1.bf16.msra.mxu1 %v822_v13  ;;  %v739_v16 = vpop.permute.xlu0 %738 }
 0x16c   : > { %1909 = vmatprep.subr.msk.bf16.mxu0 %vm330_vm1, %v832_v62  ;;  %v737_v44 = vpop.permute.xlu1 %736 }
 0x16d   : > { %v808_v5 = vsel %vm277_vm0, %v735_v47, %v737_v44  ;;  %v809_v2 = vsel %vm277_vm0, %v737_v44, %v739_v16  ;;  %v876_v47 = vsel %vm330_vm1, %v833_v38, 0 }
 0x16e   : > { %940 = vmatprep.subr.bf16.mxu1 %v809_v2 }
 0x16f   : > { %902 = vmatpush1.bf16.msra.mxu0 %v870_v61  ;;  %941 = vmatpush1.bf16.msra.mxu1 %v808_v5  ;;  %v741_v4 = vpop.permute.xlu0 %740 }
 0x170   : > { %1911 = vmatprep.subr.msk.bf16.mxu1 %vm330_vm1, %v834_v0  ;;  %975 = vmatprep.subr.bf16.mxu0 %v809_v2  ;;  %v779_v3 = vpop.permute.xlu1 %778  ;;  %v811_v10 = vsel %vm277_vm0, %v741_v4, %v2726_v8  ;;  %v810_v13 = vsel %vm277_vm0, %v739_v16, %v741_v4 }
 0x172   : > { %1910 = vmatmul.mubr.msk.bf16.vlgmr.msra.gmra.mrb[8].mxu0 %vm413_vm3, %v2758_v6 }
 0x173   : > { %943 = vmatpush1.bf16.msra.mxu1 %v876_v47  ;;  %976 = vmatpush1.bf16.msra.mxu0 %v808_v5  ;;  %v755_v7 = vpop.permute.xlu0 %754 }
 0x174   : > { %1016 = vmatprep.subr.bf16.mxu1 %v811_v10  ;;  %v797_v29 = vpop.permute.xlu1 %796  ;;  %1007 = vmatprep.mubr.bf16.mxu0 %v3177_v12  ;;  %v816_v2 = vsel %vm277_vm0, %v2732_v63, %v755_v7 }
 0x176   : > { %1912 = vmatmul.mubr.msk.bf16.vlgmr.msra.gmra.mrb[8].mxu1 %vm413_vm3, %v2758_v6 }
 0x177   : > { %1017 = vmatpush1.bf16.msra.mxu1 %v810_v13  ;;  %v759_v11 = vpop.permute.xlu0 %758  ;;  %1048 = vmatprep.mubr.bf16.mxu1 %v3177_v12 }
 0x178   : > { %v757_v62 = vpop.permute.xlu1 %756  ;;  %v819_v44 = vsel %vm277_vm0, %v759_v11, %v2728_v20 }
 0x179   : > { %v818_v5 = vsel %vm277_vm0, %v757_v62, %v759_v11  ;;  %v817_v8 = vsel %vm277_vm0, %v755_v7, %v757_v62  ;;  %1018 = vmatprep.subr.bf16.mxu1 %v819_v44 }
 0x17a   : > { %977 = vmatprep.subr.bf16.mxu0 %v817_v8  ;;  %v836_v8 = vsel %vm277_vm0, %v797_v29, %v2745_v21 }
 0x17b   : > { %978 = vmatpush1.bf16.msra.mxu0 %v816_v2  ;;  %1019 = vmatpush1.bf16.msra.mxu1 %v818_v5  ;;  %v773_v16 = vpop.permute.xlu0 %772  ;;  %v835_v5 = vsel %vm277_vm0, %v2724_v14, %v797_v29 }
 0x17c   : > { %v824_v61 = vsel %vm277_vm0, %v771_v1, %v773_v16  ;;  %v775_v38 = vpop.permute.xlu1 %774 }
 0x17d   : > { %v825_v0 = vsel %vm277_vm0, %v773_v16, %v775_v38  ;;  %v882_v16 = vsel %vm330_vm1, %v835_v5, 0 }
 0x17e   : > { %979 = vmatprep.subr.bf16.mxu0 %v825_v0 }
 0x17f   : > { %980 = vmatpush1.bf16.msra.mxu0 %v824_v61  ;;  %v777_v20 = vpop.permute.xlu0 %776 }
 0x180   : > { %v826_v47 = vsel %vm277_vm0, %v775_v38, %v777_v20  ;;  %v783_v10 = vpop.permute.xlu1 %782  ;;  %v827_v11 = vsel %vm277_vm0, %v777_v20, %v779_v3 }
 0x181   : > { %1020 = vmatprep.subr.bf16.mxu1 %v827_v11  ;;  %v830_v63 = vsel %vm277_vm0, %v783_v10, %v2741_v23 }
 0x182   : > { %1021 = vmatpush1.bf16.msra.mxu1 %v826_v47 }
 0x183   : > { %v781_v7 = vpop.permute.xlu0 %780  ;;  %1022 = vmatprep.subr.bf16.mxu1 %v830_v63 }
 0x184   : > { %v829_v1 = vsel %vm277_vm0, %v781_v7, %v783_v10  ;;  %v801_v62 = vpop.permute.xlu1 %800  ;;  %v828_v44 = vsel %vm277_vm0, %v741_v4, %v781_v7 }
 0x185   : > { %981 = vmatprep.subr.bf16.mxu0 %v828_v44  ;;  %v837_v3 = vsel %vm277_vm0, %v2745_v21, %v801_v62 }
 0x186   : > { %982 = vmatpush1.bf16.msra.mxu0 %v810_v13  ;;  %1023 = vmatpush1.bf16.msra.mxu1 %v829_v1  ;;  %v888_v4 = vsel %vm330_vm1, %v837_v3, 0  ;;  %v1142_v13 = vsel %vm330_vm1, %v2548_v30, %v2352_v15 }
 0x187   : > { %v803_v23 = vpop.permute.xlu0 %802  ;;  %1913 = vmatprep.subr.msk.bf16.mxu0 %vm330_vm1, %v836_v8 }
 0x188   : > { %v838_v2 = vsel %vm277_vm0, %v801_v62, %v803_v23  ;;  %v1137_v14 = vpop.permute.xlu1 %1136 }
 0x189   : > { %1915 = vmatprep.subr.msk.bf16.mxu1 %vm330_vm1, %v838_v2  ;;  %v2869_v15 = vsel %vm277_vm0, %v2567_v34, %v1137_v14 }
 0x18a   : > { %984 = vmatpush1.bf16.msra.mxu0 %v882_v16  ;;  %1025 = vmatpush1.bf16.msra.mxu1 %v888_v4 }
 0x18b   : > { %1157 = vmatprep.subr.bf16.mxu0 %v2388_v27  ;;  %1198 = vmatprep.subr.bf16.mxu1 %v2477_v57  ;;  %v2798_v21 = vpop.permute.xlu0 %1139 }
 0x18c   : > { %v2808_v29 = vpop.permute.xlu1 %1400  ;;  %v2888_v10 = vsel %vm304_vm2, %v2608_v51, %v2798_v21  ;;  %v427_v51 = vsel %vm330_vm1, %v2508_v9, 0 }
 0x18d   : > { %1914 = vmatmul.mubr.msk.bf16.vlgmr.msra.gmra.mrb[12].mxu0 %vm413_vm3, %v2758_v6  ;;  %1916 = vmatmul.mubr.msk.bf16.vlgmr.msra.gmra.mrb[12].mxu1 %vm413_vm3, %v2758_v6 }
 0x18e   : > { %1158 = vmatpush1.bf16.msra.mxu0 %v2383_v26  ;;  %1199 = vmatpush1.bf16.msra.mxu1 %v2379_v25 }
 0x18f   : > { %1159 = vmatprep.subr.bf16.mxu0 %v2422_v41  ;;  %1200 = vmatprep.subr.bf16.mxu1 %v2590_v37  ;;  %v2814_v27 = vpop.permute.xlu0 %1402  ;;  %v2838_v37 = vld [vmem:[#allocation2 + $0x8] sm:$0xf] }
 0x190   : > { %1189 = vmatprep.mubr.bf16.mxu0 %v3177_v12  ;;  %1230 = vmatprep.mubr.bf16.mxu1 %v3177_v12  ;;  %v2818_v26 = vpop.permute.xlu1 %1404  ;;  %v1418_v11 = vsel %vm1416_vm4, %v2808_v29, %v2814_v27 }
 0x191   : > { %v2925_v16 = vsel %vm1416_vm4, %v2814_v27, %v2818_v26 }
 0x192   : > { %1160 = vmatpush1.bf16.msra.mxu0 %v2401_v35  ;;  %1201 = vmatpush1.bf16.msra.mxu1 %v2417_v40  ;;  %v419_v40 = vsel %vm330_vm1, %v2408_v39, 0 }
 0x193   : > { %1161 = vmatprep.subr.bf16.mxu0 %v2454_v50  ;;  %1202 = vmatprep.subr.bf16.mxu1 %v2620_v52  ;;  %v2824_v41 = vpop.permute.xlu0 %1406 }
 0x194   : > { %v2832_v35 = vpop.permute.xlu1 %1398  ;;  %v2914_v8 = vsel %vm1416_vm4, %v2818_v26, %v2824_v41 }
 0x195   : > { %v1417_v4 = vsel %vm1416_vm4, %v2832_v35, %v2808_v29 }
 0x196   : > { %1162 = vmatpush1.bf16.msra.mxu0 %v2449_v49  ;;  %1203 = vmatpush1.bf16.msra.mxu1 %v2442_v48 }
 0x197   : > { %1163 = vmatprep.subr.bf16.mxu0 %v2477_v57  ;;  %1204 = vmatprep.subr.bf16.mxu1 %v2524_v19  ;;  %v423_v57 = vsel %vm330_vm1, %v2462_v54, 0 }
 0x198   : > { %v2848_v6 = vpop.permute.xlu1 %1410 }
 0x19a   : > { %1164 = vmatpush1.bf16.msra.mxu0 %v2379_v25  ;;  %1205 = vmatpush1.bf16.msra.mxu1 %v2467_v55  ;;  %v2840_v25 = vpop.permute.xlu0 %1408 }
 0x19b   : > { %1926 = vmatprep.subr.msk.bf16.mxu0 %vm330_vm1, %v2430_v45  ;;  %1928 = vmatprep.subr.msk.bf16.mxu1 %vm330_vm1, %v2484_v60  ;;  %v2947_v26 = vsel %vm1416_vm4, %v2824_v41, %v2840_v25 }
 0x19e   : > { %1166 = vmatpush1.bf16.msra.mxu0 %v419_v40  ;;  %1207 = vmatpush1.bf16.msra.mxu1 %v423_v57  ;;  %v1432_v57 = vsel %vm330_vm1, %v1417_v4, %v2374_v24  ;;  %v3179_v24 = vld [vmem:[#allocation6_spill] sm:$0xff]  ;;  %v1483_v4 = vsel %vm330_vm1, %v2947_v26, 0 }
 0x19f   : > { %1239 = vmatprep.subr.bf16.mxu0 %v2524_v19  ;;  %1280 = vmatprep.subr.bf16.mxu1 %v2631_v59  ;;  %v2858_v19 = vpop.permute.xlu0 %1412 }
 0x1a1   : > { %1927 = vmatmul.mubr.msk.bf16.vlgmr.msra.gmra.mrb[16].mxu0 %vm413_vm3, %v2838_v37  ;;  %1929 = vmatmul.mubr.msk.bf16.vlgmr.msra.gmra.mrb[16].mxu1 %vm413_vm3, %v2838_v37 }
 0x1a2   : > { %1240 = vmatpush1.bf16.msra.mxu0 %v2467_v55  ;;  %1281 = vmatpush1.bf16.msra.mxu1 %v2518_v18  ;;  %v2865_v55 = vsel %vm330_vm1, %v2580_v36, %v2625_v58 }
 0x1a3   : > { %1241 = vmatprep.subr.bf16.mxu0 %v2565_v33  ;;  %1282 = vmatprep.subr.bf16.mxu1 %v1142_v13  ;;  %v2873_v33 = vpop.permute.xlu1 %1414  ;;  %v2880_v61 = vpop.permute.xlu0 %1425 }
 0x1a4   : > { %1271 = vmatprep.mubr.bf16.mxu0 %v3177_v12  ;;  %1312 = vmatprep.mubr.bf16.mxu1 %v3177_v12 }
 0x1a6   : > { %1242 = vmatpush1.bf16.msra.mxu0 %v2560_v32  ;;  %1283 = vmatpush1.bf16.msra.mxu1 %v2539_v28  ;;  %v1147_v28 = vsel %vm330_vm1, %v2363_v17, %v2869_v15 }
 0x1a7   : > { %1243 = vmatprep.subr.bf16.mxu0 %v2606_v46  ;;  %1284 = vmatprep.subr.bf16.mxu1 %v2865_v55  ;;  %v2883_v38 = vpop.permute.xlu1 %1428 }
 0x1aa   : > { %1244 = vmatpush1.bf16.msra.mxu0 %v2601_v43  ;;  %1285 = vmatpush1.bf16.msra.mxu1 %v2575_v31  ;;  %v509_v32 = vpop.f32.mrb[0].mxu1 }
 0x1ab   : > { %1245 = vmatprep.subr.bf16.mxu0 %v2631_v59  ;;  %1286 = vmatprep.subr.bf16.mxu1 %v1147_v28  ;;  %v511_v34 = vpop.f32.mrb[1].mxu1 }
 0x1ac   : > { %v513_v0 = vpop.f32.mrb[2].mxu1 }
 0x1ad   : > { %v468_v20 = vpop.f32.mrb[0].mxu0  ;;  %v514_v47 = vpop.f32.mrb[3].mxu1 }
 0x1ae   : > { %1246 = vmatpush1.bf16.msra.mxu0 %v2518_v18  ;;  %1287 = vmatpush1.bf16.msra.mxu1 %v2595_v42  ;;  %v470_v17 = vpop.f32.mrb[1].mxu0  ;;  %v432_v18 = vsel %vm330_vm1, %v2625_v58, 0 }
 0x1af   : > { %1930 = vmatprep.subr.msk.bf16.mxu0 %vm330_vm1, %v2548_v30  ;;  %1932 = vmatprep.subr.msk.bf16.mxu1 %vm330_vm1, %v2888_v10  ;;  %v472_v59 = vpop.f32.mrb[2].mxu0 }
 0x1b0   : > { %v2903_v42 = vpop.permute.xlu0 %600  ;;  %v473_v63 = vpop.f32.mrb[3].mxu0 }
 0x1b1   : > { %v2905_v7 = vpop.permute.xlu1 %613  ;;  %v603_v1 = vmul.f32 %v2903_v42, %v468_v20  ;;  %v604_v62 = vmul.f32 %v2903_v42, %v470_v17  ;;  %v605_v44 = vmul.f32 %v2903_v42, %v509_v32  ;;  %v606_v5 = vmul.f32 %v2903_v42, %v511_v34 }
 0x1b2   : > { %1248 = vmatpush1.bf16.msra.mxu0 %v427_v51  ;;  %1289 = vmatpush1.bf16.msra.mxu1 %v432_v18  ;;  %v1457_v32 = vsel %vm330_vm1, %v2408_v39, %v2925_v16  ;;  %v1461_v34 = vsel %vm330_vm1, %v2462_v54, %v2947_v26  ;;  %v1455_v20 = vsel %vm330_vm1, %v3179_v24, %v1418_v11 }
 0x1b3   : > { %1496 = vmatprep.subr.bf16.mxu0 %v2449_v49  ;;  %1537 = vmatprep.subr.bf16.mxu1 %v2442_v48  ;;  %v616_v3 = vadd.f32 %v2905_v7, %v603_v1  ;;  %v617_v23 = vadd.f32 %v2905_v7, %v604_v62  ;;  %v618_v2 = vadd.f32 %v2905_v7, %v605_v44 }
 0x1b4   : > { %v1435_v49 = vsel %vm330_vm1, %v1418_v11, %v2370_v22  ;;  %v619_v14 = vadd.f32 %v2905_v7, %v606_v5  ;;  %v1441_v22 = vsel %vm330_vm1, %v2914_v8, %v2459_v53  ;;  %v1459_v39 = vsel %vm330_vm1, %v2430_v45, %v2914_v8 }
 0x1b5   : > { %1931 = vmatmul.mubr.msk.bf16.vlgmr.msra.gmra.mrb[20].mxu0 %vm413_vm3, %v2838_v37  ;;  %1933 = vmatmul.mubr.msk.bf16.vlgmr.msra.gmra.mrb[20].mxu1 %vm413_vm3, %v2838_v37  ;;  %vm624_vm5 = vcmp.ge.f32.partialorder %v616_v3, 0.0  ;;  %vm625_vm6 = vcmp.ge.f32.partialorder %v617_v23, 0.0  ;;  %vm626_vm7 = vcmp.ge.f32.partialorder %v618_v2, 0.0  ;;  %v632_v21 = vmul.f32 0.22916667, %v616_v3  ;;  %v3178_v37 = vld [vmem:[#allocation7_spill] sm:$0xff] }
 0x1b6   : > { %1497 = vmatpush1.bf16.msra.mxu0 %v2472_v56  ;;  %1538 = vmatpush1.bf16.msra.mxu1 %v2454_v50  ;;  %vm627_vm8 = vcmp.ge.f32.partialorder %v619_v14, 0.0  ;;  %v633_v29 = vmul.f32 0.22916667, %v617_v23  ;;  %v634_v27 = vmul.f32 0.22916667, %v618_v2  ;;  %v1438_v41 = vsel %vm330_vm1, %v2925_v16, %v3178_v37 }
 0x1b7   : > { %1498 = vmatprep.subr.bf16.mxu0 %v1435_v49  ;;  %1539 = vmatprep.subr.bf16.mxu1 %v1441_v22  ;;  %v635_v35 = vmul.f32 0.22916667, %v619_v14  ;;  %v640_v40 = vsel %vm624_vm5, %v616_v3, %v632_v21  ;;  %v1422_v45 = vsel %vm1416_vm4, %v2840_v25, %v2848_v6 }
 0x1b8   : > { %1528 = vmatprep.mubr.bf16.mxu0 %v3177_v12  ;;  %1569 = vmatprep.mubr.bf16.mxu1 %v3177_v12  ;;  %v641_v56 = vsel %vm625_vm6, %v617_v23, %v633_v29  ;;  %v642_v53 = vsel %vm626_vm7, %v618_v2, %v634_v27  ;;  %v1479_v2 = vsel %vm330_vm1, %v2925_v16, 0  ;;  %v1424_v29 = vsel %vm1416_vm4, %v2858_v19, %v2873_v33 }
 0x1b9   : > { %v643_v13 = vsel %vm627_vm8, %v619_v14, %v635_v35  ;;  %v1964_v28 = vpack.c.bf16 %v641_v56, %v640_v40  ;;  %v1475_v14 = vld [vmem:[#allocation2 + $0xc] sm:$0xf] }
 0x1ba   : > { %1499 = vmatpush1.bf16.msra.mxu0 %v1432_v57  ;;  %1540 = vmatpush1.bf16.msra.mxu1 %v1438_v41  ;;  %v1965_v0 = vpack.c.bf16 %v643_v13, %v642_v53  ;;  %v3180_v40 = vld [vmem:[#allocation9_spill] sm:$0xff]  ;;  %v1453_v57 = vsel %vm330_vm1, %v1424_v29, %v2580_v36  ;;  %v1427_v41 = vsel %vm1416_vm4, %v2873_v33, %v2880_v61 }
 0x1bb   : > { %1500 = vmatprep.subr.bf16.mxu0 %v1457_v32  ;;  %1541 = vmatprep.subr.bf16.mxu1 %v1461_v34  ;;  %680 = vst [vmem:[%s2965_s8] sm:$0xff] %v1964_v28  ;;  %v1447_v56 = vsel %vm330_vm1, %v1422_v45, %v3180_v40  ;;  %v1470_v33 = vsel %vm330_vm1, %v2625_v58, %v1427_v41 }
 0x1bc   : > { %681 = vst [vmem:[%s2965_s8 + $0x8] sm:$0xff] %v1965_v0  ;;  %v1467_v28 = vsel %vm330_vm1, %v2548_v30, %v1424_v29 }
 0x1be   : > { %1501 = vmatpush1.bf16.msra.mxu0 %v1455_v20  ;;  %1542 = vmatpush1.bf16.msra.mxu1 %v1459_v39  ;;  %v591_v47 = vpop.f32.mrb[4].mxu1 }
 0x1bf   : > { %1502 = vmatprep.subr.bf16.mxu0 %v2442_v48  ;;  %1543 = vmatprep.subr.bf16.mxu1 %v2601_v43  ;;  %v609_v54 = vmul.f32 %v2903_v42, %v591_v47  ;;  %v593_v17 = vpop.f32.mrb[5].mxu1 }
 0x1c0   : > { %v610_v59 = vmul.f32 %v2903_v42, %v593_v17  ;;  %v595_v51 = vpop.f32.mrb[6].mxu1 }
 0x1c1   : > { %v550_v18 = vpop.f32.mrb[4].mxu0  ;;  %v622_v11 = vadd.f32 %v2905_v7, %v609_v54  ;;  %v596_v63 = vpop.f32.mrb[7].mxu1 }
 0x1c2   : > { %1503 = vmatpush1.bf16.msra.mxu0 %v2454_v50  ;;  %1544 = vmatpush1.bf16.msra.mxu1 %v2620_v52  ;;  %v607_v48 = vmul.f32 %v2903_v42, %v550_v18  ;;  %v552_v1 = vpop.f32.mrb[5].mxu0  ;;  %v623_v62 = vadd.f32 %v2905_v7, %v610_v59 }
 0x1c3   : > { %1942 = vmatprep.subr.msk.bf16.mxu0 %vm330_vm1, %v2914_v8  ;;  %1944 = vmatprep.subr.msk.bf16.mxu1 %vm330_vm1, %v1422_v45  ;;  %vm630_vm9 = vcmp.ge.f32.partialorder %v622_v11, 0.0  ;;  %v638_v44 = vmul.f32 0.22916667, %v622_v11  ;;  %v608_v5 = vmul.f32 %v2903_v42, %v552_v1  ;;  %v554_v3 = vpop.f32.mrb[6].mxu0 }
 0x1c4   : > { %v620_v25 = vadd.f32 %v2905_v7, %v607_v48  ;;  %vm631_vm10 = vcmp.ge.f32.partialorder %v623_v62, 0.0  ;;  %v639_v50 = vmul.f32 0.22916667, %v623_v62  ;;  %v555_v23 = vpop.f32.mrb[7].mxu0 }
 0x1c5   : > { %v646_v49 = vsel %vm630_vm9, %v622_v11, %v638_v44  ;;  %v621_v8 = vadd.f32 %v2905_v7, %v608_v5 }
 0x1c6   : > { %1505 = vmatpush1.bf16.msra.mxu0 %v1479_v2  ;;  %1546 = vmatpush1.bf16.msra.mxu1 %v1483_v4  ;;  %vm628_vm11 = vcmp.ge.f32.partialorder %v620_v25, 0.0  ;;  %v636_v21 = vmul.f32 0.22916667, %v620_v25  ;;  %v647_v22 = vsel %vm631_vm10, %v623_v62, %v639_v50 }
 0x1c7   : > { %1578 = vmatprep.subr.bf16.mxu0 %v2601_v43  ;;  %1619 = vmatprep.subr.bf16.mxu1 %v2575_v31  ;;  %vm629_vm12 = vcmp.ge.f32.partialorder %v621_v8, 0.0  ;;  %v637_v16 = vmul.f32 0.22916667, %v621_v8  ;;  %v1967_v27 = vpack.c.bf16 %v647_v22, %v646_v49  ;;  %v1423_v43 = vsel %vm1416_vm4, %v2848_v6, %v2858_v19  ;;  %v3181_v6 = vld [vmem:[#allocation8_spill] sm:$0xff]  ;;  %v3182_v19 = vld [vmem:[#allocation10_spill] sm:$0xff] }
 0x1c8   : > { %v644_v35 = vsel %vm628_vm11, %v620_v25, %v636_v21  ;;  %v1450_v13 = vsel %vm330_vm1, %v1423_v43, %v3182_v19  ;;  %v1465_v36 = vsel %vm330_vm1, %v2508_v9, %v1423_v43  ;;  %v1430_v9 = vsel %vm1416_vm4, %v2880_v61, %v2883_v38 }
 0x1c9   : > { %1943 = vmatmul.mubr.msk.bf16.vlgmr.msra.gmra.mrb[24].mxu0 %vm413_vm3, %v1475_v14  ;;  %1945 = vmatmul.mubr.msk.bf16.vlgmr.msra.gmra.mrb[24].mxu1 %vm413_vm3, %v1475_v14  ;;  %v645_v53 = vsel %vm629_vm12, %v621_v8, %v637_v16  ;;  %683 = vst [vmem:[%s2965_s8 + $0x18] sm:$0xff] %v1967_v27  ;;  %v1487_v30 = vsel %vm330_vm1, %v1423_v43, 0 }
 0x1ca   : > { %1579 = vmatpush1.bf16.msra.mxu0 %v2620_v52  ;;  %1620 = vmatpush1.bf16.msra.mxu1 %v2606_v46  ;;  %v1966_v37 = vpack.c.bf16 %v645_v53, %v644_v35  ;;  %v1444_v52 = vsel %vm330_vm1, %v2947_v26, %v3181_v6  ;;  %v1472_v26 = vsel %vm330_vm1, %v2869_v15, %v2888_v10 }
 0x1cb   : > { %1580 = vmatprep.subr.bf16.mxu0 %v1447_v56  ;;  %1621 = vmatprep.subr.bf16.mxu1 %v1453_v57 }
 0x1cc   : > { %1610 = vmatprep.mubr.bf16.mxu0 %v3177_v12  ;;  %1651 = vmatprep.mubr.bf16.mxu1 %v3177_v12  ;;  %682 = vst [vmem:[%s2965_s8 + $0x10] sm:$0xff] %v1966_v37  ;;  %v1463_v12 = vsel %vm330_vm1, %v2484_v60, %v1422_v45  ;;  %v1491_v60 = vsel %vm330_vm1, %v1427_v41, 0 }
 0x1ce   : > { %1581 = vmatpush1.bf16.msra.mxu0 %v1444_v52  ;;  %1622 = vmatpush1.bf16.msra.mxu1 %v1450_v13 }
 0x1cf   : > { %1582 = vmatprep.subr.bf16.mxu0 %v1465_v36  ;;  %1623 = vmatprep.subr.bf16.mxu1 %v1470_v33 }
 0x1d2   : > { %1583 = vmatpush1.bf16.msra.mxu0 %v1463_v12  ;;  %1624 = vmatpush1.bf16.msra.mxu1 %v1467_v28 }
 0x1d3   : > { %1584 = vmatprep.subr.bf16.mxu0 %v2575_v31  ;;  %1625 = vmatprep.subr.bf16.mxu1 %v1472_v26 }
 0x1d6   : > { %1585 = vmatpush1.bf16.msra.mxu0 %v2606_v46  ;;  %1626 = vmatpush1.bf16.msra.mxu1 %v2865_v55 }
 0x1d7   : > { %1946 = vmatprep.subr.msk.bf16.mxu0 %vm330_vm1, %v1424_v29  ;;  %1948 = vmatprep.subr.msk.bf16.mxu1 %vm330_vm1, %v1430_v9 }
 0x1da   : > { %1587 = vmatpush1.bf16.msra.mxu0 %v1487_v30  ;;  %1628 = vmatpush1.bf16.msra.mxu1 %v1491_v60 }
 0x1dd   : > { %1947 = vmatmul.mubr.msk.bf16.vlgmr.msra.gmra.mrb[28].mxu0 %vm413_vm3, %v1475_v14  ;;  %1949 = vmatmul.mubr.msk.bf16.vlgmr.msra.gmra.mrb[28].mxu1 %vm413_vm3, %v1475_v14 }
 0x245   : > { %v927_v31 = vpop.f32.mrb[8].mxu0 }
 0x246   : > { %v1057_v58 = vmul.f32 %v927_v31, %v2903_v42  ;;  %v929_v46 = vpop.f32.mrb[9].mxu0 }
 0x247   : > { %v1058_v55 = vmul.f32 %v929_v46, %v2903_v42  ;;  %v931_v15 = vpop.f32.mrb[10].mxu0 }
 0x248   : > { %v1065_v61 = vadd.f32 %v1057_v58, %v2905_v7  ;;  %v932_v38 = vpop.f32.mrb[11].mxu0 }
 0x249   : > { %v968_v10 = vpop.f32.mrb[8].mxu1  ;;  %v1066_v32 = vadd.f32 %v1058_v55, %v2905_v7 }
 0x24a   : > { %vm1073_vm13 = vcmp.ge.f32.partialorder %v1065_v61, 0.0  ;;  %v1081_v34 = vmul.f32 0.22916667, %v1065_v61  ;;  %v1059_v0 = vmul.f32 %v968_v10, %v2903_v42  ;;  %v970_v24 = vpop.f32.mrb[9].mxu1 }
 0x24b   : > { %vm1074_vm14 = vcmp.ge.f32.partialorder %v1066_v32, 0.0  ;;  %v1082_v20 = vmul.f32 0.22916667, %v1066_v32  ;;  %v1060_v39 = vmul.f32 %v970_v24, %v2903_v42  ;;  %v972_v47 = vpop.f32.mrb[10].mxu1 }
 0x24c   : > { %v1089_v54 = vsel %vm1073_vm13, %v1065_v61, %v1081_v34  ;;  %v1067_v17 = vadd.f32 %v1059_v0, %v2905_v7  ;;  %v973_v59 = vpop.f32.mrb[11].mxu1 }
 0x24d   : > { %v1090_v51 = vsel %vm1074_vm14, %v1066_v32, %v1082_v20  ;;  %v1068_v18 = vadd.f32 %v1060_v39, %v2905_v7 }
 0x24e   : > { %vm1075_vm15 = vcmp.ge.f32.partialorder %v1067_v17, 0.0  ;;  %v1083_v11 = vmul.f32 0.22916667, %v1067_v17  ;;  %v1968_v63 = vpack.c.bf16 %v1090_v51, %v1089_v54 }
 0x24f   : > { %vm1076_vm0 = vcmp.ge.f32.partialorder %v1068_v18, 0.0  ;;  %v1084_v45 = vmul.f32 0.22916667, %v1068_v18 }
 0x250   : > { %v1091_v48 = vsel %vm1075_vm15, %v1067_v17, %v1083_v11  ;;  %1921 = vst [vmem:[%s2965_s8 + $0x20] sm:$0xff] %v1968_v63 }
 0x251   : > { %v1092_v1 = vsel %vm1076_vm0, %v1068_v18, %v1084_v45 }
 0x252   : > { %v1969_v62 = vpack.c.bf16 %v1092_v1, %v1091_v48 }
 0x254   : > { %1922 = vst [vmem:[%s2965_s8 + $0x28] sm:$0xff] %v1969_v62 }
 0x260   : > { %v1009_v44 = vpop.f32.mrb[12].mxu0  ;;  %v1050_v5 = vpop.f32.mrb[12].mxu1 }
 0x261   : > { %v1061_v3 = vmul.f32 %v1009_v44, %v2903_v42  ;;  %v1063_v25 = vmul.f32 %v1050_v5, %v2903_v42  ;;  %v1011_v50 = vpop.f32.mrb[13].mxu0  ;;  %v1052_v23 = vpop.f32.mrb[13].mxu1 }
 0x262   : > { %v1062_v2 = vmul.f32 %v1011_v50, %v2903_v42  ;;  %v1064_v4 = vmul.f32 %v1052_v23, %v2903_v42  ;;  %v1013_v49 = vpop.f32.mrb[14].mxu0  ;;  %v1054_v8 = vpop.f32.mrb[14].mxu1 }
 0x263   : > { %v1069_v14 = vadd.f32 %v1061_v3, %v2905_v7  ;;  %v1071_v21 = vadd.f32 %v1063_v25, %v2905_v7  ;;  %v1014_v22 = vpop.f32.mrb[15].mxu0  ;;  %v1055_v29 = vpop.f32.mrb[15].mxu1 }
 0x264   : > { %v1070_v16 = vadd.f32 %v1062_v2, %v2905_v7  ;;  %v1072_v27 = vadd.f32 %v1064_v4, %v2905_v7 }
 0x265   : > { %vm1077_vm1 = vcmp.ge.f32.partialorder %v1069_v14, 0.0  ;;  %v1085_v35 = vmul.f32 0.22916667, %v1069_v14  ;;  %vm1079_vm2 = vcmp.ge.f32.partialorder %v1071_v21, 0.0  ;;  %v1087_v40 = vmul.f32 0.22916667, %v1071_v21 }
 0x266   : > { %vm1078_vm3 = vcmp.ge.f32.partialorder %v1070_v16, 0.0  ;;  %v1086_v56 = vmul.f32 0.22916667, %v1070_v16  ;;  %vm1080_vm4 = vcmp.ge.f32.partialorder %v1072_v27, 0.0  ;;  %v1088_v53 = vmul.f32 0.22916667, %v1072_v27 }
 0x267   : > { %v1093_v43 = vsel %vm1077_vm1, %v1069_v14, %v1085_v35  ;;  %v1095_v57 = vsel %vm1079_vm2, %v1071_v21, %v1087_v40 }
 0x268   : > { %v1094_v37 = vsel %vm1078_vm3, %v1070_v16, %v1086_v56  ;;  %v1096_v41 = vsel %vm1080_vm4, %v1072_v27, %v1088_v53 }
 0x269   : > { %v1970_v6 = vpack.c.bf16 %v1094_v37, %v1093_v43  ;;  %v1971_v52 = vpack.c.bf16 %v1096_v41, %v1095_v57 }
 0x26b   : > { %1923 = vst [vmem:[%s2965_s8 + $0x30] sm:$0xff] %v1970_v6  ;;  %1924 = vst [vmem:[%s2965_s8 + $0x38] sm:$0xff] %v1971_v52 }
 0x274   : > { %v1191_v19 = vpop.f32.mrb[16].mxu0  ;;  %v1232_v13 = vpop.f32.mrb[16].mxu1 }
 0x275   : > { %v1321_v36 = vmul.f32 %v1191_v19, %v2903_v42  ;;  %v1323_v33 = vmul.f32 %v1232_v13, %v2903_v42  ;;  %v1193_v12 = vpop.f32.mrb[17].mxu0  ;;  %v1234_v28 = vpop.f32.mrb[17].mxu1 }
 0x276   : > { %v1322_v26 = vmul.f32 %v1193_v12, %v2903_v42  ;;  %v1324_v9 = vmul.f32 %v1234_v28, %v2903_v42  ;;  %v1195_v60 = vpop.f32.mrb[18].mxu0  ;;  %v1236_v30 = vpop.f32.mrb[18].mxu1 }
 0x277   : > { %v1329_v31 = vadd.f32 %v1321_v36, %v2905_v7  ;;  %v1331_v58 = vadd.f32 %v1323_v33, %v2905_v7  ;;  %v1196_v46 = vpop.f32.mrb[19].mxu0  ;;  %v1237_v55 = vpop.f32.mrb[19].mxu1 }
 0x278   : > { %v1330_v15 = vadd.f32 %v1322_v26, %v2905_v7  ;;  %v1332_v61 = vadd.f32 %v1324_v9, %v2905_v7 }
 0x279   : > { %vm1337_vm5 = vcmp.ge.f32.partialorder %v1329_v31, 0.0  ;;  %v1345_v38 = vmul.f32 0.22916667, %v1329_v31  ;;  %vm1339_vm6 = vcmp.ge.f32.partialorder %v1331_v58, 0.0  ;;  %v1347_v10 = vmul.f32 0.22916667, %v1331_v58 }
 0x27a   : > { %vm1338_vm7 = vcmp.ge.f32.partialorder %v1330_v15, 0.0  ;;  %v1346_v32 = vmul.f32 0.22916667, %v1330_v15  ;;  %vm1340_vm8 = vcmp.ge.f32.partialorder %v1332_v61, 0.0  ;;  %v1348_v34 = vmul.f32 0.22916667, %v1332_v61 }
 0x27b   : > { %v1353_v0 = vsel %vm1337_vm5, %v1329_v31, %v1345_v38  ;;  %v1355_v24 = vsel %vm1339_vm6, %v1331_v58, %v1347_v10 }
 0x27c   : > { %v1354_v20 = vsel %vm1338_vm7, %v1330_v15, %v1346_v32  ;;  %v1356_v39 = vsel %vm1340_vm8, %v1332_v61, %v1348_v34 }
 0x27d   : > { %v1972_v47 = vpack.c.bf16 %v1354_v20, %v1353_v0  ;;  %v1973_v54 = vpack.c.bf16 %v1356_v39, %v1355_v24 }
 0x27f   : > { %1938 = vst [vmem:[%s2965_s8 + $0x40] sm:$0xff] %v1972_v47  ;;  %1939 = vst [vmem:[%s2965_s8 + $0x48] sm:$0xff] %v1973_v54 }
 0x288   : > { %v1273_v17 = vpop.f32.mrb[20].mxu0  ;;  %v1314_v59 = vpop.f32.mrb[20].mxu1 }
 0x289   : > { %v1325_v51 = vmul.f32 %v1273_v17, %v2903_v42  ;;  %v1327_v18 = vmul.f32 %v1314_v59, %v2903_v42  ;;  %v1275_v11 = vpop.f32.mrb[21].mxu0  ;;  %v1316_v63 = vpop.f32.mrb[21].mxu1 }
 0x28a   : > { %v1326_v45 = vmul.f32 %v1275_v11, %v2903_v42  ;;  %v1328_v48 = vmul.f32 %v1316_v63, %v2903_v42  ;;  %v1277_v1 = vpop.f32.mrb[22].mxu0  ;;  %v1318_v62 = vpop.f32.mrb[22].mxu1 }
 0x28b   : > { %v1333_v44 = vadd.f32 %v1325_v51, %v2905_v7  ;;  %v1335_v5 = vadd.f32 %v1327_v18, %v2905_v7  ;;  %v1278_v3 = vpop.f32.mrb[23].mxu0  ;;  %v1319_v25 = vpop.f32.mrb[23].mxu1 }
 0x28c   : > { %v1334_v50 = vadd.f32 %v1326_v45, %v2905_v7  ;;  %v1336_v23 = vadd.f32 %v1328_v48, %v2905_v7 }
 0x28d   : > { %vm1341_vm9 = vcmp.ge.f32.partialorder %v1333_v44, 0.0  ;;  %v1349_v2 = vmul.f32 0.22916667, %v1333_v44  ;;  %vm1343_vm10 = vcmp.ge.f32.partialorder %v1335_v5, 0.0  ;;  %v1351_v4 = vmul.f32 0.22916667, %v1335_v5 }
 0x28e   : > { %vm1342_vm11 = vcmp.ge.f32.partialorder %v1334_v50, 0.0  ;;  %v1350_v49 = vmul.f32 0.22916667, %v1334_v50  ;;  %vm1344_vm12 = vcmp.ge.f32.partialorder %v1336_v23, 0.0  ;;  %v1352_v8 = vmul.f32 0.22916667, %v1336_v23 }
 0x28f   : > { %v1357_v14 = vsel %vm1341_vm9, %v1333_v44, %v1349_v2  ;;  %v1359_v21 = vsel %vm1343_vm10, %v1335_v5, %v1351_v4  ;;  %v1765_v2 = vld [vmem:[%s2965_s8 + $0x10] sm:$0xff] (%p3183_p7)  ;;  %v1767_v4 = vld [vmem:[%s2965_s8 + $0x18] sm:$0xff] (%p3183_p7) }
 0x290   : > { %v1358_v22 = vsel %vm1342_vm11, %v1334_v50, %v1350_v49  ;;  %v1360_v29 = vsel %vm1344_vm12, %v1336_v23, %v1352_v8  ;;  %v1763_v23 = vld [vmem:[%s2965_s8 + $0x8] sm:$0xff] (%p3183_p7)  ;;  %v1769_v49 = vld [vmem:[%s2965_s8 + $0x20] sm:$0xff] (%p3183_p7)  ;;  %1766 = vst [vmem:[%s1748_s26 + $0x10] sm:$0xff] (%p3183_p7), %v1765_v2  ;;  %1768 = vst [vmem:[%s1748_s26 + $0x18] sm:$0xff] (%p3183_p7), %v1767_v4 }
 0x291   : > { %v1974_v16 = vpack.c.bf16 %v1358_v22, %v1357_v14  ;;  %v1975_v27 = vpack.c.bf16 %v1360_v29, %v1359_v21  ;;  %v1771_v8 = vld [vmem:[%s2965_s8 + $0x28] sm:$0xff] (%p3183_p7)  ;;  %v1773_v14 = vld [vmem:[%s2965_s8 + $0x30] sm:$0xff] (%p3183_p7)  ;;  %v1775_v21 = vld [vmem:[%s2965_s8 + $0x38] sm:$0xff] (%p3183_p7)  ;;  %1764 = vst [vmem:[%s1748_s26 + $0x8] sm:$0xff] (%p3183_p7), %v1763_v23 }
 0x292   : > { %v1777_v22 = vld [vmem:[%s2965_s8 + $0x40] sm:$0xff] (%p3183_p7)  ;;  %v1779_v29 = vld [vmem:[%s2965_s8 + $0x48] sm:$0xff] (%p3183_p7)  ;;  %1770 = vst [vmem:[%s1748_s26 + $0x40] sm:$0xff] (%p3183_p7), %v1769_v49  ;;  %1772 = vst [vmem:[%s1748_s26 + $0x48] sm:$0xff] (%p3183_p7), %v1771_v8 }
 0x293   : > { %1940 = vst [vmem:[%s2965_s8 + $0x50] sm:$0xff] %v1974_v16  ;;  %1941 = vst [vmem:[%s2965_s8 + $0x58] sm:$0xff] %v1975_v27 }
 0x294   : > { %1774 = vst [vmem:[%s1748_s26 + $0x50] sm:$0xff] (%p3183_p7), %v1773_v14  ;;  %1776 = vst [vmem:[%s1748_s26 + $0x58] sm:$0xff] (%p3183_p7), %v1775_v21 }
 0x295   : > { %1778 = vst [vmem:[%s1748_s26 + $0x80] sm:$0xff] (%p3183_p7), %v1777_v22  ;;  %1780 = vst [vmem:[%s1748_s26 + $0x88] sm:$0xff] (%p3183_p7), %v1779_v29 }
 0x29a   : > { %v1781_v16 = vld [vmem:[%s2965_s8 + $0x50] sm:$0xff] (%p3183_p7)  ;;  %v1783_v27 = vld [vmem:[%s2965_s8 + $0x58] sm:$0xff] (%p3183_p7) }
 0x29b   : > { %1782 = vst [vmem:[%s1748_s26 + $0x90] sm:$0xff] (%p3183_p7), %v1781_v16  ;;  %1784 = vst [vmem:[%s1748_s26 + $0x98] sm:$0xff] (%p3183_p7), %v1783_v27 }
 0x29c   : > { %v1530_v35 = vpop.f32.mrb[24].mxu0  ;;  %v1571_v40 = vpop.f32.mrb[24].mxu1 }
 0x29d   : > { %v1660_v56 = vmul.f32 %v1530_v35, %v2903_v42  ;;  %v1662_v53 = vmul.f32 %v1571_v40, %v2903_v42  ;;  %v1532_v43 = vpop.f32.mrb[25].mxu0  ;;  %v1573_v57 = vpop.f32.mrb[25].mxu1 }
 0x29e   : > { %v1661_v37 = vmul.f32 %v1532_v43, %v2903_v42  ;;  %v1663_v41 = vmul.f32 %v1573_v57, %v2903_v42  ;;  %v1534_v6 = vpop.f32.mrb[26].mxu0  ;;  %v1575_v52 = vpop.f32.mrb[26].mxu1 }
 0x29f   : > { %v1668_v19 = vadd.f32 %v1660_v56, %v2905_v7  ;;  %v1670_v13 = vadd.f32 %v1662_v53, %v2905_v7  ;;  %v1535_v36 = vpop.f32.mrb[27].mxu0  ;;  %v1576_v33 = vpop.f32.mrb[27].mxu1 }
 0x2a0   : > { %v1669_v12 = vadd.f32 %v1661_v37, %v2905_v7  ;;  %v1671_v28 = vadd.f32 %v1663_v41, %v2905_v7 }
 0x2a1   : > { %vm1676_vm13 = vcmp.ge.f32.partialorder %v1668_v19, 0.0  ;;  %v1684_v26 = vmul.f32 0.22916667, %v1668_v19  ;;  %vm1678_vm14 = vcmp.ge.f32.partialorder %v1670_v13, 0.0  ;;  %v1686_v9 = vmul.f32 0.22916667, %v1670_v13 }
 0x2a2   : > { %vm1677_vm15 = vcmp.ge.f32.partialorder %v1669_v12, 0.0  ;;  %v1685_v60 = vmul.f32 0.22916667, %v1669_v12  ;;  %vm1679_vm0 = vcmp.ge.f32.partialorder %v1671_v28, 0.0  ;;  %v1687_v30 = vmul.f32 0.22916667, %v1671_v28 }
 0x2a3   : > { %v1692_v31 = vsel %vm1676_vm13, %v1668_v19, %v1684_v26  ;;  %v1694_v58 = vsel %vm1678_vm14, %v1670_v13, %v1686_v9 }
 0x2a4   : > { %v1693_v46 = vsel %vm1677_vm15, %v1669_v12, %v1685_v60  ;;  %v1695_v55 = vsel %vm1679_vm0, %v1671_v28, %v1687_v30 }
 0x2a5   : > { %v1976_v15 = vpack.c.bf16 %v1693_v46, %v1692_v31  ;;  %v1977_v61 = vpack.c.bf16 %v1695_v55, %v1694_v58 }
 0x2a7   : > { %1954 = vst [vmem:[%s2965_s8 + $0x60] sm:$0xff] %v1976_v15  ;;  %1955 = vst [vmem:[%s2965_s8 + $0x68] sm:$0xff] %v1977_v61 }
 0x2ae   : > { %v1785_v35 = vld [vmem:[%s2965_s8 + $0x60] sm:$0xff] (%p3183_p7)  ;;  %v1787_v40 = vld [vmem:[%s2965_s8 + $0x68] sm:$0xff] (%p3183_p7) }
 0x2af   : > { %1786 = vst [vmem:[%s1748_s26 + $0xc0] sm:$0xff] (%p3183_p7), %v1785_v35  ;;  %1788 = vst [vmem:[%s1748_s26 + $0xc8] sm:$0xff] (%p3183_p7), %v1787_v40 }
 0x2b0   : > { %v1612_v38 = vpop.f32.mrb[28].mxu0  ;;  %v1653_v10 = vpop.f32.mrb[28].mxu1 }
 0x2b1   : > { %v1664_v32 = vmul.f32 %v1612_v38, %v2903_v42  ;;  %v1666_v34 = vmul.f32 %v1653_v10, %v2903_v42  ;;  %v1614_v0 = vpop.f32.mrb[29].mxu0  ;;  %v1655_v24 = vpop.f32.mrb[29].mxu1 }
 0x2b2   : > { %v1665_v20 = vmul.f32 %v1614_v0, %v2903_v42  ;;  %v1667_v39 = vmul.f32 %v1655_v24, %v2903_v42  ;;  %v1616_v47 = vpop.f32.mrb[30].mxu0  ;;  %v1657_v54 = vpop.f32.mrb[30].mxu1 }
 0x2b3   : > { %v1672_v17 = vadd.f32 %v1664_v32, %v2905_v7  ;;  %v1674_v59 = vadd.f32 %v1666_v34, %v2905_v7  ;;  %v1617_v51 = vpop.f32.mrb[31].mxu0  ;;  %v1658_v18 = vpop.f32.mrb[31].mxu1 }
 0x2b4   : > { %v1673_v11 = vadd.f32 %v1665_v20, %v2905_v7  ;;  %v1675_v63 = vadd.f32 %v1667_v39, %v2905_v7  ;;  %v1761_v7 = vld [vmem:[%s2965_s8] sm:$0xff] (%p3183_p7) }
 0x2b5   : > { %vm1680_vm1 = vcmp.ge.f32.partialorder %v1672_v17, 0.0  ;;  %v1688_v45 = vmul.f32 0.22916667, %v1672_v17  ;;  %vm1682_vm2 = vcmp.ge.f32.partialorder %v1674_v59, 0.0  ;;  %v1690_v48 = vmul.f32 0.22916667, %v1674_v59  ;;  %1762 = vst [vmem:[%s1748_s26] sm:$0xff] (%p3183_p7), %v1761_v7 }
 0x2b6   : > { %vm1681_vm3 = vcmp.ge.f32.partialorder %v1673_v11, 0.0  ;;  %v1689_v42 = vmul.f32 0.22916667, %v1673_v11  ;;  %vm1683_vm4 = vcmp.ge.f32.partialorder %v1675_v63, 0.0  ;;  %v1691_v1 = vmul.f32 0.22916667, %v1675_v63 }
 0x2b7   : > { %v1696_v62 = vsel %vm1680_vm1, %v1672_v17, %v1688_v45  ;;  %v1698_v44 = vsel %vm1682_vm2, %v1674_v59, %v1690_v48  ;;  %1743 = sbr.rel (!%p3183_p7) target bundleno = 708 (0x2c4), region = 44 }
 0x2b8   : > { %v1697_v5 = vsel %vm1681_vm3, %v1673_v11, %v1689_v42  ;;  %v1699_v3 = vsel %vm1683_vm4, %v1675_v63, %v1691_v1 }
 0x2b9   : > { %v1978_v25 = vpack.c.bf16 %v1697_v5, %v1696_v62  ;;  %v1979_v50 = vpack.c.bf16 %v1699_v3, %v1698_v44 }
 0x2bb   : > { %1956 = vst [vmem:[%s2965_s8 + $0x70] sm:$0xff] %v1978_v25  ;;  %1957 = vst [vmem:[%s2965_s8 + $0x78] sm:$0xff] %v1979_v50 }
 0x2c2   : > { %v1789_v56 = vld [vmem:[%s2965_s8 + $0x70] sm:$0xff]  ;;  %v1791_v53 = vld [vmem:[%s2965_s8 + $0x78] sm:$0xff] }
 0x2c3   : > { %1790 = vst [vmem:[%s1748_s26 + $0xd0] sm:$0xff] %v1789_v56  ;;  %1792 = vst [vmem:[%s1748_s26 + $0xd8] sm:$0xff] %v1791_v53 }
 0x2c4 PF: > { %s15_s21 = sadd.s32 1, %s2154_s21   ;;  %s3184_s15 = smov %s2134_s16 }
 0x2c5   : > { %p12_p8 = scmp.ge.s32.totalorder %s15_s21, 6   ;;  %s3185_s16 = smov %s2261_s9 }
 0x2c6   : > { %s3186_s17 = smov %s2146_s19  ;;  %s3187_s18 = smov %s2150_s20 }
 0x2c7   : > { %s3188_s19 = smov %s3191_s23  ;;  %s3189_s20 = smov %s3195_s24 }
 0x2c8   :  { %14 = sbr.rel (!%p12_p8) target bundleno = 4 (0x4), region = 101 }
 0x2cf   :  { %1808 = vsyncpa [#allocation3], 1 }
 0x2d0   :  { %1810 = vsyncpa [#allocation3 + $0x1], 1 }

// kernel: conv_decoder_forward.6
= control target key start
LH: loop header
LB: loop body
LE: loop exit
PB: predicated region body
PF: predicated region fallthrough
CT: control target
= control target key end

     0   :  { %s2509_s15 = smov 0   ;;  %s2511_s16 = smov 0   ;;  %s3600_s0 = inlined_call_operand.vmem [shape: bf16[2,8,4608], index: 0, kind: input, shape index: {}]   ;;  %s3601_s1 = inlined_call_operand.vmem [shape: bf16[4,16,72], index: 1, kind: input, shape index: {}]   ;;  %s3602_s2 = inlined_call_operand.vmem [shape: f32[16,1], index: 2, kind: input, shape index: {}]   ;;  %s3603_s3 = inlined_call_operand.vmem [shape: f32[16,1], index: 3, kind: input, shape index: {}]   ;;  %s3604_s4 = inlined_call_operand.vmem [shape: bf16[2,4,16,4096], index: 4, kind: output, shape index: {}]  }
   0x1   :  { %s2513_s17 = smov 0   ;;  %s2515_s18 = smov 0  }
   0x2   :  { %s2517_s19 = smov 0   ;;  %s2519_s20 = smov 0  }
   0x3   :  { %s2521_s21 = smov 0  }
   0x4 LB: > { %s23_s22 = sadd.s32 1, %s2470_s19  ;;  %s26_s23 = sadd.s32 1, %s2474_s20  ;;  %s2478_s21 = sphi %s2521_s21, %s14_s21   ;;  %s2474_s20 = sphi %s2519_s20, %s3629_s20   ;;  %s2470_s19 = sphi %s2517_s19, %s3628_s19   ;;  %s2466_s18 = sphi %s2515_s18, %s3627_s18   ;;  %s2462_s17 = sphi %s2513_s17, %s3626_s17   ;;  %s2458_s16 = sphi %s2511_s16, %s3625_s16   ;;  %s2454_s15 = sphi %s2509_s15, %s3624_s15  }
   0x5   : > { %p24_p0 = scmp.ge.s32.totalorder %s23_s22, 4  ;;  %s2188_s24 = sadd.s32 4294967295, %s2478_s21  }
   0x6   : > { %p134_p1 = scmp.ne.s32.totalorder %s2458_s16, %s2454_s15  ;;  %p135_p2 = scmp.eq.s32.totalorder %s2188_s24, 7 }
   0x7   : > { %s3631_s22 = smov (%p24_p0, %s23_s22), 0  ;;  %s3633_s23 = smov (!%p24_p0, %s26_s23), %s2474_s20 }
   0x8   : > { %s120_s25 = ssub.s32 %s2470_s19, %s3631_s22  ;;  %p28_p3 = scmp.ge.s32.totalorder %s3633_s23, 2 }
   0x9   : > { %p2192_p4 = scmp.ge.s32.totalorder %s2478_s21, 1  ;;  %p2555_p5 = por %p135_p2, %p134_p1 }
   0xa   : > { %p176_p6 = scmp.lt.s32.totalorder %s2478_s21, 9  ;;  %s3635_s23 = smov (%p28_p3, %s3633_s23), 0 }
   0xb   : > { %s119_s27 = ssub.s32 %s2474_s20, %s3635_s23  ;;  %s124_s29 = sadd.s32 1, %s2458_s16 }
   0xc   : > { %p177_p7 = pnand %p2192_p4, %p176_p6  ;;  %s121_s28 = sor.u32 %s120_s25, %s119_s27 }
   0xd   : > { %p122_p8 = scmp.eq.s32.totalorder %s121_s28, 0 }
   0xe   : > { %180 = sbr.rel (%p177_p7) target bundleno = 680 (0x2a8), region = 36 }
   0xf   : > { %s2566_s30 = scalar_select %p122_p8, %s2458_s16, %s124_s29  }
  0x15   : > { %p201_p9 = scmp.lt.s32.totalorder %s2466_s18, 1  ;;  %s2195_s5 = sshll.u32 %s2462_s17, 10  ;;  %v3605_v11 = vmov 0   ;;  %vm264_vm0 = vcmask 1039360   ;;  %vm317_vm1 = vcmask 1043456   ;;  %vm291_vm2 = vcmask 1031168  }
  0x16   : > { %s209_s6 = sshra.s32 %s2195_s5, 7  ;;  %s2480_s14 = smov 127   ;;  %502 = vmatprep.mubr.bf16.mxu1 %v3605_v11  ;;  %459 = vmatprep.mubr.bf16.mxu0 %v3605_v11  ;;  %vm406_vm3 = vcmask 588800   ;;  %vm1635_vm4 = vcmask 1022976  }
  0x17   : > { %s202_s7 = scalar_select %p201_p9, %s2466_s18, 1  ;;  %2407 = vset.pattern.permute.xlu1 %v3605_v11  ;;  %2406 = vset.pattern.permute.xlu0 %v3605_v11 }
  0x18   : > { %s2196_s9 = sshll.u32 %s209_s6, 2  ;;  %s2481_s24 = smov 126  }
  0x19   : > { %s2345_s8 = smul.u32 144, %s202_s7  ;;  %s2483_s28 = smov 125  }
  0x1a   : > { %s198_s25 = sand.u32 1, %s2454_s15   ;;  %s2308_s5 = sshll.u32 (%p2555_p5), %s2462_s17, 3 }
  0x1b   : > { %s205_s12 = scalar_lea.vmem %s3600_s0, %s2345_s8  ;;  %s3258_s15 = sshll.u32 %s198_s25, 8 }
  0x1c   : > { %s2574_s13 = scalar_lea.vmem %s205_s12, %s2196_s9  ;;  %s3277_s27 = scalar_lea.vmem [#allocation2], %s3258_s15 }
  0x1d   : > { %v214_v0 = vld [vmem:[%s2574_s13 + $0x8] sm:$0xff]  ;;  %v213_v1 = vld [vmem:[%s2574_s13] sm:$0xff]  ;;  %v215_v2 = vld [vmem:[%s2574_s13 + $0x10] sm:$0xff]  ;;  %s2309_s6 = sshll.u32 (%p2555_p5), %s2466_s18, 8 }
  0x1e   : > { %v2579_v3 = vcombine.high %v214_v0, %v214_v0  ;;  %v2581_v4 = vcombine.high %v213_v1, %v213_v1  ;;  %v2587_v5 = vcombine.low %v215_v2, %v215_v2  ;;  %v2589_v6 = vcombine.low %v214_v0, %v214_v0  ;;  %v216_v9 = vld [vmem:[%s2574_s13 + $0x18] sm:$0xff]  ;;  %v217_v13 = vld [vmem:[%s2574_s13 + $0x20] sm:$0xff]  ;;  %v2638_v16 = vld [vmem:[%s2574_s13 + $0x28] sm:$0xff]  ;;  %s2039_s26 = sadd.s32 (%p2555_p5), %s2309_s6, %s2308_s5 }
  0x1f   : > { %v2595_v7 = vcombine.high %v215_v2, %v215_v2  ;;  %v2197_v8 = vcombine.low %v213_v1, %v213_v1  ;;  %v2612_v10 = vcombine.low %v216_v9, %v216_v9  ;;  %v2622_v12 = vcombine.high %v216_v9, %v216_v9  ;;  %v2783_v0 = vld [vmem:[%s3601_s1] sm:$0xff]   ;;  %s2310_s7 = sshll.u32 (%p2555_p5), %s2039_s26, 2 }
  0x20   : > { %252 = vrot.lane.b32.xlu1 %v2579_v3, %s2480_s14  ;;  %248 = vrot.lane.b32.xlu0 %v2581_v4, %s2480_s14  ;;  %v2629_v14 = vcombine.low %v217_v13, %v217_v13  ;;  %v2635_v15 = vcombine.high %v217_v13, %v217_v13  ;;  %v2646_v17 = vcombine.low %v2638_v16, %v2638_v16  ;;  %s3522_s10 = scalar_lea.vmem (%p2555_p5), %s3604_s4, %s2310_s7 }
  0x24   : > { %254 = vrot.lane.b32.xlu1 %v2587_v5, %s2480_s14  ;;  %250 = vrot.lane.b32.xlu0 %v2589_v6, %s2480_s14 }
  0x28   : > { %256 = vrot.lane.b32.xlu0 %v2595_v7, %s2480_s14  ;;  %246 = vrot.lane.b32.xlu1 %v2197_v8, %s2480_s14 }
  0x2c   : > { %275 = vrot.lane.b32.xlu0 %v2581_v4, %s2481_s24  ;;  %277 = vrot.lane.b32.xlu1 %v2589_v6, %s2481_s24 }
  0x30   : > { %279 = vrot.lane.b32.xlu0 %v2579_v3, %s2481_s24  ;;  %281 = vrot.lane.b32.xlu1 %v2587_v5, %s2481_s24 }
  0x34   : > { %283 = vrot.lane.b32.xlu0 %v2595_v7, %s2481_s24  ;;  %273 = vrot.lane.b32.xlu1 %v2197_v8, %s2481_s24 }
  0x38   : > { %258 = vrot.lane.b32.xlu0 %v2612_v10, %s2480_s14  ;;  %285 = vrot.lane.b32.xlu1 %v2612_v10, %s2481_s24 }
  0x3c   : > { %260 = vrot.lane.b32.xlu0 %v2622_v12, %s2480_s14  ;;  %287 = vrot.lane.b32.xlu1 %v2622_v12, %s2481_s24 }
  0x40   : > { %262 = vrot.lane.b32.xlu0 %v2629_v14, %s2480_s14  ;;  %289 = vrot.lane.b32.xlu1 %v2629_v14, %s2481_s24 }
  0x44   : > { %302 = vrot.lane.b32.xlu0 %v2635_v15, %s2480_s14  ;;  %305 = vrot.lane.b32.xlu1 %v2635_v15, %s2481_s24 }
  0x48   : > { %311 = vrot.lane.b32.xlu0 %v2646_v17, %s2480_s14  ;;  %314 = vrot.lane.b32.xlu1 %v2646_v17, %s2481_s24 }
  0x92   : > { %v253_v18 = vpop.permute.xlu1 %252  ;;  %v249_v19 = vpop.permute.xlu0 %248 }
  0x96   : > { %v255_v20 = vpop.permute.xlu1 %254  ;;  %v251_v21 = vpop.permute.xlu0 %250 }
  0x97   : > { %v2653_v22 = vsel %vm264_vm0, %v253_v18, %v255_v20  ;;  %v266_v23 = vsel %vm264_vm0, %v249_v19, %v251_v21  ;;  %v2657_v24 = vsel %vm264_vm0, %v251_v21, %v253_v18 }
  0x98   : > { %v2662_v25 = vsel %vm317_vm1, %v2579_v3, %v2653_v22  ;;  %v2666_v26 = vsel %vm317_vm1, %v2581_v4, %v266_v23  ;;  %v2671_v27 = vsel %vm317_vm1, %v2589_v6, %v2657_v24 }
  0x99   : > { %427 = vmatprep.subr.bf16.mxu0 %v2666_v26  ;;  %470 = vmatprep.subr.bf16.mxu1 %v2662_v25 }
  0x9a   : > { %471 = vmatpush1.bf16.msra.mxu1 %v2671_v27  ;;  %v257_v28 = vpop.permute.xlu0 %256  ;;  %v247_v29 = vpop.permute.xlu1 %246 }
  0x9b   : > { %v265_v30 = vsel %vm264_vm0, %v247_v29, %v249_v19  ;;  %v2710_v44 = vsel %vm264_vm0, %v255_v20, %v257_v28 }
  0x9c   : > { %v2678_v31 = vsel %vm317_vm1, %v2197_v8, %v265_v30  ;;  %v2760_v57 = vsel %vm317_vm1, %v2587_v5, %v2710_v44 }
  0x9d   : > { %428 = vmatpush1.bf16.msra.mxu0 %v2678_v31 }
  0x9e   : > { %v276_v32 = vpop.permute.xlu0 %275  ;;  %v278_v33 = vpop.permute.xlu1 %277 }
  0x9f   : > { %v293_v34 = vsel %vm291_vm2, %v276_v32, %v278_v33 }
  0xa0   : > { %v2684_v35 = vsel %vm317_vm1, %v293_v34, %v2589_v6  ;;  %v2755_v56 = vsel %vm317_vm1, %v266_v23, %v293_v34 }
  0xa1   : > { %429 = vmatprep.subr.bf16.mxu0 %v2684_v35  ;;  %3614 = vst [vmem:[#allocation4_spill] sm:$0xff] %v2755_v56 }
  0xa2   : > { %v280_v36 = vpop.permute.xlu0 %279  ;;  %v282_v37 = vpop.permute.xlu1 %281 }
  0xa3   : > { %v2688_v38 = vsel %vm291_vm2, %v278_v33, %v280_v36  ;;  %v2691_v39 = vsel %vm291_vm2, %v280_v36, %v282_v37 }
  0xa4   : > { %3613 = vst [vmem:[#allocation3_spill] sm:$0xff] %v2688_v38  ;;  %863 = vrot.lane.b32.xlu1 %v2688_v38, %s2480_s14  ;;  %865 = vrot.lane.b32.xlu0 %v2691_v39, %s2480_s14  ;;  %v2700_v40 = vsel %vm317_vm1, %v2691_v39, %v2587_v5  ;;  %v2705_v41 = vsel %vm317_vm1, %v2688_v38, %v2579_v3  ;;  %v410_v13 = vsel %vm317_vm1, %v2688_v38, 0 }
  0xa5   : > { %472 = vmatprep.subr.bf16.mxu1 %v2700_v40  ;;  %v2732_v49 = vsel %vm317_vm1, %v2657_v24, %v2688_v38  ;;  %v2737_v50 = vsel %vm317_vm1, %v2653_v22, %v2691_v39 }
  0xa6   : > { %v284_v42 = vpop.permute.xlu0 %283  ;;  %473 = vmatpush1.bf16.msra.mxu1 %v2705_v41  ;;  %v274_v43 = vpop.permute.xlu1 %273 }
  0xa7   : > { %v2713_v45 = vsel %vm291_vm2, %v282_v37, %v284_v42  ;;  %v292_v46 = vsel %vm291_vm2, %v274_v43, %v276_v32 }
  0xa8   : > { %867 = vrot.lane.b32.xlu1 %v2713_v45, %s2480_s14  ;;  %v2720_v47 = vsel %vm317_vm1, %v292_v46, %v2581_v4  ;;  %v2725_v48 = vsel %vm317_vm1, %v2710_v44, %v2713_v45  ;;  %v414_v61 = vsel %vm317_vm1, %v2713_v45, 0  ;;  %v2876_v37 = vsel %vm317_vm1, %v2713_v45, %v2595_v7 }
  0xa9   : > { %430 = vmatpush1.bf16.msra.mxu0 %v2720_v47  ;;  %474 = vmatprep.subr.bf16.mxu1 %v2725_v48 }
  0xaa   : > { %v259_v51 = vpop.permute.xlu0 %258  ;;  %431 = vmatprep.subr.bf16.mxu0 %v2732_v49  ;;  %475 = vmatpush1.bf16.msra.mxu1 %v2737_v50  ;;  %v286_v52 = vpop.permute.xlu1 %285 }
  0xab   : > { %v2742_v53 = vsel %vm264_vm0, %v257_v28, %v259_v51  ;;  %v2745_v54 = vsel %vm291_vm2, %v284_v42, %v286_v52 }
  0xac   : > { %v2750_v55 = vsel %vm317_vm1, %v2595_v7, %v2742_v53  ;;  %869 = vrot.lane.b32.xlu0 %v2745_v54, %s2480_s14  ;;  %v2846_v32 = vsel %vm317_vm1, %v2745_v54, %v2612_v10 }
  0xad   : > { %432 = vmatpush1.bf16.msra.mxu0 %v2755_v56  ;;  %476 = vmatprep.subr.bf16.mxu1 %v2750_v55 }
  0xae   : > { %v261_v58 = vpop.permute.xlu0 %260  ;;  %433 = vmatprep.subr.bf16.mxu0 %v2662_v25  ;;  %477 = vmatpush1.bf16.msra.mxu1 %v2760_v57  ;;  %v288_v59 = vpop.permute.xlu1 %287 }
  0xaf   : > { %v2767_v60 = vsel %vm291_vm2, %v286_v52, %v288_v59  ;;  %2211 = vmatprep.subr.msk.bf16.mxu1 %vm317_vm1, %v2745_v54  ;;  %v2786_v1 = vsel %vm264_vm0, %v259_v51, %v261_v58  ;;  %v2906_v52 = vsel %vm317_vm1, %v2742_v53, %v2745_v54 }
  0xb0   : > { %805 = vrot.lane.b32.xlu0 %v2666_v26, %s2480_s14  ;;  %871 = vrot.lane.b32.xlu1 %v2767_v60, %s2480_s14  ;;  %3615 = vst [vmem:[#allocation5_spill] sm:$0xff] %v2786_v1  ;;  %v2810_v19 = vsel %vm317_vm1, %v2612_v10, %v2786_v1  ;;  %v2851_v33 = vsel %vm317_vm1, %v2767_v60, %v2622_v12 }
  0xb1   : > { %434 = vmatpush1.bf16.msra.mxu0 %v2671_v27  ;;  %v2887_v43 = vsel %vm317_vm1, %v2786_v1, %v2767_v60 }
  0xb2   : > { %v263_v62 = vpop.permute.xlu0 %262  ;;  %2209 = vmatprep.subr.msk.bf16.mxu0 %vm317_vm1, %v2691_v39  ;;  %479 = vmatpush1.bf16.msra.mxu1 %v414_v61  ;;  %v290_v63 = vpop.permute.xlu1 %289 }
  0xb3   : > { %v2789_v2 = vsel %vm264_vm0, %v261_v58, %v263_v62  ;;  %v756_v8 = vsel %vm317_vm1, %v2629_v14, %v263_v62  ;;  %v2794_v9 = vsel %vm291_vm2, %v288_v59, %v290_v63  ;;  %v758_v23 = vsel %vm317_vm1, %v290_v63, %v2635_v15 }
  0xb4   : > { %3616 = vst [vmem:[#allocation6_spill] sm:$0xff] %v2789_v2  ;;  %809 = vrot.lane.b32.xlu0 %v2662_v25, %s2480_s14  ;;  %819 = vrot.lane.b32.xlu1 %v756_v8, %s2480_s14  ;;  %v2804_v18 = vsel %vm317_vm1, %v2622_v12, %v2789_v2  ;;  %v2825_v28 = vsel %vm317_vm1, %v2794_v9, %v2629_v14 }
  0xb5   : > { %436 = vmatpush1.bf16.msra.mxu0 %v410_v13  ;;  %556 = vmatprep.subr.bf16.mxu1 %v2804_v18  ;;  %v2892_v46 = vsel %vm317_vm1, %v2789_v2, %v2794_v9 }
  0xb6   : > { %v2812_v20 = vpop.permute.xlu0 %302  ;;  %2212 = vmatmul.mubr.msk.bf16.vlgmr.msra.gmra.mrb[0].mxu1 %vm406_vm3, %v2783_v0  ;;  %513 = vmatprep.subr.bf16.mxu0 %v2750_v55  ;;  %v2817_v21 = vpop.permute.xlu1 %305 }
  0xb7   : > { %557 = vmatpush1.bf16.msra.mxu1 %v2810_v19  ;;  %588 = vmatprep.mubr.bf16.mxu1 %v3605_v11  ;;  %v2830_v29 = vsel %vm264_vm0, %v263_v62, %v2812_v20  ;;  %v2834_v30 = vsel %vm291_vm2, %v290_v63, %v2817_v21  ;;  %v418_v62 = vsel %vm317_vm1, %v2767_v60, 0 }
  0xb8   : > { %3617 = vst [vmem:[#allocation7_spill] sm:$0xff] %v2830_v29  ;;  %558 = vmatprep.subr.bf16.mxu1 %v2825_v28  ;;  %803 = vrot.lane.b32.xlu0 %v2678_v31, %s2480_s14  ;;  %v2861_v31 = vsel %vm317_vm1, %v2830_v29, %v2834_v30  ;;  %v2917_v59 = vsel %vm317_vm1, %v2629_v14, %v2830_v29  ;;  %v422_v61 = vsel %vm317_vm1, %v2834_v30, 0 }
  0xb9   : > { %837 = vrot.lane.b32.xlu1 %v758_v23, %s2480_s14  ;;  %2210 = vmatmul.mubr.msk.bf16.vlgmr.msra.gmra.mrb[0].mxu0 %vm406_vm3, %v2783_v0 }
  0xba   : > { %514 = vmatpush1.bf16.msra.mxu0 %v2760_v57  ;;  %v2853_v34 = vpop.permute.xlu0 %311  ;;  %545 = vmatprep.mubr.bf16.mxu0 %v3605_v11  ;;  %v2894_v51 = vpop.permute.xlu1 %314 }
  0xbb   : > { %515 = vmatprep.subr.bf16.mxu0 %v2846_v32  ;;  %559 = vmatpush1.bf16.msra.mxu1 %v2851_v33  ;;  %v2866_v36 = vsel %vm264_vm0, %v2812_v20, %v2853_v34  ;;  %v2911_v58 = vsel %vm291_vm2, %v2817_v21, %v2894_v51  ;;  %v764_v63 = vsel %vm317_vm1, %v2646_v17, %v2853_v34 }
  0xbc   : > { %560 = vmatprep.subr.bf16.mxu1 %v2861_v31  ;;  %825 = vrot.lane.b32.xlu0 %v2705_v41, %s2480_s14  ;;  %v2881_v42 = vsel %vm317_vm1, %v2635_v15, %v2866_v36 }
  0xbd   : > { %807 = vrot.lane.b32.xlu1 %v2671_v27, %s2480_s14 }
  0xbe   : > { %516 = vmatpush1.bf16.msra.mxu0 %v2876_v37 }
  0xbf   : > { %517 = vmatprep.subr.bf16.mxu0 %v2887_v43  ;;  %561 = vmatpush1.bf16.msra.mxu1 %v2892_v46 }
  0xc0   : > { %829 = vrot.lane.b32.xlu0 %v2876_v37, %s2480_s14  ;;  %562 = vmatprep.subr.bf16.mxu1 %v2881_v42 }
  0xc1   : > { %811 = vrot.lane.b32.xlu1 %v2760_v57, %s2480_s14 }
  0xc2   : > { %518 = vmatpush1.bf16.msra.mxu0 %v2906_v52 }
  0xc3   : > { %519 = vmatprep.subr.bf16.mxu0 %v2804_v18  ;;  %563 = vmatpush1.bf16.msra.mxu1 %v2917_v59 }
  0xc4   : > { %841 = vrot.lane.b32.xlu0 %v2732_v49, %s2480_s14  ;;  %2215 = vmatprep.subr.msk.bf16.mxu1 %vm317_vm1, %v2911_v58 }
  0xc5   : > { %823 = vrot.lane.b32.xlu1 %v2684_v35, %s2480_s14 }
  0xc6   : > { %520 = vmatpush1.bf16.msra.mxu0 %v2810_v19 }
  0xc7   : > { %2213 = vmatprep.subr.msk.bf16.mxu0 %vm317_vm1, %v2794_v9  ;;  %565 = vmatpush1.bf16.msra.mxu1 %v422_v61 }
  0xc8   : > { %845 = vrot.lane.b32.xlu0 %v2725_v48, %s2480_s14 }
  0xc9   : > { %827 = vrot.lane.b32.xlu1 %v2700_v40, %s2480_s14 }
  0xca   : > { %522 = vmatpush1.bf16.msra.mxu0 %v418_v62  ;;  %2216 = vmatmul.mubr.msk.bf16.vlgmr.msra.gmra.mrb[4].mxu1 %vm406_vm3, %v2783_v0 }
  0xcb   : > { %1045 = vmatprep.mubr.bf16.mxu1 %v3605_v11 }
  0xcc   : > { %839 = vrot.lane.b32.xlu0 %v2755_v56, %s2480_s14 }
  0xcd   : > { %821 = vrot.lane.b32.xlu1 %v2720_v47, %s2480_s14  ;;  %2214 = vmatmul.mubr.msk.bf16.vlgmr.msra.gmra.mrb[4].mxu0 %vm406_vm3, %v2783_v0  ;;  %v761_v47 = vsel %vm317_vm1, %v2812_v20, %v2817_v21  ;;  %v2252_v0 = vcombine.high %v2638_v16, %v2638_v16 }
  0xce   : > { %1002 = vmatprep.mubr.bf16.mxu0 %v3605_v11 }
  0xd0   : > { %861 = vrot.lane.b32.xlu0 %v764_v63, %s2480_s14 }
  0xd1   : > { %843 = vrot.lane.b32.xlu1 %v2737_v50, %s2480_s14 }
  0xd4   : > { %875 = vrot.lane.b32.xlu0 %v2834_v30, %s2480_s14 }
  0xd5   : > { %847 = vrot.lane.b32.xlu1 %v2906_v52, %s2480_s14 }
  0xd8   : > { %815 = vrot.lane.b32.xlu0 %v2810_v19, %s2480_s14 }
  0xd9   : > { %813 = vrot.lane.b32.xlu1 %v2750_v55, %s2480_s14 }
  0xdc   : > { %817 = vrot.lane.b32.xlu0 %v2804_v18, %s2480_s14 }
  0xdd   : > { %855 = vrot.lane.b32.xlu1 %v761_v47, %s2480_s14 }
  0xe0   : > { %831 = vrot.lane.b32.xlu0 %v2846_v32, %s2480_s14 }
  0xe1   : > { %873 = vrot.lane.b32.xlu1 %v2794_v9, %s2480_s14 }
  0xe4   : > { %835 = vrot.lane.b32.xlu0 %v2825_v28, %s2480_s14 }
  0xe5   : > { %833 = vrot.lane.b32.xlu1 %v2851_v33, %s2480_s14 }
  0xe8   : > { %849 = vrot.lane.b32.xlu0 %v2887_v43, %s2480_s14 }
  0xe9   : > { %851 = vrot.lane.b32.xlu1 %v2892_v46, %s2480_s14 }
  0xec   : > { %853 = vrot.lane.b32.xlu0 %v2861_v31, %s2480_s14 }
  0xed   : > { %859 = vrot.lane.b32.xlu1 %v2881_v42, %s2480_s14 }
  0xf0   : > { %857 = vrot.lane.b32.xlu0 %v2917_v59, %s2480_s14 }
  0xf1   : > { %877 = vrot.lane.b32.xlu1 %v2911_v58, %s2480_s14 }
  0xf4   : > { %879 = vrot.lane.b32.xlu0 %v2894_v51, %s2480_s14 }
  0xf5   : > { %1281 = vrot.lane.b32.xlu1 %v2252_v0, %s2480_s14 }
  0xf8   : > { %1284 = vrot.lane.b32.xlu0 %v2252_v0, %s2481_s24 }
  0xf9   : > { %1619 = vrot.lane.b32.xlu1 %v2589_v6, %s2483_s28  ;;  %v221_v6 = vld [vmem:[%s3603_s3] sm:$0xff] }
  0xfc   : > { %1621 = vrot.lane.b32.xlu0 %v2579_v3, %s2483_s28  ;;  %v219_v3 = vld [vmem:[%s3602_s2] sm:$0xff] }
  0xfd   : > { %1623 = vrot.lane.b32.xlu1 %v2587_v5, %s2483_s28  ;;  %v220_v5 = vld [vmem:[%s3602_s2 + $0x8] sm:$0xff] }
 0x100   : > { %1625 = vrot.lane.b32.xlu0 %v2595_v7, %s2483_s28 }
 0x101   : > { %1617 = vrot.lane.b32.xlu1 %v2581_v4, %s2483_s28  ;;  %v222_v4 = vld [vmem:[%s3603_s3 + $0x8] sm:$0xff] }
 0x104   : > { %1627 = vrot.lane.b32.xlu0 %v2612_v10, %s2483_s28 }
 0x105   : > { %1629 = vrot.lane.b32.xlu1 %v2622_v12, %s2483_s28 }
 0x108   : > { %1631 = vrot.lane.b32.xlu0 %v2629_v14, %s2483_s28 }
 0x109   : > { %1633 = vrot.lane.b32.xlu1 %v2635_v15, %s2483_s28 }
 0x10c   : > { %1644 = vrot.lane.b32.xlu0 %v2646_v17, %s2483_s28 }
 0x10d   : > { %1647 = vrot.lane.b32.xlu1 %v2252_v0, %s2483_s28 }
 0x110   : > { %601 = vperm.xlu0 %2406, %v219_v3  }
 0x111   : > { %606 = vperm.xlu1 %2407, %v220_v5  }
 0x114   : > { %632 = vperm.xlu0 %2406, %v222_v4  }
 0x115   : > { %627 = vperm.xlu1 %2407, %v221_v6  }
 0x116   : > { %v864_v7 = vpop.permute.xlu1 %863  ;;  %v866_v10 = vpop.permute.xlu0 %865 }
 0x11a   : > { %v868_v12 = vpop.permute.xlu1 %867 }
 0x11e   : > { %v870_v14 = vpop.permute.xlu0 %869 }
 0x122   : > { %v806_v16 = vpop.permute.xlu0 %805  ;;  %v3016_v8 = vpop.permute.xlu1 %871 }
 0x126   : > { %v810_v13 = vpop.permute.xlu0 %809  ;;  %v3018_v20 = vpop.permute.xlu1 %819 }
 0x12a   : > { %v804_v21 = vpop.permute.xlu0 %803 }
 0x12b   : > { %v3020_v23 = vpop.permute.xlu1 %837  ;;  %v881_v47 = vsel %vm264_vm0, %v804_v21, %v806_v16 }
 0x12e   : > { %v826_v61 = vpop.permute.xlu0 %825 }
 0x12f   : > { %v808_v62 = vpop.permute.xlu1 %807 }
 0x130   : > { %v882_v63 = vsel %vm264_vm0, %v806_v16, %v808_v62  ;;  %v883_v4 = vsel %vm264_vm0, %v808_v62, %v810_v13 }
 0x131   : > { %970 = vmatprep.subr.bf16.mxu0 %v882_v63 }
 0x132   : > { %971 = vmatpush1.bf16.msra.mxu0 %v881_v47  ;;  %v3024_v0 = vpop.permute.xlu0 %829 }
 0x133   : > { %v812_v3 = vpop.permute.xlu1 %811 }
 0x134   : > { %v884_v5 = vsel %vm264_vm0, %v810_v13, %v812_v3 }
 0x135   : > { %1013 = vmatprep.subr.bf16.mxu1 %v884_v5 }
 0x136   : > { %1014 = vmatpush1.bf16.msra.mxu1 %v883_v4  ;;  %v842_v6 = vpop.permute.xlu0 %841 }
 0x137   : > { %v824_v11 = vpop.permute.xlu1 %823 }
 0x138   : > { %v890_v29 = vsel %vm264_vm0, %v824_v11, %v826_v61 }
 0x139   : > { %972 = vmatprep.subr.bf16.mxu0 %v890_v29 }
 0x13a   : > { %v846_v1 = vpop.permute.xlu0 %845 }
 0x13b   : > { %v828_v2 = vpop.permute.xlu1 %827 }
 0x13c   : > { %v891_v16 = vsel %vm264_vm0, %v826_v61, %v828_v2  ;;  %v892_v21 = vsel %vm264_vm0, %v828_v2, %v3024_v0 }
 0x13d   : > { %1015 = vmatprep.subr.bf16.mxu1 %v892_v21 }
 0x13e   : > { %1016 = vmatpush1.bf16.msra.mxu1 %v891_v16  ;;  %v840_v63 = vpop.permute.xlu0 %839 }
 0x13f   : > { %v822_v47 = vpop.permute.xlu1 %821  ;;  %v897_v29 = vsel %vm264_vm0, %v840_v63, %v842_v6 }
 0x140   : > { %v889_v13 = vsel %vm264_vm0, %v822_v47, %v824_v11  ;;  %v908_v11 = vsel %vm264_vm0, %v864_v7, %v866_v10  ;;  %v909_v47 = vsel %vm264_vm0, %v866_v10, %v868_v12  ;;  %v911_v7 = vsel %vm264_vm0, %v870_v14, %v3016_v8 }
 0x141   : > { %973 = vmatpush1.bf16.msra.mxu0 %v889_v13  ;;  %v947_v63 = vsel %vm317_vm1, %v908_v11, 0 }
 0x142   : > { %v3033_v62 = vpop.permute.xlu0 %861 }
 0x143   : > { %v844_v38 = vpop.permute.xlu1 %843 }
 0x144   : > { %v898_v56 = vsel %vm264_vm0, %v842_v6, %v844_v38  ;;  %v899_v21 = vsel %vm264_vm0, %v844_v38, %v846_v1  ;;  %v3050_v38 = vld [vmem:[%s3601_s1 + $0x8] sm:$0xff]  }
 0x145   : > { %974 = vmatprep.subr.bf16.mxu0 %v898_v56 }
 0x146   : > { %975 = vmatpush1.bf16.msra.mxu0 %v897_v29  ;;  %v3037_v61 = vpop.permute.xlu0 %875 }
 0x147   : > { %976 = vmatprep.subr.bf16.mxu0 %v884_v5  ;;  %v848_v2 = vpop.permute.xlu1 %847 }
 0x148   : > { %v900_v16 = vsel %vm264_vm0, %v846_v1, %v848_v2  ;;  %v910_v1 = vsel %vm264_vm0, %v868_v12, %v870_v14 }
 0x149   : > { %1017 = vmatprep.subr.bf16.mxu1 %v900_v16  ;;  %v3618_v16 = vmov 0  }
 0x14a   : > { %977 = vmatpush1.bf16.msra.mxu0 %v883_v4  ;;  %1018 = vmatpush1.bf16.msra.mxu1 %v899_v21  ;;  %v816_v13 = vpop.permute.xlu0 %815  ;;  %v953_v4 = vsel %vm317_vm1, %v910_v1, 0 }
 0x14b   : > { %2228 = vmatprep.subr.msk.bf16.mxu0 %vm317_vm1, %v909_v47  ;;  %v814_v56 = vpop.permute.xlu1 %813 }
 0x14c   : > { %v885_v6 = vsel %vm264_vm0, %v812_v3, %v814_v56  ;;  %v886_v5 = vsel %vm264_vm0, %v814_v56, %v816_v13 }
 0x14d   : > { %1019 = vmatprep.subr.bf16.mxu1 %v886_v5 }
 0x14e   : > { %979 = vmatpush1.bf16.msra.mxu0 %v947_v63  ;;  %1020 = vmatpush1.bf16.msra.mxu1 %v885_v6  ;;  %v818_v10 = vpop.permute.xlu0 %817 }
 0x14f   : > { %2230 = vmatprep.subr.msk.bf16.mxu1 %vm317_vm1, %v911_v7  ;;  %1056 = vmatprep.subr.bf16.mxu0 %v886_v5  ;;  %v856_v3 = vpop.permute.xlu1 %855  ;;  %v888_v12 = vsel %vm264_vm0, %v818_v10, %v3018_v20  ;;  %v887_v21 = vsel %vm264_vm0, %v816_v13, %v818_v10 }
 0x151   : > { %2229 = vmatmul.mubr.msk.bf16.vlgmr.msra.gmra.mrb[8].mxu0 %vm406_vm3, %v3050_v38 }
 0x152   : > { %1022 = vmatpush1.bf16.msra.mxu1 %v953_v4  ;;  %1057 = vmatpush1.bf16.msra.mxu0 %v885_v6  ;;  %v832_v29 = vpop.permute.xlu0 %831 }
 0x153   : > { %1099 = vmatprep.subr.bf16.mxu1 %v888_v12  ;;  %v874_v14 = vpop.permute.xlu1 %873  ;;  %1088 = vmatprep.mubr.bf16.mxu0 %v3618_v16  ;;  %v893_v5 = vsel %vm264_vm0, %v3024_v0, %v832_v29 }
 0x155   : > { %2231 = vmatmul.mubr.msk.bf16.vlgmr.msra.gmra.mrb[8].mxu1 %vm406_vm3, %v3050_v38 }
 0x156   : > { %1100 = vmatpush1.bf16.msra.mxu1 %v887_v21  ;;  %v836_v11 = vpop.permute.xlu0 %835  ;;  %1131 = vmatprep.mubr.bf16.mxu1 %v3618_v16 }
 0x157   : > { %v834_v47 = vpop.permute.xlu1 %833  ;;  %v896_v56 = vsel %vm264_vm0, %v836_v11, %v3020_v23 }
 0x158   : > { %v895_v6 = vsel %vm264_vm0, %v834_v47, %v836_v11  ;;  %v894_v20 = vsel %vm264_vm0, %v832_v29, %v834_v47  ;;  %1101 = vmatprep.subr.bf16.mxu1 %v896_v56 }
 0x159   : > { %1058 = vmatprep.subr.bf16.mxu0 %v894_v20  ;;  %v913_v20 = vsel %vm264_vm0, %v874_v14, %v3037_v61 }
 0x15a   : > { %1059 = vmatpush1.bf16.msra.mxu0 %v893_v5  ;;  %1102 = vmatpush1.bf16.msra.mxu1 %v895_v6  ;;  %v850_v13 = vpop.permute.xlu0 %849  ;;  %v912_v6 = vsel %vm264_vm0, %v3016_v8, %v874_v14 }
 0x15b   : > { %v901_v63 = vsel %vm264_vm0, %v848_v2, %v850_v13  ;;  %v852_v1 = vpop.permute.xlu1 %851 }
 0x15c   : > { %v902_v7 = vsel %vm264_vm0, %v850_v13, %v852_v1  ;;  %v959_v13 = vsel %vm317_vm1, %v912_v6, 0 }
 0x15d   : > { %1060 = vmatprep.subr.bf16.mxu0 %v902_v7 }
 0x15e   : > { %1061 = vmatpush1.bf16.msra.mxu0 %v901_v63  ;;  %v854_v23 = vpop.permute.xlu0 %853 }
 0x15f   : > { %v903_v4 = vsel %vm264_vm0, %v852_v1, %v854_v23  ;;  %v860_v12 = vpop.permute.xlu1 %859  ;;  %v904_v11 = vsel %vm264_vm0, %v854_v23, %v856_v3 }
 0x160   : > { %1103 = vmatprep.subr.bf16.mxu1 %v904_v11  ;;  %v907_v0 = vsel %vm264_vm0, %v860_v12, %v3033_v62 }
 0x161   : > { %1104 = vmatpush1.bf16.msra.mxu1 %v903_v4 }
 0x162   : > { %v858_v29 = vpop.permute.xlu0 %857  ;;  %1105 = vmatprep.subr.bf16.mxu1 %v907_v0  ;;  %v420_v0 = vsel %vm317_vm1, %v2794_v9, 0 }
 0x163   : > { %v906_v2 = vsel %vm264_vm0, %v858_v29, %v860_v12  ;;  %v878_v47 = vpop.permute.xlu1 %877  ;;  %v905_v56 = vsel %vm264_vm0, %v818_v10, %v858_v29 }
 0x164   : > { %1062 = vmatprep.subr.bf16.mxu0 %v905_v56  ;;  %v914_v3 = vsel %vm264_vm0, %v3037_v61, %v878_v47 }
 0x165   : > { %1063 = vmatpush1.bf16.msra.mxu0 %v887_v21  ;;  %1106 = vmatpush1.bf16.msra.mxu1 %v906_v2  ;;  %v965_v10 = vsel %vm317_vm1, %v914_v3, 0  ;;  %v1287_v21 = vsel %vm317_vm1, %v2834_v30, %v2635_v15 }
 0x166   : > { %v880_v62 = vpop.permute.xlu0 %879  ;;  %2232 = vmatprep.subr.msk.bf16.mxu0 %vm317_vm1, %v913_v20 }
 0x167   : > { %v915_v5 = vsel %vm264_vm0, %v878_v47, %v880_v62  ;;  %v1282_v8 = vpop.permute.xlu1 %1281 }
 0x168   : > { %2234 = vmatprep.subr.msk.bf16.mxu1 %vm317_vm1, %v915_v5  ;;  %v3161_v15 = vsel %vm264_vm0, %v2853_v34, %v1282_v8 }
 0x169   : > { %1065 = vmatpush1.bf16.msra.mxu0 %v959_v13  ;;  %1108 = vmatpush1.bf16.msra.mxu1 %v965_v10 }
 0x16a   : > { %1308 = vmatprep.subr.bf16.mxu0 %v2671_v27  ;;  %1351 = vmatprep.subr.bf16.mxu1 %v2760_v57  ;;  %v3093_v61 = vpop.permute.xlu0 %1284 }
 0x16b   : > { %v3103_v14 = vpop.permute.xlu1 %1619 }
 0x16c   : > { %2233 = vmatmul.mubr.msk.bf16.vlgmr.msra.gmra.mrb[12].mxu0 %vm406_vm3, %v3050_v38  ;;  %2235 = vmatmul.mubr.msk.bf16.vlgmr.msra.gmra.mrb[12].mxu1 %vm406_vm3, %v3050_v38 }
 0x16d   : > { %1309 = vmatpush1.bf16.msra.mxu0 %v2666_v26  ;;  %1352 = vmatpush1.bf16.msra.mxu1 %v2662_v25 }
 0x16e   : > { %1310 = vmatprep.subr.bf16.mxu0 %v2705_v41  ;;  %1353 = vmatprep.subr.bf16.mxu1 %v2876_v37  ;;  %v1622_v27 = vpop.permute.xlu0 %1621  ;;  %v3130_v37 = vld [vmem:[%s3601_s1 + $0x10] sm:$0xff]  }
 0x16f   : > { %1340 = vmatprep.mubr.bf16.mxu0 %v3618_v16  ;;  %1383 = vmatprep.mubr.bf16.mxu1 %v3618_v16  ;;  %v1624_v26 = vpop.permute.xlu1 %1623  ;;  %v3179_v23 = vsel %vm1635_vm4, %v3103_v14, %v1622_v27 }
 0x170   : > { %v3182_v4 = vsel %vm1635_vm4, %v1622_v27, %v1624_v26 }
 0x171   : > { %1311 = vmatpush1.bf16.msra.mxu0 %v2684_v35  ;;  %1354 = vmatpush1.bf16.msra.mxu1 %v2700_v40  ;;  %v412_v40 = vsel %vm317_vm1, %v2691_v39, 0  ;;  %v1676_v8 = vsel %vm317_vm1, %v2691_v39, %v3182_v4 }
 0x172   : > { %1312 = vmatprep.subr.bf16.mxu0 %v2737_v50  ;;  %1355 = vmatprep.subr.bf16.mxu1 %v2906_v52  ;;  %v3115_v41 = vpop.permute.xlu0 %1625 }
 0x173   : > { %v1618_v35 = vpop.permute.xlu1 %1617  ;;  %v3199_v2 = vsel %vm1635_vm4, %v1624_v26, %v3115_v41 }
 0x174   : > { %v1636_v6 = vsel %vm1635_vm4, %v1618_v35, %v3103_v14  ;;  %v1660_v10 = vsel %vm317_vm1, %v3199_v2, %v2742_v53  ;;  %v3619_v35 = vld [vmem:[#allocation4_spill] sm:$0xff] }
 0x175   : > { %1313 = vmatpush1.bf16.msra.mxu0 %v2732_v49  ;;  %1356 = vmatpush1.bf16.msra.mxu1 %v2725_v48  ;;  %v1651_v14 = vsel %vm317_vm1, %v1636_v6, %v2657_v24 }
 0x176   : > { %1314 = vmatprep.subr.bf16.mxu0 %v2760_v57  ;;  %1357 = vmatprep.subr.bf16.mxu1 %v2810_v19  ;;  %v416_v57 = vsel %vm317_vm1, %v2745_v54, 0 }
 0x177   : > { %v3140_v38 = vpop.permute.xlu1 %1629 }
 0x179   : > { %1315 = vmatpush1.bf16.msra.mxu0 %v2662_v25  ;;  %1358 = vmatpush1.bf16.msra.mxu1 %v2750_v55  ;;  %v3132_v25 = vpop.permute.xlu0 %1627 }
 0x17a   : > { %2256 = vmatprep.subr.msk.bf16.mxu0 %vm317_vm1, %v2713_v45  ;;  %2258 = vmatprep.subr.msk.bf16.mxu1 %vm317_vm1, %v2767_v60  ;;  %v3216_v20 = vsel %vm1635_vm4, %v3115_v41, %v3132_v25 }
 0x17b   : > { %v1680_v27 = vsel %vm317_vm1, %v2745_v54, %v3216_v20 }
 0x17d   : > { %1317 = vmatpush1.bf16.msra.mxu0 %v412_v40  ;;  %1360 = vmatpush1.bf16.msra.mxu1 %v416_v57 }
 0x17e   : > { %1394 = vmatprep.subr.bf16.mxu0 %v2810_v19  ;;  %1437 = vmatprep.subr.bf16.mxu1 %v2917_v59  ;;  %v3150_v19 = vpop.permute.xlu0 %1631 }
 0x180   : > { %2257 = vmatmul.mubr.msk.bf16.vlgmr.msra.gmra.mrb[16].mxu0 %vm406_vm3, %v3130_v37  ;;  %2259 = vmatmul.mubr.msk.bf16.vlgmr.msra.gmra.mrb[16].mxu1 %vm406_vm3, %v3130_v37 }
 0x181   : > { %1395 = vmatpush1.bf16.msra.mxu0 %v2750_v55  ;;  %1438 = vmatpush1.bf16.msra.mxu1 %v2804_v18  ;;  %v3157_v55 = vsel %vm317_vm1, %v2866_v36, %v2911_v58 }
 0x182   : > { %1396 = vmatprep.subr.bf16.mxu0 %v2851_v33  ;;  %1439 = vmatprep.subr.bf16.mxu1 %v1287_v21  ;;  %v3165_v33 = vpop.permute.xlu1 %1633  ;;  %v3172_v63 = vpop.permute.xlu0 %1644 }
 0x183   : > { %1426 = vmatprep.mubr.bf16.mxu0 %v3618_v16  ;;  %1469 = vmatprep.mubr.bf16.mxu1 %v3618_v16 }
 0x185   : > { %1397 = vmatpush1.bf16.msra.mxu0 %v2846_v32  ;;  %1440 = vmatpush1.bf16.msra.mxu1 %v2825_v28  ;;  %v1292_v28 = vsel %vm317_vm1, %v2646_v17, %v3161_v15  ;;  %v3187_v17 = vsel %vm291_vm2, %v2894_v51, %v3093_v61  ;;  %v1657_v51 = vsel %vm317_vm1, %v3182_v4, %v2710_v44 }
 0x186   : > { %1398 = vmatprep.subr.bf16.mxu0 %v2892_v46  ;;  %1441 = vmatprep.subr.bf16.mxu1 %v3157_v55  ;;  %v3175_v1 = vpop.permute.xlu1 %1647 }
 0x189   : > { %1399 = vmatpush1.bf16.msra.mxu0 %v2887_v43  ;;  %1442 = vmatpush1.bf16.msra.mxu1 %v2861_v31  ;;  %v504_v32 = vpop.f32.mrb[0].mxu1 }
 0x18a   : > { %1400 = vmatprep.subr.bf16.mxu0 %v2917_v59  ;;  %1443 = vmatprep.subr.bf16.mxu1 %v1292_v28  ;;  %v506_v34 = vpop.f32.mrb[1].mxu1 }
 0x18b   : > { %v508_v7 = vpop.f32.mrb[2].mxu1 }
 0x18c   : > { %v461_v12 = vpop.f32.mrb[0].mxu0  ;;  %v510_v11 = vpop.f32.mrb[3].mxu1 }
 0x18d   : > { %1401 = vmatpush1.bf16.msra.mxu0 %v2804_v18  ;;  %1444 = vmatpush1.bf16.msra.mxu1 %v2881_v42  ;;  %v463_v59 = vpop.f32.mrb[1].mxu0  ;;  %v425_v18 = vsel %vm317_vm1, %v2911_v58, 0  ;;  %v1654_v42 = vsel %vm317_vm1, %v3179_v23, %v2653_v22 }
 0x18e   : > { %2260 = vmatprep.subr.msk.bf16.mxu0 %vm317_vm1, %v2834_v30  ;;  %2262 = vmatprep.subr.msk.bf16.mxu1 %vm317_vm1, %v3187_v17  ;;  %v465_v29 = vpop.f32.mrb[2].mxu0 }
 0x18f   : > { %v3209_v47 = vpop.permute.xlu0 %601  ;;  %v467_v56 = vpop.f32.mrb[3].mxu0 }
 0x190   : > { %v3218_v3 = vpop.permute.xlu1 %606  ;;  %v609_v22 = vmul.f32 %v3209_v47, %v461_v12  ;;  %v610_v62 = vmul.f32 %v3209_v47, %v463_v59  ;;  %v611_v26 = vmul.f32 %v3209_v47, %v504_v32  ;;  %v612_v53 = vmul.f32 %v3209_v47, %v506_v34 }
 0x191   : > { %1403 = vmatpush1.bf16.msra.mxu0 %v420_v0  ;;  %1446 = vmatpush1.bf16.msra.mxu1 %v425_v18  ;;  %v617_v44 = vmul.f32 %v3218_v3, %v465_v29  ;;  %v619_v5 = vmul.f32 %v3218_v3, %v508_v7  ;;  %v618_v13 = vmul.f32 %v3218_v3, %v467_v56 }
 0x192   : > { %1721 = vmatprep.subr.bf16.mxu0 %v2732_v49  ;;  %1764 = vmatprep.subr.bf16.mxu1 %v2725_v48  ;;  %v620_v61 = vmul.f32 %v3218_v3, %v510_v11 }
 0x193   : > { %v3239_v49 = vpop.permute.xlu0 %632 }
 0x194   : > { %2261 = vmatmul.mubr.msk.bf16.vlgmr.msra.gmra.mrb[20].mxu0 %vm406_vm3, %v3130_v37  ;;  %2263 = vmatmul.mubr.msk.bf16.vlgmr.msra.gmra.mrb[20].mxu1 %vm406_vm3, %v3130_v37  ;;  %v643_v39 = vadd.f32 %v3239_v49, %v617_v44  ;;  %v644_v24 = vadd.f32 %v3239_v49, %v618_v13  ;;  %v645_v41 = vadd.f32 %v3239_v49, %v619_v5  ;;  %v3251_v54 = vpop.permute.xlu1 %627  ;;  %v3620_v44 = vld [vmem:[#allocation3_spill] sm:$0xff] }
 0x195   : > { %1722 = vmatpush1.bf16.msra.mxu0 %v3619_v35  ;;  %1765 = vmatpush1.bf16.msra.mxu1 %v2737_v50  ;;  %v646_v40 = vadd.f32 %v3239_v49, %v620_v61  ;;  %v635_v57 = vadd.f32 %v3251_v54, %v609_v22  ;;  %v636_v21 = vadd.f32 %v3251_v54, %v610_v62 }
 0x196   : > { %1723 = vmatprep.subr.bf16.mxu0 %v1654_v42  ;;  %1766 = vmatprep.subr.bf16.mxu1 %v1660_v10  ;;  %vm659_vm5 = vcmp.ge.f32.partialorder %v643_v39, 0.0  ;;  %vm660_vm6 = vcmp.ge.f32.partialorder %v644_v24, 0.0  ;;  %vm661_vm7 = vcmp.ge.f32.partialorder %v645_v41, 0.0  ;;  %v675_v37 = vmul.f32 0.22916667, %v643_v39 }
 0x197   : > { %1753 = vmatprep.mubr.bf16.mxu0 %v3618_v16  ;;  %1796 = vmatprep.mubr.bf16.mxu1 %v3618_v16  ;;  %vm662_vm8 = vcmp.ge.f32.partialorder %v646_v40, 0.0  ;;  %v676_v28 = vmul.f32 0.22916667, %v644_v24  ;;  %v677_v32 = vmul.f32 0.22916667, %v645_v41  ;;  %v637_v34 = vadd.f32 %v3251_v54, %v611_v26 }
 0x198   : > { %v678_v7 = vmul.f32 0.22916667, %v646_v40  ;;  %v691_v12 = vsel %vm659_vm5, %v643_v39, %v675_v37  ;;  %v638_v11 = vadd.f32 %v3251_v54, %v612_v53  ;;  %vm651_vm9 = vcmp.ge.f32.partialorder %v635_v57, 0.0 }
 0x199   : > { %1724 = vmatpush1.bf16.msra.mxu0 %v1651_v14  ;;  %1767 = vmatpush1.bf16.msra.mxu1 %v1657_v51  ;;  %v692_v59 = vsel %vm660_vm6, %v644_v24, %v676_v28  ;;  %v693_v0 = vsel %vm661_vm7, %v645_v41, %v677_v32  ;;  %vm652_vm10 = vcmp.ge.f32.partialorder %v636_v21, 0.0  ;;  %vm653_vm11 = vcmp.ge.f32.partialorder %v637_v34, 0.0 }
 0x19a   : > { %1725 = vmatprep.subr.bf16.mxu0 %v1676_v8  ;;  %1768 = vmatprep.subr.bf16.mxu1 %v1680_v27  ;;  %v694_v29 = vsel %vm662_vm8, %v646_v40, %v678_v7  ;;  %v2317_v18 = vpack.c.bf16 %v692_v59, %v691_v12  ;;  %vm654_vm12 = vcmp.ge.f32.partialorder %v638_v11, 0.0  ;;  %v667_v42 = vmul.f32 0.22916667, %v635_v57 }
 0x19b   : > { %v2318_v56 = vpack.c.bf16 %v694_v29, %v693_v0  ;;  %v668_v6 = vmul.f32 0.22916667, %v636_v21  ;;  %v669_v22 = vmul.f32 0.22916667, %v637_v34  ;;  %v670_v62 = vmul.f32 0.22916667, %v638_v11 }
 0x19c   : > { %v3268_v51 = vsel %vm1635_vm4, %v3132_v25, %v3140_v38  ;;  %v1674_v5 = vsel %vm317_vm1, %v3620_v44, %v3179_v23  ;;  %v1678_v13 = vsel %vm317_vm1, %v2713_v45, %v3199_v2  ;;  %751 = vst [vmem:[%s3277_s27 + $0x20] sm:$0xff] %v2317_v18  ;;  %v683_v10 = vsel %vm651_vm9, %v635_v57, %v667_v42  ;;  %v3320_v18 = vld [vmem:[%s3601_s1 + $0x18] sm:$0xff]  }
 0x19d   : > { %1726 = vmatpush1.bf16.msra.mxu0 %v1674_v5  ;;  %1769 = vmatpush1.bf16.msra.mxu1 %v1678_v13  ;;  %752 = vst [vmem:[%s3277_s27 + $0x28] sm:$0xff] %v2318_v56  ;;  %v684_v25 = vsel %vm652_vm10, %v636_v21, %v668_v6  ;;  %v685_v23 = vsel %vm653_vm11, %v637_v34, %v669_v22  ;;  %v590_v61 = vpop.f32.mrb[4].mxu1  ;;  %v1704_v24 = vsel %vm317_vm1, %v3182_v4, 0  ;;  %v1708_v57 = vsel %vm317_vm1, %v3216_v20, 0  ;;  %v3621_v21 = vld [vmem:[#allocation6_spill] sm:$0xff] }
 0x19e   : > { %v686_v8 = vsel %vm654_vm12, %v638_v11, %v670_v62  ;;  %1727 = vmatprep.subr.bf16.mxu0 %v2725_v48  ;;  %1770 = vmatprep.subr.bf16.mxu1 %v2887_v43  ;;  %v2313_v45 = vpack.c.bf16 %v684_v25, %v683_v10  ;;  %v615_v27 = vmul.f32 %v3209_v47, %v590_v61  ;;  %v592_v26 = vpop.f32.mrb[5].mxu1 }
 0x19f   : > { %v2314_v14 = vpack.c.bf16 %v686_v8, %v685_v23  ;;  %v616_v53 = vmul.f32 %v3209_v47, %v592_v26  ;;  %v594_v39 = vpop.f32.mrb[6].mxu1  ;;  %v1666_v37 = vsel %vm317_vm1, %v3268_v51, %v3621_v21  ;;  %v1642_v61 = vsel %vm1635_vm4, %v3140_v38, %v3150_v19 }
 0x1a0   : > { %747 = vst [vmem:[%s3277_s27] sm:$0xff] %v2313_v45  ;;  %v547_v41 = vpop.f32.mrb[4].mxu0  ;;  %v641_v35 = vadd.f32 %v3251_v54, %v615_v27  ;;  %v623_v48 = vmul.f32 %v3218_v3, %v594_v39  ;;  %v596_v40 = vpop.f32.mrb[7].mxu1  ;;  %v1646_v27 = vsel %vm1635_vm4, %v3165_v33, %v3172_v63  ;;  %v3622_v39 = vld [vmem:[#allocation5_spill] sm:$0xff] }
 0x1a1   : > { %748 = vst [vmem:[%s3277_s27 + $0x8] sm:$0xff] %v2314_v14  ;;  %1728 = vmatpush1.bf16.msra.mxu0 %v2737_v50  ;;  %1771 = vmatpush1.bf16.msra.mxu1 %v2906_v52  ;;  %v613_v4 = vmul.f32 %v3209_v47, %v547_v41  ;;  %v549_v28 = vpop.f32.mrb[5].mxu0  ;;  %v642_v32 = vadd.f32 %v3251_v54, %v616_v53 }
 0x1a2   : > { %2283 = vmatprep.subr.msk.bf16.mxu0 %vm317_vm1, %v3199_v2  ;;  %2285 = vmatprep.subr.msk.bf16.mxu1 %vm317_vm1, %v3268_v51  ;;  %vm657_vm13 = vcmp.ge.f32.partialorder %v641_v35, 0.0  ;;  %v673_v50 = vmul.f32 0.22916667, %v641_v35  ;;  %v614_v34 = vmul.f32 %v3209_v47, %v549_v28  ;;  %v551_v7 = vpop.f32.mrb[6].mxu0  ;;  %v649_v12 = vadd.f32 %v3239_v49, %v623_v48 }
 0x1a3   : > { %v639_v11 = vadd.f32 %v3251_v54, %v613_v4  ;;  %vm658_vm14 = vcmp.ge.f32.partialorder %v642_v32, 0.0  ;;  %v674_v59 = vmul.f32 0.22916667, %v642_v32  ;;  %v621_v0 = vmul.f32 %v3218_v3, %v551_v7  ;;  %v553_v29 = vpop.f32.mrb[7].mxu0 }
 0x1a4   : > { %v3315_v2 = vsel %vm1635_vm4, %v3150_v19, %v3165_v33  ;;  %v689_v42 = vsel %vm657_vm13, %v641_v35, %v673_v50  ;;  %v640_v56 = vadd.f32 %v3251_v54, %v614_v34  ;;  %v624_v6 = vmul.f32 %v3218_v3, %v596_v40 }
 0x1a5   : > { %1730 = vmatpush1.bf16.msra.mxu0 %v1704_v24  ;;  %1773 = vmatpush1.bf16.msra.mxu1 %v1708_v57  ;;  %vm655_vm15 = vcmp.ge.f32.partialorder %v639_v11, 0.0  ;;  %v671_v22 = vmul.f32 0.22916667, %v639_v11  ;;  %v690_v62 = vsel %vm658_vm14, %v642_v32, %v674_v59  ;;  %v647_v44 = vadd.f32 %v3239_v49, %v621_v0  ;;  %v3623_v24 = vld [vmem:[#allocation7_spill] sm:$0xff] }
 0x1a6   : > { %1807 = vmatprep.subr.bf16.mxu0 %v2887_v43  ;;  %1850 = vmatprep.subr.bf16.mxu1 %v2861_v31  ;;  %vm656_vm0 = vcmp.ge.f32.partialorder %v640_v56, 0.0  ;;  %v672_v5 = vmul.f32 0.22916667, %v640_v56  ;;  %v2316_v13 = vpack.c.bf16 %v690_v62, %v689_v42  ;;  %v681_v10 = vmul.f32 0.22916667, %v649_v12 }
 0x1a7   : > { %v687_v25 = vsel %vm655_vm15, %v639_v11, %v671_v22  ;;  %v679_v23 = vmul.f32 0.22916667, %v647_v44  ;;  %vm665_vm2 = vcmp.ge.f32.partialorder %v649_v12, 0.0  ;;  %v622_v8 = vmul.f32 %v3218_v3, %v553_v29 }
 0x1a8   : > { %2284 = vmatmul.mubr.msk.bf16.vlgmr.msra.gmra.mrb[24].mxu0 %vm406_vm3, %v3320_v18  ;;  %2286 = vmatmul.mubr.msk.bf16.vlgmr.msra.gmra.mrb[24].mxu1 %vm406_vm3, %v3320_v18  ;;  %v688_v43 = vsel %vm656_vm0, %v640_v56, %v672_v5  ;;  %750 = vst [vmem:[%s3277_s27 + $0x18] sm:$0xff] %v2316_v13  ;;  %vm663_vm5 = vcmp.ge.f32.partialorder %v647_v44, 0.0  ;;  %v650_v45 = vadd.f32 %v3239_v49, %v624_v6 }
 0x1a9   : > { %1808 = vmatpush1.bf16.msra.mxu0 %v2906_v52  ;;  %1851 = vmatpush1.bf16.msra.mxu1 %v2892_v46  ;;  %v1672_v38 = vsel %vm317_vm1, %v3315_v2, %v2866_v36  ;;  %v2315_v19 = vpack.c.bf16 %v688_v43, %v687_v25  ;;  %v648_v14 = vadd.f32 %v3239_v49, %v622_v8 }
 0x1aa   : > { %1809 = vmatprep.subr.bf16.mxu0 %v1666_v37  ;;  %1852 = vmatprep.subr.bf16.mxu1 %v1672_v38  ;;  %v697_v26 = vsel %vm665_vm2, %v649_v12, %v681_v10  ;;  %vm666_vm6 = vcmp.ge.f32.partialorder %v650_v45, 0.0  ;;  %v682_v53 = vmul.f32 0.22916667, %v650_v45  ;;  %v695_v36 = vsel %vm663_vm5, %v647_v44, %v679_v23 }
 0x1ab   : > { %1839 = vmatprep.mubr.bf16.mxu0 %v3618_v16  ;;  %1882 = vmatprep.mubr.bf16.mxu1 %v3618_v16  ;;  %749 = vst [vmem:[%s3277_s27 + $0x10] sm:$0xff] %v2315_v19  ;;  %vm664_vm7 = vcmp.ge.f32.partialorder %v648_v14, 0.0  ;;  %v680_v52 = vmul.f32 0.22916667, %v648_v14  ;;  %v1663_v33 = vsel %vm317_vm1, %v3216_v20, %v3622_v39  ;;  %v1669_v41 = vsel %vm317_vm1, %v1642_v61, %v3623_v24 }
 0x1ac   : > { %v1684_v35 = vsel %vm317_vm1, %v2794_v9, %v1642_v61  ;;  %v698_v48 = vsel %vm666_vm6, %v650_v45, %v682_v53  ;;  %v1689_v16 = vsel %vm317_vm1, %v2911_v58, %v1646_v27  ;;  %v1682_v20 = vsel %vm317_vm1, %v2767_v60, %v3268_v51 }
 0x1ad   : > { %1810 = vmatpush1.bf16.msra.mxu0 %v1663_v33  ;;  %1853 = vmatpush1.bf16.msra.mxu1 %v1669_v41  ;;  %v696_v40 = vsel %vm664_vm7, %v648_v14, %v680_v52  ;;  %v2320_v57 = vpack.c.bf16 %v698_v48, %v697_v26  ;;  %v1686_v9 = vsel %vm317_vm1, %v2834_v30, %v3315_v2  ;;  %v1716_v60 = vsel %vm317_vm1, %v1646_v27, 0 }
 0x1ae   : > { %1811 = vmatprep.subr.bf16.mxu0 %v1684_v35  ;;  %1854 = vmatprep.subr.bf16.mxu1 %v1689_v16  ;;  %v2319_v21 = vpack.c.bf16 %v696_v40, %v695_v36  ;;  %v1691_v58 = vsel %vm317_vm1, %v3161_v15, %v3187_v17  ;;  %v1649_v37 = vsel %vm1635_vm4, %v3172_v63, %v3175_v1  ;;  %v1712_v30 = vsel %vm317_vm1, %v1642_v61, 0 }
 0x1af   : > { %754 = vst [vmem:[%s3277_s27 + $0x38] sm:$0xff] %v2320_v57 }
 0x1b0   : > { %753 = vst [vmem:[%s3277_s27 + $0x30] sm:$0xff] %v2319_v21 }
 0x1b1   : > { %1812 = vmatpush1.bf16.msra.mxu0 %v1682_v20  ;;  %1855 = vmatpush1.bf16.msra.mxu1 %v1686_v9 }
 0x1b2   : > { %1813 = vmatprep.subr.bf16.mxu0 %v2861_v31  ;;  %1856 = vmatprep.subr.bf16.mxu1 %v1691_v58 }
 0x1b5   : > { %1814 = vmatpush1.bf16.msra.mxu0 %v2892_v46  ;;  %1857 = vmatpush1.bf16.msra.mxu1 %v3157_v55 }
 0x1b6   : > { %2287 = vmatprep.subr.msk.bf16.mxu0 %vm317_vm1, %v3315_v2  ;;  %2289 = vmatprep.subr.msk.bf16.mxu1 %vm317_vm1, %v1649_v37 }
 0x1b9   : > { %1816 = vmatpush1.bf16.msra.mxu0 %v1712_v30  ;;  %1859 = vmatpush1.bf16.msra.mxu1 %v1716_v60 }
 0x1bc   : > { %2288 = vmatmul.mubr.msk.bf16.vlgmr.msra.gmra.mrb[28].mxu0 %vm406_vm3, %v3320_v18  ;;  %2290 = vmatmul.mubr.msk.bf16.vlgmr.msra.gmra.mrb[28].mxu1 %vm406_vm3, %v3320_v18 }
 0x224   : > { %v1004_v31 = vpop.f32.mrb[8].mxu0 }
 0x225   : > { %v1142_v46 = vmul.f32 %v1004_v31, %v3209_v47  ;;  %v1006_v55 = vpop.f32.mrb[9].mxu0 }
 0x226   : > { %v1143_v15 = vmul.f32 %v1006_v55, %v3209_v47  ;;  %v1008_v63 = vpop.f32.mrb[10].mxu0 }
 0x227   : > { %v1158_v1 = vadd.f32 %v1142_v46, %v3251_v54  ;;  %v1150_v17 = vmul.f32 %v1008_v63, %v3218_v3  ;;  %v1010_v51 = vpop.f32.mrb[11].mxu0 }
 0x228   : > { %v1047_v4 = vpop.f32.mrb[8].mxu1  ;;  %v1159_v28 = vadd.f32 %v1143_v15, %v3251_v54  ;;  %v1151_v32 = vmul.f32 %v1010_v51, %v3218_v3 }
 0x229   : > { %vm1174_vm1 = vcmp.ge.f32.partialorder %v1158_v1, 0.0  ;;  %v1190_v50 = vmul.f32 0.22916667, %v1158_v1  ;;  %v1144_v34 = vmul.f32 %v1047_v4, %v3209_v47  ;;  %v1049_v7 = vpop.f32.mrb[9].mxu1  ;;  %v1166_v12 = vadd.f32 %v1150_v17, %v3239_v49 }
 0x22a   : > { %vm1175_vm3 = vcmp.ge.f32.partialorder %v1159_v28, 0.0  ;;  %v1191_v11 = vmul.f32 0.22916667, %v1159_v28  ;;  %v1145_v59 = vmul.f32 %v1049_v7, %v3209_v47  ;;  %v1051_v0 = vpop.f32.mrb[10].mxu1  ;;  %v1167_v29 = vadd.f32 %v1151_v32, %v3239_v49 }
 0x22b   : > { %v1206_v2 = vsel %vm1174_vm1, %v1158_v1, %v1190_v50  ;;  %v1160_v18 = vadd.f32 %v1144_v34, %v3251_v54  ;;  %vm1182_vm4 = vcmp.ge.f32.partialorder %v1166_v12, 0.0  ;;  %v1198_v42 = vmul.f32 0.22916667, %v1166_v12  ;;  %v1053_v56 = vpop.f32.mrb[11].mxu1 }
 0x22c   : > { %v1207_v6 = vsel %vm1175_vm3, %v1159_v28, %v1191_v11  ;;  %v1161_v22 = vadd.f32 %v1145_v59, %v3251_v54  ;;  %v1152_v62 = vmul.f32 %v1051_v0, %v3218_v3  ;;  %vm1183_vm8 = vcmp.ge.f32.partialorder %v1167_v29, 0.0 }
 0x22d   : > { %vm1176_vm9 = vcmp.ge.f32.partialorder %v1160_v18, 0.0  ;;  %v1192_v44 = vmul.f32 0.22916667, %v1160_v18  ;;  %v2321_v5 = vpack.c.bf16 %v1207_v6, %v1206_v2  ;;  %v1214_v13 = vsel %vm1182_vm4, %v1166_v12, %v1198_v42 }
 0x22e   : > { %vm1177_vm10 = vcmp.ge.f32.partialorder %v1161_v22, 0.0  ;;  %v1193_v10 = vmul.f32 0.22916667, %v1161_v22  ;;  %v1168_v25 = vadd.f32 %v1152_v62, %v3239_v49  ;;  %v1199_v23 = vmul.f32 0.22916667, %v1167_v29 }
 0x22f   : > { %v1208_v8 = vsel %vm1176_vm9, %v1160_v18, %v1192_v44  ;;  %2244 = vst [vmem:[%s3277_s27 + $0x40] sm:$0xff] %v2321_v5  ;;  %v1153_v61 = vmul.f32 %v1053_v56, %v3218_v3 }
 0x230   : > { %v1209_v43 = vsel %vm1177_vm10, %v1161_v22, %v1193_v10  ;;  %vm1184_vm11 = vcmp.ge.f32.partialorder %v1168_v25, 0.0  ;;  %v1200_v45 = vmul.f32 0.22916667, %v1168_v25  ;;  %v1215_v38 = vsel %vm1183_vm8, %v1167_v29, %v1199_v23 }
 0x231   : > { %v2322_v19 = vpack.c.bf16 %v1209_v43, %v1208_v8  ;;  %v2325_v14 = vpack.c.bf16 %v1215_v38, %v1214_v13  ;;  %v1169_v27 = vadd.f32 %v1153_v61, %v3239_v49 }
 0x232   : > { %v1216_v26 = vsel %vm1184_vm11, %v1168_v25, %v1200_v45 }
 0x233   : > { %2245 = vst [vmem:[%s3277_s27 + $0x48] sm:$0xff] %v2322_v19  ;;  %2248 = vst [vmem:[%s3277_s27 + $0x60] sm:$0xff] %v2325_v14  ;;  %vm1185_vm12 = vcmp.ge.f32.partialorder %v1169_v27, 0.0  ;;  %v1201_v53 = vmul.f32 0.22916667, %v1169_v27 }
 0x235   : > { %v1217_v36 = vsel %vm1185_vm12, %v1169_v27, %v1201_v53 }
 0x236   : > { %v2326_v52 = vpack.c.bf16 %v1217_v36, %v1216_v26 }
 0x238   : > { %2249 = vst [vmem:[%s3277_s27 + $0x68] sm:$0xff] %v2326_v52 }
 0x23f   : > { %v1090_v39 = vpop.f32.mrb[12].mxu0  ;;  %v1133_v33 = vpop.f32.mrb[12].mxu1 }
 0x240   : > { %v1146_v24 = vmul.f32 %v1090_v39, %v3209_v47  ;;  %v1148_v41 = vmul.f32 %v1133_v33, %v3209_v47  ;;  %v1092_v35 = vpop.f32.mrb[13].mxu0  ;;  %v1135_v48 = vpop.f32.mrb[13].mxu1 }
 0x241   : > { %v1147_v16 = vmul.f32 %v1092_v35, %v3209_v47  ;;  %v1149_v40 = vmul.f32 %v1135_v48, %v3209_v47  ;;  %v1094_v57 = vpop.f32.mrb[14].mxu0  ;;  %v1137_v21 = vpop.f32.mrb[14].mxu1 }
 0x242   : > { %v1162_v20 = vadd.f32 %v1146_v24, %v3251_v54  ;;  %v1164_v9 = vadd.f32 %v1148_v41, %v3251_v54  ;;  %v1154_v58 = vmul.f32 %v1094_v57, %v3218_v3  ;;  %v1156_v37 = vmul.f32 %v1137_v21, %v3218_v3  ;;  %v1096_v60 = vpop.f32.mrb[15].mxu0  ;;  %v1139_v30 = vpop.f32.mrb[15].mxu1 }
 0x243   : > { %v1163_v31 = vadd.f32 %v1147_v16, %v3251_v54  ;;  %v1165_v46 = vadd.f32 %v1149_v40, %v3251_v54  ;;  %v1155_v55 = vmul.f32 %v1096_v60, %v3218_v3  ;;  %v1157_v15 = vmul.f32 %v1139_v30, %v3218_v3 }
 0x244   : > { %vm1178_vm13 = vcmp.ge.f32.partialorder %v1162_v20, 0.0  ;;  %v1194_v63 = vmul.f32 0.22916667, %v1162_v20  ;;  %vm1180_vm14 = vcmp.ge.f32.partialorder %v1164_v9, 0.0  ;;  %v1196_v1 = vmul.f32 0.22916667, %v1164_v9 }
 0x245   : > { %vm1179_vm15 = vcmp.ge.f32.partialorder %v1163_v31, 0.0  ;;  %v1195_v17 = vmul.f32 0.22916667, %v1163_v31  ;;  %vm1181_vm0 = vcmp.ge.f32.partialorder %v1165_v46, 0.0  ;;  %v1197_v51 = vmul.f32 0.22916667, %v1165_v46 }
 0x246   : > { %v1210_v4 = vsel %vm1178_vm13, %v1162_v20, %v1194_v63  ;;  %v1212_v28 = vsel %vm1180_vm14, %v1164_v9, %v1196_v1  ;;  %v1170_v32 = vadd.f32 %v1154_v58, %v3239_v49  ;;  %v1172_v50 = vadd.f32 %v1156_v37, %v3239_v49 }
 0x247   : > { %v1211_v34 = vsel %vm1179_vm15, %v1163_v31, %v1195_v17  ;;  %v1213_v7 = vsel %vm1181_vm0, %v1165_v46, %v1197_v51  ;;  %v1171_v12 = vadd.f32 %v1155_v55, %v3239_v49  ;;  %v1173_v11 = vadd.f32 %v1157_v15, %v3239_v49 }
 0x248   : > { %v2323_v59 = vpack.c.bf16 %v1211_v34, %v1210_v4  ;;  %v2324_v0 = vpack.c.bf16 %v1213_v7, %v1212_v28  ;;  %vm1186_vm2 = vcmp.ge.f32.partialorder %v1170_v32, 0.0  ;;  %v1202_v29 = vmul.f32 0.22916667, %v1170_v32 }
 0x249   : > { %vm1188_vm5 = vcmp.ge.f32.partialorder %v1172_v50, 0.0  ;;  %v1204_v2 = vmul.f32 0.22916667, %v1172_v50  ;;  %vm1187_vm6 = vcmp.ge.f32.partialorder %v1171_v12, 0.0  ;;  %v1203_v18 = vmul.f32 0.22916667, %v1171_v12 }
 0x24a   : > { %2246 = vst [vmem:[%s3277_s27 + $0x50] sm:$0xff] %v2323_v59  ;;  %2247 = vst [vmem:[%s3277_s27 + $0x58] sm:$0xff] %v2324_v0  ;;  %v1218_v42 = vsel %vm1186_vm2, %v1170_v32, %v1202_v29  ;;  %vm1189_vm7 = vcmp.ge.f32.partialorder %v1173_v11, 0.0  ;;  %v1205_v56 = vmul.f32 0.22916667, %v1173_v11 }
 0x24b   : > { %v1220_v6 = vsel %vm1188_vm5, %v1172_v50, %v1204_v2  ;;  %v1219_v22 = vsel %vm1187_vm6, %v1171_v12, %v1203_v18 }
 0x24c   : > { %v2327_v62 = vpack.c.bf16 %v1219_v22, %v1218_v42  ;;  %v1221_v44 = vsel %vm1189_vm7, %v1173_v11, %v1205_v56 }
 0x24d   : > { %v2328_v5 = vpack.c.bf16 %v1221_v44, %v1220_v6 }
 0x24e   : > { %2250 = vst [vmem:[%s3277_s27 + $0x70] sm:$0xff] %v2327_v62 }
 0x24f   : > { %2251 = vst [vmem:[%s3277_s27 + $0x78] sm:$0xff] %v2328_v5 }
 0x253   : > { %v1342_v13 = vpop.f32.mrb[16].mxu0  ;;  %v1385_v10 = vpop.f32.mrb[16].mxu1 }
 0x254   : > { %v1480_v25 = vmul.f32 %v1342_v13, %v3209_v47  ;;  %v1482_v23 = vmul.f32 %v1385_v10, %v3209_v47  ;;  %v1344_v8 = vpop.f32.mrb[17].mxu0  ;;  %v1387_v61 = vpop.f32.mrb[17].mxu1 }
 0x255   : > { %v1481_v43 = vmul.f32 %v1344_v8, %v3209_v47  ;;  %v1483_v45 = vmul.f32 %v1387_v61, %v3209_v47  ;;  %v1346_v38 = vpop.f32.mrb[18].mxu0  ;;  %v1389_v19 = vpop.f32.mrb[18].mxu1 }
 0x256   : > { %v1496_v14 = vadd.f32 %v1480_v25, %v3251_v54  ;;  %v1498_v27 = vadd.f32 %v1482_v23, %v3251_v54  ;;  %v1488_v26 = vmul.f32 %v1346_v38, %v3218_v3  ;;  %v1490_v53 = vmul.f32 %v1389_v19, %v3218_v3  ;;  %v1348_v36 = vpop.f32.mrb[19].mxu0  ;;  %v1391_v52 = vpop.f32.mrb[19].mxu1 }
 0x257   : > { %v1497_v39 = vadd.f32 %v1481_v43, %v3251_v54  ;;  %v1499_v33 = vadd.f32 %v1483_v45, %v3251_v54  ;;  %v1489_v24 = vmul.f32 %v1348_v36, %v3218_v3  ;;  %v1491_v41 = vmul.f32 %v1391_v52, %v3218_v3 }
 0x258   : > { %vm1512_vm1 = vcmp.ge.f32.partialorder %v1496_v14, 0.0  ;;  %v1528_v35 = vmul.f32 0.22916667, %v1496_v14  ;;  %vm1514_vm3 = vcmp.ge.f32.partialorder %v1498_v27, 0.0  ;;  %v1530_v48 = vmul.f32 0.22916667, %v1498_v27 }
 0x259   : > { %vm1513_vm4 = vcmp.ge.f32.partialorder %v1497_v39, 0.0  ;;  %v1529_v16 = vmul.f32 0.22916667, %v1497_v39  ;;  %vm1515_vm8 = vcmp.ge.f32.partialorder %v1499_v33, 0.0  ;;  %v1531_v40 = vmul.f32 0.22916667, %v1499_v33 }
 0x25a   : > { %v1544_v57 = vsel %vm1512_vm1, %v1496_v14, %v1528_v35  ;;  %v1546_v21 = vsel %vm1514_vm3, %v1498_v27, %v1530_v48  ;;  %v1504_v20 = vadd.f32 %v1488_v26, %v3239_v49  ;;  %v1506_v9 = vadd.f32 %v1490_v53, %v3239_v49 }
 0x25b   : > { %v1545_v58 = vsel %vm1513_vm4, %v1497_v39, %v1529_v16  ;;  %v1547_v37 = vsel %vm1515_vm8, %v1499_v33, %v1531_v40  ;;  %v1505_v60 = vadd.f32 %v1489_v24, %v3239_v49  ;;  %v1507_v30 = vadd.f32 %v1491_v41, %v3239_v49 }
 0x25c   : > { %v2329_v31 = vpack.c.bf16 %v1545_v58, %v1544_v57  ;;  %v2330_v46 = vpack.c.bf16 %v1547_v37, %v1546_v21  ;;  %vm1520_vm9 = vcmp.ge.f32.partialorder %v1504_v20, 0.0  ;;  %v1536_v55 = vmul.f32 0.22916667, %v1504_v20 }
 0x25d   : > { %vm1522_vm10 = vcmp.ge.f32.partialorder %v1506_v9, 0.0  ;;  %v1538_v15 = vmul.f32 0.22916667, %v1506_v9  ;;  %vm1521_vm11 = vcmp.ge.f32.partialorder %v1505_v60, 0.0  ;;  %v1537_v63 = vmul.f32 0.22916667, %v1505_v60 }
 0x25e   : > { %2272 = vst [vmem:[%s3277_s27 + $0x80] sm:$0xff] %v2329_v31  ;;  %2273 = vst [vmem:[%s3277_s27 + $0x88] sm:$0xff] %v2330_v46  ;;  %v1552_v1 = vsel %vm1520_vm9, %v1504_v20, %v1536_v55  ;;  %vm1523_vm12 = vcmp.ge.f32.partialorder %v1507_v30, 0.0  ;;  %v1539_v17 = vmul.f32 0.22916667, %v1507_v30 }
 0x25f   : > { %v1554_v51 = vsel %vm1522_vm10, %v1506_v9, %v1538_v15  ;;  %v1553_v4 = vsel %vm1521_vm11, %v1505_v60, %v1537_v63 }
 0x260   : > { %v2333_v28 = vpack.c.bf16 %v1553_v4, %v1552_v1  ;;  %v1555_v32 = vsel %vm1523_vm12, %v1507_v30, %v1539_v17 }
 0x261   : > { %v2334_v50 = vpack.c.bf16 %v1555_v32, %v1554_v51 }
 0x262   : > { %2276 = vst [vmem:[%s3277_s27 + $0xa0] sm:$0xff] %v2333_v28 }
 0x263   : > { %2277 = vst [vmem:[%s3277_s27 + $0xa8] sm:$0xff] %v2334_v50 }
 0x267   : > { %v1428_v34 = vpop.f32.mrb[20].mxu0  ;;  %v1471_v7 = vpop.f32.mrb[20].mxu1 }
 0x268   : > { %v1484_v12 = vmul.f32 %v1428_v34, %v3209_v47  ;;  %v1486_v11 = vmul.f32 %v1471_v7, %v3209_v47  ;;  %v1430_v59 = vpop.f32.mrb[21].mxu0  ;;  %v1473_v0 = vpop.f32.mrb[21].mxu1 }
 0x269   : > { %v1485_v29 = vmul.f32 %v1430_v59, %v3209_v47  ;;  %v1487_v2 = vmul.f32 %v1473_v0, %v3209_v47  ;;  %v1432_v18 = vpop.f32.mrb[22].mxu0  ;;  %v1475_v42 = vpop.f32.mrb[22].mxu1 }
 0x26a   : > { %v1500_v56 = vadd.f32 %v1484_v12, %v3251_v54  ;;  %v1502_v6 = vadd.f32 %v1486_v11, %v3251_v54  ;;  %v1492_v22 = vmul.f32 %v1432_v18, %v3218_v3  ;;  %v1494_v62 = vmul.f32 %v1475_v42, %v3218_v3  ;;  %v1434_v44 = vpop.f32.mrb[23].mxu0  ;;  %v1477_v5 = vpop.f32.mrb[23].mxu1 }
 0x26b   : > { %v1501_v13 = vadd.f32 %v1485_v29, %v3251_v54  ;;  %v1503_v10 = vadd.f32 %v1487_v2, %v3251_v54  ;;  %v1493_v25 = vmul.f32 %v1434_v44, %v3218_v3  ;;  %v1495_v23 = vmul.f32 %v1477_v5, %v3218_v3 }
 0x26c   : > { %vm1516_vm13 = vcmp.ge.f32.partialorder %v1500_v56, 0.0  ;;  %v1532_v8 = vmul.f32 0.22916667, %v1500_v56  ;;  %vm1518_vm14 = vcmp.ge.f32.partialorder %v1502_v6, 0.0  ;;  %v1534_v61 = vmul.f32 0.22916667, %v1502_v6 }
 0x26d   : > { %vm1517_vm15 = vcmp.ge.f32.partialorder %v1501_v13, 0.0  ;;  %v1533_v43 = vmul.f32 0.22916667, %v1501_v13  ;;  %vm1519_vm0 = vcmp.ge.f32.partialorder %v1503_v10, 0.0  ;;  %v1535_v45 = vmul.f32 0.22916667, %v1503_v10 }
 0x26e   : > { %v1548_v38 = vsel %vm1516_vm13, %v1500_v56, %v1532_v8  ;;  %v1550_v19 = vsel %vm1518_vm14, %v1502_v6, %v1534_v61  ;;  %v1508_v14 = vadd.f32 %v1492_v22, %v3239_v49  ;;  %v1510_v27 = vadd.f32 %v1494_v62, %v3239_v49 }
 0x26f   : > { %v1549_v26 = vsel %vm1517_vm15, %v1501_v13, %v1533_v43  ;;  %v1551_v53 = vsel %vm1519_vm0, %v1503_v10, %v1535_v45  ;;  %v1509_v36 = vadd.f32 %v1493_v25, %v3239_v49  ;;  %v1511_v52 = vadd.f32 %v1495_v23, %v3239_v49 }
 0x270   : > { %v2331_v39 = vpack.c.bf16 %v1549_v26, %v1548_v38  ;;  %v2332_v33 = vpack.c.bf16 %v1551_v53, %v1550_v19  ;;  %vm1524_vm2 = vcmp.ge.f32.partialorder %v1508_v14, 0.0  ;;  %v1540_v24 = vmul.f32 0.22916667, %v1508_v14 }
 0x271   : > { %vm1526_vm5 = vcmp.ge.f32.partialorder %v1510_v27, 0.0  ;;  %v1542_v41 = vmul.f32 0.22916667, %v1510_v27  ;;  %vm1525_vm6 = vcmp.ge.f32.partialorder %v1509_v36, 0.0  ;;  %v1541_v35 = vmul.f32 0.22916667, %v1509_v36 }
 0x272   : > { %2274 = vst [vmem:[%s3277_s27 + $0x90] sm:$0xff] %v2331_v39  ;;  %2275 = vst [vmem:[%s3277_s27 + $0x98] sm:$0xff] %v2332_v33  ;;  %v1556_v48 = vsel %vm1524_vm2, %v1508_v14, %v1540_v24  ;;  %vm1527_vm7 = vcmp.ge.f32.partialorder %v1511_v52, 0.0  ;;  %v1543_v16 = vmul.f32 0.22916667, %v1511_v52 }
 0x273   : > { %v1558_v40 = vsel %vm1526_vm5, %v1510_v27, %v1542_v41  ;;  %v1557_v57 = vsel %vm1525_vm6, %v1509_v36, %v1541_v35 }
 0x274   : > { %v2335_v21 = vpack.c.bf16 %v1557_v57, %v1556_v48  ;;  %v1559_v20 = vsel %vm1527_vm7, %v1511_v52, %v1543_v16 }
 0x275   : > { %v2336_v9 = vpack.c.bf16 %v1559_v20, %v1558_v40 }
 0x276   : > { %2278 = vst [vmem:[%s3277_s27 + $0xb0] sm:$0xff] %v2335_v21 }
 0x277   : > { %2279 = vst [vmem:[%s3277_s27 + $0xb8] sm:$0xff] %v2336_v9 }
 0x27b   : > { %v1755_v58 = vpop.f32.mrb[24].mxu0  ;;  %v1798_v37 = vpop.f32.mrb[24].mxu1 }
 0x27c   : > { %v1893_v60 = vmul.f32 %v1755_v58, %v3209_v47  ;;  %v1895_v30 = vmul.f32 %v1798_v37, %v3209_v47  ;;  %v1757_v31 = vpop.f32.mrb[25].mxu0  ;;  %v1800_v46 = vpop.f32.mrb[25].mxu1 }
 0x27d   : > { %v1894_v55 = vmul.f32 %v1757_v31, %v3209_v47  ;;  %v1896_v15 = vmul.f32 %v1800_v46, %v3209_v47  ;;  %v1759_v63 = vpop.f32.mrb[26].mxu0  ;;  %v1802_v1 = vpop.f32.mrb[26].mxu1 }
 0x27e   : > { %v1909_v17 = vadd.f32 %v1893_v60, %v3251_v54  ;;  %v1911_v51 = vadd.f32 %v1895_v30, %v3251_v54  ;;  %v1901_v4 = vmul.f32 %v1759_v63, %v3218_v3  ;;  %v1903_v28 = vmul.f32 %v1802_v1, %v3218_v3  ;;  %v1761_v32 = vpop.f32.mrb[27].mxu0  ;;  %v1804_v50 = vpop.f32.mrb[27].mxu1 }
 0x27f   : > { %v1910_v34 = vadd.f32 %v1894_v55, %v3251_v54  ;;  %v1912_v7 = vadd.f32 %v1896_v15, %v3251_v54  ;;  %v1902_v12 = vmul.f32 %v1761_v32, %v3218_v3  ;;  %v1904_v11 = vmul.f32 %v1804_v50, %v3218_v3 }
 0x280   : > { %vm1925_vm1 = vcmp.ge.f32.partialorder %v1909_v17, 0.0  ;;  %v1941_v59 = vmul.f32 0.22916667, %v1909_v17  ;;  %vm1927_vm3 = vcmp.ge.f32.partialorder %v1911_v51, 0.0  ;;  %v1943_v0 = vmul.f32 0.22916667, %v1911_v51 }
 0x281   : > { %vm1926_vm4 = vcmp.ge.f32.partialorder %v1910_v34, 0.0  ;;  %v1942_v29 = vmul.f32 0.22916667, %v1910_v34  ;;  %vm1928_vm8 = vcmp.ge.f32.partialorder %v1912_v7, 0.0  ;;  %v1944_v2 = vmul.f32 0.22916667, %v1912_v7 }
 0x282   : > { %v1957_v18 = vsel %vm1925_vm1, %v1909_v17, %v1941_v59  ;;  %v1959_v42 = vsel %vm1927_vm3, %v1911_v51, %v1943_v0  ;;  %v1917_v56 = vadd.f32 %v1901_v4, %v3239_v49  ;;  %v1919_v6 = vadd.f32 %v1903_v28, %v3239_v49 }
 0x283   : > { %v1958_v22 = vsel %vm1926_vm4, %v1910_v34, %v1942_v29  ;;  %v1960_v62 = vsel %vm1928_vm8, %v1912_v7, %v1944_v2  ;;  %v1918_v44 = vadd.f32 %v1902_v12, %v3239_v49  ;;  %v1920_v5 = vadd.f32 %v1904_v11, %v3239_v49 }
 0x284   : > { %v2337_v13 = vpack.c.bf16 %v1958_v22, %v1957_v18  ;;  %v2338_v10 = vpack.c.bf16 %v1960_v62, %v1959_v42  ;;  %vm1933_vm9 = vcmp.ge.f32.partialorder %v1917_v56, 0.0  ;;  %v1949_v25 = vmul.f32 0.22916667, %v1917_v56  ;;  %v2054_v18 = vld [vmem:[%s3277_s27] sm:$0xff] (%p2555_p5)  ;;  %v2056_v42 = vld [vmem:[%s3277_s27 + $0x8] sm:$0xff] (%p2555_p5) }
 0x285   : > { %vm1935_vm10 = vcmp.ge.f32.partialorder %v1919_v6, 0.0  ;;  %v1951_v23 = vmul.f32 0.22916667, %v1919_v6  ;;  %vm1934_vm11 = vcmp.ge.f32.partialorder %v1918_v44, 0.0  ;;  %v1950_v8 = vmul.f32 0.22916667, %v1918_v44  ;;  %2055 = vst [vmem:[%s3522_s10] sm:$0xff] (%p2555_p5), %v2054_v18 }
 0x286   : > { %2299 = vst [vmem:[%s3277_s27 + $0xc0] sm:$0xff] %v2337_v13  ;;  %2300 = vst [vmem:[%s3277_s27 + $0xc8] sm:$0xff] %v2338_v10  ;;  %v1965_v61 = vsel %vm1933_vm9, %v1917_v56, %v1949_v25  ;;  %vm1936_vm12 = vcmp.ge.f32.partialorder %v1920_v5, 0.0  ;;  %v1952_v43 = vmul.f32 0.22916667, %v1920_v5  ;;  %v2058_v56 = vld [vmem:[%s3277_s27 + $0x10] sm:$0xff] (%p2555_p5) }
 0x287   : > { %v1967_v45 = vsel %vm1935_vm10, %v1919_v6, %v1951_v23  ;;  %v1966_v38 = vsel %vm1934_vm11, %v1918_v44, %v1950_v8  ;;  %v2060_v6 = vld [vmem:[%s3277_s27 + $0x18] sm:$0xff] (%p2555_p5)  ;;  %v2062_v22 = vld [vmem:[%s3277_s27 + $0x20] sm:$0xff] (%p2555_p5)  ;;  %v2064_v62 = vld [vmem:[%s3277_s27 + $0x28] sm:$0xff] (%p2555_p5)  ;;  %2057 = vst [vmem:[%s3522_s10 + $0x8] sm:$0xff] (%p2555_p5), %v2056_v42 }
 0x288   : > { %v2341_v19 = vpack.c.bf16 %v1966_v38, %v1965_v61  ;;  %v1968_v14 = vsel %vm1936_vm12, %v1920_v5, %v1952_v43  ;;  %v2066_v44 = vld [vmem:[%s3277_s27 + $0x30] sm:$0xff] (%p2555_p5)  ;;  %v2068_v5 = vld [vmem:[%s3277_s27 + $0x38] sm:$0xff] (%p2555_p5)  ;;  %v2070_v13 = vld [vmem:[%s3277_s27 + $0x40] sm:$0xff] (%p2555_p5)  ;;  %2059 = vst [vmem:[%s3522_s10 + $0x10] sm:$0xff] (%p2555_p5), %v2058_v56 }
 0x289   : > { %v2342_v27 = vpack.c.bf16 %v1968_v14, %v1967_v45  ;;  %v2072_v10 = vld [vmem:[%s3277_s27 + $0x48] sm:$0xff] (%p2555_p5)  ;;  %v2074_v25 = vld [vmem:[%s3277_s27 + $0x50] sm:$0xff] (%p2555_p5)  ;;  %v2076_v23 = vld [vmem:[%s3277_s27 + $0x58] sm:$0xff] (%p2555_p5)  ;;  %2061 = vst [vmem:[%s3522_s10 + $0x18] sm:$0xff] (%p2555_p5), %v2060_v6 }
 0x28a   : > { %2303 = vst [vmem:[%s3277_s27 + $0xe0] sm:$0xff] %v2341_v19  ;;  %2063 = vst [vmem:[%s3522_s10 + $0x80] sm:$0xff] (%p2555_p5), %v2062_v22  ;;  %v2078_v8 = vld [vmem:[%s3277_s27 + $0x60] sm:$0xff] (%p2555_p5)  ;;  %v2080_v61 = vld [vmem:[%s3277_s27 + $0x68] sm:$0xff] (%p2555_p5) }
 0x28b   : > { %2304 = vst [vmem:[%s3277_s27 + $0xe8] sm:$0xff] %v2342_v27  ;;  %2065 = vst [vmem:[%s3522_s10 + $0x88] sm:$0xff] (%p2555_p5), %v2064_v62  ;;  %v2082_v43 = vld [vmem:[%s3277_s27 + $0x70] sm:$0xff] (%p2555_p5)  ;;  %v2084_v45 = vld [vmem:[%s3277_s27 + $0x78] sm:$0xff] (%p2555_p5) }
 0x28c   : > { %2067 = vst [vmem:[%s3522_s10 + $0x90] sm:$0xff] (%p2555_p5), %v2066_v44  ;;  %2069 = vst [vmem:[%s3522_s10 + $0x98] sm:$0xff] (%p2555_p5), %v2068_v5  ;;  %v2086_v38 = vld [vmem:[%s3277_s27 + $0x80] sm:$0xff] (%p2555_p5)  ;;  %v2088_v19 = vld [vmem:[%s3277_s27 + $0x88] sm:$0xff] (%p2555_p5) }
 0x28d   : > { %2071 = vst [vmem:[%s3522_s10 + $0x100] sm:$0xff] (%p2555_p5), %v2070_v13  ;;  %2073 = vst [vmem:[%s3522_s10 + $0x108] sm:$0xff] (%p2555_p5), %v2072_v10  ;;  %v2090_v14 = vld [vmem:[%s3277_s27 + $0x90] sm:$0xff] (%p2555_p5)  ;;  %v2092_v27 = vld [vmem:[%s3277_s27 + $0x98] sm:$0xff] (%p2555_p5) }
 0x28e   : > { %2075 = vst [vmem:[%s3522_s10 + $0x110] sm:$0xff] (%p2555_p5), %v2074_v25  ;;  %2077 = vst [vmem:[%s3522_s10 + $0x118] sm:$0xff] (%p2555_p5), %v2076_v23 }
 0x28f   : > { %v1841_v26 = vpop.f32.mrb[28].mxu0  ;;  %v1884_v53 = vpop.f32.mrb[28].mxu1  ;;  %2079 = vst [vmem:[%s3522_s10 + $0x180] sm:$0xff] (%p2555_p5), %v2078_v8  ;;  %2081 = vst [vmem:[%s3522_s10 + $0x188] sm:$0xff] (%p2555_p5), %v2080_v61 }
 0x290   : > { %v1897_v36 = vmul.f32 %v1841_v26, %v3209_v47  ;;  %v1899_v52 = vmul.f32 %v1884_v53, %v3209_v47  ;;  %v1843_v39 = vpop.f32.mrb[29].mxu0  ;;  %v1886_v33 = vpop.f32.mrb[29].mxu1  ;;  %2083 = vst [vmem:[%s3522_s10 + $0x190] sm:$0xff] (%p2555_p5), %v2082_v43  ;;  %2085 = vst [vmem:[%s3522_s10 + $0x198] sm:$0xff] (%p2555_p5), %v2084_v45  ;;  %v2094_v26 = vld [vmem:[%s3277_s27 + $0xa0] sm:$0xff] (%p2555_p5)  ;;  %v2096_v53 = vld [vmem:[%s3277_s27 + $0xa8] sm:$0xff] (%p2555_p5) }
 0x291   : > { %v1898_v24 = vmul.f32 %v1843_v39, %v3209_v47  ;;  %v1900_v41 = vmul.f32 %v1886_v33, %v3209_v47  ;;  %v1845_v35 = vpop.f32.mrb[30].mxu0  ;;  %v1888_v48 = vpop.f32.mrb[30].mxu1  ;;  %2087 = vst [vmem:[%s3522_s10 + $0x200] sm:$0xff] (%p2555_p5), %v2086_v38  ;;  %2089 = vst [vmem:[%s3522_s10 + $0x208] sm:$0xff] (%p2555_p5), %v2088_v19  ;;  %v2102_v39 = vld [vmem:[%s3277_s27 + $0xc0] sm:$0xff] (%p2555_p5)  ;;  %v2104_v33 = vld [vmem:[%s3277_s27 + $0xc8] sm:$0xff] (%p2555_p5) }
 0x292   : > { %v1913_v16 = vadd.f32 %v1897_v36, %v3251_v54  ;;  %v1915_v40 = vadd.f32 %v1899_v52, %v3251_v54  ;;  %v1905_v57 = vmul.f32 %v1845_v35, %v3218_v3  ;;  %v1907_v21 = vmul.f32 %v1888_v48, %v3218_v3  ;;  %v1847_v20 = vpop.f32.mrb[31].mxu0  ;;  %v1890_v9 = vpop.f32.mrb[31].mxu1  ;;  %2091 = vst [vmem:[%s3522_s10 + $0x210] sm:$0xff] (%p2555_p5), %v2090_v14  ;;  %v2098_v36 = vld [vmem:[%s3277_s27 + $0xb0] sm:$0xff] (%p2555_p5)  ;;  %v2100_v52 = vld [vmem:[%s3277_s27 + $0xb8] sm:$0xff] (%p2555_p5)  ;;  %v2110_v35 = vld [vmem:[%s3277_s27 + $0xe0] sm:$0xff] (%p2555_p5) }
 0x293   : > { %v1914_v58 = vadd.f32 %v1898_v24, %v3251_v54  ;;  %v1916_v37 = vadd.f32 %v1900_v41, %v3251_v54  ;;  %v1906_v60 = vmul.f32 %v1847_v20, %v3218_v3  ;;  %v1908_v47 = vmul.f32 %v1890_v9, %v3218_v3  ;;  %2093 = vst [vmem:[%s3522_s10 + $0x218] sm:$0xff] (%p2555_p5), %v2092_v27  ;;  %v2112_v48 = vld [vmem:[%s3277_s27 + $0xe8] sm:$0xff] (%p2555_p5) }
 0x294   : > { %vm1929_vm13 = vcmp.ge.f32.partialorder %v1913_v16, 0.0  ;;  %v1945_v30 = vmul.f32 0.22916667, %v1913_v16  ;;  %vm1931_vm14 = vcmp.ge.f32.partialorder %v1915_v40, 0.0  ;;  %v1947_v31 = vmul.f32 0.22916667, %v1915_v40 }
 0x295   : > { %vm1930_vm15 = vcmp.ge.f32.partialorder %v1914_v58, 0.0  ;;  %v1946_v46 = vmul.f32 0.22916667, %v1914_v58  ;;  %vm1932_vm0 = vcmp.ge.f32.partialorder %v1916_v37, 0.0  ;;  %v1948_v55 = vmul.f32 0.22916667, %v1916_v37 }
 0x296   : > { %v1961_v15 = vsel %vm1929_vm13, %v1913_v16, %v1945_v30  ;;  %v1963_v63 = vsel %vm1931_vm14, %v1915_v40, %v1947_v31  ;;  %v1921_v1 = vadd.f32 %v1905_v57, %v3239_v49  ;;  %v1923_v54 = vadd.f32 %v1907_v21, %v3239_v49  ;;  %2095 = vst [vmem:[%s3522_s10 + $0x280] sm:$0xff] (%p2555_p5), %v2094_v26 }
 0x297   : > { %v1962_v17 = vsel %vm1930_vm15, %v1914_v58, %v1946_v46  ;;  %v1964_v51 = vsel %vm1932_vm0, %v1916_v37, %v1948_v55  ;;  %v1922_v3 = vadd.f32 %v1906_v60, %v3239_v49  ;;  %v1924_v4 = vadd.f32 %v1908_v47, %v3239_v49  ;;  %2097 = vst [vmem:[%s3522_s10 + $0x288] sm:$0xff] (%p2555_p5), %v2096_v53 }
 0x298   : > { %v2339_v28 = vpack.c.bf16 %v1962_v17, %v1961_v15  ;;  %v2340_v32 = vpack.c.bf16 %v1964_v51, %v1963_v63  ;;  %vm1937_vm2 = vcmp.ge.f32.partialorder %v1921_v1, 0.0  ;;  %v1953_v50 = vmul.f32 0.22916667, %v1921_v1  ;;  %2099 = vst [vmem:[%s3522_s10 + $0x290] sm:$0xff] (%p2555_p5), %v2098_v36  ;;  %2101 = vst [vmem:[%s3522_s10 + $0x298] sm:$0xff] (%p2555_p5), %v2100_v52 }
 0x299   : > { %vm1939_vm5 = vcmp.ge.f32.partialorder %v1923_v54, 0.0  ;;  %v1955_v34 = vmul.f32 0.22916667, %v1923_v54  ;;  %vm1938_vm6 = vcmp.ge.f32.partialorder %v1922_v3, 0.0  ;;  %v1954_v7 = vmul.f32 0.22916667, %v1922_v3 }
 0x29a   : > { %2301 = vst [vmem:[%s3277_s27 + $0xd0] sm:$0xff] %v2339_v28  ;;  %2302 = vst [vmem:[%s3277_s27 + $0xd8] sm:$0xff] %v2340_v32  ;;  %v1969_v12 = vsel %vm1937_vm2, %v1921_v1, %v1953_v50  ;;  %vm1940_vm7 = vcmp.ge.f32.partialorder %v1924_v4, 0.0  ;;  %v1956_v11 = vmul.f32 0.22916667, %v1924_v4  ;;  %2036 = sbr.rel (!%p2555_p5) target bundleno = 680 (0x2a8), region = 40 }
 0x29b   : > { %v1971_v59 = vsel %vm1939_vm5, %v1923_v54, %v1955_v34  ;;  %v1970_v0 = vsel %vm1938_vm6, %v1922_v3, %v1954_v7  ;;  %2103 = vst [vmem:[%s3522_s10 + $0x300] sm:$0xff] (%p2555_p5), %v2102_v39  ;;  %2105 = vst [vmem:[%s3522_s10 + $0x308] sm:$0xff] (%p2555_p5), %v2104_v33 }
 0x29c   : > { %v2343_v29 = vpack.c.bf16 %v1970_v0, %v1969_v12  ;;  %v1972_v2 = vsel %vm1940_vm7, %v1924_v4, %v1956_v11  ;;  %2111 = vst [vmem:[%s3522_s10 + $0x380] sm:$0xff] (%p2555_p5), %v2110_v35  ;;  %2113 = vst [vmem:[%s3522_s10 + $0x388] sm:$0xff] (%p2555_p5), %v2112_v48 }
 0x29d   : > { %v2344_v49 = vpack.c.bf16 %v1972_v2, %v1971_v59 }
 0x29e   : > { %2305 = vst [vmem:[%s3277_s27 + $0xf0] sm:$0xff] %v2343_v29 }
 0x29f   : > { %2306 = vst [vmem:[%s3277_s27 + $0xf8] sm:$0xff] %v2344_v49 }
 0x2a1   : > { %v2106_v24 = vld [vmem:[%s3277_s27 + $0xd0] sm:$0xff]  ;;  %v2108_v41 = vld [vmem:[%s3277_s27 + $0xd8] sm:$0xff] }
 0x2a2   : > { %2107 = vst [vmem:[%s3522_s10 + $0x310] sm:$0xff] %v2106_v24  ;;  %2109 = vst [vmem:[%s3522_s10 + $0x318] sm:$0xff] %v2108_v41 }
 0x2a5   : > { %v2114_v16 = vld [vmem:[%s3277_s27 + $0xf0] sm:$0xff] }
 0x2a6   : > { %v2116_v40 = vld [vmem:[%s3277_s27 + $0xf8] sm:$0xff]  ;;  %2115 = vst [vmem:[%s3522_s10 + $0x390] sm:$0xff] %v2114_v16 }
 0x2a7   : > { %2117 = vst [vmem:[%s3522_s10 + $0x398] sm:$0xff] %v2116_v40 }
 0x2a8 PF: > { %s14_s21 = sadd.s32 1, %s2478_s21   ;;  %s3624_s15 = smov %s2458_s16 }
 0x2a9   : > { %p11_p10 = scmp.ge.s32.totalorder %s14_s21, 10   ;;  %s3625_s16 = smov %s2566_s30 }
 0x2aa   : > { %s3626_s17 = smov %s2470_s19  ;;  %s3627_s18 = smov %s2474_s20 }
 0x2ab   : > { %s3628_s19 = smov %s3631_s22  ;;  %s3629_s20 = smov %s3635_s23 }
 0x2ac   :  { %13 = sbr.rel (!%p11_p10) target bundleno = 4 (0x4), region = 96 }

// kernel: conv_decoder_forward.7
= control target key start
LH: loop header
LB: loop body
LE: loop exit
PB: predicated region body
PF: predicated region fallthrough
CT: control target
= control target key end

     0   :  { %s1805_s15 = smov 0   ;;  %s1807_s16 = smov 0   ;;  %s3084_s0 = inlined_call_operand.vmem [shape: bf16[2,16,9728], index: 0, kind: input, shape index: {}]   ;;  %s3085_s1 = inlined_call_operand.vmem [shape: bf16[4,8,256], index: 1, kind: input, shape index: {}]   ;;  %s3086_s2 = inlined_call_operand.vmem [shape: f32[8,1], index: 2, kind: input, shape index: {}]   ;;  %s3087_s3 = inlined_call_operand.vmem [shape: f32[8,1], index: 3, kind: input, shape index: {}]   ;;  %s3088_s4 = inlined_call_operand.vmem [shape: f32[2,4,8,9216], index: 4, kind: output, shape index: {}]  }
   0x1   :  { %s1809_s17 = smov 0   ;;  %s1811_s18 = smov 0  }
   0x2   :  { %s1813_s19 = smov 0   ;;  %s1815_s20 = smov 0  }
   0x3   :  { %s1817_s21 = smov 0  }
   0x4 LB: > { %s23_s22 = sadd.s32 1, %s1766_s19  ;;  %s26_s23 = sadd.s32 1, %s1770_s20  ;;  %s1774_s21 = sphi %s1817_s21, %s14_s21   ;;  %s1770_s20 = sphi %s1815_s20, %s3192_s20   ;;  %s1766_s19 = sphi %s1813_s19, %s3191_s19   ;;  %s1762_s18 = sphi %s1811_s18, %s3190_s18   ;;  %s1758_s17 = sphi %s1809_s17, %s3189_s17   ;;  %s1754_s16 = sphi %s1807_s16, %s3188_s16   ;;  %s1750_s15 = sphi %s1805_s15, %s3187_s15  }
   0x5   : > { %p24_p0 = scmp.ge.s32.totalorder %s23_s22, 9  ;;  %s1558_s24 = sadd.s32 4294967295, %s1774_s21  }
   0x6   : > { %p134_p1 = scmp.ne.s32.totalorder %s1754_s16, %s1750_s15  ;;  %p135_p2 = scmp.eq.s32.totalorder %s1558_s24, 17 }
   0x7   : > { %s3194_s22 = smov (%p24_p0, %s23_s22), 0  ;;  %s3196_s23 = smov (!%p24_p0, %s26_s23), %s1770_s20 }
   0x8   : > { %s120_s25 = ssub.s32 %s1766_s19, %s3194_s22  ;;  %p28_p3 = scmp.ge.s32.totalorder %s3196_s23, 2 }
   0x9   : > { %p1562_p4 = scmp.ge.s32.totalorder %s1774_s21, 1  ;;  %p1851_p5 = por %p135_p2, %p134_p1 }
   0xa   : > { %p176_p6 = scmp.lt.s32.totalorder %s1774_s21, 19  ;;  %s3198_s23 = smov (%p28_p3, %s3196_s23), 0 }
   0xb   : > { %s119_s27 = ssub.s32 %s1770_s20, %s3198_s23  ;;  %s124_s29 = sadd.s32 1, %s1754_s16 }
   0xc   : > { %p177_p7 = pnand %p1562_p4, %p176_p6  ;;  %s121_s28 = sor.u32 %s120_s25, %s119_s27 }
   0xd   : > { %p122_p8 = scmp.eq.s32.totalorder %s121_s28, 0 }
   0xe   : > { %180 = sbr.rel (%p177_p7) target bundleno = 908 (0x38c), region = 36 }
   0xf   : > { %s1862_s30 = scalar_select %p122_p8, %s1754_s16, %s124_s29  }
  0x15   : > { %p201_p9 = scmp.lt.s32.totalorder %s1762_s18, 1  ;;  %s1565_s5 = sshll.u32 %s1758_s17, 10  ;;  %v1971_v12 = vld [vmem:[%s3085_s1] sm:$0xff]  ;;  %vm289_vm0 = vcmask 1039360   ;;  %vm324_vm1 = vcmask 1031168   ;;  %vm359_vm2 = vcmask 1022976  }
  0x16   : > { %s208_s6 = sshra.s32 %s1565_s5, 7  ;;  %s1776_s14 = smov 127   ;;  %v1975_v13 = vcombine.high %v1971_v12, %v1971_v12  ;;  %v1779_v52 = vmov 0  }
  0x17   : > { %s202_s7 = scalar_select %p201_p9, %s1762_s18, 1  ;;  %1681 = vset.pattern.permute.xlu1 %v1779_v52  ;;  %1682 = vset.pattern.permute.xlu0 %v1779_v52 }
  0x18   : > { %s1566_s9 = sshll.u32 %s208_s6, 2  ;;  %s1777_s24 = smov 126   ;;  %507 = vmatprep.mubr.bf16.mxu1 %v1975_v13  ;;  %466 = vmatprep.mubr.bf16.mxu0 %v1975_v13 }
  0x19   : > { %s1619_s8 = smul.u32 608, %s202_s7  ;;  %s1778_s25 = smov 125  }
  0x1a   : > { %s1620_s27 = smul.u32 (%p1851_p5), 288, %s1762_s18 }
  0x1b   : > { %s205_s12 = scalar_lea.vmem %s3084_s0, %s1619_s8 }
  0x1c   : > { %s1870_s13 = scalar_lea.vmem %s205_s12, %s1566_s9  ;;  %s198_s12 = sand.u32 1, %s1750_s15  }
  0x1d   : > { %v1873_v0 = vld [vmem:[%s1870_s13 + $0xc] ss:$304 sps:$4 sm:$0xff]   ;;  %v1876_v1 = vld [vmem:[%s1870_s13 + $0x4] ss:$304 sps:$4 sm:$0xff]   ;;  %v1881_v2 = vld [vmem:[%s1870_s13 + $0x10] ss:$304 sps:$4 sm:$0xff]  }
  0x1e   : > { %277 = vrot.lane.b32.xlu1 %v1873_v0, %s1776_s14  ;;  %475 = vmatprep.subr.bf16.mxu1 %v1873_v0  ;;  %v1887_v3 = vld [vmem:[%s1870_s13 + $0x8] ss:$304 sps:$4 sm:$0xff]   ;;  %v1690_v4 = vld [vmem:[%s1870_s13] ss:$304 sps:$4 sm:$0xff]   ;;  %v1913_v5 = vld [vmem:[%s1870_s13 + $0x14] ss:$304 sps:$4 sm:$0xff]  }
  0x1f   : > { %273 = vrot.lane.b32.xlu0 %v1876_v1, %s1776_s14  ;;  %434 = vmatprep.subr.bf16.mxu0 %v1876_v1  ;;  %v1923_v6 = vld [vmem:[%s1870_s13 + $0x18] ss:$304 sps:$4 sm:$0xff]   ;;  %v1930_v7 = vld [vmem:[%s1870_s13 + $0x1c] ss:$304 sps:$4 sm:$0xff]   ;;  %v1941_v8 = vld [vmem:[%s1870_s13 + $0x20] ss:$304 sps:$4 sm:$0xff]  }
  0x20   : > { %476 = vmatpush1.bf16.msra.mxu1 %v1887_v3  ;;  %435 = vmatpush1.bf16.msra.mxu0 %v1690_v4  ;;  %v1948_v9 = vld [vmem:[%s1870_s13 + $0x24] ss:$304 sps:$4 sm:$0xff]   ;;  %v1961_v10 = vld [vmem:[%s1870_s13 + $0x28] ss:$304 sps:$4 sm:$0xff]   ;;  %v1700_v11 = vld [vmem:[%s1870_s13 + $0x2c] ss:$304 sps:$4 sm:$0xff]  }
  0x22   : > { %279 = vrot.lane.b32.xlu1 %v1881_v2, %s1776_s14 }
  0x23   : > { %275 = vrot.lane.b32.xlu0 %v1887_v3, %s1776_s14 }
  0x26   : > { %308 = vrot.lane.b32.xlu1 %v1876_v1, %s1777_s24 }
  0x27   : > { %271 = vrot.lane.b32.xlu0 %v1690_v4, %s1776_s14 }
  0x2a   : > { %312 = vrot.lane.b32.xlu1 %v1873_v0, %s1777_s24 }
  0x2b   : > { %310 = vrot.lane.b32.xlu0 %v1887_v3, %s1777_s24 }
  0x2e   : > { %306 = vrot.lane.b32.xlu1 %v1690_v4, %s1777_s24 }
  0x2f   : > { %314 = vrot.lane.b32.xlu0 %v1881_v2, %s1777_s24 }
  0x32   : > { %345 = vrot.lane.b32.xlu1 %v1887_v3, %s1778_s25 }
  0x33   : > { %343 = vrot.lane.b32.xlu0 %v1876_v1, %s1778_s25 }
  0x36   : > { %349 = vrot.lane.b32.xlu1 %v1881_v2, %s1778_s25 }
  0x37   : > { %347 = vrot.lane.b32.xlu0 %v1873_v0, %s1778_s25 }
  0x3a   : > { %281 = vrot.lane.b32.xlu1 %v1913_v5, %s1776_s14 }
  0x3b   : > { %341 = vrot.lane.b32.xlu0 %v1690_v4, %s1778_s25 }
  0x3e   : > { %351 = vrot.lane.b32.xlu1 %v1913_v5, %s1778_s25 }
  0x3f   : > { %316 = vrot.lane.b32.xlu0 %v1913_v5, %s1777_s24 }
  0x42   : > { %318 = vrot.lane.b32.xlu1 %v1923_v6, %s1777_s24 }
  0x43   : > { %283 = vrot.lane.b32.xlu0 %v1923_v6, %s1776_s14 }
  0x46   : > { %285 = vrot.lane.b32.xlu1 %v1930_v7, %s1776_s14 }
  0x47   : > { %353 = vrot.lane.b32.xlu0 %v1923_v6, %s1778_s25 }
  0x4a   : > { %355 = vrot.lane.b32.xlu1 %v1930_v7, %s1778_s25 }
  0x4b   : > { %320 = vrot.lane.b32.xlu0 %v1930_v7, %s1777_s24 }
  0x4e   : > { %322 = vrot.lane.b32.xlu1 %v1941_v8, %s1777_s24 }
  0x4f   : > { %287 = vrot.lane.b32.xlu0 %v1941_v8, %s1776_s14 }
  0x52   : > { %380 = vrot.lane.b32.xlu1 %v1948_v9, %s1776_s14 }
  0x53   : > { %357 = vrot.lane.b32.xlu0 %v1941_v8, %s1778_s25 }
  0x56   : > { %388 = vrot.lane.b32.xlu1 %v1948_v9, %s1778_s25 }
  0x57   : > { %384 = vrot.lane.b32.xlu0 %v1948_v9, %s1777_s24 }
  0x5a   : > { %402 = vrot.lane.b32.xlu1 %v1961_v10, %s1777_s24 }
  0x5b   : > { %398 = vrot.lane.b32.xlu0 %v1961_v10, %s1776_s14 }
  0x5e   : > { %414 = vrot.lane.b32.xlu1 %v1700_v11, %s1776_s14 }
  0x5f   : > { %406 = vrot.lane.b32.xlu0 %v1961_v10, %s1778_s25 }
  0x62   : > { %422 = vrot.lane.b32.xlu1 %v1700_v11, %s1778_s25 }
  0x63   : > { %418 = vrot.lane.b32.xlu0 %v1700_v11, %s1777_s24  ;;  %v2169_v11 = vcombine.low %v1971_v12, %v1971_v12 }
  0x90   : > { %v278_v14 = vpop.permute.xlu1 %277 }
  0x91   : > { %v274_v15 = vpop.permute.xlu0 %273 }
  0x94   : > { %v280_v16 = vpop.permute.xlu1 %279 }
  0x95   : > { %v1985_v17 = vsel %vm289_vm0, %v278_v14, %v280_v16  ;;  %v276_v18 = vpop.permute.xlu0 %275 }
  0x96   : > { %v1988_v19 = vsel %vm289_vm0, %v274_v15, %v276_v18  ;;  %v1991_v20 = vsel %vm289_vm0, %v276_v18, %v278_v14  ;;  %477 = vmatprep.subr.bf16.mxu1 %v1985_v17 }
  0x97   : > { %645 = vrot.lane.b32.xlu1 %v1991_v20, %s1776_s14  ;;  %643 = vrot.lane.b32.xlu0 %v1988_v19, %s1776_s14 }
  0x98   : > { %436 = vmatprep.subr.bf16.mxu0 %v1988_v19  ;;  %478 = vmatpush1.bf16.msra.mxu1 %v1991_v20  ;;  %v309_v21 = vpop.permute.xlu1 %308 }
  0x99   : > { %v272_v22 = vpop.permute.xlu0 %271 }
  0x9a   : > { %v2001_v23 = vsel %vm289_vm0, %v272_v22, %v274_v15 }
  0x9b   : > { %647 = vrot.lane.b32.xlu0 %v1985_v17, %s1776_s14  ;;  %437 = vmatpush1.bf16.msra.mxu0 %v2001_v23 }
  0x9c   : > { %v313_v24 = vpop.permute.xlu1 %312 }
  0x9d   : > { %v311_v25 = vpop.permute.xlu0 %310 }
  0x9e   : > { %v2007_v26 = vsel %vm324_vm1, %v309_v21, %v311_v25  ;;  %v2016_v30 = vsel %vm324_vm1, %v311_v25, %v313_v24 }
  0x9f   : > { %641 = vrot.lane.b32.xlu0 %v2001_v23, %s1776_s14  ;;  %438 = vmatprep.subr.bf16.mxu0 %v2007_v26 }
  0xa0   : > { %v307_v27 = vpop.permute.xlu1 %306 }
  0xa1   : > { %v315_v28 = vpop.permute.xlu0 %314  ;;  %v2013_v29 = vsel %vm324_vm1, %v307_v27, %v309_v21 }
  0xa2   : > { %v2019_v31 = vsel %vm324_vm1, %v313_v24, %v315_v28  ;;  %439 = vmatpush1.bf16.msra.mxu0 %v2013_v29 }
  0xa3   : > { %663 = vrot.lane.b32.xlu0 %v2016_v30, %s1776_s14  ;;  %479 = vmatprep.subr.bf16.mxu1 %v2019_v31 }
  0xa4   : > { %480 = vmatpush1.bf16.msra.mxu1 %v2016_v30  ;;  %v346_v32 = vpop.permute.xlu1 %345 }
  0xa5   : > { %v344_v33 = vpop.permute.xlu0 %343 }
  0xa6   : > { %v2027_v34 = vsel %vm359_vm2, %v344_v33, %v346_v32 }
  0xa7   : > { %440 = vmatprep.subr.bf16.mxu0 %v2027_v34 }
  0xa8   : > { %v350_v35 = vpop.permute.xlu1 %349 }
  0xa9   : > { %v348_v36 = vpop.permute.xlu0 %347 }
  0xaa   : > { %v2031_v37 = vsel %vm359_vm2, %v346_v32, %v348_v36  ;;  %v2034_v38 = vsel %vm359_vm2, %v348_v36, %v350_v35  ;;  %v224_v36 = vld [vmem:[%s3086_s2] sm:$0xff] }
  0xab   : > { %481 = vmatprep.subr.bf16.mxu1 %v2034_v38 }
  0xac   : > { %482 = vmatpush1.bf16.msra.mxu1 %v2031_v37  ;;  %v282_v39 = vpop.permute.xlu1 %281 }
  0xad   : > { %v2039_v40 = vsel %vm289_vm0, %v280_v16, %v282_v39  ;;  %v342_v41 = vpop.permute.xlu0 %341  ;;  %483 = vmatprep.subr.bf16.mxu1 %v1881_v2 }
  0xae   : > { %649 = vrot.lane.b32.xlu1 %v2039_v40, %s1776_s14  ;;  %v2045_v42 = vsel %vm359_vm2, %v342_v41, %v344_v33 }
  0xaf   : > { %441 = vmatpush1.bf16.msra.mxu0 %v2045_v42 }
  0xb0   : > { %484 = vmatpush1.bf16.msra.mxu1 %v1873_v0  ;;  %442 = vmatprep.subr.bf16.mxu0 %v1887_v3  ;;  %v352_v45 = vpop.permute.xlu1 %351 }
  0xb1   : > { %485 = vmatprep.subr.bf16.mxu1 %v2039_v40  ;;  %v317_v43 = vpop.permute.xlu0 %316  ;;  %v2068_v46 = vsel %vm359_vm2, %v350_v35, %v352_v45  ;;  %v225_v35 = vld [vmem:[%s3087_s3] sm:$0xff] }
  0xb2   : > { %v2052_v44 = vsel %vm324_vm1, %v315_v28, %v317_v43  ;;  %661 = vrot.lane.b32.xlu1 %v2007_v26, %s1776_s14 }
  0xb3   : > { %667 = vrot.lane.b32.xlu0 %v2052_v44, %s1776_s14  ;;  %443 = vmatpush1.bf16.msra.mxu0 %v1876_v1 }
  0xb4   : > { %444 = vmatprep.subr.bf16.mxu0 %v1991_v20  ;;  %486 = vmatpush1.bf16.msra.mxu1 %v1985_v17  ;;  %v319_v47 = vpop.permute.xlu1 %318 }
  0xb5   : > { %487 = vmatprep.subr.bf16.mxu1 %v2052_v44  ;;  %v284_v48 = vpop.permute.xlu0 %283  ;;  %v2093_v53 = vsel %vm324_vm1, %v317_v43, %v319_v47 }
  0xb6   : > { %665 = vrot.lane.b32.xlu1 %v2019_v31, %s1776_s14  ;;  %v2087_v50 = vsel %vm289_vm0, %v282_v39, %v284_v48 }
  0xb7   : > { %679 = vrot.lane.b32.xlu0 %v2027_v34, %s1776_s14  ;;  %445 = vmatpush1.bf16.msra.mxu0 %v1988_v19 }
  0xb8   : > { %446 = vmatprep.subr.bf16.mxu0 %v2016_v30  ;;  %488 = vmatpush1.bf16.msra.mxu1 %v2019_v31  ;;  %v286_v49 = vpop.permute.xlu1 %285 }
  0xb9   : > { %489 = vmatprep.subr.bf16.mxu1 %v2068_v46  ;;  %v354_v51 = vpop.permute.xlu0 %353  ;;  %v2103_v55 = vsel %vm289_vm0, %v284_v48, %v286_v49 }
  0xba   : > { %659 = vrot.lane.b32.xlu1 %v2013_v29, %s1776_s14  ;;  %v2112_v57 = vsel %vm359_vm2, %v352_v45, %v354_v51 }
  0xbb   : > { %683 = vrot.lane.b32.xlu0 %v2034_v38, %s1776_s14  ;;  %447 = vmatpush1.bf16.msra.mxu0 %v2007_v26 }
  0xbc   : > { %448 = vmatprep.subr.bf16.mxu0 %v2031_v37  ;;  %490 = vmatpush1.bf16.msra.mxu1 %v2034_v38  ;;  %v356_v54 = vpop.permute.xlu1 %355 }
  0xbd   : > { %491 = vmatprep.subr.bf16.mxu1 %v1913_v5  ;;  %v321_v56 = vpop.permute.xlu0 %320  ;;  %v2117_v58 = vsel %vm359_vm2, %v354_v51, %v356_v54 }
  0xbe   : > { %681 = vrot.lane.b32.xlu1 %v2031_v37, %s1776_s14  ;;  %v2126_v61 = vsel %vm324_vm1, %v319_v47, %v321_v56 }
  0xbf   : > { %677 = vrot.lane.b32.xlu0 %v2045_v42, %s1776_s14  ;;  %449 = vmatpush1.bf16.msra.mxu0 %v2027_v34 }
  0xc0   : > { %492 = vmatpush1.bf16.msra.mxu1 %v1881_v2  ;;  %450 = vmatprep.subr.bf16.mxu0 %v1873_v0  ;;  %v323_v59 = vpop.permute.xlu1 %322 }
  0xc1   : > { %493 = vmatprep.subr.bf16.mxu1 %v2087_v50  ;;  %v288_v60 = vpop.permute.xlu0 %287  ;;  %v2131_v62 = vsel %vm324_vm1, %v321_v56, %v323_v59 }
  0xc2   : > { %685 = vrot.lane.b32.xlu1 %v2068_v46, %s1776_s14  ;;  %v2140_v63 = vsel %vm289_vm0, %v286_v49, %v288_v60 }
  0xc3   : > { %669 = vrot.lane.b32.xlu0 %v2093_v53, %s1776_s14  ;;  %451 = vmatpush1.bf16.msra.mxu0 %v1887_v3 }
  0xc4   : > { %452 = vmatprep.subr.bf16.mxu0 %v1985_v17  ;;  %494 = vmatpush1.bf16.msra.mxu1 %v2039_v40 }
  0xc5   : > { %495 = vmatprep.subr.bf16.mxu1 %v2093_v53  ;;  %v358_v1 = vpop.permute.xlu0 %357 }
  0xc6   : > { %651 = vrot.lane.b32.xlu1 %v2087_v50, %s1776_s14  ;;  %v2149_v3 = vsel %vm359_vm2, %v356_v54, %v358_v1 }
  0xc7   : > { %653 = vrot.lane.b32.xlu0 %v2103_v55, %s1776_s14  ;;  %453 = vmatpush1.bf16.msra.mxu0 %v1991_v20 }
  0xc8   : > { %454 = vmatprep.subr.bf16.mxu0 %v2019_v31  ;;  %496 = vmatpush1.bf16.msra.mxu1 %v2052_v44 }
  0xc9   : > { %497 = vmatprep.subr.bf16.mxu1 %v2112_v57  ;;  %v385_v14 = vpop.permute.xlu0 %384 }
  0xca   : > { %687 = vrot.lane.b32.xlu1 %v2112_v57, %s1776_s14  ;;  %v2180_v15 = vsel %vm324_vm1, %v323_v59, %v385_v14 }
  0xcb   : > { %689 = vrot.lane.b32.xlu0 %v2117_v58, %s1776_s14  ;;  %455 = vmatpush1.bf16.msra.mxu0 %v2016_v30 }
  0xcc   : > { %456 = vmatprep.subr.bf16.mxu0 %v2034_v38  ;;  %498 = vmatpush1.bf16.msra.mxu1 %v2068_v46 }
  0xcd   : > { %499 = vmatprep.subr.bf16.mxu1 %v1923_v6  ;;  %v399_v18 = vpop.permute.xlu0 %398 }
  0xce   : > { %671 = vrot.lane.b32.xlu1 %v2126_v61, %s1776_s14 }
  0xcf   : > { %673 = vrot.lane.b32.xlu0 %v2131_v62, %s1776_s14  ;;  %457 = vmatpush1.bf16.msra.mxu0 %v2031_v37 }
  0xd0   : > { %500 = vmatpush1.bf16.msra.mxu1 %v1913_v5  ;;  %458 = vmatprep.subr.bf16.mxu0 %v1881_v2 }
  0xd1   : > { %501 = vmatprep.subr.bf16.mxu1 %v2103_v55  ;;  %v407_v22 = vpop.permute.xlu0 %406 }
  0xd2   : > { %655 = vrot.lane.b32.xlu1 %v2140_v63, %s1776_s14 }
  0xd3   : > { %459 = vmatpush1.bf16.msra.mxu0 %v1873_v0  ;;  %657 = vrot.lane.b32.xlu0 %v288_v60, %s1776_s14  ;;  %v381_v0 = vpop.permute.xlu1 %380 }
  0xd4   : > { %460 = vmatprep.subr.bf16.mxu0 %v2039_v40  ;;  %502 = vmatpush1.bf16.msra.mxu1 %v2087_v50  ;;  %v2165_v4 = vsel %vm289_vm0, %v288_v60, %v381_v0 }
  0xd5   : > { %503 = vmatprep.subr.bf16.mxu1 %v2126_v61  ;;  %v419_v28 = vpop.permute.xlu0 %418 }
  0xd6   : > { %691 = vrot.lane.b32.xlu1 %v2149_v3, %s1776_s14 }
  0xd7   : > { %461 = vmatpush1.bf16.msra.mxu0 %v1985_v17  ;;  %693 = vrot.lane.b32.xlu0 %v358_v1, %s1776_s14  ;;  %v389_v12 = vpop.permute.xlu1 %388 }
  0xd8   : > { %462 = vmatprep.subr.bf16.mxu0 %v2052_v44  ;;  %504 = vmatpush1.bf16.msra.mxu1 %v2093_v53  ;;  %v2191_v16 = vsel %vm359_vm2, %v358_v1, %v389_v12  ;;  %v2223_v24 = vsel %vm359_vm2, %v389_v12, %v407_v22 }
  0xd9   : > { %505 = vmatprep.subr.bf16.mxu1 %v2117_v58 }
  0xda   : > { %675 = vrot.lane.b32.xlu1 %v323_v59, %s1776_s14 }
  0xdb   : > { %463 = vmatpush1.bf16.msra.mxu0 %v2019_v31  ;;  %697 = vrot.lane.b32.xlu0 %v381_v0, %s1776_s14  ;;  %v403_v21 = vpop.permute.xlu1 %402 }
  0xdc   : > { %464 = vmatprep.subr.bf16.mxu0 %v2068_v46  ;;  %506 = vmatpush1.bf16.msra.mxu1 %v2112_v57  ;;  %v2243_v32 = vsel %vm324_vm1, %v403_v21, %v419_v28 }
  0xdd   : > { %557 = vmatprep.subr.bf16.mxu1 %v1930_v7 }
  0xde   : > { %695 = vrot.lane.b32.xlu1 %v2165_v4, %s1776_s14 }
  0xdf   : > { %465 = vmatpush1.bf16.msra.mxu0 %v2034_v38  ;;  %508 = vmatmul.mubr.bf16.vlgmr.msra.gmra.mrb[0].mxu1 %v2169_v11  ;;  %v415_v25 = vpop.permute.xlu1 %414 }
  0xe0   : > { %558 = vmatpush1.bf16.msra.mxu1 %v1923_v6  ;;  %516 = vmatprep.subr.bf16.mxu0 %v1913_v5  ;;  %v2233_v27 = vsel %vm289_vm0, %v399_v18, %v415_v25 }
  0xe1   : > { %559 = vmatprep.subr.bf16.mxu1 %v2140_v63  ;;  %701 = vrot.lane.b32.xlu0 %v385_v14, %s1776_s14 }
  0xe2   : > { %699 = vrot.lane.b32.xlu1 %v2180_v15, %s1776_s14  ;;  %467 = vmatmul.mubr.bf16.vlgmr.msra.gmra.mrb[0].mxu0 %v2169_v11 }
  0xe3   : > { %517 = vmatpush1.bf16.msra.mxu0 %v1881_v2  ;;  %589 = vmatprep.mubr.bf16.mxu1 %v1975_v13  ;;  %v2203_v2 = vsel %vm289_vm0, %v381_v0, %v399_v18 }
  0xe4   : > { %518 = vmatprep.subr.bf16.mxu0 %v2087_v50  ;;  %560 = vmatpush1.bf16.msra.mxu1 %v2103_v55 }
  0xe5   : > { %561 = vmatprep.subr.bf16.mxu1 %v2131_v62  ;;  %705 = vrot.lane.b32.xlu0 %v389_v12, %s1776_s14 }
  0xe6   : > { %703 = vrot.lane.b32.xlu1 %v2191_v16, %s1776_s14  ;;  %548 = vmatprep.mubr.bf16.mxu0 %v1975_v13  ;;  %v2213_v13 = vsel %vm324_vm1, %v385_v14, %v403_v21 }
  0xe7   : > { %519 = vmatpush1.bf16.msra.mxu0 %v2039_v40 }
  0xe8   : > { %520 = vmatprep.subr.bf16.mxu0 %v2093_v53  ;;  %562 = vmatpush1.bf16.msra.mxu1 %v2126_v61 }
  0xe9   : > { %563 = vmatprep.subr.bf16.mxu1 %v2149_v3  ;;  %709 = vrot.lane.b32.xlu0 %v399_v18, %s1776_s14 }
  0xea   : > { %707 = vrot.lane.b32.xlu1 %v2203_v2, %s1776_s14 }
  0xeb   : > { %521 = vmatpush1.bf16.msra.mxu0 %v2052_v44 }
  0xec   : > { %522 = vmatprep.subr.bf16.mxu0 %v2112_v57  ;;  %564 = vmatpush1.bf16.msra.mxu1 %v2117_v58 }
  0xed   : > { %565 = vmatprep.subr.bf16.mxu1 %v1941_v8  ;;  %713 = vrot.lane.b32.xlu0 %v403_v21, %s1776_s14 }
  0xee   : > { %711 = vrot.lane.b32.xlu1 %v2213_v13, %s1776_s14 }
  0xef   : > { %523 = vmatpush1.bf16.msra.mxu0 %v2068_v46 }
  0xf0   : > { %566 = vmatpush1.bf16.msra.mxu1 %v1930_v7  ;;  %524 = vmatprep.subr.bf16.mxu0 %v1923_v6 }
  0xf1   : > { %567 = vmatprep.subr.bf16.mxu1 %v2165_v4  ;;  %717 = vrot.lane.b32.xlu0 %v407_v22, %s1776_s14 }
  0xf2   : > { %715 = vrot.lane.b32.xlu1 %v2223_v24, %s1776_s14 }
  0xf3   : > { %525 = vmatpush1.bf16.msra.mxu0 %v1913_v5  ;;  %v423_v5 = vpop.permute.xlu1 %422 }
  0xf4   : > { %526 = vmatprep.subr.bf16.mxu0 %v2103_v55  ;;  %568 = vmatpush1.bf16.msra.mxu1 %v2140_v63  ;;  %v2253_v33 = vsel %vm359_vm2, %v407_v22, %v423_v5 }
  0xf5   : > { %569 = vmatprep.subr.bf16.mxu1 %v2180_v15  ;;  %721 = vrot.lane.b32.xlu0 %v415_v25, %s1776_s14 }
  0xf6   : > { %719 = vrot.lane.b32.xlu1 %v2233_v27, %s1776_s14 }
  0xf7   : > { %527 = vmatpush1.bf16.msra.mxu0 %v2087_v50 }
  0xf8   : > { %528 = vmatprep.subr.bf16.mxu0 %v2126_v61  ;;  %570 = vmatpush1.bf16.msra.mxu1 %v2131_v62 }
  0xf9   : > { %571 = vmatprep.subr.bf16.mxu1 %v2191_v16  ;;  %725 = vrot.lane.b32.xlu0 %v419_v28, %s1776_s14 }
  0xfa   : > { %723 = vrot.lane.b32.xlu1 %v2243_v32, %s1776_s14 }
  0xfb   : > { %529 = vmatpush1.bf16.msra.mxu0 %v2093_v53 }
  0xfc   : > { %530 = vmatprep.subr.bf16.mxu0 %v2117_v58  ;;  %572 = vmatpush1.bf16.msra.mxu1 %v2149_v3 }
  0xfd   : > { %573 = vmatprep.subr.bf16.mxu1 %v1948_v9  ;;  %729 = vrot.lane.b32.xlu0 %v423_v5, %s1776_s14 }
  0xfe   : > { %727 = vrot.lane.b32.xlu1 %v2253_v33, %s1776_s14  ;;  %s1563_s14 = sshll.u32 %s198_s12, 8 }
  0xff   : > { %531 = vmatpush1.bf16.msra.mxu0 %v2112_v57  ;;  %s2627_s15 = scalar_lea.vmem [#allocation2], %s1563_s14 }
 0x100   : > { %574 = vmatpush1.bf16.msra.mxu1 %v1941_v8  ;;  %532 = vmatprep.subr.bf16.mxu0 %v1930_v7 }
 0x101   : > { %575 = vmatprep.subr.bf16.mxu1 %v2203_v2  ;;  %613 = vperm.xlu0 %1682, %v225_v35  }
 0x102   : > { %600 = vperm.xlu1 %1681, %v224_v36  }
 0x103   : > { %533 = vmatpush1.bf16.msra.mxu0 %v1923_v6 }
 0x104   : > { %534 = vmatprep.subr.bf16.mxu0 %v2140_v63  ;;  %576 = vmatpush1.bf16.msra.mxu1 %v2165_v4 }
 0x105   : > { %577 = vmatprep.subr.bf16.mxu1 %v2213_v13 }
 0x107   : > { %535 = vmatpush1.bf16.msra.mxu0 %v2103_v55 }
 0x108   : > { %536 = vmatprep.subr.bf16.mxu0 %v2131_v62  ;;  %578 = vmatpush1.bf16.msra.mxu1 %v2180_v15 }
 0x109   : > { %579 = vmatprep.subr.bf16.mxu1 %v2223_v24  ;;  %v644_v6 = vpop.permute.xlu0 %643 }
 0x10b   : > { %537 = vmatpush1.bf16.msra.mxu0 %v2126_v61 }
 0x10c   : > { %580 = vmatpush1.bf16.msra.mxu1 %v2191_v16  ;;  %538 = vmatprep.subr.bf16.mxu0 %v2149_v3 }
 0x10d   : > { %581 = vmatprep.subr.bf16.mxu1 %v1961_v10  ;;  %v648_v39 = vpop.permute.xlu0 %647 }
 0x10f   : > { %539 = vmatpush1.bf16.msra.mxu0 %v2117_v58 }
 0x110   : > { %582 = vmatpush1.bf16.msra.mxu1 %v1948_v9  ;;  %540 = vmatprep.subr.bf16.mxu0 %v1941_v8  ;;  %v646_v9 = vpop.permute.xlu1 %645 }
 0x111   : > { %583 = vmatprep.subr.bf16.mxu1 %v2233_v27  ;;  %v642_v8 = vpop.permute.xlu0 %641  ;;  %v2319_v47 = vsel %vm289_vm0, %v644_v6, %v646_v9  ;;  %v2322_v48 = vsel %vm289_vm0, %v646_v9, %v648_v39 }
 0x112   : > { %v2332_v54 = vsel %vm289_vm0, %v642_v8, %v644_v6 }
 0x113   : > { %541 = vmatpush1.bf16.msra.mxu0 %v1930_v7  ;;  %v2301_v7 = vld [vmem:[%s3085_s1 + $0x8] sm:$0xff] }
 0x114   : > { %584 = vmatpush1.bf16.msra.mxu1 %v2203_v2  ;;  %542 = vmatprep.subr.bf16.mxu0 %v2165_v4  ;;  %v2308_v10 = vcombine.high %v2301_v7, %v2301_v7 }
 0x115   : > { %585 = vmatprep.subr.bf16.mxu1 %v2243_v32  ;;  %v664_v43 = vpop.permute.xlu0 %663 }
 0x117   : > { %543 = vmatpush1.bf16.msra.mxu0 %v2140_v63 }
 0x118   : > { %544 = vmatprep.subr.bf16.mxu0 %v2180_v15  ;;  %586 = vmatpush1.bf16.msra.mxu1 %v2213_v13 }
 0x119   : > { %587 = vmatprep.subr.bf16.mxu1 %v2253_v33 }
 0x11b   : > { %545 = vmatpush1.bf16.msra.mxu0 %v2131_v62 }
 0x11c   : > { %546 = vmatprep.subr.bf16.mxu0 %v2191_v16  ;;  %588 = vmatpush1.bf16.msra.mxu1 %v2223_v24 }
 0x11d   : > { %856 = vmatprep.subr.bf16.mxu1 %v1985_v17 }
 0x11f   : > { %547 = vmatpush1.bf16.msra.mxu0 %v2149_v3  ;;  %590 = vmatmul.mubr.bf16.vlgmr.msra.gmra.mrb[4].mxu1 %v2169_v11 }
 0x120   : > { %815 = vmatprep.subr.bf16.mxu0 %v1988_v19  ;;  %857 = vmatpush1.bf16.msra.mxu1 %v1991_v20  ;;  %v650_v41 = vpop.permute.xlu1 %649 }
 0x121   : > { %v2313_v45 = vsel %vm289_vm0, %v648_v39, %v650_v41  ;;  %888 = vmatprep.mubr.bf16.mxu1 %v2308_v10 }
 0x122   : > { %549 = vmatmul.mubr.bf16.vlgmr.msra.gmra.mrb[4].mxu0 %v2169_v11  ;;  %858 = vmatprep.subr.bf16.mxu1 %v2313_v45 }
 0x123   : > { %816 = vmatpush1.bf16.msra.mxu0 %v2001_v23  ;;  %847 = vmatprep.mubr.bf16.mxu0 %v2308_v10 }
 0x124   : > { %817 = vmatprep.subr.bf16.mxu0 %v2319_v47  ;;  %859 = vmatpush1.bf16.msra.mxu1 %v2322_v48  ;;  %v662_v49 = vpop.permute.xlu1 %661 }
 0x125   : > { %v2329_v51 = vsel %vm289_vm0, %v662_v49, %v664_v43  ;;  %v668_v52 = vpop.permute.xlu0 %667 }
 0x127   : > { %818 = vmatpush1.bf16.msra.mxu0 %v2332_v54 }
 0x128   : > { %819 = vmatprep.subr.bf16.mxu0 %v2329_v51  ;;  %v666_v56 = vpop.permute.xlu1 %665 }
 0x129   : > { %v2337_v59 = vsel %vm289_vm0, %v664_v43, %v666_v56  ;;  %v2340_v60 = vsel %vm289_vm0, %v666_v56, %v668_v52  ;;  %v680_v1 = vpop.permute.xlu0 %679 }
 0x12a   : > { %860 = vmatprep.subr.bf16.mxu1 %v2340_v60 }
 0x12b   : > { %861 = vmatpush1.bf16.msra.mxu1 %v2337_v59 }
 0x12c   : > { %v660_v0 = vpop.permute.xlu1 %659 }
 0x12d   : > { %v2345_v11 = vsel %vm289_vm0, %v660_v0, %v662_v49  ;;  %v684_v14 = vpop.permute.xlu0 %683 }
 0x12e   : > { %820 = vmatpush1.bf16.msra.mxu0 %v2345_v11 }
 0x130   : > { %v682_v12 = vpop.permute.xlu1 %681 }
 0x131   : > { %v2349_v18 = vsel %vm289_vm0, %v680_v1, %v682_v12  ;;  %v678_v21 = vpop.permute.xlu0 %677  ;;  %v2361_v5 = vsel %vm289_vm0, %v682_v12, %v684_v14 }
 0x132   : > { %v2352_v22 = vsel %vm289_vm0, %v678_v21, %v680_v1  ;;  %821 = vmatprep.subr.bf16.mxu0 %v2349_v18 }
 0x133   : > { %822 = vmatpush1.bf16.msra.mxu0 %v2352_v22 }
 0x134   : > { %v686_v25 = vpop.permute.xlu1 %685  ;;  %823 = vmatprep.subr.bf16.mxu0 %v1991_v20 }
 0x135   : > { %v2358_v28 = vsel %vm289_vm0, %v684_v14, %v686_v25  ;;  %v670_v6 = vpop.permute.xlu0 %669 }
 0x136   : > { %862 = vmatprep.subr.bf16.mxu1 %v2358_v28  ;;  %v2376_v39 = vsel %vm289_vm0, %v668_v52, %v670_v6 }
 0x137   : > { %824 = vmatpush1.bf16.msra.mxu0 %v1988_v19  ;;  %863 = vmatpush1.bf16.msra.mxu1 %v2361_v5  ;;  %3131 = vst [vmem:[#allocation3_spill] sm:$0xff] %v2376_v39 }
 0x138   : > { %v652_v35 = vpop.permute.xlu1 %651  ;;  %864 = vmatprep.subr.bf16.mxu1 %v2039_v40  ;;  %825 = vmatprep.subr.bf16.mxu0 %v2322_v48 }
 0x139   : > { %v2369_v36 = vsel %vm289_vm0, %v650_v41, %v652_v35  ;;  %v654_v41 = vpop.permute.xlu0 %653 }
 0x13a   : > { %v2394_v43 = vsel %vm289_vm0, %v652_v35, %v654_v41  ;;  %v2439_v35 = vcombine.low %v2301_v7, %v2301_v7 }
 0x13b   : > { %826 = vmatpush1.bf16.msra.mxu0 %v2319_v47  ;;  %865 = vmatpush1.bf16.msra.mxu1 %v1985_v17  ;;  %3133 = vst [vmem:[#allocation5_spill] sm:$0xff] %v2394_v43 }
 0x13c   : > { %866 = vmatprep.subr.bf16.mxu1 %v2369_v36  ;;  %827 = vmatprep.subr.bf16.mxu0 %v2337_v59  ;;  %v688_v8 = vpop.permute.xlu1 %687 }
 0x13d   : > { %v2383_v9 = vsel %vm289_vm0, %v686_v25, %v688_v8  ;;  %v690_v56 = vpop.permute.xlu0 %689 }
 0x13e   : > { %3132 = vst [vmem:[#allocation4_spill] sm:$0xff] %v2383_v9  ;;  %v2408_v1 = vsel %vm289_vm0, %v688_v8, %v690_v56 }
 0x13f   : > { %828 = vmatpush1.bf16.msra.mxu0 %v2329_v51  ;;  %867 = vmatpush1.bf16.msra.mxu1 %v2313_v45  ;;  %3135 = vst [vmem:[#allocation7_spill] sm:$0xff] %v2408_v1 }
 0x140   : > { %868 = vmatprep.subr.bf16.mxu1 %v2376_v39  ;;  %829 = vmatprep.subr.bf16.mxu0 %v2361_v5  ;;  %v672_v49 = vpop.permute.xlu1 %671 }
 0x141   : > { %v2401_v52 = vsel %vm289_vm0, %v670_v6, %v672_v49  ;;  %v2423_v12 = vpop.permute.xlu0 %673 }
 0x142   : > { %3134 = vst [vmem:[#allocation6_spill] sm:$0xff] %v2401_v52  ;;  %v2429_v21 = vsel %vm289_vm0, %v672_v49, %v2423_v12 }
 0x143   : > { %830 = vmatpush1.bf16.msra.mxu0 %v2349_v18  ;;  %869 = vmatpush1.bf16.msra.mxu1 %v2340_v60  ;;  %3137 = vst [vmem:[#allocation9_spill] sm:$0xff] %v2429_v21 }
 0x144   : > { %831 = vmatprep.subr.bf16.mxu0 %v1985_v17  ;;  %870 = vmatprep.subr.bf16.mxu1 %v2383_v9  ;;  %v656_v0 = vpop.permute.xlu1 %655 }
 0x145   : > { %v2419_v14 = vsel %vm289_vm0, %v654_v41, %v656_v0  ;;  %v658_v7 = vpop.permute.xlu0 %657 }
 0x146   : > { %3136 = vst [vmem:[#allocation8_spill] sm:$0xff] %v2419_v14  ;;  %v2459_v8 = vsel %vm289_vm0, %v656_v0, %v658_v7 }
 0x147   : > { %832 = vmatpush1.bf16.msra.mxu0 %v1991_v20  ;;  %871 = vmatpush1.bf16.msra.mxu1 %v2358_v28  ;;  %3138 = vst [vmem:[#allocation10_spill] sm:$0xff] %v2459_v8 }
 0x148   : > { %833 = vmatprep.subr.bf16.mxu0 %v2313_v45  ;;  %872 = vmatprep.subr.bf16.mxu1 %v2087_v50  ;;  %v2433_v25 = vpop.permute.xlu1 %691 }
 0x149   : > { %v2443_v6 = vsel %vm289_vm0, %v690_v56, %v2433_v25  ;;  %v694_v49 = vpop.permute.xlu0 %693 }
 0x14b   : > { %834 = vmatpush1.bf16.msra.mxu0 %v2322_v48  ;;  %873 = vmatpush1.bf16.msra.mxu1 %v2039_v40 }
 0x14c   : > { %874 = vmatprep.subr.bf16.mxu1 %v2394_v43  ;;  %835 = vmatprep.subr.bf16.mxu0 %v2340_v60  ;;  %v676_v41 = vpop.permute.xlu1 %675 }
 0x14d   : > { %v2468_v56 = vsel %vm289_vm0, %v2423_v12, %v676_v41  ;;  %v698_v7 = vpop.permute.xlu0 %697 }
 0x14e   : > { %3139 = vst [vmem:[#allocation11_spill] sm:$0xff] %v2468_v56 }
 0x14f   : > { %836 = vmatpush1.bf16.msra.mxu0 %v2337_v59  ;;  %875 = vmatpush1.bf16.msra.mxu1 %v2369_v36 }
 0x150   : > { %837 = vmatprep.subr.bf16.mxu0 %v2358_v28  ;;  %876 = vmatprep.subr.bf16.mxu1 %v2401_v52 }
 0x153   : > { %838 = vmatpush1.bf16.msra.mxu0 %v2361_v5  ;;  %877 = vmatpush1.bf16.msra.mxu1 %v2376_v39  ;;  %v702_v41 = vpop.permute.xlu0 %701 }
 0x154   : > { %878 = vmatprep.subr.bf16.mxu1 %v2408_v1  ;;  %839 = vmatprep.subr.bf16.mxu0 %v2039_v40 }
 0x157   : > { %840 = vmatpush1.bf16.msra.mxu0 %v1985_v17  ;;  %879 = vmatpush1.bf16.msra.mxu1 %v2383_v9 }
 0x158   : > { %841 = vmatprep.subr.bf16.mxu0 %v2369_v36  ;;  %880 = vmatprep.subr.bf16.mxu1 %v2103_v55 }
 0x15b   : > { %842 = vmatpush1.bf16.msra.mxu0 %v2313_v45  ;;  %881 = vmatpush1.bf16.msra.mxu1 %v2087_v50 }
 0x15c   : > { %882 = vmatprep.subr.bf16.mxu1 %v2419_v14  ;;  %843 = vmatprep.subr.bf16.mxu0 %v2376_v39 }
 0x15f   : > { %844 = vmatpush1.bf16.msra.mxu0 %v2340_v60  ;;  %883 = vmatpush1.bf16.msra.mxu1 %v2394_v43 }
 0x160   : > { %884 = vmatprep.subr.bf16.mxu1 %v2429_v21  ;;  %845 = vmatprep.subr.bf16.mxu0 %v2383_v9 }
 0x163   : > { %846 = vmatpush1.bf16.msra.mxu0 %v2358_v28  ;;  %885 = vmatpush1.bf16.msra.mxu1 %v2401_v52 }
 0x164   : > { %886 = vmatprep.subr.bf16.mxu1 %v2443_v6  ;;  %897 = vmatprep.subr.bf16.mxu0 %v2087_v50 }
 0x166   : > { %848 = vmatmul.mubr.bf16.vlgmr.msra.gmra.mrb[8].mxu0 %v2439_v35 }
 0x167   : > { %887 = vmatpush1.bf16.msra.mxu1 %v2408_v1  ;;  %898 = vmatpush1.bf16.msra.mxu0 %v2039_v40 }
 0x168   : > { %899 = vmatprep.subr.bf16.mxu0 %v2394_v43  ;;  %938 = vmatprep.subr.bf16.mxu1 %v2140_v63 }
 0x169   : > { %929 = vmatprep.mubr.bf16.mxu0 %v2308_v10 }
 0x16a   : > { %889 = vmatmul.mubr.bf16.vlgmr.msra.gmra.mrb[8].mxu1 %v2439_v35 }
 0x16b   : > { %900 = vmatpush1.bf16.msra.mxu0 %v2369_v36  ;;  %939 = vmatpush1.bf16.msra.mxu1 %v2103_v55 }
 0x16c   : > { %901 = vmatprep.subr.bf16.mxu0 %v2401_v52  ;;  %940 = vmatprep.subr.bf16.mxu1 %v2459_v8  ;;  %v696_v8 = vpop.permute.xlu1 %695 }
 0x16d   : > { %970 = vmatprep.mubr.bf16.mxu1 %v2308_v10  ;;  %v2476_v10 = vsel %vm289_vm0, %v2433_v25, %v694_v49  ;;  %v2487_v49 = vsel %vm289_vm0, %v696_v8, %v698_v7 }
 0x16e   : > { %3140 = vst [vmem:[#allocation12_spill] sm:$0xff] %v2476_v10  ;;  %3141 = vst [vmem:[#allocation13_spill] sm:$0xff] %v2487_v49 }
 0x16f   : > { %902 = vmatpush1.bf16.msra.mxu0 %v2376_v39  ;;  %941 = vmatpush1.bf16.msra.mxu1 %v2419_v14 }
 0x170   : > { %942 = vmatprep.subr.bf16.mxu1 %v2468_v56  ;;  %903 = vmatprep.subr.bf16.mxu0 %v2408_v1  ;;  %v700_v56 = vpop.permute.xlu1 %699 }
 0x171   : > { %v2497_v39 = vsel %vm289_vm0, %v700_v56, %v702_v41  ;;  %v2503_v7 = vsel %vm289_vm0, %v2423_v12, %v700_v56 }
 0x172   : > { %3143 = vst [vmem:[#allocation15_spill] sm:$0xff] %v2497_v39  ;;  %3144 = vst [vmem:[#allocation16_spill] sm:$0xff] %v2503_v7 }
 0x173   : > { %904 = vmatpush1.bf16.msra.mxu0 %v2383_v9  ;;  %943 = vmatpush1.bf16.msra.mxu1 %v2429_v21  ;;  %v706_v9 = vpop.permute.xlu0 %705 }
 0x174   : > { %944 = vmatprep.subr.bf16.mxu1 %v2476_v10  ;;  %905 = vmatprep.subr.bf16.mxu0 %v2103_v55  ;;  %v2492_v10 = vsel %vm289_vm0, %v656_v0, %v696_v8 }
 0x175   : > { %3142 = vst [vmem:[#allocation14_spill] sm:$0xff] %v2492_v10 }
 0x177   : > { %906 = vmatpush1.bf16.msra.mxu0 %v2087_v50  ;;  %945 = vmatpush1.bf16.msra.mxu1 %v2443_v6 }
 0x178   : > { %946 = vmatprep.subr.bf16.mxu1 %v2165_v4  ;;  %907 = vmatprep.subr.bf16.mxu0 %v2419_v14 }
 0x17b   : > { %908 = vmatpush1.bf16.msra.mxu0 %v2394_v43  ;;  %947 = vmatpush1.bf16.msra.mxu1 %v2140_v63  ;;  %v704_v43 = vpop.permute.xlu1 %703 }
 0x17c   : > { %909 = vmatprep.subr.bf16.mxu0 %v2429_v21  ;;  %948 = vmatprep.subr.bf16.mxu1 %v2487_v49  ;;  %v710_v49 = vpop.permute.xlu0 %709  ;;  %v2508_v0 = vsel %vm289_vm0, %v704_v43, %v706_v9  ;;  %v2514_v41 = vsel %vm289_vm0, %v2433_v25, %v704_v43 }
 0x17d   : > { %3145 = vst [vmem:[#allocation17_spill] sm:$0xff] %v2508_v0  ;;  %3146 = vst [vmem:[#allocation18_spill] sm:$0xff] %v2514_v41 }
 0x17f   : > { %910 = vmatpush1.bf16.msra.mxu0 %v2401_v52  ;;  %949 = vmatpush1.bf16.msra.mxu1 %v2492_v10 }
 0x180   : > { %911 = vmatprep.subr.bf16.mxu0 %v2443_v6  ;;  %950 = vmatprep.subr.bf16.mxu1 %v2497_v39  ;;  %v708_v39 = vpop.permute.xlu1 %707  ;;  %v714_v12 = vpop.permute.xlu0 %713 }
 0x181   : > { %v2523_v9 = vsel %vm289_vm0, %v708_v39, %v710_v49 }
 0x182   : > { %3147 = vst [vmem:[#allocation19_spill] sm:$0xff] %v2523_v9 }
 0x183   : > { %912 = vmatpush1.bf16.msra.mxu0 %v2408_v1  ;;  %951 = vmatpush1.bf16.msra.mxu1 %v2503_v7  ;;  %v2528_v1 = vsel %vm289_vm0, %v696_v8, %v708_v39 }
 0x184   : > { %913 = vmatprep.subr.bf16.mxu0 %v2140_v63  ;;  %952 = vmatprep.subr.bf16.mxu1 %v2508_v0  ;;  %v712_v0 = vpop.permute.xlu1 %711  ;;  %v718_v25 = vpop.permute.xlu0 %717  ;;  %3148 = vst [vmem:[#allocation20_spill] sm:$0xff] %v2528_v1 }
 0x185   : > { %v2538_v52 = vsel %vm289_vm0, %v700_v56, %v712_v0 }
 0x186   : > { %3150 = vst [vmem:[#allocation22_spill] sm:$0xff] %v2538_v52 }
 0x187   : > { %914 = vmatpush1.bf16.msra.mxu0 %v2103_v55  ;;  %953 = vmatpush1.bf16.msra.mxu1 %v2514_v41 }
 0x188   : > { %915 = vmatprep.subr.bf16.mxu0 %v2492_v10  ;;  %954 = vmatprep.subr.bf16.mxu1 %v2203_v2  ;;  %v716_v49 = vpop.permute.xlu1 %715 }
 0x189   : > { %v2543_v8 = vsel %vm289_vm0, %v716_v49, %v718_v25 }
 0x18a   : > { %3151 = vst [vmem:[#allocation23_spill] sm:$0xff] %v2543_v8 }
 0x18b   : > { %916 = vmatpush1.bf16.msra.mxu0 %v2419_v14  ;;  %955 = vmatpush1.bf16.msra.mxu1 %v2165_v4  ;;  %v2533_v14 = vsel %vm289_vm0, %v712_v0, %v714_v12 }
 0x18c   : > { %917 = vmatprep.subr.bf16.mxu0 %v2503_v7  ;;  %956 = vmatprep.subr.bf16.mxu1 %v2523_v9  ;;  %3149 = vst [vmem:[#allocation21_spill] sm:$0xff] %v2533_v14  ;;  %v722_v9 = vpop.permute.xlu0 %721  ;;  %v720_v12 = vpop.permute.xlu1 %719 }
 0x18d   : > { %v2557_v25 = vsel %vm289_vm0, %v720_v12, %v722_v9 }
 0x18e   : > { %3153 = vst [vmem:[#allocation25_spill] sm:$0xff] %v2557_v25 }
 0x18f   : > { %918 = vmatpush1.bf16.msra.mxu0 %v2429_v21  ;;  %957 = vmatpush1.bf16.msra.mxu1 %v2528_v1  ;;  %v2548_v21 = vsel %vm289_vm0, %v704_v43, %v716_v49  ;;  %v2562_v43 = vsel %vm289_vm0, %v708_v39, %v720_v12  ;;  %v2577_v39 = vld [vmem:[%s3085_s1 + $0x10] sm:$0xff] }
 0x190   : > { %919 = vmatprep.subr.bf16.mxu0 %v2514_v41  ;;  %958 = vmatprep.subr.bf16.mxu1 %v2533_v14  ;;  %3152 = vst [vmem:[#allocation24_spill] sm:$0xff] %v2548_v21  ;;  %v726_v56 = vpop.permute.xlu0 %725  ;;  %3154 = vst [vmem:[#allocation26_spill] sm:$0xff] %v2562_v43 }
 0x193   : > { %920 = vmatpush1.bf16.msra.mxu0 %v2443_v6  ;;  %959 = vmatpush1.bf16.msra.mxu1 %v2538_v52 }
 0x194   : > { %921 = vmatprep.subr.bf16.mxu0 %v2165_v4  ;;  %960 = vmatprep.subr.bf16.mxu1 %v2543_v8  ;;  %v724_v8 = vpop.permute.xlu1 %723 }
 0x195   : > { %v2567_v14 = vsel %vm289_vm0, %v724_v8, %v726_v56  ;;  %v2572_v9 = vsel %vm289_vm0, %v712_v0, %v724_v8  ;;  %v1709_v56 = vld [vmem:[%s1870_s13 + $0x4] ss:$304 sps:$4 sm:$0xff]   ;;  %v2588_v0 = vcombine.high %v2577_v39, %v2577_v39 }
 0x196   : > { %3155 = vst [vmem:[#allocation27_spill] sm:$0xff] %v2567_v14  ;;  %3156 = vst [vmem:[#allocation28_spill] sm:$0xff] %v2572_v9 }
 0x197   : > { %922 = vmatpush1.bf16.msra.mxu0 %v2140_v63  ;;  %961 = vmatpush1.bf16.msra.mxu1 %v2548_v21 }
 0x198   : > { %923 = vmatprep.subr.bf16.mxu0 %v2528_v1  ;;  %962 = vmatprep.subr.bf16.mxu1 %v2233_v27  ;;  %v730_v1 = vpop.permute.xlu0 %729 }
 0x19b   : > { %924 = vmatpush1.bf16.msra.mxu0 %v2492_v10  ;;  %963 = vmatpush1.bf16.msra.mxu1 %v2203_v2 }
 0x19c   : > { %925 = vmatprep.subr.bf16.mxu0 %v2538_v52  ;;  %964 = vmatprep.subr.bf16.mxu1 %v2557_v25  ;;  %v728_v25 = vpop.permute.xlu1 %727 }
 0x19d   : > { %v2582_v12 = vsel %vm289_vm0, %v728_v25, %v730_v1  ;;  %v2591_v8 = vsel %vm289_vm0, %v716_v49, %v728_v25  ;;  %v2598_v1 = vld [vmem:[%s1870_s13 + $0xc] ss:$304 sps:$4 sm:$0xff]   ;;  %v1712_v49 = vld [vmem:[%s1870_s13 + $0x8] ss:$304 sps:$4 sm:$0xff]  }
 0x19e   : > { %3157 = vst [vmem:[#allocation29_spill] sm:$0xff] %v2582_v12  ;;  %3158 = vst [vmem:[#allocation30_spill] sm:$0xff] %v2591_v8 }
 0x19f   : > { %926 = vmatpush1.bf16.msra.mxu0 %v2503_v7  ;;  %965 = vmatpush1.bf16.msra.mxu1 %v2562_v43 }
 0x1a0   : > { %927 = vmatprep.subr.bf16.mxu0 %v2548_v21  ;;  %966 = vmatprep.subr.bf16.mxu1 %v2567_v14 }
 0x1a3   : > { %928 = vmatpush1.bf16.msra.mxu0 %v2514_v41  ;;  %967 = vmatpush1.bf16.msra.mxu1 %v2572_v9  ;;  %v1710_v9 = vld [vmem:[%s1870_s13] ss:$304 sps:$4 sm:$0xff]  }
 0x1a4   : > { %968 = vmatprep.subr.bf16.mxu1 %v2582_v12  ;;  %1013 = vmatprep.subr.bf16.mxu0 %v1709_v56 }
 0x1a6   : > { %930 = vmatmul.mubr.bf16.vlgmr.msra.gmra.mrb[12].mxu0 %v2439_v35 }
 0x1a7   : > { %969 = vmatpush1.bf16.msra.mxu1 %v2591_v8  ;;  %1014 = vmatpush1.bf16.msra.mxu0 %v1710_v9  ;;  %v2615_v9 = vpop.permute.xlu0 %613 }
 0x1a8   : > { %1015 = vmatprep.subr.bf16.mxu0 %v1988_v19  ;;  %1054 = vmatprep.subr.bf16.mxu1 %v2598_v1 }
 0x1a9   : > { %1045 = vmatprep.mubr.bf16.mxu0 %v2588_v0 }
 0x1aa   : > { %971 = vmatmul.mubr.bf16.vlgmr.msra.gmra.mrb[12].mxu1 %v2439_v35  ;;  %v2613_v35 = vpop.permute.xlu1 %600 }
 0x1ab   : > { %1016 = vmatpush1.bf16.msra.mxu0 %v2001_v23  ;;  %1055 = vmatpush1.bf16.msra.mxu1 %v1712_v49 }
 0x1ac   : > { %1017 = vmatprep.subr.bf16.mxu0 %v2007_v26  ;;  %1056 = vmatprep.subr.bf16.mxu1 %v1985_v17 }
 0x1ad   : > { %1086 = vmatprep.mubr.bf16.mxu1 %v2588_v0 }
 0x1af   : > { %1018 = vmatpush1.bf16.msra.mxu0 %v2013_v29  ;;  %1057 = vmatpush1.bf16.msra.mxu1 %v1991_v20 }
 0x1b0   : > { %1019 = vmatprep.subr.bf16.mxu0 %v2027_v34  ;;  %1058 = vmatprep.subr.bf16.mxu1 %v2019_v31 }
 0x1b2   : > { %v509_v25 = vpop.f32.mrb[0].mxu1 }
 0x1b3   : > { %1020 = vmatpush1.bf16.msra.mxu0 %v2045_v42  ;;  %1059 = vmatpush1.bf16.msra.mxu1 %v2016_v30  ;;  %v511_v8 = vpop.f32.mrb[1].mxu1  ;;  %v605_v12 = vmul.f32 %v2613_v35, %v509_v25 }
 0x1b4   : > { %1060 = vmatprep.subr.bf16.mxu1 %v2034_v38  ;;  %1021 = vmatprep.subr.bf16.mxu0 %v1712_v49  ;;  %v513_v29 = vpop.f32.mrb[2].mxu1  ;;  %v606_v14 = vmul.f32 %v2613_v35, %v511_v8 }
 0x1b5   : > { %v468_v43 = vpop.f32.mrb[0].mxu0  ;;  %v514_v21 = vpop.f32.mrb[3].mxu1  ;;  %v618_v52 = vadd.f32 %v2615_v9, %v605_v12 }
 0x1b6   : > { %v470_v41 = vpop.f32.mrb[1].mxu0  ;;  %v603_v7 = vmul.f32 %v2613_v35, %v468_v43  ;;  %v619_v42 = vadd.f32 %v2615_v9, %v606_v14  ;;  %v1713_v21 = vld [vmem:[%s1870_s13 + $0x10] ss:$304 sps:$4 sm:$0xff]  }
 0x1b7   : > { %1022 = vmatpush1.bf16.msra.mxu0 %v1709_v56  ;;  %1061 = vmatpush1.bf16.msra.mxu1 %v2031_v37  ;;  %v472_v25 = vpop.f32.mrb[2].mxu0  ;;  %v604_v10 = vmul.f32 %v2613_v35, %v470_v41  ;;  %626 = vst [vmem:[%s2627_s15 + $0x10] sm:$0xff] %v618_v52 }
 0x1b8   : > { %1023 = vmatprep.subr.bf16.mxu0 %v1991_v20  ;;  %1062 = vmatprep.subr.bf16.mxu1 %v1713_v21  ;;  %v473_v43 = vpop.f32.mrb[3].mxu0  ;;  %v616_v14 = vadd.f32 %v2615_v9, %v603_v7  ;;  %627 = vst [vmem:[%s2627_s15 + $0x18] sm:$0xff] %v619_v42 }
 0x1b9   : > { %v617_v12 = vadd.f32 %v2615_v9, %v604_v10  ;;  %v3159_v43 = vld [vmem:[#allocation3_spill] sm:$0xff] }
 0x1ba   : > { %624 = vst [vmem:[%s2627_s15] sm:$0xff] %v616_v14 }
 0x1bb   : > { %1024 = vmatpush1.bf16.msra.mxu0 %v1988_v19  ;;  %1063 = vmatpush1.bf16.msra.mxu1 %v2598_v1  ;;  %625 = vst [vmem:[%s2627_s15 + $0x8] sm:$0xff] %v617_v12 }
 0x1bc   : > { %1025 = vmatprep.subr.bf16.mxu0 %v2016_v30  ;;  %1064 = vmatprep.subr.bf16.mxu1 %v2039_v40 }
 0x1bf   : > { %1026 = vmatpush1.bf16.msra.mxu0 %v2007_v26  ;;  %1065 = vmatpush1.bf16.msra.mxu1 %v1985_v17  ;;  %v2652_v26 = vld [vmem:[%s1870_s13 + $0x14] ss:$304 sps:$4 sm:$0xff]  }
 0x1c0   : > { %1066 = vmatprep.subr.bf16.mxu1 %v2052_v44  ;;  %1027 = vmatprep.subr.bf16.mxu0 %v2031_v37 }
 0x1c3   : > { %1028 = vmatpush1.bf16.msra.mxu0 %v2027_v34  ;;  %1067 = vmatpush1.bf16.msra.mxu1 %v2019_v31  ;;  %v2682_v34 = vcombine.low %v2577_v39, %v2577_v39 }
 0x1c4   : > { %1068 = vmatprep.subr.bf16.mxu1 %v2068_v46  ;;  %1029 = vmatprep.subr.bf16.mxu0 %v2598_v1 }
 0x1c7   : > { %1030 = vmatpush1.bf16.msra.mxu0 %v1712_v49  ;;  %1069 = vmatpush1.bf16.msra.mxu1 %v2034_v38  ;;  %v1717_v49 = vld [vmem:[%s1870_s13 + $0x20] ss:$304 sps:$4 sm:$0xff]  }
 0x1c8   : > { %1031 = vmatprep.subr.bf16.mxu0 %v1985_v17  ;;  %1070 = vmatprep.subr.bf16.mxu1 %v2652_v26 }
 0x1cb   : > { %1032 = vmatpush1.bf16.msra.mxu0 %v1991_v20  ;;  %1071 = vmatpush1.bf16.msra.mxu1 %v1713_v21 }
 0x1cc   : > { %1033 = vmatprep.subr.bf16.mxu0 %v2019_v31  ;;  %1072 = vmatprep.subr.bf16.mxu1 %v2087_v50 }
 0x1cf   : > { %1034 = vmatpush1.bf16.msra.mxu0 %v2016_v30  ;;  %1073 = vmatpush1.bf16.msra.mxu1 %v2039_v40  ;;  %v2669_v30 = vld [vmem:[%s1870_s13 + $0x18] ss:$304 sps:$4 sm:$0xff]  }
 0x1d0   : > { %1035 = vmatprep.subr.bf16.mxu0 %v2034_v38  ;;  %1074 = vmatprep.subr.bf16.mxu1 %v2093_v53 }
 0x1d3   : > { %1036 = vmatpush1.bf16.msra.mxu0 %v2031_v37  ;;  %1075 = vmatpush1.bf16.msra.mxu1 %v2052_v44 }
 0x1d4   : > { %1076 = vmatprep.subr.bf16.mxu1 %v2112_v57  ;;  %1037 = vmatprep.subr.bf16.mxu0 %v1713_v21 }
 0x1d7   : > { %1038 = vmatpush1.bf16.msra.mxu0 %v2598_v1  ;;  %1077 = vmatpush1.bf16.msra.mxu1 %v2068_v46 }
 0x1d8   : > { %1039 = vmatprep.subr.bf16.mxu0 %v2039_v40  ;;  %1078 = vmatprep.subr.bf16.mxu1 %v2669_v30 }
 0x1db   : > { %1040 = vmatpush1.bf16.msra.mxu0 %v1985_v17  ;;  %1079 = vmatpush1.bf16.msra.mxu1 %v2652_v26 }
 0x1dc   : > { %1041 = vmatprep.subr.bf16.mxu0 %v2052_v44  ;;  %1080 = vmatprep.subr.bf16.mxu1 %v2103_v55 }
 0x1df   : > { %1042 = vmatpush1.bf16.msra.mxu0 %v2019_v31  ;;  %1081 = vmatpush1.bf16.msra.mxu1 %v2087_v50  ;;  %v2692_v31 = vld [vmem:[%s1870_s13 + $0x1c] ss:$304 sps:$4 sm:$0xff]  }
 0x1e0   : > { %1043 = vmatprep.subr.bf16.mxu0 %v2068_v46  ;;  %1082 = vmatprep.subr.bf16.mxu1 %v2126_v61 }
 0x1e3   : > { %1044 = vmatpush1.bf16.msra.mxu0 %v2034_v38  ;;  %1083 = vmatpush1.bf16.msra.mxu1 %v2093_v53 }
 0x1e4   : > { %1084 = vmatprep.subr.bf16.mxu1 %v2117_v58  ;;  %1095 = vmatprep.subr.bf16.mxu0 %v2652_v26 }
 0x1e6   : > { %1046 = vmatmul.mubr.bf16.vlgmr.msra.gmra.mrb[16].mxu0 %v2682_v34 }
 0x1e7   : > { %1085 = vmatpush1.bf16.msra.mxu1 %v2112_v57  ;;  %1096 = vmatpush1.bf16.msra.mxu0 %v1713_v21 }
 0x1e8   : > { %1097 = vmatprep.subr.bf16.mxu0 %v2087_v50  ;;  %1136 = vmatprep.subr.bf16.mxu1 %v2692_v31 }
 0x1e9   : > { %1127 = vmatprep.mubr.bf16.mxu0 %v2588_v0 }
 0x1ea   : > { %1087 = vmatmul.mubr.bf16.vlgmr.msra.gmra.mrb[16].mxu1 %v2682_v34 }
 0x1eb   : > { %1098 = vmatpush1.bf16.msra.mxu0 %v2039_v40  ;;  %1137 = vmatpush1.bf16.msra.mxu1 %v2669_v30 }
 0x1ec   : > { %1099 = vmatprep.subr.bf16.mxu0 %v2093_v53  ;;  %1138 = vmatprep.subr.bf16.mxu1 %v2140_v63 }
 0x1ed   : > { %1168 = vmatprep.mubr.bf16.mxu1 %v2588_v0 }
 0x1ef   : > { %1100 = vmatpush1.bf16.msra.mxu0 %v2052_v44  ;;  %1139 = vmatpush1.bf16.msra.mxu1 %v2103_v55 }
 0x1f0   : > { %1101 = vmatprep.subr.bf16.mxu0 %v2112_v57  ;;  %1140 = vmatprep.subr.bf16.mxu1 %v2131_v62 }
 0x1f2   : > { %v591_v37 = vpop.f32.mrb[4].mxu1 }
 0x1f3   : > { %1102 = vmatpush1.bf16.msra.mxu0 %v2068_v46  ;;  %1141 = vmatpush1.bf16.msra.mxu1 %v2126_v61  ;;  %v609_v38 = vmul.f32 %v2613_v35, %v591_v37  ;;  %v593_v52 = vpop.f32.mrb[5].mxu1 }
 0x1f4   : > { %1142 = vmatprep.subr.bf16.mxu1 %v2149_v3  ;;  %1103 = vmatprep.subr.bf16.mxu0 %v2669_v30  ;;  %v610_v44 = vmul.f32 %v2613_v35, %v593_v52  ;;  %v595_v10 = vpop.f32.mrb[6].mxu1 }
 0x1f5   : > { %v550_v7 = vpop.f32.mrb[4].mxu0  ;;  %v622_v41 = vadd.f32 %v2615_v9, %v609_v38  ;;  %v596_v39 = vpop.f32.mrb[7].mxu1 }
 0x1f6   : > { %v607_v46 = vmul.f32 %v2613_v35, %v550_v7  ;;  %v552_v56 = vpop.f32.mrb[5].mxu0  ;;  %v623_v0 = vadd.f32 %v2615_v9, %v610_v44 }
 0x1f7   : > { %1104 = vmatpush1.bf16.msra.mxu0 %v2652_v26  ;;  %1143 = vmatpush1.bf16.msra.mxu1 %v2117_v58  ;;  %630 = vst [vmem:[%s2627_s15 + $0x30] sm:$0xff] %v622_v41  ;;  %v608_v8 = vmul.f32 %v2613_v35, %v552_v56  ;;  %v554_v1 = vpop.f32.mrb[6].mxu0  ;;  %v3170_v41 = vld [vmem:[#allocation14_spill] sm:$0xff]  ;;  %v3171_v56 = vld [vmem:[#allocation15_spill] sm:$0xff] }
 0x1f8   : > { %1105 = vmatprep.subr.bf16.mxu0 %v2103_v55  ;;  %1144 = vmatprep.subr.bf16.mxu1 %v1717_v49  ;;  %v620_v29 = vadd.f32 %v2615_v9, %v607_v46  ;;  %631 = vst [vmem:[%s2627_s15 + $0x38] sm:$0xff] %v623_v0  ;;  %v555_v42 = vpop.f32.mrb[7].mxu0  ;;  %v3173_v1 = vld [vmem:[#allocation17_spill] sm:$0xff] }
 0x1f9   : > { %v621_v25 = vadd.f32 %v2615_v9, %v608_v8  ;;  %v3172_v8 = vld [vmem:[#allocation16_spill] sm:$0xff] }
 0x1fa   : > { %628 = vst [vmem:[%s2627_s15 + $0x20] sm:$0xff] %v620_v29  ;;  %v3175_v29 = vld [vmem:[#allocation19_spill] sm:$0xff]  ;;  %v3176_v42 = vld [vmem:[#allocation20_spill] sm:$0xff] }
 0x1fb   : > { %1106 = vmatpush1.bf16.msra.mxu0 %v2087_v50  ;;  %1145 = vmatpush1.bf16.msra.mxu1 %v2692_v31  ;;  %629 = vst [vmem:[%s2627_s15 + $0x28] sm:$0xff] %v621_v25  ;;  %v3178_v25 = vld [vmem:[#allocation22_spill] sm:$0xff] }
 0x1fc   : > { %1107 = vmatprep.subr.bf16.mxu0 %v2126_v61  ;;  %1146 = vmatprep.subr.bf16.mxu1 %v2165_v4 }
 0x1ff   : > { %1108 = vmatpush1.bf16.msra.mxu0 %v2093_v53  ;;  %1147 = vmatpush1.bf16.msra.mxu1 %v2140_v63  ;;  %v1718_v53 = vld [vmem:[%s1870_s13 + $0x24] ss:$304 sps:$4 sm:$0xff]  }
 0x200   : > { %1109 = vmatprep.subr.bf16.mxu0 %v2117_v58  ;;  %1148 = vmatprep.subr.bf16.mxu1 %v2180_v15 }
 0x203   : > { %1110 = vmatpush1.bf16.msra.mxu0 %v2112_v57  ;;  %1149 = vmatpush1.bf16.msra.mxu1 %v2131_v62  ;;  %v1719_v57 = vld [vmem:[%s1870_s13 + $0x28] ss:$304 sps:$4 sm:$0xff]   ;;  %s1615_s13 = sshll.u32 (%p1851_p5), %s1758_s17, 3 }
 0x204   : > { %1150 = vmatprep.subr.bf16.mxu1 %v2191_v16  ;;  %1111 = vmatprep.subr.bf16.mxu0 %v2692_v31  ;;  %s1409_s26 = sadd.s32 (%p1851_p5), %s1620_s27, %s1615_s13 }
 0x205   : > { %s1616_s28 = sshll.u32 (%p1851_p5), %s1409_s26, 3 }
 0x206   : > { %s3009_s18 = scalar_lea.vmem (%p1851_p5), %s3088_s4, %s1616_s28 }
 0x207   : > { %1112 = vmatpush1.bf16.msra.mxu0 %v2669_v30  ;;  %1151 = vmatpush1.bf16.msra.mxu1 %v2149_v3 }
 0x208   : > { %1113 = vmatprep.subr.bf16.mxu0 %v2140_v63  ;;  %1152 = vmatprep.subr.bf16.mxu1 %v1718_v53 }
 0x20b   : > { %1114 = vmatpush1.bf16.msra.mxu0 %v2103_v55  ;;  %1153 = vmatpush1.bf16.msra.mxu1 %v1717_v49 }
 0x20c   : > { %1115 = vmatprep.subr.bf16.mxu0 %v2131_v62  ;;  %1154 = vmatprep.subr.bf16.mxu1 %v2203_v2 }
 0x20f   : > { %1116 = vmatpush1.bf16.msra.mxu0 %v2126_v61  ;;  %1155 = vmatpush1.bf16.msra.mxu1 %v2165_v4 }
 0x210   : > { %1117 = vmatprep.subr.bf16.mxu0 %v2149_v3  ;;  %1156 = vmatprep.subr.bf16.mxu1 %v2213_v13 }
 0x213   : > { %1118 = vmatpush1.bf16.msra.mxu0 %v2117_v58  ;;  %1157 = vmatpush1.bf16.msra.mxu1 %v2180_v15  ;;  %v2766_v58 = vld [vmem:[%s3085_s1 + $0x18] sm:$0xff] }
 0x214   : > { %1158 = vmatprep.subr.bf16.mxu1 %v2223_v24  ;;  %1119 = vmatprep.subr.bf16.mxu0 %v1717_v49  ;;  %v2774_v61 = vcombine.high %v2766_v58, %v2766_v58  ;;  %v3174_v49 = vld [vmem:[#allocation18_spill] sm:$0xff] }
 0x217   : > { %1120 = vmatpush1.bf16.msra.mxu0 %v2692_v31  ;;  %1159 = vmatpush1.bf16.msra.mxu1 %v2191_v16 }
 0x218   : > { %1121 = vmatprep.subr.bf16.mxu0 %v2165_v4  ;;  %1160 = vmatprep.subr.bf16.mxu1 %v1719_v57  ;;  %v3180_v57 = vld [vmem:[#allocation24_spill] sm:$0xff] }
 0x21b   : > { %1122 = vmatpush1.bf16.msra.mxu0 %v2140_v63  ;;  %1161 = vmatpush1.bf16.msra.mxu1 %v1718_v53  ;;  %v3179_v53 = vld [vmem:[#allocation23_spill] sm:$0xff] }
 0x21c   : > { %1123 = vmatprep.subr.bf16.mxu0 %v2180_v15  ;;  %1162 = vmatprep.subr.bf16.mxu1 %v2233_v27 }
 0x21f   : > { %1124 = vmatpush1.bf16.msra.mxu0 %v2131_v62  ;;  %1163 = vmatpush1.bf16.msra.mxu1 %v2203_v2 }
 0x220   : > { %1125 = vmatprep.subr.bf16.mxu0 %v2191_v16  ;;  %1164 = vmatprep.subr.bf16.mxu1 %v2243_v32 }
 0x223   : > { %1126 = vmatpush1.bf16.msra.mxu0 %v2149_v3  ;;  %1165 = vmatpush1.bf16.msra.mxu1 %v2213_v13 }
 0x224   : > { %1166 = vmatprep.subr.bf16.mxu1 %v2253_v33  ;;  %1211 = vmatprep.subr.bf16.mxu0 %v1988_v19 }
 0x226   : > { %1128 = vmatmul.mubr.bf16.vlgmr.msra.gmra.mrb[20].mxu0 %v2682_v34 }
 0x227   : > { %1167 = vmatpush1.bf16.msra.mxu1 %v2223_v24  ;;  %1212 = vmatpush1.bf16.msra.mxu0 %v2001_v23 }
 0x228   : > { %1213 = vmatprep.subr.bf16.mxu0 %v2319_v47  ;;  %1252 = vmatprep.subr.bf16.mxu1 %v1985_v17 }
 0x229   : > { %1243 = vmatprep.mubr.bf16.mxu0 %v2774_v61 }
 0x22a   : > { %1169 = vmatmul.mubr.bf16.vlgmr.msra.gmra.mrb[20].mxu1 %v2682_v34  ;;  %v3169_v34 = vld [vmem:[#allocation13_spill] sm:$0xff] }
 0x22b   : > { %1214 = vmatpush1.bf16.msra.mxu0 %v2332_v54  ;;  %1253 = vmatpush1.bf16.msra.mxu1 %v1991_v20 }
 0x22c   : > { %1215 = vmatprep.subr.bf16.mxu0 %v2329_v51  ;;  %1254 = vmatprep.subr.bf16.mxu1 %v2313_v45 }
 0x22d   : > { %1284 = vmatprep.mubr.bf16.mxu1 %v2774_v61 }
 0x22f   : > { %1216 = vmatpush1.bf16.msra.mxu0 %v2345_v11  ;;  %1255 = vmatpush1.bf16.msra.mxu1 %v2322_v48 }
 0x230   : > { %1217 = vmatprep.subr.bf16.mxu0 %v2349_v18  ;;  %1256 = vmatprep.subr.bf16.mxu1 %v2340_v60 }
 0x233   : > { %1218 = vmatpush1.bf16.msra.mxu0 %v2352_v22  ;;  %1257 = vmatpush1.bf16.msra.mxu1 %v2337_v59 }
 0x234   : > { %1219 = vmatprep.subr.bf16.mxu0 %v1991_v20  ;;  %1258 = vmatprep.subr.bf16.mxu1 %v2358_v28 }
 0x237   : > { %1220 = vmatpush1.bf16.msra.mxu0 %v1988_v19  ;;  %1259 = vmatpush1.bf16.msra.mxu1 %v2361_v5 }
 0x238   : > { %1221 = vmatprep.subr.bf16.mxu0 %v2322_v48  ;;  %1260 = vmatprep.subr.bf16.mxu1 %v2039_v40 }
 0x239   : > { %v849_v23 = vpop.f32.mrb[8].mxu0 }
 0x23a   : > { %v979_v62 = vmul.f32 %v849_v23, %v2613_v35  ;;  %v851_v3 = vpop.f32.mrb[9].mxu0 }
 0x23b   : > { %1222 = vmatpush1.bf16.msra.mxu0 %v2319_v47  ;;  %1261 = vmatpush1.bf16.msra.mxu1 %v1985_v17  ;;  %v980_v15 = vmul.f32 %v851_v3, %v2613_v35  ;;  %v853_v16 = vpop.f32.mrb[10].mxu0 }
 0x23c   : > { %v987_v19 = vadd.f32 %v979_v62, %v2615_v9  ;;  %1223 = vmatprep.subr.bf16.mxu0 %v2337_v59  ;;  %1262 = vmatprep.subr.bf16.mxu1 %v2369_v36  ;;  %v854_v13 = vpop.f32.mrb[11].mxu0 }
 0x23d   : > { %v988_v24 = vadd.f32 %v980_v15, %v2615_v9  ;;  %v890_v32 = vpop.f32.mrb[8].mxu1 }
 0x23e   : > { %1584 = vst [vmem:[%s2627_s15 + $0x40] sm:$0xff] %v987_v19  ;;  %v981_v33 = vmul.f32 %v890_v32, %v2613_v35  ;;  %v892_v47 = vpop.f32.mrb[9].mxu1 }
 0x23f   : > { %1585 = vst [vmem:[%s2627_s15 + $0x48] sm:$0xff] %v988_v24  ;;  %v982_v54 = vmul.f32 %v892_v47, %v2613_v35  ;;  %v894_v11 = vpop.f32.mrb[10].mxu1  ;;  %1224 = vmatpush1.bf16.msra.mxu0 %v2329_v51  ;;  %1263 = vmatpush1.bf16.msra.mxu1 %v2313_v45  ;;  %v3160_v51 = vld [vmem:[#allocation4_spill] sm:$0xff] }
 0x240   : > { %v989_v22 = vadd.f32 %v981_v33, %v2615_v9  ;;  %v895_v21 = vpop.f32.mrb[11].mxu1  ;;  %1225 = vmatprep.subr.bf16.mxu0 %v2361_v5  ;;  %1264 = vmatprep.subr.bf16.mxu1 %v3159_v43 }
 0x241   : > { %v990_v14 = vadd.f32 %v982_v54, %v2615_v9 }
 0x242   : > { %1586 = vst [vmem:[%s2627_s15 + $0x50] sm:$0xff] %v989_v22 }
 0x243   : > { %1587 = vst [vmem:[%s2627_s15 + $0x58] sm:$0xff] %v990_v14  ;;  %1226 = vmatpush1.bf16.msra.mxu0 %v2349_v18  ;;  %1265 = vmatpush1.bf16.msra.mxu1 %v2340_v60  ;;  %v3161_v18 = vld [vmem:[#allocation5_spill] sm:$0xff] }
 0x244   : > { %1227 = vmatprep.subr.bf16.mxu0 %v1985_v17  ;;  %1266 = vmatprep.subr.bf16.mxu1 %v3160_v51 }
 0x247   : > { %1228 = vmatpush1.bf16.msra.mxu0 %v1991_v20  ;;  %1267 = vmatpush1.bf16.msra.mxu1 %v2358_v28  ;;  %v3162_v20 = vld [vmem:[#allocation6_spill] sm:$0xff] }
 0x248   : > { %1229 = vmatprep.subr.bf16.mxu0 %v2313_v45  ;;  %1268 = vmatprep.subr.bf16.mxu1 %v2087_v50 }
 0x24b   : > { %1230 = vmatpush1.bf16.msra.mxu0 %v2322_v48  ;;  %1269 = vmatpush1.bf16.msra.mxu1 %v2039_v40  ;;  %v3163_v48 = vld [vmem:[#allocation7_spill] sm:$0xff] }
 0x24c   : > { %1231 = vmatprep.subr.bf16.mxu0 %v2340_v60  ;;  %1270 = vmatprep.subr.bf16.mxu1 %v3161_v18 }
 0x24f   : > { %1232 = vmatpush1.bf16.msra.mxu0 %v2337_v59  ;;  %1271 = vmatpush1.bf16.msra.mxu1 %v2369_v36  ;;  %v3164_v59 = vld [vmem:[#allocation8_spill] sm:$0xff] }
 0x250   : > { %1233 = vmatprep.subr.bf16.mxu0 %v2358_v28  ;;  %1272 = vmatprep.subr.bf16.mxu1 %v3162_v20 }
 0x253   : > { %1234 = vmatpush1.bf16.msra.mxu0 %v2361_v5  ;;  %1273 = vmatpush1.bf16.msra.mxu1 %v3159_v43  ;;  %v2854_v5 = vcombine.low %v2766_v58, %v2766_v58  ;;  %v3185_v58 = vld [vmem:[#allocation29_spill] sm:$0xff] }
 0x254   : > { %1235 = vmatprep.subr.bf16.mxu0 %v2039_v40  ;;  %1274 = vmatprep.subr.bf16.mxu1 %v3163_v48 }
 0x257   : > { %1236 = vmatpush1.bf16.msra.mxu0 %v1985_v17  ;;  %1275 = vmatpush1.bf16.msra.mxu1 %v3160_v51  ;;  %v3165_v17 = vld [vmem:[#allocation9_spill] sm:$0xff] }
 0x258   : > { %1237 = vmatprep.subr.bf16.mxu0 %v2369_v36  ;;  %1276 = vmatprep.subr.bf16.mxu1 %v2103_v55 }
 0x25b   : > { %1238 = vmatpush1.bf16.msra.mxu0 %v2313_v45  ;;  %1277 = vmatpush1.bf16.msra.mxu1 %v2087_v50  ;;  %v3166_v45 = vld [vmem:[#allocation10_spill] sm:$0xff] }
 0x25c   : > { %1239 = vmatprep.subr.bf16.mxu0 %v3159_v43  ;;  %1278 = vmatprep.subr.bf16.mxu1 %v3164_v59 }
 0x25f   : > { %1240 = vmatpush1.bf16.msra.mxu0 %v2340_v60  ;;  %1279 = vmatpush1.bf16.msra.mxu1 %v3161_v18  ;;  %v3168_v60 = vld [vmem:[#allocation12_spill] sm:$0xff] }
 0x260   : > { %1241 = vmatprep.subr.bf16.mxu0 %v3160_v51  ;;  %1280 = vmatprep.subr.bf16.mxu1 %v3165_v17 }
 0x263   : > { %1242 = vmatpush1.bf16.msra.mxu0 %v2358_v28  ;;  %1281 = vmatpush1.bf16.msra.mxu1 %v3162_v20 }
 0x264   : > { %1282 = vmatprep.subr.bf16.mxu1 %v2443_v6  ;;  %1293 = vmatprep.subr.bf16.mxu0 %v2087_v50 }
 0x266   : > { %1244 = vmatmul.mubr.bf16.vlgmr.msra.gmra.mrb[24].mxu0 %v2854_v5 }
 0x267   : > { %1283 = vmatpush1.bf16.msra.mxu1 %v3163_v48  ;;  %1294 = vmatpush1.bf16.msra.mxu0 %v2039_v40  ;;  %v3167_v40 = vld [vmem:[#allocation11_spill] sm:$0xff] }
 0x268   : > { %1295 = vmatprep.subr.bf16.mxu0 %v3161_v18  ;;  %1334 = vmatprep.subr.bf16.mxu1 %v2140_v63 }
 0x269   : > { %1325 = vmatprep.mubr.bf16.mxu0 %v2774_v61 }
 0x26a   : > { %1285 = vmatmul.mubr.bf16.vlgmr.msra.gmra.mrb[24].mxu1 %v2854_v5 }
 0x26b   : > { %1296 = vmatpush1.bf16.msra.mxu0 %v2369_v36  ;;  %1335 = vmatpush1.bf16.msra.mxu1 %v2103_v55 }
 0x26c   : > { %1297 = vmatprep.subr.bf16.mxu0 %v3162_v20  ;;  %1336 = vmatprep.subr.bf16.mxu1 %v3166_v45 }
 0x26d   : > { %1366 = vmatprep.mubr.bf16.mxu1 %v2774_v61 }
 0x26f   : > { %1298 = vmatpush1.bf16.msra.mxu0 %v3159_v43  ;;  %1337 = vmatpush1.bf16.msra.mxu1 %v3164_v59 }
 0x270   : > { %1299 = vmatprep.subr.bf16.mxu0 %v3163_v48  ;;  %1338 = vmatprep.subr.bf16.mxu1 %v3167_v40 }
 0x273   : > { %1300 = vmatpush1.bf16.msra.mxu0 %v3160_v51  ;;  %1339 = vmatpush1.bf16.msra.mxu1 %v3165_v17 }
 0x274   : > { %1301 = vmatprep.subr.bf16.mxu0 %v2103_v55  ;;  %1340 = vmatprep.subr.bf16.mxu1 %v3168_v60 }
 0x277   : > { %1302 = vmatpush1.bf16.msra.mxu0 %v2087_v50  ;;  %1341 = vmatpush1.bf16.msra.mxu1 %v2443_v6 }
 0x278   : > { %1303 = vmatprep.subr.bf16.mxu0 %v3164_v59  ;;  %1342 = vmatprep.subr.bf16.mxu1 %v2165_v4 }
 0x279   : > { %v931_v28 = vpop.f32.mrb[12].mxu0 }
 0x27a   : > { %v983_v36 = vmul.f32 %v931_v28, %v2613_v35  ;;  %v933_v12 = vpop.f32.mrb[13].mxu0 }
 0x27b   : > { %1304 = vmatpush1.bf16.msra.mxu0 %v3161_v18  ;;  %1343 = vmatpush1.bf16.msra.mxu1 %v2140_v63  ;;  %v984_v26 = vmul.f32 %v933_v12, %v2613_v35  ;;  %v935_v30 = vpop.f32.mrb[14].mxu0 }
 0x27c   : > { %v991_v50 = vadd.f32 %v983_v36, %v2615_v9  ;;  %1305 = vmatprep.subr.bf16.mxu0 %v3165_v17  ;;  %1344 = vmatprep.subr.bf16.mxu1 %v3169_v34  ;;  %v936_v31 = vpop.f32.mrb[15].mxu0 }
 0x27d   : > { %v992_v37 = vadd.f32 %v984_v26, %v2615_v9  ;;  %v972_v38 = vpop.f32.mrb[12].mxu1 }
 0x27e   : > { %1588 = vst [vmem:[%s2627_s15 + $0x60] sm:$0xff] %v991_v50  ;;  %v985_v52 = vmul.f32 %v972_v38, %v2613_v35  ;;  %v974_v44 = vpop.f32.mrb[13].mxu1 }
 0x27f   : > { %1589 = vst [vmem:[%s2627_s15 + $0x68] sm:$0xff] %v992_v37  ;;  %v986_v10 = vmul.f32 %v974_v44, %v2613_v35  ;;  %v976_v7 = vpop.f32.mrb[14].mxu1  ;;  %1306 = vmatpush1.bf16.msra.mxu0 %v3162_v20  ;;  %1345 = vmatpush1.bf16.msra.mxu1 %v3170_v41 }
 0x280   : > { %v993_v39 = vadd.f32 %v985_v52, %v2615_v9  ;;  %v977_v46 = vpop.f32.mrb[15].mxu1  ;;  %1307 = vmatprep.subr.bf16.mxu0 %v2443_v6  ;;  %1346 = vmatprep.subr.bf16.mxu1 %v3171_v56 }
 0x281   : > { %v994_v0 = vadd.f32 %v986_v10, %v2615_v9 }
 0x282   : > { %1590 = vst [vmem:[%s2627_s15 + $0x70] sm:$0xff] %v993_v39 }
 0x283   : > { %1591 = vst [vmem:[%s2627_s15 + $0x78] sm:$0xff] %v994_v0  ;;  %1308 = vmatpush1.bf16.msra.mxu0 %v3163_v48  ;;  %1347 = vmatpush1.bf16.msra.mxu1 %v3172_v8 }
 0x284   : > { %1309 = vmatprep.subr.bf16.mxu0 %v2140_v63  ;;  %1348 = vmatprep.subr.bf16.mxu1 %v3173_v1 }
 0x287   : > { %1310 = vmatpush1.bf16.msra.mxu0 %v2103_v55  ;;  %1349 = vmatpush1.bf16.msra.mxu1 %v3174_v49  ;;  %v3177_v55 = vld [vmem:[#allocation21_spill] sm:$0xff] }
 0x288   : > { %1311 = vmatprep.subr.bf16.mxu0 %v3170_v41  ;;  %1350 = vmatprep.subr.bf16.mxu1 %v2203_v2 }
 0x28b   : > { %1312 = vmatpush1.bf16.msra.mxu0 %v3164_v59  ;;  %1351 = vmatpush1.bf16.msra.mxu1 %v2165_v4 }
 0x28c   : > { %1313 = vmatprep.subr.bf16.mxu0 %v3172_v8  ;;  %1352 = vmatprep.subr.bf16.mxu1 %v3175_v29 }
 0x28f   : > { %1314 = vmatpush1.bf16.msra.mxu0 %v3165_v17  ;;  %1353 = vmatpush1.bf16.msra.mxu1 %v3176_v42 }
 0x290   : > { %1315 = vmatprep.subr.bf16.mxu0 %v3174_v49  ;;  %1354 = vmatprep.subr.bf16.mxu1 %v3177_v55 }
 0x293   : > { %1316 = vmatpush1.bf16.msra.mxu0 %v2443_v6  ;;  %1355 = vmatpush1.bf16.msra.mxu1 %v3178_v25  ;;  %v3181_v6 = vld [vmem:[#allocation25_spill] sm:$0xff] }
 0x294   : > { %1317 = vmatprep.subr.bf16.mxu0 %v2165_v4  ;;  %1356 = vmatprep.subr.bf16.mxu1 %v3179_v53  ;;  %v3182_v4 = vld [vmem:[#allocation26_spill] sm:$0xff] }
 0x297   : > { %1318 = vmatpush1.bf16.msra.mxu0 %v2140_v63  ;;  %1357 = vmatpush1.bf16.msra.mxu1 %v3180_v57  ;;  %v3183_v63 = vld [vmem:[#allocation27_spill] sm:$0xff] }
 0x298   : > { %1319 = vmatprep.subr.bf16.mxu0 %v3176_v42  ;;  %1358 = vmatprep.subr.bf16.mxu1 %v2233_v27  ;;  %v3184_v27 = vld [vmem:[#allocation28_spill] sm:$0xff] }
 0x29b   : > { %1320 = vmatpush1.bf16.msra.mxu0 %v3170_v41  ;;  %1359 = vmatpush1.bf16.msra.mxu1 %v2203_v2  ;;  %v3186_v2 = vld [vmem:[#allocation30_spill] sm:$0xff] }
 0x29c   : > { %1321 = vmatprep.subr.bf16.mxu0 %v3178_v25  ;;  %1360 = vmatprep.subr.bf16.mxu1 %v3181_v6 }
 0x29f   : > { %1322 = vmatpush1.bf16.msra.mxu0 %v3172_v8  ;;  %1361 = vmatpush1.bf16.msra.mxu1 %v3182_v4 }
 0x2a0   : > { %1323 = vmatprep.subr.bf16.mxu0 %v3180_v57  ;;  %1362 = vmatprep.subr.bf16.mxu1 %v3183_v63 }
 0x2a3   : > { %1324 = vmatpush1.bf16.msra.mxu0 %v3174_v49  ;;  %1363 = vmatpush1.bf16.msra.mxu1 %v3184_v27 }
 0x2a4   : > { %1364 = vmatprep.subr.bf16.mxu1 %v3185_v58 }
 0x2a6   : > { %1326 = vmatmul.mubr.bf16.vlgmr.msra.gmra.mrb[28].mxu0 %v2854_v5 }
 0x2a7   : > { %1365 = vmatpush1.bf16.msra.mxu1 %v3186_v2 }
 0x2aa   : > { %1367 = vmatmul.mubr.bf16.vlgmr.msra.gmra.mrb[28].mxu1 %v2854_v5 }
 0x2b9   : > { %v1047_v61 = vpop.f32.mrb[16].mxu0 }
 0x2ba   : > { %v1177_v23 = vmul.f32 %v1047_v61, %v2613_v35  ;;  %v1049_v62 = vpop.f32.mrb[17].mxu0 }
 0x2bb   : > { %v1178_v3 = vmul.f32 %v1049_v62, %v2613_v35  ;;  %v1051_v15 = vpop.f32.mrb[18].mxu0  ;;  %v1428_v62 = vld [vmem:[%s2627_s15 + $0x10] sm:$0xff] (%p1851_p5) }
 0x2bc   : > { %v1185_v16 = vadd.f32 %v1177_v23, %v2615_v9  ;;  %v1052_v19 = vpop.f32.mrb[19].mxu0  ;;  %v1432_v15 = vld [vmem:[%s2627_s15 + $0x20] sm:$0xff] (%p1851_p5)  ;;  %1429 = vst [vmem:[%s3009_s18 + $0x10] sm:$0xff] (%p1851_p5), %v1428_v62 }
 0x2bd   : > { %v1186_v13 = vadd.f32 %v1178_v3, %v2615_v9  ;;  %v1088_v24 = vpop.f32.mrb[16].mxu1  ;;  %v1430_v3 = vld [vmem:[%s2627_s15 + $0x18] sm:$0xff] (%p1851_p5)  ;;  %v1436_v19 = vld [vmem:[%s2627_s15 + $0x30] sm:$0xff] (%p1851_p5)  ;;  %1433 = vst [vmem:[%s3009_s18 + $0x20] sm:$0xff] (%p1851_p5), %v1432_v15 }
 0x2be   : > { %1595 = vst [vmem:[%s2627_s15 + $0x80] sm:$0xff] %v1185_v16  ;;  %v1179_v32 = vmul.f32 %v1088_v24, %v2613_v35  ;;  %v1090_v33 = vpop.f32.mrb[17].mxu1  ;;  %v1434_v16 = vld [vmem:[%s2627_s15 + $0x28] sm:$0xff] (%p1851_p5)  ;;  %v1440_v24 = vld [vmem:[%s2627_s15 + $0x40] sm:$0xff] (%p1851_p5)  ;;  %1431 = vst [vmem:[%s3009_s18 + $0x18] sm:$0xff] (%p1851_p5), %v1430_v3 }
 0x2bf   : > { %1596 = vst [vmem:[%s2627_s15 + $0x88] sm:$0xff] %v1186_v13  ;;  %v1180_v47 = vmul.f32 %v1090_v33, %v2613_v35  ;;  %v1092_v54 = vpop.f32.mrb[18].mxu1  ;;  %v1438_v13 = vld [vmem:[%s2627_s15 + $0x38] sm:$0xff] (%p1851_p5)  ;;  %v1444_v33 = vld [vmem:[%s2627_s15 + $0x50] sm:$0xff] (%p1851_p5)  ;;  %1435 = vst [vmem:[%s3009_s18 + $0x28] sm:$0xff] (%p1851_p5), %v1434_v16 }
 0x2c0   : > { %v1187_v11 = vadd.f32 %v1179_v32, %v2615_v9  ;;  %v1093_v22 = vpop.f32.mrb[19].mxu1  ;;  %v1442_v32 = vld [vmem:[%s2627_s15 + $0x48] sm:$0xff] (%p1851_p5)  ;;  %v1448_v54 = vld [vmem:[%s2627_s15 + $0x60] sm:$0xff] (%p1851_p5)  ;;  %1437 = vst [vmem:[%s3009_s18 + $0x30] sm:$0xff] (%p1851_p5), %v1436_v19  ;;  %1439 = vst [vmem:[%s3009_s18 + $0x38] sm:$0xff] (%p1851_p5), %v1438_v13 }
 0x2c1   : > { %v1188_v21 = vadd.f32 %v1180_v47, %v2615_v9  ;;  %v1446_v47 = vld [vmem:[%s2627_s15 + $0x58] sm:$0xff] (%p1851_p5)  ;;  %v1452_v22 = vld [vmem:[%s2627_s15 + $0x70] sm:$0xff] (%p1851_p5)  ;;  %1441 = vst [vmem:[%s3009_s18 + $0x240] sm:$0xff] (%p1851_p5), %v1440_v24  ;;  %1443 = vst [vmem:[%s3009_s18 + $0x248] sm:$0xff] (%p1851_p5), %v1442_v32 }
 0x2c2   : > { %1597 = vst [vmem:[%s2627_s15 + $0x90] sm:$0xff] %v1187_v11  ;;  %v1450_v11 = vld [vmem:[%s2627_s15 + $0x68] sm:$0xff] (%p1851_p5)  ;;  %1445 = vst [vmem:[%s3009_s18 + $0x250] sm:$0xff] (%p1851_p5), %v1444_v33 }
 0x2c3   : > { %1598 = vst [vmem:[%s2627_s15 + $0x98] sm:$0xff] %v1188_v21  ;;  %1447 = vst [vmem:[%s3009_s18 + $0x258] sm:$0xff] (%p1851_p5), %v1446_v47  ;;  %v1454_v21 = vld [vmem:[%s2627_s15 + $0x78] sm:$0xff] (%p1851_p5) }
 0x2c4   : > { %1449 = vst [vmem:[%s3009_s18 + $0x260] sm:$0xff] (%p1851_p5), %v1448_v54  ;;  %1451 = vst [vmem:[%s3009_s18 + $0x268] sm:$0xff] (%p1851_p5), %v1450_v11 }
 0x2c5   : > { %1453 = vst [vmem:[%s3009_s18 + $0x270] sm:$0xff] (%p1851_p5), %v1452_v22  ;;  %1455 = vst [vmem:[%s3009_s18 + $0x278] sm:$0xff] (%p1851_p5), %v1454_v21 }
 0x2f9   : > { %v1129_v43 = vpop.f32.mrb[20].mxu0 }
 0x2fa   : > { %v1181_v14 = vmul.f32 %v1129_v43, %v2613_v35  ;;  %v1131_v51 = vpop.f32.mrb[21].mxu0  ;;  %v1456_v43 = vld [vmem:[%s2627_s15 + $0x80] sm:$0xff] (%p1851_p5) }
 0x2fb   : > { %v1182_v18 = vmul.f32 %v1131_v51, %v2613_v35  ;;  %v1133_v20 = vpop.f32.mrb[22].mxu0  ;;  %1457 = vst [vmem:[%s3009_s18 + $0x480] sm:$0xff] (%p1851_p5), %v1456_v43  ;;  %v1460_v51 = vld [vmem:[%s2627_s15 + $0x90] sm:$0xff] (%p1851_p5) }
 0x2fc   : > { %v1189_v48 = vadd.f32 %v1181_v14, %v2615_v9  ;;  %v1134_v59 = vpop.f32.mrb[23].mxu0  ;;  %v1458_v14 = vld [vmem:[%s2627_s15 + $0x88] sm:$0xff] (%p1851_p5)  ;;  %1461 = vst [vmem:[%s3009_s18 + $0x490] sm:$0xff] (%p1851_p5), %v1460_v51 }
 0x2fd   : > { %v1190_v17 = vadd.f32 %v1182_v18, %v2615_v9  ;;  %v1170_v5 = vpop.f32.mrb[20].mxu1  ;;  %1459 = vst [vmem:[%s3009_s18 + $0x488] sm:$0xff] (%p1851_p5), %v1458_v14  ;;  %v1462_v18 = vld [vmem:[%s2627_s15 + $0x98] sm:$0xff] (%p1851_p5) }
 0x2fe   : > { %1599 = vst [vmem:[%s2627_s15 + $0xa0] sm:$0xff] %v1189_v48  ;;  %v1183_v45 = vmul.f32 %v1170_v5, %v2613_v35  ;;  %v1172_v40 = vpop.f32.mrb[21].mxu1  ;;  %1463 = vst [vmem:[%s3009_s18 + $0x498] sm:$0xff] (%p1851_p5), %v1462_v18 }
 0x2ff   : > { %1600 = vst [vmem:[%s2627_s15 + $0xa8] sm:$0xff] %v1190_v17  ;;  %v1184_v60 = vmul.f32 %v1172_v40, %v2613_v35  ;;  %v1174_v28 = vpop.f32.mrb[22].mxu1 }
 0x300   : > { %v1191_v36 = vadd.f32 %v1183_v45, %v2615_v9  ;;  %v1175_v12 = vpop.f32.mrb[23].mxu1 }
 0x301   : > { %v1192_v26 = vadd.f32 %v1184_v60, %v2615_v9 }
 0x302   : > { %1601 = vst [vmem:[%s2627_s15 + $0xb0] sm:$0xff] %v1191_v36 }
 0x303   : > { %1602 = vst [vmem:[%s2627_s15 + $0xb8] sm:$0xff] %v1192_v26 }
 0x305   : > { %v1464_v20 = vld [vmem:[%s2627_s15 + $0xa0] sm:$0xff] (%p1851_p5) }
 0x306   : > { %1465 = vst [vmem:[%s3009_s18 + $0x4a0] sm:$0xff] (%p1851_p5), %v1464_v20  ;;  %v1466_v48 = vld [vmem:[%s2627_s15 + $0xa8] sm:$0xff] (%p1851_p5) }
 0x307   : > { %1467 = vst [vmem:[%s3009_s18 + $0x4a8] sm:$0xff] (%p1851_p5), %v1466_v48 }
 0x309   : > { %v1468_v59 = vld [vmem:[%s2627_s15 + $0xb0] sm:$0xff] (%p1851_p5) }
 0x30a   : > { %v1470_v17 = vld [vmem:[%s2627_s15 + $0xb8] sm:$0xff] (%p1851_p5)  ;;  %1469 = vst [vmem:[%s3009_s18 + $0x4b0] sm:$0xff] (%p1851_p5), %v1468_v59 }
 0x30b   : > { %1471 = vst [vmem:[%s3009_s18 + $0x4b8] sm:$0xff] (%p1851_p5), %v1470_v17 }
 0x339   : > { %v1245_v30 = vpop.f32.mrb[24].mxu0 }
 0x33a   : > { %v1375_v50 = vmul.f32 %v1245_v30, %v2613_v35  ;;  %v1247_v34 = vpop.f32.mrb[25].mxu0 }
 0x33b   : > { %v1376_v31 = vmul.f32 %v1247_v34, %v2613_v35  ;;  %v1249_v37 = vpop.f32.mrb[26].mxu0 }
 0x33c   : > { %v1383_v38 = vadd.f32 %v1375_v50, %v2615_v9  ;;  %v1250_v52 = vpop.f32.mrb[27].mxu0 }
 0x33d   : > { %v1384_v44 = vadd.f32 %v1376_v31, %v2615_v9  ;;  %v1286_v10 = vpop.f32.mrb[24].mxu1 }
 0x33e   : > { %1606 = vst [vmem:[%s2627_s15 + $0xc0] sm:$0xff] %v1383_v38  ;;  %v1377_v7 = vmul.f32 %v1286_v10, %v2613_v35  ;;  %v1288_v41 = vpop.f32.mrb[25].mxu1 }
 0x33f   : > { %1607 = vst [vmem:[%s2627_s15 + $0xc8] sm:$0xff] %v1384_v44  ;;  %v1378_v39 = vmul.f32 %v1288_v41, %v2613_v35  ;;  %v1290_v46 = vpop.f32.mrb[26].mxu1 }
 0x340   : > { %v1385_v56 = vadd.f32 %v1377_v7, %v2615_v9  ;;  %v1291_v0 = vpop.f32.mrb[27].mxu1 }
 0x341   : > { %v1386_v8 = vadd.f32 %v1378_v39, %v2615_v9 }
 0x342   : > { %1608 = vst [vmem:[%s2627_s15 + $0xd0] sm:$0xff] %v1385_v56 }
 0x343   : > { %1609 = vst [vmem:[%s2627_s15 + $0xd8] sm:$0xff] %v1386_v8 }
 0x345   : > { %v1472_v5 = vld [vmem:[%s2627_s15 + $0xc0] sm:$0xff] (%p1851_p5) }
 0x346   : > { %v1474_v45 = vld [vmem:[%s2627_s15 + $0xc8] sm:$0xff] (%p1851_p5)  ;;  %1473 = vst [vmem:[%s3009_s18 + $0x6c0] sm:$0xff] (%p1851_p5), %v1472_v5 }
 0x347   : > { %1475 = vst [vmem:[%s3009_s18 + $0x6c8] sm:$0xff] (%p1851_p5), %v1474_v45 }
 0x349   : > { %v1476_v40 = vld [vmem:[%s2627_s15 + $0xd0] sm:$0xff] (%p1851_p5) }
 0x34a   : > { %1477 = vst [vmem:[%s3009_s18 + $0x6d0] sm:$0xff] (%p1851_p5), %v1476_v40  ;;  %v1478_v60 = vld [vmem:[%s2627_s15 + $0xd8] sm:$0xff] (%p1851_p5) }
 0x34b   : > { %1479 = vst [vmem:[%s3009_s18 + $0x6d8] sm:$0xff] (%p1851_p5), %v1478_v60 }
 0x379   : > { %v1327_v1 = vpop.f32.mrb[28].mxu0 }
 0x37a   : > { %v1379_v49 = vmul.f32 %v1327_v1, %v2613_v35  ;;  %v1329_v29 = vpop.f32.mrb[29].mxu0 }
 0x37b   : > { %v1380_v42 = vmul.f32 %v1329_v29, %v2613_v35  ;;  %v1331_v55 = vpop.f32.mrb[30].mxu0 }
 0x37c   : > { %v1387_v25 = vadd.f32 %v1379_v49, %v2615_v9  ;;  %v1332_v53 = vpop.f32.mrb[31].mxu0 }
 0x37d   : > { %v1388_v57 = vadd.f32 %v1380_v42, %v2615_v9  ;;  %v1368_v6 = vpop.f32.mrb[28].mxu1  ;;  %1406 = sbr.rel (!%p1851_p5) target bundleno = 908 (0x38c), region = 40 }
 0x37e   : > { %1610 = vst [vmem:[%s2627_s15 + $0xe0] sm:$0xff] %v1387_v25  ;;  %v1381_v4 = vmul.f32 %v1368_v6, %v2613_v35  ;;  %v1370_v63 = vpop.f32.mrb[29].mxu1 }
 0x37f   : > { %1611 = vst [vmem:[%s2627_s15 + $0xe8] sm:$0xff] %v1388_v57  ;;  %v1382_v27 = vmul.f32 %v1370_v63, %v2613_v35  ;;  %v1372_v58 = vpop.f32.mrb[30].mxu1  ;;  %v1424_v35 = vld [vmem:[%s2627_s15] sm:$0xff] (%p1851_p5) }
 0x380   : > { %v1389_v2 = vadd.f32 %v1381_v4, %v2615_v9  ;;  %v1373_v61 = vpop.f32.mrb[31].mxu1  ;;  %1425 = vst [vmem:[%s3009_s18] sm:$0xff] (%p1851_p5), %v1424_v35 }
 0x381   : > { %v1390_v23 = vadd.f32 %v1382_v27, %v2615_v9  ;;  %v1426_v9 = vld [vmem:[%s2627_s15 + $0x8] sm:$0xff] (%p1851_p5) }
 0x382   : > { %1612 = vst [vmem:[%s2627_s15 + $0xf0] sm:$0xff] %v1389_v2  ;;  %1427 = vst [vmem:[%s3009_s18 + $0x8] sm:$0xff] (%p1851_p5), %v1426_v9 }
 0x383   : > { %1613 = vst [vmem:[%s2627_s15 + $0xf8] sm:$0xff] %v1390_v23 }
 0x385   : > { %v1480_v28 = vld [vmem:[%s2627_s15 + $0xe0] sm:$0xff] }
 0x386   : > { %v1482_v36 = vld [vmem:[%s2627_s15 + $0xe8] sm:$0xff]  ;;  %1481 = vst [vmem:[%s3009_s18 + $0x6e0] sm:$0xff] %v1480_v28 }
 0x387   : > { %1483 = vst [vmem:[%s3009_s18 + $0x6e8] sm:$0xff] %v1482_v36 }
 0x389   : > { %v1484_v12 = vld [vmem:[%s2627_s15 + $0xf0] sm:$0xff] }
 0x38a   : > { %v1486_v26 = vld [vmem:[%s2627_s15 + $0xf8] sm:$0xff]  ;;  %1485 = vst [vmem:[%s3009_s18 + $0x6f0] sm:$0xff] %v1484_v12 }
 0x38b   : > { %1487 = vst [vmem:[%s3009_s18 + $0x6f8] sm:$0xff] %v1486_v26 }
 0x38c PF: > { %s14_s21 = sadd.s32 1, %s1774_s21   ;;  %s3187_s15 = smov %s1754_s16 }
 0x38d   : > { %p11_p10 = scmp.ge.s32.totalorder %s14_s21, 20   ;;  %s3188_s16 = smov %s1862_s30 }
 0x38e   : > { %s3189_s17 = smov %s1766_s19  ;;  %s3190_s18 = smov %s1770_s20 }
 0x38f   : > { %s3191_s19 = smov %s3194_s22  ;;  %s3192_s20 = smov %s3198_s23 }
 0x390   :  { %13 = sbr.rel (!%p11_p10) target bundleno = 4 (0x4), region = 96 }

</bundles_post_ra>
